<compile_context>
chip_gen: v6e
topology: v6e:2x2x1
jax: 0.10.0
libtpu: 0.0.40
codegen_flags: <defaults>
</compile_context>

<pallas_src>
import functools
import math

import jax
import jax.numpy as jnp
from jax import lax
from jax.experimental import pallas as pl
from jax.experimental.pallas import tpu as pltpu


# ----------------------------------------------------------------------------
# Fused 4-layer kernel.
#
# Per layer l (spatial oh x ow, wb = ow+1, mp = oh*wb-1 "expanded" rows):
#   acc[m] = ELU( b_l + sum_{t=(bi,bj)} X_l[m + bi*wb + bj] @ W_l[t] )
# where X_l is the layer's s2d(2)-flattened input ((oh+1)*(ow+1), 4*Cin),
# and expanded row m = oh_idx*wb + ow_idx (rows with ow_idx == ow are phantom
# and never consumed downstream).  Layers 1..3 then rebuild the next layer's
# s2d-flat input in scratch via stride-2 row reads; layer 4 writes the 2x2
# spatial output rows (channels along lanes).
# ----------------------------------------------------------------------------
def _fused_encoder_kernel(x_ref, w1_ref, b1_ref, w2_ref, b2_ref, w3_ref, b3_ref,
                          w4_ref, b4_ref, o_ref,
                          y1_ref, x2_ref, y2_ref, x3_ref, y3_ref, x4_ref,
                          *, spatial, chans, block_b):
    w_refs = (w1_ref, w2_ref, w3_ref, w4_ref)
    b_refs = (b1_ref, b2_ref, b3_ref, b4_ref)
    y_refs = (y1_ref, y2_ref, y3_ref)          # layer-l ELU output scratch
    xnext_refs = (x2_ref, x3_ref, x4_ref)      # next layer's s2d-flat input

    for s in range(block_b):                   # static unroll over batch block
        for layer in range(4):
            oh, ow = spatial[layer]
            wb = ow + 1
            mp = oh * wb - 1                   # expanded rows; max tap read = R-1
            cout = chans[layer + 1]

            def tap(off, _layer=layer, _mp=mp, _s=s):
                if _layer == 0:
                    return x_ref[_s, off:off + _mp, :]
                return xnext_refs[_layer - 1][off:off + _mp, :]

            w_l = w_refs[layer]
            acc = jnp.dot(tap(0), w_l[0], preferred_element_type=jnp.float32)
            acc = acc + jnp.dot(tap(1), w_l[1], preferred_element_type=jnp.float32)
            acc = acc + jnp.dot(tap(wb), w_l[2], preferred_element_type=jnp.float32)
            acc = acc + jnp.dot(tap(wb + 1), w_l[3],
                                preferred_element_type=jnp.float32)
            acc = acc + b_refs[layer][...]                       # (mp,C)+(1,C)
            # ELU(alpha=1): exp(x)-1 (1 EUP push); min() keeps the unselected
            # branch finite so no inf/nan lanes are ever produced.
            acc = jnp.where(acc > 0.0, acc,
                            jnp.exp(jnp.minimum(acc, 0.0)) - 1.0)

            if layer < 3:
                # Stash the layer output, then rebuild the next layer's
                # s2d-flat input:  X'[i*wbn+j, t*C:(t+1)*C] = Y[(2i+di)*wb+2j+dj]
                y_refs[layer][...] = acc
                ohn, own = spatial[layer + 1]
                hbn, wbn = ohn + 1, own + 1
                for di in (0, 1):
                    for dj in (0, 1):
                        t = 2 * di + dj
                        for i in range(hbn):
                            src = y_refs[layer][
                                pl.ds((2 * i + di) * wb + dj, wbn, stride=2), :]
                            xnext_refs[layer][i * wbn:(i + 1) * wbn,
                                              t * cout:(t + 1) * cout] = src
            else:
                # Final layer: drop phantom-column rows, spatial-major rows,
                # channels along lanes.
                for r in range(oh):
                    o_ref[s, r * ow:(r + 1) * ow, :] = acc[r * wb:r * wb + ow, :]


# ----------------------------------------------------------------------------
# One-time wrapper glue (runs once per forward, not per layer).
# ----------------------------------------------------------------------------
def _space_to_depth_flat(x_nchw, oh, ow):
    """(N, C, H, W) -> (N, (oh+1)*(ow+1), 4*C), channel order (2*dh+dw)*C + c."""
    n, c, _, _ = x_nchw.shape
    hb, wb = oh + 1, ow + 1
    x = x_nchw[:, :, :2 * hb, :2 * wb]
    x = x.reshape(n, c, hb, 2, wb, 2)
    x = jnp.transpose(x, (0, 2, 4, 3, 5, 1))      # (N, hb, wb, dh, dw, C)
    return x.reshape(n, hb * wb, 4 * c)


def preprocess_params(raw_params):
    """Conv2d (OC, IC, 4, 4) weights -> (4, 4*IC, OC) tap matrices matching the
    space-to-depth channel order; bias -> (1, OC).  One-time re-layout."""
    out = []
    for (w, b) in raw_params:
        oc, ic, kh, kw = w.shape
        assert (kh, kw) == (4, 4)
        taps = []
        for i in (0, 1):
            for j in (0, 1):
                sub = w[:, :, 2 * i:2 * i + 2, 2 * j:2 * j + 2]   # (OC,IC,dh,dw)
                sub = jnp.transpose(sub, (2, 3, 1, 0))            # (dh,dw,IC,OC)
                taps.append(sub.reshape(4 * ic, oc))
        out.append((jnp.stack(taps, axis=0), b.reshape(1, oc)))
    return out


# ----------------------------------------------------------------------------
# ConvEncoder forward: flatten_batch -> fused 4x[conv+ELU] -> Flatten -> unflatten.
# ----------------------------------------------------------------------------
def conv_encoder_forward(x, params, *, block_b=1):
    bd = x.shape[:-3]
    cin, h, w = x.shape[-3:]
    xf = x.reshape((-1, cin, h, w))
    n = xf.shape[0]
    assert n % block_b == 0, (n, block_b)

    spatial = []
    hh, ww = h, w
    for _ in range(4):
        assert hh >= 4 and ww >= 4, "input too small for 4 stride-2 4x4 convs"
        oh, ow = (hh - 4) // 2 + 1, (ww - 4) // 2 + 1
        spatial.append((oh, ow))
        hh, ww = oh, ow
    spatial = tuple(spatial)

    chans = (cin,) + tuple(int(wt.shape[-1]) for (wt, _) in params)

    oh1, ow1 = spatial[0]
    x1 = _space_to_depth_flat(xf, oh1, ow1)       # (N, R1, 4*Cin)
    r1, k1 = x1.shape[1], x1.shape[2]

    oh4, ow4 = spatial[3]
    s_out, c4 = oh4 * ow4, chans[4]

    in_specs = [pl.BlockSpec((block_b, r1, k1), lambda i: (i, 0, 0))]
    flat_inputs = [x1]
    for (wt, b2) in params:                       # weights stay VMEM-resident
        in_specs.append(pl.BlockSpec(wt.shape, lambda i: (0, 0, 0)))
        in_specs.append(pl.BlockSpec(b2.shape, lambda i: (0, 0)))
        flat_inputs.append(wt)
        flat_inputs.append(b2)

    scratch_shapes = []
    for layer in range(3):
        oh, ow = spatial[layer]
        mp = oh * (ow + 1) - 1
        scratch_shapes.append(pltpu.VMEM((mp, chans[layer + 1]), jnp.float32))
        ohn, own = spatial[layer + 1]
        rn = (ohn + 1) * (own + 1)
        scratch_shapes.append(pltpu.VMEM((rn, 4 * chans[layer + 1]), jnp.float32))

    kernel = functools.partial(_fused_encoder_kernel, spatial=spatial,
                               chans=chans, block_b=block_b)

    out = pl.pallas_call(
        kernel,
        out_shape=jax.ShapeDtypeStruct((n, s_out, c4), jnp.float32),
        grid=(n // block_b,),
        in_specs=in_specs,
        out_specs=pl.BlockSpec((block_b, s_out, c4), lambda i: (i, 0, 0)),
        scratch_shapes=scratch_shapes,
        compiler_params=pltpu.CompilerParams(
            dimension_semantics=("parallel",)),
    )(*flat_inputs)

    # nn.Flatten flattens NCHW as (C, H, W): channel-major reorder of the tiny
    # (N, oh4*ow4, C4) kernel output, once for the whole forward.
    y = jnp.transpose(out, (0, 2, 1)).reshape(n, c4 * s_out)
    return y.reshape(bd + (y.shape[-1],))


# ----------------------------------------------------------------------------
# Deterministic params (PyTorch Conv2d default-style uniform bounds).
# ----------------------------------------------------------------------------
def init_params(key, in_channels, cnn_depth):
    d = cnn_depth
    chans = [in_channels, d, 2 * d, 4 * d, 8 * d]
    params = []
    for i in range(4):
        key, k1, k2 = jax.random.split(key, 3)
        ic, oc = chans[i], chans[i + 1]
        bound = 1.0 / math.sqrt(ic * 4 * 4)
        wgt = jax.random.uniform(k1, (oc, ic, 4, 4), jnp.float32, -bound, bound)
        bia = jax.random.uniform(k2, (oc,), jnp.float32, -bound, bound)
        params.append((wgt, bia))
    return params


# ----------------------------------------------------------------------------
# Pure-JAX reference (XLA conv) for the correctness check.
# ----------------------------------------------------------------------------
def reference_forward(x, raw_params):
    bd = x.shape[:-3]
    h = x.reshape((-1,) + x.shape[-3:])
    for (w, b) in raw_params:
        h = lax.conv_general_dilated(
            h, w, (2, 2), "VALID",
            dimension_numbers=("NCHW", "OIHW", "NCHW"),
            precision=lax.Precision.HIGHEST)
        h = jax.nn.elu(h + b[None, :, None, None])
    y = h.reshape(h.shape[0], -1)
    return y.reshape(bd + (y.shape[-1],))


if __name__ == "__main__":
    key = jax.random.PRNGKey(0)
    kx, kp = jax.random.split(key)

    in_channels, cnn_depth = 3, 8      # out_dim = cnn_depth * 32 = 256
    x = jax.random.normal(kx, (2, in_channels, 64, 64), jnp.float32)
    raw_params = init_params(kp, in_channels, cnn_depth)
    params = preprocess_params(raw_params)       # one-time weight re-layout

    fwd = jax.jit(conv_encoder_forward)          # block_b=1 -> grid=(2,), both v7x TCs busy
    y = jax.block_until_ready(fwd(x, params))
    y_ref = jax.block_until_ready(reference_forward(x, raw_params))

    assert y.shape == (2, cnn_depth * 32), y.shape
    err = float(jnp.max(jnp.abs(y - y_ref)))
    assert jnp.allclose(y, y_ref, atol=1e-4, rtol=1e-4), err
    print("KERNEL_OK")
</pallas_src>

<mosaic_0001>
module attributes {stable_mosaic.version = 11 : i64} {
  func.func @_fused_encoder_kernel(%arg0: i32, %arg1: memref<1x1024x12xf32, #tpu.memory_space<vmem>>, %arg2: memref<4x12x8xf32, #tpu.memory_space<vmem>>, %arg3: memref<1x8xf32, #tpu.memory_space<vmem>>, %arg4: memref<4x32x16xf32, #tpu.memory_space<vmem>>, %arg5: memref<1x16xf32, #tpu.memory_space<vmem>>, %arg6: memref<4x64x32xf32, #tpu.memory_space<vmem>>, %arg7: memref<1x32xf32, #tpu.memory_space<vmem>>, %arg8: memref<4x128x64xf32, #tpu.memory_space<vmem>>, %arg9: memref<1x64xf32, #tpu.memory_space<vmem>>, %arg10: memref<1x4x64xf32, #tpu.memory_space<vmem>>, %arg11: memref<991x8xf32, #tpu.memory_space<vmem>>, %arg12: memref<225x32xf32, #tpu.memory_space<vmem>>, %arg13: memref<209x16xf32, #tpu.memory_space<vmem>>, %arg14: memref<49x64xf32, #tpu.memory_space<vmem>>, %arg15: memref<41x32xf32, #tpu.memory_space<vmem>>, %arg16: memref<9x128xf32, #tpu.memory_space<vmem>>) attributes {dimension_semantics = [#tpu.dimension_semantics<parallel>], iteration_bounds = array<i64: 2>, scalar_prefetch = 0 : i64, scratch_operands = 6 : i64, tpu.core_type = #tpu.core_type<tc>, window_params = [{transform_indices = @transform_0, window_bounds = array<i64: 1, 1024, 12>}, {pipeline_mode = #tpu.pipeline_mode<synchronous>, transform_indices = @transform_1, window_bounds = array<i64: 4, 12, 8>}, {pipeline_mode = #tpu.pipeline_mode<synchronous>, transform_indices = @transform_2, window_bounds = array<i64: 1, 8>}, {pipeline_mode = #tpu.pipeline_mode<synchronous>, transform_indices = @transform_3, window_bounds = array<i64: 4, 32, 16>}, {pipeline_mode = #tpu.pipeline_mode<synchronous>, transform_indices = @transform_4, window_bounds = array<i64: 1, 16>}, {pipeline_mode = #tpu.pipeline_mode<synchronous>, transform_indices = @transform_5, window_bounds = array<i64: 4, 64, 32>}, {pipeline_mode = #tpu.pipeline_mode<synchronous>, transform_indices = @transform_6, window_bounds = array<i64: 1, 32>}, {pipeline_mode = #tpu.pipeline_mode<synchronous>, transform_indices = @transform_7, window_bounds = array<i64: 4, 128, 64>}, {pipeline_mode = #tpu.pipeline_mode<synchronous>, transform_indices = @transform_8, window_bounds = array<i64: 1, 64>}, {transform_indices = @transform_9, window_bounds = array<i64: 1, 4, 64>}]} {
    %c0 = arith.constant 0 : index
    %c0_0 = arith.constant 0 : index
    %c0_1 = arith.constant 0 : index
    %0 = vector.load %arg1[%c0, %c0_0, %c0_1] : memref<1x1024x12xf32, #tpu.memory_space<vmem>>, vector<1x991x12xf32>
    %1 = vector.shape_cast %0 : vector<1x991x12xf32> to vector<991x12xf32>
    %c0_2 = arith.constant 0 : index
    %c0_3 = arith.constant 0 : index
    %c0_4 = arith.constant 0 : index
    %2 = vector.load %arg2[%c0_2, %c0_3, %c0_4] : memref<4x12x8xf32, #tpu.memory_space<vmem>>, vector<1x12x8xf32>
    %3 = vector.shape_cast %2 : vector<1x12x8xf32> to vector<12x8xf32>
    %cst = arith.constant dense<0.000000e+00> : vector<991x8xf32>
    %4 = tpu.matmul %1, %3, %cst {dimension_numbers = #tpu.dot_dimension_numbers<[1], [0], [0], [1], [0, 0, 1, 1], [], []>} : vector<991x12xf32>, vector<12x8xf32>, vector<991x8xf32> -> vector<991x8xf32>
    %c0_5 = arith.constant 0 : index
    %c1 = arith.constant 1 : index
    %c0_6 = arith.constant 0 : index
    %5 = vector.load %arg1[%c0_5, %c1, %c0_6] : memref<1x1024x12xf32, #tpu.memory_space<vmem>>, vector<1x991x12xf32>
    %6 = vector.shape_cast %5 : vector<1x991x12xf32> to vector<991x12xf32>
    %c1_7 = arith.constant 1 : index
    %c0_8 = arith.constant 0 : index
    %c0_9 = arith.constant 0 : index
    %7 = vector.load %arg2[%c1_7, %c0_8, %c0_9] : memref<4x12x8xf32, #tpu.memory_space<vmem>>, vector<1x12x8xf32>
    %8 = vector.shape_cast %7 : vector<1x12x8xf32> to vector<12x8xf32>
    %cst_10 = arith.constant dense<0.000000e+00> : vector<991x8xf32>
    %9 = tpu.matmul %6, %8, %cst_10 {dimension_numbers = #tpu.dot_dimension_numbers<[1], [0], [0], [1], [0, 0, 1, 1], [], []>} : vector<991x12xf32>, vector<12x8xf32>, vector<991x8xf32> -> vector<991x8xf32>
    %10 = arith.addf %4, %9 : vector<991x8xf32>
    %c0_11 = arith.constant 0 : index
    %c32 = arith.constant 32 : index
    %c0_12 = arith.constant 0 : index
    %11 = vector.load %arg1[%c0_11, %c32, %c0_12] : memref<1x1024x12xf32, #tpu.memory_space<vmem>>, vector<1x991x12xf32>
    %12 = vector.shape_cast %11 : vector<1x991x12xf32> to vector<991x12xf32>
    %c2 = arith.constant 2 : index
    %c0_13 = arith.constant 0 : index
    %c0_14 = arith.constant 0 : index
    %13 = vector.load %arg2[%c2, %c0_13, %c0_14] : memref<4x12x8xf32, #tpu.memory_space<vmem>>, vector<1x12x8xf32>
    %14 = vector.shape_cast %13 : vector<1x12x8xf32> to vector<12x8xf32>
    %cst_15 = arith.constant dense<0.000000e+00> : vector<991x8xf32>
    %15 = tpu.matmul %12, %14, %cst_15 {dimension_numbers = #tpu.dot_dimension_numbers<[1], [0], [0], [1], [0, 0, 1, 1], [], []>} : vector<991x12xf32>, vector<12x8xf32>, vector<991x8xf32> -> vector<991x8xf32>
    %16 = arith.addf %10, %15 : vector<991x8xf32>
    %c0_16 = arith.constant 0 : index
    %c33 = arith.constant 33 : index
    %c0_17 = arith.constant 0 : index
    %17 = vector.load %arg1[%c0_16, %c33, %c0_17] : memref<1x1024x12xf32, #tpu.memory_space<vmem>>, vector<1x991x12xf32>
    %18 = vector.shape_cast %17 : vector<1x991x12xf32> to vector<991x12xf32>
    %c3 = arith.constant 3 : index
    %c0_18 = arith.constant 0 : index
    %c0_19 = arith.constant 0 : index
    %19 = vector.load %arg2[%c3, %c0_18, %c0_19] : memref<4x12x8xf32, #tpu.memory_space<vmem>>, vector<1x12x8xf32>
    %20 = vector.shape_cast %19 : vector<1x12x8xf32> to vector<12x8xf32>
    %cst_20 = arith.constant dense<0.000000e+00> : vector<991x8xf32>
    %21 = tpu.matmul %18, %20, %cst_20 {dimension_numbers = #tpu.dot_dimension_numbers<[1], [0], [0], [1], [0, 0, 1, 1], [], []>} : vector<991x12xf32>, vector<12x8xf32>, vector<991x8xf32> -> vector<991x8xf32>
    %22 = arith.addf %16, %21 : vector<991x8xf32>
    %c0_21 = arith.constant 0 : index
    %c0_22 = arith.constant 0 : index
    %23 = vector.load %arg3[%c0_21, %c0_22] : memref<1x8xf32, #tpu.memory_space<vmem>>, vector<1x8xf32>
    %24 = vector.broadcast %23 : vector<1x8xf32> to vector<991x8xf32>
    %25 = arith.addf %22, %24 : vector<991x8xf32>
    %cst_23 = arith.constant 0.000000e+00 : f32
    %26 = vector.broadcast %cst_23 : f32 to vector<991x8xf32>
    %27 = arith.cmpf ogt, %25, %26 : vector<991x8xf32>
    %cst_24 = arith.constant 0.000000e+00 : f32
    %28 = vector.broadcast %cst_24 : f32 to vector<991x8xf32>
    %29 = arith.minimumf %25, %28 : vector<991x8xf32>
    %30 = math.exp %29 : vector<991x8xf32>
    %cst_25 = arith.constant 1.000000e+00 : f32
    %31 = vector.broadcast %cst_25 : f32 to vector<991x8xf32>
    %32 = arith.subf %30, %31 : vector<991x8xf32>
    %33 = arith.select %27, %25, %32 : vector<991x8xi1>, vector<991x8xf32>
    %c0_26 = arith.constant 0 : index
    %c0_27 = arith.constant 0 : index
    %34 = vector.load %arg11[%c0_26, %c0_27] : memref<991x8xf32, #tpu.memory_space<vmem>>, vector<991x8xf32>
    tpu.vector_store %arg11[%c0_26, %c0_27], %33 {strides = array<i32>} : memref<991x8xf32, #tpu.memory_space<vmem>>, vector<991x8xf32>,
    %c0_28 = arith.constant 0 : index
    %c0_29 = arith.constant 0 : index
    %35 = tpu.strided_load %arg11[%c0_28, %c0_29] {strides = array<i32: 2, 1>} : memref<991x8xf32, #tpu.memory_space<vmem>>, vector<15x8xf32>
    %c0_30 = arith.constant 0 : index
    %c0_31 = arith.constant 0 : index
    %36 = vector.load %arg12[%c0_30, %c0_31] : memref<225x32xf32, #tpu.memory_space<vmem>>, vector<15x8xf32>
    tpu.vector_store %arg12[%c0_30, %c0_31], %35 {strides = array<i32>} : memref<225x32xf32, #tpu.memory_space<vmem>>, vector<15x8xf32>,
    %c64 = arith.constant 64 : index
    %c0_32 = arith.constant 0 : index
    %37 = tpu.strided_load %arg11[%c64, %c0_32] {strides = array<i32: 2, 1>} : memref<991x8xf32, #tpu.memory_space<vmem>>, vector<15x8xf32>
    %c15 = arith.constant 15 : index
    %c0_33 = arith.constant 0 : index
    %38 = vector.load %arg12[%c15, %c0_33] : memref<225x32xf32, #tpu.memory_space<vmem>>, vector<15x8xf32>
    tpu.vector_store %arg12[%c15, %c0_33], %37 {strides = array<i32>} : memref<225x32xf32, #tpu.memory_space<vmem>>, vector<15x8xf32>,
    %c128 = arith.constant 128 : index
    %c0_34 = arith.constant 0 : index
    %39 = tpu.strided_load %arg11[%c128, %c0_34] {strides = array<i32: 2, 1>} : memref<991x8xf32, #tpu.memory_space<vmem>>, vector<15x8xf32>
    %c30 = arith.constant 30 : index
    %c0_35 = arith.constant 0 : index
    %40 = vector.load %arg12[%c30, %c0_35] : memref<225x32xf32, #tpu.memory_space<vmem>>, vector<15x8xf32>
    tpu.vector_store %arg12[%c30, %c0_35], %39 {strides = array<i32>} : memref<225x32xf32, #tpu.memory_space<vmem>>, vector<15x8xf32>,
    %c192 = arith.constant 192 : index
    %c0_36 = arith.constant 0 : index
    %41 = tpu.strided_load %arg11[%c192, %c0_36] {strides = array<i32: 2, 1>} : memref<991x8xf32, #tpu.memory_space<vmem>>, vector<15x8xf32>
    %c45 = arith.constant 45 : index
    %c0_37 = arith.constant 0 : index
    %42 = vector.load %arg12[%c45, %c0_37] : memref<225x32xf32, #tpu.memory_space<vmem>>, vector<15x8xf32>
    tpu.vector_store %arg12[%c45, %c0_37], %41 {strides = array<i32>} : memref<225x32xf32, #tpu.memory_space<vmem>>, vector<15x8xf32>,
    %c256 = arith.constant 256 : index
    %c0_38 = arith.constant 0 : index
    %43 = tpu.strided_load %arg11[%c256, %c0_38] {strides = array<i32: 2, 1>} : memref<991x8xf32, #tpu.memory_space<vmem>>, vector<15x8xf32>
    %c60 = arith.constant 60 : index
    %c0_39 = arith.constant 0 : index
    %44 = vector.load %arg12[%c60, %c0_39] : memref<225x32xf32, #tpu.memory_space<vmem>>, vector<15x8xf32>
    tpu.vector_store %arg12[%c60, %c0_39], %43 {strides = array<i32>} : memref<225x32xf32, #tpu.memory_space<vmem>>, vector<15x8xf32>,
    %c320 = arith.constant 320 : index
    %c0_40 = arith.constant 0 : index
    %45 = tpu.strided_load %arg11[%c320, %c0_40] {strides = array<i32: 2, 1>} : memref<991x8xf32, #tpu.memory_space<vmem>>, vector<15x8xf32>
    %c75 = arith.constant 75 : index
    %c0_41 = arith.constant 0 : index
    %46 = vector.load %arg12[%c75, %c0_41] : memref<225x32xf32, #tpu.memory_space<vmem>>, vector<15x8xf32>
    tpu.vector_store %arg12[%c75, %c0_41], %45 {strides = array<i32>} : memref<225x32xf32, #tpu.memory_space<vmem>>, vector<15x8xf32>,
    %c384 = arith.constant 384 : index
    %c0_42 = arith.constant 0 : index
    %47 = tpu.strided_load %arg11[%c384, %c0_42] {strides = array<i32: 2, 1>} : memref<991x8xf32, #tpu.memory_space<vmem>>, vector<15x8xf32>
    %c90 = arith.constant 90 : index
    %c0_43 = arith.constant 0 : index
    %48 = vector.load %arg12[%c90, %c0_43] : memref<225x32xf32, #tpu.memory_space<vmem>>, vector<15x8xf32>
    tpu.vector_store %arg12[%c90, %c0_43], %47 {strides = array<i32>} : memref<225x32xf32, #tpu.memory_space<vmem>>, vector<15x8xf32>,
    %c448 = arith.constant 448 : index
    %c0_44 = arith.constant 0 : index
    %49 = tpu.strided_load %arg11[%c448, %c0_44] {strides = array<i32: 2, 1>} : memref<991x8xf32, #tpu.memory_space<vmem>>, vector<15x8xf32>
    %c105 = arith.constant 105 : index
    %c0_45 = arith.constant 0 : index
    %50 = vector.load %arg12[%c105, %c0_45] : memref<225x32xf32, #tpu.memory_space<vmem>>, vector<15x8xf32>
    tpu.vector_store %arg12[%c105, %c0_45], %49 {strides = array<i32>} : memref<225x32xf32, #tpu.memory_space<vmem>>, vector<15x8xf32>,
    %c512 = arith.constant 512 : index
    %c0_46 = arith.constant 0 : index
    %51 = tpu.strided_load %arg11[%c512, %c0_46] {strides = array<i32: 2, 1>} : memref<991x8xf32, #tpu.memory_space<vmem>>, vector<15x8xf32>
    %c120 = arith.constant 120 : index
    %c0_47 = arith.constant 0 : index
    %52 = vector.load %arg12[%c120, %c0_47] : memref<225x32xf32, #tpu.memory_space<vmem>>, vector<15x8xf32>
    tpu.vector_store %arg12[%c120, %c0_47], %51 {strides = array<i32>} : memref<225x32xf32, #tpu.memory_space<vmem>>, vector<15x8xf32>,
    %c576 = arith.constant 576 : index
    %c0_48 = arith.constant 0 : index
    %53 = tpu.strided_load %arg11[%c576, %c0_48] {strides = array<i32: 2, 1>} : memref<991x8xf32, #tpu.memory_space<vmem>>, vector<15x8xf32>
    %c135 = arith.constant 135 : index
    %c0_49 = arith.constant 0 : index
    %54 = vector.load %arg12[%c135, %c0_49] : memref<225x32xf32, #tpu.memory_space<vmem>>, vector<15x8xf32>
    tpu.vector_store %arg12[%c135, %c0_49], %53 {strides = array<i32>} : memref<225x32xf32, #tpu.memory_space<vmem>>, vector<15x8xf32>,
    %c640 = arith.constant 640 : index
    %c0_50 = arith.constant 0 : index
    %55 = tpu.strided_load %arg11[%c640, %c0_50] {strides = array<i32: 2, 1>} : memref<991x8xf32, #tpu.memory_space<vmem>>, vector<15x8xf32>
    %c150 = arith.constant 150 : index
    %c0_51 = arith.constant 0 : index
    %56 = vector.load %arg12[%c150, %c0_51] : memref<225x32xf32, #tpu.memory_space<vmem>>, vector<15x8xf32>
    tpu.vector_store %arg12[%c150, %c0_51], %55 {strides = array<i32>} : memref<225x32xf32, #tpu.memory_space<vmem>>, vector<15x8xf32>,
    %c704 = arith.constant 704 : index
    %c0_52 = arith.constant 0 : index
    %57 = tpu.strided_load %arg11[%c704, %c0_52] {strides = array<i32: 2, 1>} : memref<991x8xf32, #tpu.memory_space<vmem>>, vector<15x8xf32>
    %c165 = arith.constant 165 : index
    %c0_53 = arith.constant 0 : index
    %58 = vector.load %arg12[%c165, %c0_53] : memref<225x32xf32, #tpu.memory_space<vmem>>, vector<15x8xf32>
    tpu.vector_store %arg12[%c165, %c0_53], %57 {strides = array<i32>} : memref<225x32xf32, #tpu.memory_space<vmem>>, vector<15x8xf32>,
    %c768 = arith.constant 768 : index
    %c0_54 = arith.constant 0 : index
    %59 = tpu.strided_load %arg11[%c768, %c0_54] {strides = array<i32: 2, 1>} : memref<991x8xf32, #tpu.memory_space<vmem>>, vector<15x8xf32>
    %c180 = arith.constant 180 : index
    %c0_55 = arith.constant 0 : index
    %60 = vector.load %arg12[%c180, %c0_55] : memref<225x32xf32, #tpu.memory_space<vmem>>, vector<15x8xf32>
    tpu.vector_store %arg12[%c180, %c0_55], %59 {strides = array<i32>} : memref<225x32xf32, #tpu.memory_space<vmem>>, vector<15x8xf32>,
    %c832 = arith.constant 832 : index
    %c0_56 = arith.constant 0 : index
    %61 = tpu.strided_load %arg11[%c832, %c0_56] {strides = array<i32: 2, 1>} : memref<991x8xf32, #tpu.memory_space<vmem>>, vector<15x8xf32>
    %c195 = arith.constant 195 : index
    %c0_57 = arith.constant 0 : index
    %62 = vector.load %arg12[%c195, %c0_57] : memref<225x32xf32, #tpu.memory_space<vmem>>, vector<15x8xf32>
    tpu.vector_store %arg12[%c195, %c0_57], %61 {strides = array<i32>} : memref<225x32xf32, #tpu.memory_space<vmem>>, vector<15x8xf32>,
    %c896 = arith.constant 896 : index
    %c0_58 = arith.constant 0 : index
    %63 = tpu.strided_load %arg11[%c896, %c0_58] {strides = array<i32: 2, 1>} : memref<991x8xf32, #tpu.memory_space<vmem>>, vector<15x8xf32>
    %c210 = arith.constant 210 : index
    %c0_59 = arith.constant 0 : index
    %64 = vector.load %arg12[%c210, %c0_59] : memref<225x32xf32, #tpu.memory_space<vmem>>, vector<15x8xf32>
    tpu.vector_store %arg12[%c210, %c0_59], %63 {strides = array<i32>} : memref<225x32xf32, #tpu.memory_space<vmem>>, vector<15x8xf32>,
    %c1_60 = arith.constant 1 : index
    %c0_61 = arith.constant 0 : index
    %65 = tpu.strided_load %arg11[%c1_60, %c0_61] {strides = array<i32: 2, 1>} : memref<991x8xf32, #tpu.memory_space<vmem>>, vector<15x8xf32>
    %c0_62 = arith.constant 0 : index
    %c8 = arith.constant 8 : index
    %66 = vector.load %arg12[%c0_62, %c8] : memref<225x32xf32, #tpu.memory_space<vmem>>, vector<15x8xf32>
    tpu.vector_store %arg12[%c0_62, %c8], %65 {strides = array<i32>} : memref<225x32xf32, #tpu.memory_space<vmem>>, vector<15x8xf32>,
    %c65 = arith.constant 65 : index
    %c0_63 = arith.constant 0 : index
    %67 = tpu.strided_load %arg11[%c65, %c0_63] {strides = array<i32: 2, 1>} : memref<991x8xf32, #tpu.memory_space<vmem>>, vector<15x8xf32>
    %c15_64 = arith.constant 15 : index
    %c8_65 = arith.constant 8 : index
    %68 = vector.load %arg12[%c15_64, %c8_65] : memref<225x32xf32, #tpu.memory_space<vmem>>, vector<15x8xf32>
    tpu.vector_store %arg12[%c15_64, %c8_65], %67 {strides = array<i32>} : memref<225x32xf32, #tpu.memory_space<vmem>>, vector<15x8xf32>,
    %c129 = arith.constant 129 : index
    %c0_66 = arith.constant 0 : index
    %69 = tpu.strided_load %arg11[%c129, %c0_66] {strides = array<i32: 2, 1>} : memref<991x8xf32, #tpu.memory_space<vmem>>, vector<15x8xf32>
    %c30_67 = arith.constant 30 : index
    %c8_68 = arith.constant 8 : index
    %70 = vector.load %arg12[%c30_67, %c8_68] : memref<225x32xf32, #tpu.memory_space<vmem>>, vector<15x8xf32>
    tpu.vector_store %arg12[%c30_67, %c8_68], %69 {strides = array<i32>} : memref<225x32xf32, #tpu.memory_space<vmem>>, vector<15x8xf32>,
    %c193 = arith.constant 193 : index
    %c0_69 = arith.constant 0 : index
    %71 = tpu.strided_load %arg11[%c193, %c0_69] {strides = array<i32: 2, 1>} : memref<991x8xf32, #tpu.memory_space<vmem>>, vector<15x8xf32>
    %c45_70 = arith.constant 45 : index
    %c8_71 = arith.constant 8 : index
    %72 = vector.load %arg12[%c45_70, %c8_71] : memref<225x32xf32, #tpu.memory_space<vmem>>, vector<15x8xf32>
    tpu.vector_store %arg12[%c45_70, %c8_71], %71 {strides = array<i32>} : memref<225x32xf32, #tpu.memory_space<vmem>>, vector<15x8xf32>,
    %c257 = arith.constant 257 : index
    %c0_72 = arith.constant 0 : index
    %73 = tpu.strided_load %arg11[%c257, %c0_72] {strides = array<i32: 2, 1>} : memref<991x8xf32, #tpu.memory_space<vmem>>, vector<15x8xf32>
    %c60_73 = arith.constant 60 : index
    %c8_74 = arith.constant 8 : index
    %74 = vector.load %arg12[%c60_73, %c8_74] : memref<225x32xf32, #tpu.memory_space<vmem>>, vector<15x8xf32>
    tpu.vector_store %arg12[%c60_73, %c8_74], %73 {strides = array<i32>} : memref<225x32xf32, #tpu.memory_space<vmem>>, vector<15x8xf32>,
    %c321 = arith.constant 321 : index
    %c0_75 = arith.constant 0 : index
    %75 = tpu.strided_load %arg11[%c321, %c0_75] {strides = array<i32: 2, 1>} : memref<991x8xf32, #tpu.memory_space<vmem>>, vector<15x8xf32>
    %c75_76 = arith.constant 75 : index
    %c8_77 = arith.constant 8 : index
    %76 = vector.load %arg12[%c75_76, %c8_77] : memref<225x32xf32, #tpu.memory_space<vmem>>, vector<15x8xf32>
    tpu.vector_store %arg12[%c75_76, %c8_77], %75 {strides = array<i32>} : memref<225x32xf32, #tpu.memory_space<vmem>>, vector<15x8xf32>,
    %c385 = arith.constant 385 : index
    %c0_78 = arith.constant 0 : index
    %77 = tpu.strided_load %arg11[%c385, %c0_78] {strides = array<i32: 2, 1>} : memref<991x8xf32, #tpu.memory_space<vmem>>, vector<15x8xf32>
    %c90_79 = arith.constant 90 : index
    %c8_80 = arith.constant 8 : index
    %78 = vector.load %arg12[%c90_79, %c8_80] : memref<225x32xf32, #tpu.memory_space<vmem>>, vector<15x8xf32>
    tpu.vector_store %arg12[%c90_79, %c8_80], %77 {strides = array<i32>} : memref<225x32xf32, #tpu.memory_space<vmem>>, vector<15x8xf32>,
    %c449 = arith.constant 449 : index
    %c0_81 = arith.constant 0 : index
    %79 = tpu.strided_load %arg11[%c449, %c0_81] {strides = array<i32: 2, 1>} : memref<991x8xf32, #tpu.memory_space<vmem>>, vector<15x8xf32>
    %c105_82 = arith.constant 105 : index
    %c8_83 = arith.constant 8 : index
    %80 = vector.load %arg12[%c105_82, %c8_83] : memref<225x32xf32, #tpu.memory_space<vmem>>, vector<15x8xf32>
    tpu.vector_store %arg12[%c105_82, %c8_83], %79 {strides = array<i32>} : memref<225x32xf32, #tpu.memory_space<vmem>>, vector<15x8xf32>,
    %c513 = arith.constant 513 : index
    %c0_84 = arith.constant 0 : index
    %81 = tpu.strided_load %arg11[%c513, %c0_84] {strides = array<i32: 2, 1>} : memref<991x8xf32, #tpu.memory_space<vmem>>, vector<15x8xf32>
    %c120_85 = arith.constant 120 : index
    %c8_86 = arith.constant 8 : index
    %82 = vector.load %arg12[%c120_85, %c8_86] : memref<225x32xf32, #tpu.memory_space<vmem>>, vector<15x8xf32>
    tpu.vector_store %arg12[%c120_85, %c8_86], %81 {strides = array<i32>} : memref<225x32xf32, #tpu.memory_space<vmem>>, vector<15x8xf32>,
    %c577 = arith.constant 577 : index
    %c0_87 = arith.constant 0 : index
    %83 = tpu.strided_load %arg11[%c577, %c0_87] {strides = array<i32: 2, 1>} : memref<991x8xf32, #tpu.memory_space<vmem>>, vector<15x8xf32>
    %c135_88 = arith.constant 135 : index
    %c8_89 = arith.constant 8 : index
    %84 = vector.load %arg12[%c135_88, %c8_89] : memref<225x32xf32, #tpu.memory_space<vmem>>, vector<15x8xf32>
    tpu.vector_store %arg12[%c135_88, %c8_89], %83 {strides = array<i32>} : memref<225x32xf32, #tpu.memory_space<vmem>>, vector<15x8xf32>,
    %c641 = arith.constant 641 : index
    %c0_90 = arith.constant 0 : index
    %85 = tpu.strided_load %arg11[%c641, %c0_90] {strides = array<i32: 2, 1>} : memref<991x8xf32, #tpu.memory_space<vmem>>, vector<15x8xf32>
    %c150_91 = arith.constant 150 : index
    %c8_92 = arith.constant 8 : index
    %86 = vector.load %arg12[%c150_91, %c8_92] : memref<225x32xf32, #tpu.memory_space<vmem>>, vector<15x8xf32>
    tpu.vector_store %arg12[%c150_91, %c8_92], %85 {strides = array<i32>} : memref<225x32xf32, #tpu.memory_space<vmem>>, vector<15x8xf32>,
    %c705 = arith.constant 705 : index
    %c0_93 = arith.constant 0 : index
    %87 = tpu.strided_load %arg11[%c705, %c0_93] {strides = array<i32: 2, 1>} : memref<991x8xf32, #tpu.memory_space<vmem>>, vector<15x8xf32>
    %c165_94 = arith.constant 165 : index
    %c8_95 = arith.constant 8 : index
    %88 = vector.load %arg12[%c165_94, %c8_95] : memref<225x32xf32, #tpu.memory_space<vmem>>, vector<15x8xf32>
    tpu.vector_store %arg12[%c165_94, %c8_95], %87 {strides = array<i32>} : memref<225x32xf32, #tpu.memory_space<vmem>>, vector<15x8xf32>,
    %c769 = arith.constant 769 : index
    %c0_96 = arith.constant 0 : index
    %89 = tpu.strided_load %arg11[%c769, %c0_96] {strides = array<i32: 2, 1>} : memref<991x8xf32, #tpu.memory_space<vmem>>, vector<15x8xf32>
    %c180_97 = arith.constant 180 : index
    %c8_98 = arith.constant 8 : index
    %90 = vector.load %arg12[%c180_97, %c8_98] : memref<225x32xf32, #tpu.memory_space<vmem>>, vector<15x8xf32>
    tpu.vector_store %arg12[%c180_97, %c8_98], %89 {strides = array<i32>} : memref<225x32xf32, #tpu.memory_space<vmem>>, vector<15x8xf32>,
    %c833 = arith.constant 833 : index
    %c0_99 = arith.constant 0 : index
    %91 = tpu.strided_load %arg11[%c833, %c0_99] {strides = array<i32: 2, 1>} : memref<991x8xf32, #tpu.memory_space<vmem>>, vector<15x8xf32>
    %c195_100 = arith.constant 195 : index
    %c8_101 = arith.constant 8 : index
    %92 = vector.load %arg12[%c195_100, %c8_101] : memref<225x32xf32, #tpu.memory_space<vmem>>, vector<15x8xf32>
    tpu.vector_store %arg12[%c195_100, %c8_101], %91 {strides = array<i32>} : memref<225x32xf32, #tpu.memory_space<vmem>>, vector<15x8xf32>,
    %c897 = arith.constant 897 : index
    %c0_102 = arith.constant 0 : index
    %93 = tpu.strided_load %arg11[%c897, %c0_102] {strides = array<i32: 2, 1>} : memref<991x8xf32, #tpu.memory_space<vmem>>, vector<15x8xf32>
    %c210_103 = arith.constant 210 : index
    %c8_104 = arith.constant 8 : index
    %94 = vector.load %arg12[%c210_103, %c8_104] : memref<225x32xf32, #tpu.memory_space<vmem>>, vector<15x8xf32>
    tpu.vector_store %arg12[%c210_103, %c8_104], %93 {strides = array<i32>} : memref<225x32xf32, #tpu.memory_space<vmem>>, vector<15x8xf32>,
    %c32_105 = arith.constant 32 : index
    %c0_106 = arith.constant 0 : index
    %95 = tpu.strided_load %arg11[%c32_105, %c0_106] {strides = array<i32: 2, 1>} : memref<991x8xf32, #tpu.memory_space<vmem>>, vector<15x8xf32>
    %c0_107 = arith.constant 0 : index
    %c16 = arith.constant 16 : index
    %96 = vector.load %arg12[%c0_107, %c16] : memref<225x32xf32, #tpu.memory_space<vmem>>, vector<15x8xf32>
    tpu.vector_store %arg12[%c0_107, %c16], %95 {strides = array<i32>} : memref<225x32xf32, #tpu.memory_space<vmem>>, vector<15x8xf32>,
    %c96 = arith.constant 96 : index
    %c0_108 = arith.constant 0 : index
    %97 = tpu.strided_load %arg11[%c96, %c0_108] {strides = array<i32: 2, 1>} : memref<991x8xf32, #tpu.memory_space<vmem>>, vector<15x8xf32>
    %c15_109 = arith.constant 15 : index
    %c16_110 = arith.constant 16 : index
    %98 = vector.load %arg12[%c15_109, %c16_110] : memref<225x32xf32, #tpu.memory_space<vmem>>, vector<15x8xf32>
    tpu.vector_store %arg12[%c15_109, %c16_110], %97 {strides = array<i32>} : memref<225x32xf32, #tpu.memory_space<vmem>>, vector<15x8xf32>,
    %c160 = arith.constant 160 : index
    %c0_111 = arith.constant 0 : index
    %99 = tpu.strided_load %arg11[%c160, %c0_111] {strides = array<i32: 2, 1>} : memref<991x8xf32, #tpu.memory_space<vmem>>, vector<15x8xf32>
    %c30_112 = arith.constant 30 : index
    %c16_113 = arith.constant 16 : index
    %100 = vector.load %arg12[%c30_112, %c16_113] : memref<225x32xf32, #tpu.memory_space<vmem>>, vector<15x8xf32>
    tpu.vector_store %arg12[%c30_112, %c16_113], %99 {strides = array<i32>} : memref<225x32xf32, #tpu.memory_space<vmem>>, vector<15x8xf32>,
    %c224 = arith.constant 224 : index
    %c0_114 = arith.constant 0 : index
    %101 = tpu.strided_load %arg11[%c224, %c0_114] {strides = array<i32: 2, 1>} : memref<991x8xf32, #tpu.memory_space<vmem>>, vector<15x8xf32>
    %c45_115 = arith.constant 45 : index
    %c16_116 = arith.constant 16 : index
    %102 = vector.load %arg12[%c45_115, %c16_116] : memref<225x32xf32, #tpu.memory_space<vmem>>, vector<15x8xf32>
    tpu.vector_store %arg12[%c45_115, %c16_116], %101 {strides = array<i32>} : memref<225x32xf32, #tpu.memory_space<vmem>>, vector<15x8xf32>,
    %c288 = arith.constant 288 : index
    %c0_117 = arith.constant 0 : index
    %103 = tpu.strided_load %arg11[%c288, %c0_117] {strides = array<i32: 2, 1>} : memref<991x8xf32, #tpu.memory_space<vmem>>, vector<15x8xf32>
    %c60_118 = arith.constant 60 : index
    %c16_119 = arith.constant 16 : index
    %104 = vector.load %arg12[%c60_118, %c16_119] : memref<225x32xf32, #tpu.memory_space<vmem>>, vector<15x8xf32>
    tpu.vector_store %arg12[%c60_118, %c16_119], %103 {strides = array<i32>} : memref<225x32xf32, #tpu.memory_space<vmem>>, vector<15x8xf32>,
    %c352 = arith.constant 352 : index
    %c0_120 = arith.constant 0 : index
    %105 = tpu.strided_load %arg11[%c352, %c0_120] {strides = array<i32: 2, 1>} : memref<991x8xf32, #tpu.memory_space<vmem>>, vector<15x8xf32>
    %c75_121 = arith.constant 75 : index
    %c16_122 = arith.constant 16 : index
    %106 = vector.load %arg12[%c75_121, %c16_122] : memref<225x32xf32, #tpu.memory_space<vmem>>, vector<15x8xf32>
    tpu.vector_store %arg12[%c75_121, %c16_122], %105 {strides = array<i32>} : memref<225x32xf32, #tpu.memory_space<vmem>>, vector<15x8xf32>,
    %c416 = arith.constant 416 : index
    %c0_123 = arith.constant 0 : index
    %107 = tpu.strided_load %arg11[%c416, %c0_123] {strides = array<i32: 2, 1>} : memref<991x8xf32, #tpu.memory_space<vmem>>, vector<15x8xf32>
    %c90_124 = arith.constant 90 : index
    %c16_125 = arith.constant 16 : index
    %108 = vector.load %arg12[%c90_124, %c16_125] : memref<225x32xf32, #tpu.memory_space<vmem>>, vector<15x8xf32>
    tpu.vector_store %arg12[%c90_124, %c16_125], %107 {strides = array<i32>} : memref<225x32xf32, #tpu.memory_space<vmem>>, vector<15x8xf32>,
    %c480 = arith.constant 480 : index
    %c0_126 = arith.constant 0 : index
    %109 = tpu.strided_load %arg11[%c480, %c0_126] {strides = array<i32: 2, 1>} : memref<991x8xf32, #tpu.memory_space<vmem>>, vector<15x8xf32>
    %c105_127 = arith.constant 105 : index
    %c16_128 = arith.constant 16 : index
    %110 = vector.load %arg12[%c105_127, %c16_128] : memref<225x32xf32, #tpu.memory_space<vmem>>, vector<15x8xf32>
    tpu.vector_store %arg12[%c105_127, %c16_128], %109 {strides = array<i32>} : memref<225x32xf32, #tpu.memory_space<vmem>>, vector<15x8xf32>,
    %c544 = arith.constant 544 : index
    %c0_129 = arith.constant 0 : index
    %111 = tpu.strided_load %arg11[%c544, %c0_129] {strides = array<i32: 2, 1>} : memref<991x8xf32, #tpu.memory_space<vmem>>, vector<15x8xf32>
    %c120_130 = arith.constant 120 : index
    %c16_131 = arith.constant 16 : index
    %112 = vector.load %arg12[%c120_130, %c16_131] : memref<225x32xf32, #tpu.memory_space<vmem>>, vector<15x8xf32>
    tpu.vector_store %arg12[%c120_130, %c16_131], %111 {strides = array<i32>} : memref<225x32xf32, #tpu.memory_space<vmem>>, vector<15x8xf32>,
    %c608 = arith.constant 608 : index
    %c0_132 = arith.constant 0 : index
    %113 = tpu.strided_load %arg11[%c608, %c0_132] {strides = array<i32: 2, 1>} : memref<991x8xf32, #tpu.memory_space<vmem>>, vector<15x8xf32>
    %c135_133 = arith.constant 135 : index
    %c16_134 = arith.constant 16 : index
    %114 = vector.load %arg12[%c135_133, %c16_134] : memref<225x32xf32, #tpu.memory_space<vmem>>, vector<15x8xf32>
    tpu.vector_store %arg12[%c135_133, %c16_134], %113 {strides = array<i32>} : memref<225x32xf32, #tpu.memory_space<vmem>>, vector<15x8xf32>,
    %c672 = arith.constant 672 : index
    %c0_135 = arith.constant 0 : index
    %115 = tpu.strided_load %arg11[%c672, %c0_135] {strides = array<i32: 2, 1>} : memref<991x8xf32, #tpu.memory_space<vmem>>, vector<15x8xf32>
    %c150_136 = arith.constant 150 : index
    %c16_137 = arith.constant 16 : index
    %116 = vector.load %arg12[%c150_136, %c16_137] : memref<225x32xf32, #tpu.memory_space<vmem>>, vector<15x8xf32>
    tpu.vector_store %arg12[%c150_136, %c16_137], %115 {strides = array<i32>} : memref<225x32xf32, #tpu.memory_space<vmem>>, vector<15x8xf32>,
    %c736 = arith.constant 736 : index
    %c0_138 = arith.constant 0 : index
    %117 = tpu.strided_load %arg11[%c736, %c0_138] {strides = array<i32: 2, 1>} : memref<991x8xf32, #tpu.memory_space<vmem>>, vector<15x8xf32>
    %c165_139 = arith.constant 165 : index
    %c16_140 = arith.constant 16 : index
    %118 = vector.load %arg12[%c165_139, %c16_140] : memref<225x32xf32, #tpu.memory_space<vmem>>, vector<15x8xf32>
    tpu.vector_store %arg12[%c165_139, %c16_140], %117 {strides = array<i32>} : memref<225x32xf32, #tpu.memory_space<vmem>>, vector<15x8xf32>,
    %c800 = arith.constant 800 : index
    %c0_141 = arith.constant 0 : index
    %119 = tpu.strided_load %arg11[%c800, %c0_141] {strides = array<i32: 2, 1>} : memref<991x8xf32, #tpu.memory_space<vmem>>, vector<15x8xf32>
    %c180_142 = arith.constant 180 : index
    %c16_143 = arith.constant 16 : index
    %120 = vector.load %arg12[%c180_142, %c16_143] : memref<225x32xf32, #tpu.memory_space<vmem>>, vector<15x8xf32>
    tpu.vector_store %arg12[%c180_142, %c16_143], %119 {strides = array<i32>} : memref<225x32xf32, #tpu.memory_space<vmem>>, vector<15x8xf32>,
    %c864 = arith.constant 864 : index
    %c0_144 = arith.constant 0 : index
    %121 = tpu.strided_load %arg11[%c864, %c0_144] {strides = array<i32: 2, 1>} : memref<991x8xf32, #tpu.memory_space<vmem>>, vector<15x8xf32>
    %c195_145 = arith.constant 195 : index
    %c16_146 = arith.constant 16 : index
    %122 = vector.load %arg12[%c195_145, %c16_146] : memref<225x32xf32, #tpu.memory_space<vmem>>, vector<15x8xf32>
    tpu.vector_store %arg12[%c195_145, %c16_146], %121 {strides = array<i32>} : memref<225x32xf32, #tpu.memory_space<vmem>>, vector<15x8xf32>,
    %c928 = arith.constant 928 : index
    %c0_147 = arith.constant 0 : index
    %123 = tpu.strided_load %arg11[%c928, %c0_147] {strides = array<i32: 2, 1>} : memref<991x8xf32, #tpu.memory_space<vmem>>, vector<15x8xf32>
    %c210_148 = arith.constant 210 : index
    %c16_149 = arith.constant 16 : index
    %124 = vector.load %arg12[%c210_148, %c16_149] : memref<225x32xf32, #tpu.memory_space<vmem>>, vector<15x8xf32>
    tpu.vector_store %arg12[%c210_148, %c16_149], %123 {strides = array<i32>} : memref<225x32xf32, #tpu.memory_space<vmem>>, vector<15x8xf32>,
    %c33_150 = arith.constant 33 : index
    %c0_151 = arith.constant 0 : index
    %125 = tpu.strided_load %arg11[%c33_150, %c0_151] {strides = array<i32: 2, 1>} : memref<991x8xf32, #tpu.memory_space<vmem>>, vector<15x8xf32>
    %c0_152 = arith.constant 0 : index
    %c24 = arith.constant 24 : index
    %126 = vector.load %arg12[%c0_152, %c24] : memref<225x32xf32, #tpu.memory_space<vmem>>, vector<15x8xf32>
    tpu.vector_store %arg12[%c0_152, %c24], %125 {strides = array<i32>} : memref<225x32xf32, #tpu.memory_space<vmem>>, vector<15x8xf32>,
    %c97 = arith.constant 97 : index
    %c0_153 = arith.constant 0 : index
    %127 = tpu.strided_load %arg11[%c97, %c0_153] {strides = array<i32: 2, 1>} : memref<991x8xf32, #tpu.memory_space<vmem>>, vector<15x8xf32>
    %c15_154 = arith.constant 15 : index
    %c24_155 = arith.constant 24 : index
    %128 = vector.load %arg12[%c15_154, %c24_155] : memref<225x32xf32, #tpu.memory_space<vmem>>, vector<15x8xf32>
    tpu.vector_store %arg12[%c15_154, %c24_155], %127 {strides = array<i32>} : memref<225x32xf32, #tpu.memory_space<vmem>>, vector<15x8xf32>,
    %c161 = arith.constant 161 : index
    %c0_156 = arith.constant 0 : index
    %129 = tpu.strided_load %arg11[%c161, %c0_156] {strides = array<i32: 2, 1>} : memref<991x8xf32, #tpu.memory_space<vmem>>, vector<15x8xf32>
    %c30_157 = arith.constant 30 : index
    %c24_158 = arith.constant 24 : index
    %130 = vector.load %arg12[%c30_157, %c24_158] : memref<225x32xf32, #tpu.memory_space<vmem>>, vector<15x8xf32>
    tpu.vector_store %arg12[%c30_157, %c24_158], %129 {strides = array<i32>} : memref<225x32xf32, #tpu.memory_space<vmem>>, vector<15x8xf32>,
    %c225 = arith.constant 225 : index
    %c0_159 = arith.constant 0 : index
    %131 = tpu.strided_load %arg11[%c225, %c0_159] {strides = array<i32: 2, 1>} : memref<991x8xf32, #tpu.memory_space<vmem>>, vector<15x8xf32>
    %c45_160 = arith.constant 45 : index
    %c24_161 = arith.constant 24 : index
    %132 = vector.load %arg12[%c45_160, %c24_161] : memref<225x32xf32, #tpu.memory_space<vmem>>, vector<15x8xf32>
    tpu.vector_store %arg12[%c45_160, %c24_161], %131 {strides = array<i32>} : memref<225x32xf32, #tpu.memory_space<vmem>>, vector<15x8xf32>,
    %c289 = arith.constant 289 : index
    %c0_162 = arith.constant 0 : index
    %133 = tpu.strided_load %arg11[%c289, %c0_162] {strides = array<i32: 2, 1>} : memref<991x8xf32, #tpu.memory_space<vmem>>, vector<15x8xf32>
    %c60_163 = arith.constant 60 : index
    %c24_164 = arith.constant 24 : index
    %134 = vector.load %arg12[%c60_163, %c24_164] : memref<225x32xf32, #tpu.memory_space<vmem>>, vector<15x8xf32>
    tpu.vector_store %arg12[%c60_163, %c24_164], %133 {strides = array<i32>} : memref<225x32xf32, #tpu.memory_space<vmem>>, vector<15x8xf32>,
    %c353 = arith.constant 353 : index
    %c0_165 = arith.constant 0 : index
    %135 = tpu.strided_load %arg11[%c353, %c0_165] {strides = array<i32: 2, 1>} : memref<991x8xf32, #tpu.memory_space<vmem>>, vector<15x8xf32>
    %c75_166 = arith.constant 75 : index
    %c24_167 = arith.constant 24 : index
    %136 = vector.load %arg12[%c75_166, %c24_167] : memref<225x32xf32, #tpu.memory_space<vmem>>, vector<15x8xf32>
    tpu.vector_store %arg12[%c75_166, %c24_167], %135 {strides = array<i32>} : memref<225x32xf32, #tpu.memory_space<vmem>>, vector<15x8xf32>,
    %c417 = arith.constant 417 : index
    %c0_168 = arith.constant 0 : index
    %137 = tpu.strided_load %arg11[%c417, %c0_168] {strides = array<i32: 2, 1>} : memref<991x8xf32, #tpu.memory_space<vmem>>, vector<15x8xf32>
    %c90_169 = arith.constant 90 : index
    %c24_170 = arith.constant 24 : index
    %138 = vector.load %arg12[%c90_169, %c24_170] : memref<225x32xf32, #tpu.memory_space<vmem>>, vector<15x8xf32>
    tpu.vector_store %arg12[%c90_169, %c24_170], %137 {strides = array<i32>} : memref<225x32xf32, #tpu.memory_space<vmem>>, vector<15x8xf32>,
    %c481 = arith.constant 481 : index
    %c0_171 = arith.constant 0 : index
    %139 = tpu.strided_load %arg11[%c481, %c0_171] {strides = array<i32: 2, 1>} : memref<991x8xf32, #tpu.memory_space<vmem>>, vector<15x8xf32>
    %c105_172 = arith.constant 105 : index
    %c24_173 = arith.constant 24 : index
    %140 = vector.load %arg12[%c105_172, %c24_173] : memref<225x32xf32, #tpu.memory_space<vmem>>, vector<15x8xf32>
    tpu.vector_store %arg12[%c105_172, %c24_173], %139 {strides = array<i32>} : memref<225x32xf32, #tpu.memory_space<vmem>>, vector<15x8xf32>,
    %c545 = arith.constant 545 : index
    %c0_174 = arith.constant 0 : index
    %141 = tpu.strided_load %arg11[%c545, %c0_174] {strides = array<i32: 2, 1>} : memref<991x8xf32, #tpu.memory_space<vmem>>, vector<15x8xf32>
    %c120_175 = arith.constant 120 : index
    %c24_176 = arith.constant 24 : index
    %142 = vector.load %arg12[%c120_175, %c24_176] : memref<225x32xf32, #tpu.memory_space<vmem>>, vector<15x8xf32>
    tpu.vector_store %arg12[%c120_175, %c24_176], %141 {strides = array<i32>} : memref<225x32xf32, #tpu.memory_space<vmem>>, vector<15x8xf32>,
    %c609 = arith.constant 609 : index
    %c0_177 = arith.constant 0 : index
    %143 = tpu.strided_load %arg11[%c609, %c0_177] {strides = array<i32: 2, 1>} : memref<991x8xf32, #tpu.memory_space<vmem>>, vector<15x8xf32>
    %c135_178 = arith.constant 135 : index
    %c24_179 = arith.constant 24 : index
    %144 = vector.load %arg12[%c135_178, %c24_179] : memref<225x32xf32, #tpu.memory_space<vmem>>, vector<15x8xf32>
    tpu.vector_store %arg12[%c135_178, %c24_179], %143 {strides = array<i32>} : memref<225x32xf32, #tpu.memory_space<vmem>>, vector<15x8xf32>,
    %c673 = arith.constant 673 : index
    %c0_180 = arith.constant 0 : index
    %145 = tpu.strided_load %arg11[%c673, %c0_180] {strides = array<i32: 2, 1>} : memref<991x8xf32, #tpu.memory_space<vmem>>, vector<15x8xf32>
    %c150_181 = arith.constant 150 : index
    %c24_182 = arith.constant 24 : index
    %146 = vector.load %arg12[%c150_181, %c24_182] : memref<225x32xf32, #tpu.memory_space<vmem>>, vector<15x8xf32>
    tpu.vector_store %arg12[%c150_181, %c24_182], %145 {strides = array<i32>} : memref<225x32xf32, #tpu.memory_space<vmem>>, vector<15x8xf32>,
    %c737 = arith.constant 737 : index
    %c0_183 = arith.constant 0 : index
    %147 = tpu.strided_load %arg11[%c737, %c0_183] {strides = array<i32: 2, 1>} : memref<991x8xf32, #tpu.memory_space<vmem>>, vector<15x8xf32>
    %c165_184 = arith.constant 165 : index
    %c24_185 = arith.constant 24 : index
    %148 = vector.load %arg12[%c165_184, %c24_185] : memref<225x32xf32, #tpu.memory_space<vmem>>, vector<15x8xf32>
    tpu.vector_store %arg12[%c165_184, %c24_185], %147 {strides = array<i32>} : memref<225x32xf32, #tpu.memory_space<vmem>>, vector<15x8xf32>,
    %c801 = arith.constant 801 : index
    %c0_186 = arith.constant 0 : index
    %149 = tpu.strided_load %arg11[%c801, %c0_186] {strides = array<i32: 2, 1>} : memref<991x8xf32, #tpu.memory_space<vmem>>, vector<15x8xf32>
    %c180_187 = arith.constant 180 : index
    %c24_188 = arith.constant 24 : index
    %150 = vector.load %arg12[%c180_187, %c24_188] : memref<225x32xf32, #tpu.memory_space<vmem>>, vector<15x8xf32>
    tpu.vector_store %arg12[%c180_187, %c24_188], %149 {strides = array<i32>} : memref<225x32xf32, #tpu.memory_space<vmem>>, vector<15x8xf32>,
    %c865 = arith.constant 865 : index
    %c0_189 = arith.constant 0 : index
    %151 = tpu.strided_load %arg11[%c865, %c0_189] {strides = array<i32: 2, 1>} : memref<991x8xf32, #tpu.memory_space<vmem>>, vector<15x8xf32>
    %c195_190 = arith.constant 195 : index
    %c24_191 = arith.constant 24 : index
    %152 = vector.load %arg12[%c195_190, %c24_191] : memref<225x32xf32, #tpu.memory_space<vmem>>, vector<15x8xf32>
    tpu.vector_store %arg12[%c195_190, %c24_191], %151 {strides = array<i32>} : memref<225x32xf32, #tpu.memory_space<vmem>>, vector<15x8xf32>,
    %c929 = arith.constant 929 : index
    %c0_192 = arith.constant 0 : index
    %153 = tpu.strided_load %arg11[%c929, %c0_192] {strides = array<i32: 2, 1>} : memref<991x8xf32, #tpu.memory_space<vmem>>, vector<15x8xf32>
    %c210_193 = arith.constant 210 : index
    %c24_194 = arith.constant 24 : index
    %154 = vector.load %arg12[%c210_193, %c24_194] : memref<225x32xf32, #tpu.memory_space<vmem>>, vector<15x8xf32>
    tpu.vector_store %arg12[%c210_193, %c24_194], %153 {strides = array<i32>} : memref<225x32xf32, #tpu.memory_space<vmem>>, vector<15x8xf32>,
    %c0_195 = arith.constant 0 : index
    %c0_196 = arith.constant 0 : index
    %155 = vector.load %arg12[%c0_195, %c0_196] : memref<225x32xf32, #tpu.memory_space<vmem>>, vector<209x32xf32>
    %c0_197 = arith.constant 0 : index
    %c0_198 = arith.constant 0 : index
    %c0_199 = arith.constant 0 : index
    %156 = vector.load %arg4[%c0_197, %c0_198, %c0_199] : memref<4x32x16xf32, #tpu.memory_space<vmem>>, vector<1x32x16xf32>
    %157 = vector.shape_cast %156 : vector<1x32x16xf32> to vector<32x16xf32>
    %cst_200 = arith.constant dense<0.000000e+00> : vector<209x16xf32>
    %158 = tpu.matmul %155, %157, %cst_200 {dimension_numbers = #tpu.dot_dimension_numbers<[1], [0], [0], [1], [0, 0, 1, 1], [], []>} : vector<209x32xf32>, vector<32x16xf32>, vector<209x16xf32> -> vector<209x16xf32>
    %c1_201 = arith.constant 1 : index
    %c0_202 = arith.constant 0 : index
    %159 = vector.load %arg12[%c1_201, %c0_202] : memref<225x32xf32, #tpu.memory_space<vmem>>, vector<209x32xf32>
    %c1_203 = arith.constant 1 : index
    %c0_204 = arith.constant 0 : index
    %c0_205 = arith.constant 0 : index
    %160 = vector.load %arg4[%c1_203, %c0_204, %c0_205] : memref<4x32x16xf32, #tpu.memory_space<vmem>>, vector<1x32x16xf32>
    %161 = vector.shape_cast %160 : vector<1x32x16xf32> to vector<32x16xf32>
    %cst_206 = arith.constant dense<0.000000e+00> : vector<209x16xf32>
    %162 = tpu.matmul %159, %161, %cst_206 {dimension_numbers = #tpu.dot_dimension_numbers<[1], [0], [0], [1], [0, 0, 1, 1], [], []>} : vector<209x32xf32>, vector<32x16xf32>, vector<209x16xf32> -> vector<209x16xf32>
    %163 = arith.addf %158, %162 : vector<209x16xf32>
    %c15_207 = arith.constant 15 : index
    %c0_208 = arith.constant 0 : index
    %164 = vector.load %arg12[%c15_207, %c0_208] : memref<225x32xf32, #tpu.memory_space<vmem>>, vector<209x32xf32>
    %c2_209 = arith.constant 2 : index
    %c0_210 = arith.constant 0 : index
    %c0_211 = arith.constant 0 : index
    %165 = vector.load %arg4[%c2_209, %c0_210, %c0_211] : memref<4x32x16xf32, #tpu.memory_space<vmem>>, vector<1x32x16xf32>
    %166 = vector.shape_cast %165 : vector<1x32x16xf32> to vector<32x16xf32>
    %cst_212 = arith.constant dense<0.000000e+00> : vector<209x16xf32>
    %167 = tpu.matmul %164, %166, %cst_212 {dimension_numbers = #tpu.dot_dimension_numbers<[1], [0], [0], [1], [0, 0, 1, 1], [], []>} : vector<209x32xf32>, vector<32x16xf32>, vector<209x16xf32> -> vector<209x16xf32>
    %168 = arith.addf %163, %167 : vector<209x16xf32>
    %c16_213 = arith.constant 16 : index
    %c0_214 = arith.constant 0 : index
    %169 = vector.load %arg12[%c16_213, %c0_214] : memref<225x32xf32, #tpu.memory_space<vmem>>, vector<209x32xf32>
    %c3_215 = arith.constant 3 : index
    %c0_216 = arith.constant 0 : index
    %c0_217 = arith.constant 0 : index
    %170 = vector.load %arg4[%c3_215, %c0_216, %c0_217] : memref<4x32x16xf32, #tpu.memory_space<vmem>>, vector<1x32x16xf32>
    %171 = vector.shape_cast %170 : vector<1x32x16xf32> to vector<32x16xf32>
    %cst_218 = arith.constant dense<0.000000e+00> : vector<209x16xf32>
    %172 = tpu.matmul %169, %171, %cst_218 {dimension_numbers = #tpu.dot_dimension_numbers<[1], [0], [0], [1], [0, 0, 1, 1], [], []>} : vector<209x32xf32>, vector<32x16xf32>, vector<209x16xf32> -> vector<209x16xf32>
    %173 = arith.addf %168, %172 : vector<209x16xf32>
    %c0_219 = arith.constant 0 : index
    %c0_220 = arith.constant 0 : index
    %174 = vector.load %arg5[%c0_219, %c0_220] : memref<1x16xf32, #tpu.memory_space<vmem>>, vector<1x16xf32>
    %175 = vector.broadcast %174 : vector<1x16xf32> to vector<209x16xf32>
    %176 = arith.addf %173, %175 : vector<209x16xf32>
    %cst_221 = arith.constant 0.000000e+00 : f32
    %177 = vector.broadcast %cst_221 : f32 to vector<209x16xf32>
    %178 = arith.cmpf ogt, %176, %177 : vector<209x16xf32>
    %cst_222 = arith.constant 0.000000e+00 : f32
    %179 = vector.broadcast %cst_222 : f32 to vector<209x16xf32>
    %180 = arith.minimumf %176, %179 : vector<209x16xf32>
    %181 = math.exp %180 : vector<209x16xf32>
    %cst_223 = arith.constant 1.000000e+00 : f32
    %182 = vector.broadcast %cst_223 : f32 to vector<209x16xf32>
    %183 = arith.subf %181, %182 : vector<209x16xf32>
    %184 = arith.select %178, %176, %183 : vector<209x16xi1>, vector<209x16xf32>
    %c0_224 = arith.constant 0 : index
    %c0_225 = arith.constant 0 : index
    %185 = vector.load %arg13[%c0_224, %c0_225] : memref<209x16xf32, #tpu.memory_space<vmem>>, vector<209x16xf32>
    tpu.vector_store %arg13[%c0_224, %c0_225], %184 {strides = array<i32>} : memref<209x16xf32, #tpu.memory_space<vmem>>, vector<209x16xf32>,
    %c0_226 = arith.constant 0 : index
    %c0_227 = arith.constant 0 : index
    %186 = tpu.strided_load %arg13[%c0_226, %c0_227] {strides = array<i32: 2, 1>} : memref<209x16xf32, #tpu.memory_space<vmem>>, vector<7x16xf32>
    %c0_228 = arith.constant 0 : index
    %c0_229 = arith.constant 0 : index
    %187 = vector.load %arg14[%c0_228, %c0_229] : memref<49x64xf32, #tpu.memory_space<vmem>>, vector<7x16xf32>
    tpu.vector_store %arg14[%c0_228, %c0_229], %186 {strides = array<i32>} : memref<49x64xf32, #tpu.memory_space<vmem>>, vector<7x16xf32>,
    %c30_230 = arith.constant 30 : index
    %c0_231 = arith.constant 0 : index
    %188 = tpu.strided_load %arg13[%c30_230, %c0_231] {strides = array<i32: 2, 1>} : memref<209x16xf32, #tpu.memory_space<vmem>>, vector<7x16xf32>
    %c7 = arith.constant 7 : index
    %c0_232 = arith.constant 0 : index
    %189 = vector.load %arg14[%c7, %c0_232] : memref<49x64xf32, #tpu.memory_space<vmem>>, vector<7x16xf32>
    tpu.vector_store %arg14[%c7, %c0_232], %188 {strides = array<i32>} : memref<49x64xf32, #tpu.memory_space<vmem>>, vector<7x16xf32>,
    %c60_233 = arith.constant 60 : index
    %c0_234 = arith.constant 0 : index
    %190 = tpu.strided_load %arg13[%c60_233, %c0_234] {strides = array<i32: 2, 1>} : memref<209x16xf32, #tpu.memory_space<vmem>>, vector<7x16xf32>
    %c14 = arith.constant 14 : index
    %c0_235 = arith.constant 0 : index
    %191 = vector.load %arg14[%c14, %c0_235] : memref<49x64xf32, #tpu.memory_space<vmem>>, vector<7x16xf32>
    tpu.vector_store %arg14[%c14, %c0_235], %190 {strides = array<i32>} : memref<49x64xf32, #tpu.memory_space<vmem>>, vector<7x16xf32>,
    %c90_236 = arith.constant 90 : index
    %c0_237 = arith.constant 0 : index
    %192 = tpu.strided_load %arg13[%c90_236, %c0_237] {strides = array<i32: 2, 1>} : memref<209x16xf32, #tpu.memory_space<vmem>>, vector<7x16xf32>
    %c21 = arith.constant 21 : index
    %c0_238 = arith.constant 0 : index
    %193 = vector.load %arg14[%c21, %c0_238] : memref<49x64xf32, #tpu.memory_space<vmem>>, vector<7x16xf32>
    tpu.vector_store %arg14[%c21, %c0_238], %192 {strides = array<i32>} : memref<49x64xf32, #tpu.memory_space<vmem>>, vector<7x16xf32>,
    %c120_239 = arith.constant 120 : index
    %c0_240 = arith.constant 0 : index
    %194 = tpu.strided_load %arg13[%c120_239, %c0_240] {strides = array<i32: 2, 1>} : memref<209x16xf32, #tpu.memory_space<vmem>>, vector<7x16xf32>
    %c28 = arith.constant 28 : index
    %c0_241 = arith.constant 0 : index
    %195 = vector.load %arg14[%c28, %c0_241] : memref<49x64xf32, #tpu.memory_space<vmem>>, vector<7x16xf32>
    tpu.vector_store %arg14[%c28, %c0_241], %194 {strides = array<i32>} : memref<49x64xf32, #tpu.memory_space<vmem>>, vector<7x16xf32>,
    %c150_242 = arith.constant 150 : index
    %c0_243 = arith.constant 0 : index
    %196 = tpu.strided_load %arg13[%c150_242, %c0_243] {strides = array<i32: 2, 1>} : memref<209x16xf32, #tpu.memory_space<vmem>>, vector<7x16xf32>
    %c35 = arith.constant 35 : index
    %c0_244 = arith.constant 0 : index
    %197 = vector.load %arg14[%c35, %c0_244] : memref<49x64xf32, #tpu.memory_space<vmem>>, vector<7x16xf32>
    tpu.vector_store %arg14[%c35, %c0_244], %196 {strides = array<i32>} : memref<49x64xf32, #tpu.memory_space<vmem>>, vector<7x16xf32>,
    %c180_245 = arith.constant 180 : index
    %c0_246 = arith.constant 0 : index
    %198 = tpu.strided_load %arg13[%c180_245, %c0_246] {strides = array<i32: 2, 1>} : memref<209x16xf32, #tpu.memory_space<vmem>>, vector<7x16xf32>
    %c42 = arith.constant 42 : index
    %c0_247 = arith.constant 0 : index
    %199 = vector.load %arg14[%c42, %c0_247] : memref<49x64xf32, #tpu.memory_space<vmem>>, vector<7x16xf32>
    tpu.vector_store %arg14[%c42, %c0_247], %198 {strides = array<i32>} : memref<49x64xf32, #tpu.memory_space<vmem>>, vector<7x16xf32>,
    %c1_248 = arith.constant 1 : index
    %c0_249 = arith.constant 0 : index
    %200 = tpu.strided_load %arg13[%c1_248, %c0_249] {strides = array<i32: 2, 1>} : memref<209x16xf32, #tpu.memory_space<vmem>>, vector<7x16xf32>
    %c0_250 = arith.constant 0 : index
    %c16_251 = arith.constant 16 : index
    %201 = vector.load %arg14[%c0_250, %c16_251] : memref<49x64xf32, #tpu.memory_space<vmem>>, vector<7x16xf32>
    tpu.vector_store %arg14[%c0_250, %c16_251], %200 {strides = array<i32>} : memref<49x64xf32, #tpu.memory_space<vmem>>, vector<7x16xf32>,
    %c31 = arith.constant 31 : index
    %c0_252 = arith.constant 0 : index
    %202 = tpu.strided_load %arg13[%c31, %c0_252] {strides = array<i32: 2, 1>} : memref<209x16xf32, #tpu.memory_space<vmem>>, vector<7x16xf32>
    %c7_253 = arith.constant 7 : index
    %c16_254 = arith.constant 16 : index
    %203 = vector.load %arg14[%c7_253, %c16_254] : memref<49x64xf32, #tpu.memory_space<vmem>>, vector<7x16xf32>
    tpu.vector_store %arg14[%c7_253, %c16_254], %202 {strides = array<i32>} : memref<49x64xf32, #tpu.memory_space<vmem>>, vector<7x16xf32>,
    %c61 = arith.constant 61 : index
    %c0_255 = arith.constant 0 : index
    %204 = tpu.strided_load %arg13[%c61, %c0_255] {strides = array<i32: 2, 1>} : memref<209x16xf32, #tpu.memory_space<vmem>>, vector<7x16xf32>
    %c14_256 = arith.constant 14 : index
    %c16_257 = arith.constant 16 : index
    %205 = vector.load %arg14[%c14_256, %c16_257] : memref<49x64xf32, #tpu.memory_space<vmem>>, vector<7x16xf32>
    tpu.vector_store %arg14[%c14_256, %c16_257], %204 {strides = array<i32>} : memref<49x64xf32, #tpu.memory_space<vmem>>, vector<7x16xf32>,
    %c91 = arith.constant 91 : index
    %c0_258 = arith.constant 0 : index
    %206 = tpu.strided_load %arg13[%c91, %c0_258] {strides = array<i32: 2, 1>} : memref<209x16xf32, #tpu.memory_space<vmem>>, vector<7x16xf32>
    %c21_259 = arith.constant 21 : index
    %c16_260 = arith.constant 16 : index
    %207 = vector.load %arg14[%c21_259, %c16_260] : memref<49x64xf32, #tpu.memory_space<vmem>>, vector<7x16xf32>
    tpu.vector_store %arg14[%c21_259, %c16_260], %206 {strides = array<i32>} : memref<49x64xf32, #tpu.memory_space<vmem>>, vector<7x16xf32>,
    %c121 = arith.constant 121 : index
    %c0_261 = arith.constant 0 : index
    %208 = tpu.strided_load %arg13[%c121, %c0_261] {strides = array<i32: 2, 1>} : memref<209x16xf32, #tpu.memory_space<vmem>>, vector<7x16xf32>
    %c28_262 = arith.constant 28 : index
    %c16_263 = arith.constant 16 : index
    %209 = vector.load %arg14[%c28_262, %c16_263] : memref<49x64xf32, #tpu.memory_space<vmem>>, vector<7x16xf32>
    tpu.vector_store %arg14[%c28_262, %c16_263], %208 {strides = array<i32>} : memref<49x64xf32, #tpu.memory_space<vmem>>, vector<7x16xf32>,
    %c151 = arith.constant 151 : index
    %c0_264 = arith.constant 0 : index
    %210 = tpu.strided_load %arg13[%c151, %c0_264] {strides = array<i32: 2, 1>} : memref<209x16xf32, #tpu.memory_space<vmem>>, vector<7x16xf32>
    %c35_265 = arith.constant 35 : index
    %c16_266 = arith.constant 16 : index
    %211 = vector.load %arg14[%c35_265, %c16_266] : memref<49x64xf32, #tpu.memory_space<vmem>>, vector<7x16xf32>
    tpu.vector_store %arg14[%c35_265, %c16_266], %210 {strides = array<i32>} : memref<49x64xf32, #tpu.memory_space<vmem>>, vector<7x16xf32>,
    %c181 = arith.constant 181 : index
    %c0_267 = arith.constant 0 : index
    %212 = tpu.strided_load %arg13[%c181, %c0_267] {strides = array<i32: 2, 1>} : memref<209x16xf32, #tpu.memory_space<vmem>>, vector<7x16xf32>
    %c42_268 = arith.constant 42 : index
    %c16_269 = arith.constant 16 : index
    %213 = vector.load %arg14[%c42_268, %c16_269] : memref<49x64xf32, #tpu.memory_space<vmem>>, vector<7x16xf32>
    tpu.vector_store %arg14[%c42_268, %c16_269], %212 {strides = array<i32>} : memref<49x64xf32, #tpu.memory_space<vmem>>, vector<7x16xf32>,
    %c15_270 = arith.constant 15 : index
    %c0_271 = arith.constant 0 : index
    %214 = tpu.strided_load %arg13[%c15_270, %c0_271] {strides = array<i32: 2, 1>} : memref<209x16xf32, #tpu.memory_space<vmem>>, vector<7x16xf32>
    %c0_272 = arith.constant 0 : index
    %c32_273 = arith.constant 32 : index
    %215 = vector.load %arg14[%c0_272, %c32_273] : memref<49x64xf32, #tpu.memory_space<vmem>>, vector<7x16xf32>
    tpu.vector_store %arg14[%c0_272, %c32_273], %214 {strides = array<i32>} : memref<49x64xf32, #tpu.memory_space<vmem>>, vector<7x16xf32>,
    %c45_274 = arith.constant 45 : index
    %c0_275 = arith.constant 0 : index
    %216 = tpu.strided_load %arg13[%c45_274, %c0_275] {strides = array<i32: 2, 1>} : memref<209x16xf32, #tpu.memory_space<vmem>>, vector<7x16xf32>
    %c7_276 = arith.constant 7 : index
    %c32_277 = arith.constant 32 : index
    %217 = vector.load %arg14[%c7_276, %c32_277] : memref<49x64xf32, #tpu.memory_space<vmem>>, vector<7x16xf32>
    tpu.vector_store %arg14[%c7_276, %c32_277], %216 {strides = array<i32>} : memref<49x64xf32, #tpu.memory_space<vmem>>, vector<7x16xf32>,
    %c75_278 = arith.constant 75 : index
    %c0_279 = arith.constant 0 : index
    %218 = tpu.strided_load %arg13[%c75_278, %c0_279] {strides = array<i32: 2, 1>} : memref<209x16xf32, #tpu.memory_space<vmem>>, vector<7x16xf32>
    %c14_280 = arith.constant 14 : index
    %c32_281 = arith.constant 32 : index
    %219 = vector.load %arg14[%c14_280, %c32_281] : memref<49x64xf32, #tpu.memory_space<vmem>>, vector<7x16xf32>
    tpu.vector_store %arg14[%c14_280, %c32_281], %218 {strides = array<i32>} : memref<49x64xf32, #tpu.memory_space<vmem>>, vector<7x16xf32>,
    %c105_282 = arith.constant 105 : index
    %c0_283 = arith.constant 0 : index
    %220 = tpu.strided_load %arg13[%c105_282, %c0_283] {strides = array<i32: 2, 1>} : memref<209x16xf32, #tpu.memory_space<vmem>>, vector<7x16xf32>
    %c21_284 = arith.constant 21 : index
    %c32_285 = arith.constant 32 : index
    %221 = vector.load %arg14[%c21_284, %c32_285] : memref<49x64xf32, #tpu.memory_space<vmem>>, vector<7x16xf32>
    tpu.vector_store %arg14[%c21_284, %c32_285], %220 {strides = array<i32>} : memref<49x64xf32, #tpu.memory_space<vmem>>, vector<7x16xf32>,
    %c135_286 = arith.constant 135 : index
    %c0_287 = arith.constant 0 : index
    %222 = tpu.strided_load %arg13[%c135_286, %c0_287] {strides = array<i32: 2, 1>} : memref<209x16xf32, #tpu.memory_space<vmem>>, vector<7x16xf32>
    %c28_288 = arith.constant 28 : index
    %c32_289 = arith.constant 32 : index
    %223 = vector.load %arg14[%c28_288, %c32_289] : memref<49x64xf32, #tpu.memory_space<vmem>>, vector<7x16xf32>
    tpu.vector_store %arg14[%c28_288, %c32_289], %222 {strides = array<i32>} : memref<49x64xf32, #tpu.memory_space<vmem>>, vector<7x16xf32>,
    %c165_290 = arith.constant 165 : index
    %c0_291 = arith.constant 0 : index
    %224 = tpu.strided_load %arg13[%c165_290, %c0_291] {strides = array<i32: 2, 1>} : memref<209x16xf32, #tpu.memory_space<vmem>>, vector<7x16xf32>
    %c35_292 = arith.constant 35 : index
    %c32_293 = arith.constant 32 : index
    %225 = vector.load %arg14[%c35_292, %c32_293] : memref<49x64xf32, #tpu.memory_space<vmem>>, vector<7x16xf32>
    tpu.vector_store %arg14[%c35_292, %c32_293], %224 {strides = array<i32>} : memref<49x64xf32, #tpu.memory_space<vmem>>, vector<7x16xf32>,
    %c195_294 = arith.constant 195 : index
    %c0_295 = arith.constant 0 : index
    %226 = tpu.strided_load %arg13[%c195_294, %c0_295] {strides = array<i32: 2, 1>} : memref<209x16xf32, #tpu.memory_space<vmem>>, vector<7x16xf32>
    %c42_296 = arith.constant 42 : index
    %c32_297 = arith.constant 32 : index
    %227 = vector.load %arg14[%c42_296, %c32_297] : memref<49x64xf32, #tpu.memory_space<vmem>>, vector<7x16xf32>
    tpu.vector_store %arg14[%c42_296, %c32_297], %226 {strides = array<i32>} : memref<49x64xf32, #tpu.memory_space<vmem>>, vector<7x16xf32>,
    %c16_298 = arith.constant 16 : index
    %c0_299 = arith.constant 0 : index
    %228 = tpu.strided_load %arg13[%c16_298, %c0_299] {strides = array<i32: 2, 1>} : memref<209x16xf32, #tpu.memory_space<vmem>>, vector<7x16xf32>
    %c0_300 = arith.constant 0 : index
    %c48 = arith.constant 48 : index
    %229 = vector.load %arg14[%c0_300, %c48] : memref<49x64xf32, #tpu.memory_space<vmem>>, vector<7x16xf32>
    tpu.vector_store %arg14[%c0_300, %c48], %228 {strides = array<i32>} : memref<49x64xf32, #tpu.memory_space<vmem>>, vector<7x16xf32>,
    %c46 = arith.constant 46 : index
    %c0_301 = arith.constant 0 : index
    %230 = tpu.strided_load %arg13[%c46, %c0_301] {strides = array<i32: 2, 1>} : memref<209x16xf32, #tpu.memory_space<vmem>>, vector<7x16xf32>
    %c7_302 = arith.constant 7 : index
    %c48_303 = arith.constant 48 : index
    %231 = vector.load %arg14[%c7_302, %c48_303] : memref<49x64xf32, #tpu.memory_space<vmem>>, vector<7x16xf32>
    tpu.vector_store %arg14[%c7_302, %c48_303], %230 {strides = array<i32>} : memref<49x64xf32, #tpu.memory_space<vmem>>, vector<7x16xf32>,
    %c76 = arith.constant 76 : index
    %c0_304 = arith.constant 0 : index
    %232 = tpu.strided_load %arg13[%c76, %c0_304] {strides = array<i32: 2, 1>} : memref<209x16xf32, #tpu.memory_space<vmem>>, vector<7x16xf32>
    %c14_305 = arith.constant 14 : index
    %c48_306 = arith.constant 48 : index
    %233 = vector.load %arg14[%c14_305, %c48_306] : memref<49x64xf32, #tpu.memory_space<vmem>>, vector<7x16xf32>
    tpu.vector_store %arg14[%c14_305, %c48_306], %232 {strides = array<i32>} : memref<49x64xf32, #tpu.memory_space<vmem>>, vector<7x16xf32>,
    %c106 = arith.constant 106 : index
    %c0_307 = arith.constant 0 : index
    %234 = tpu.strided_load %arg13[%c106, %c0_307] {strides = array<i32: 2, 1>} : memref<209x16xf32, #tpu.memory_space<vmem>>, vector<7x16xf32>
    %c21_308 = arith.constant 21 : index
    %c48_309 = arith.constant 48 : index
    %235 = vector.load %arg14[%c21_308, %c48_309] : memref<49x64xf32, #tpu.memory_space<vmem>>, vector<7x16xf32>
    tpu.vector_store %arg14[%c21_308, %c48_309], %234 {strides = array<i32>} : memref<49x64xf32, #tpu.memory_space<vmem>>, vector<7x16xf32>,
    %c136 = arith.constant 136 : index
    %c0_310 = arith.constant 0 : index
    %236 = tpu.strided_load %arg13[%c136, %c0_310] {strides = array<i32: 2, 1>} : memref<209x16xf32, #tpu.memory_space<vmem>>, vector<7x16xf32>
    %c28_311 = arith.constant 28 : index
    %c48_312 = arith.constant 48 : index
    %237 = vector.load %arg14[%c28_311, %c48_312] : memref<49x64xf32, #tpu.memory_space<vmem>>, vector<7x16xf32>
    tpu.vector_store %arg14[%c28_311, %c48_312], %236 {strides = array<i32>} : memref<49x64xf32, #tpu.memory_space<vmem>>, vector<7x16xf32>,
    %c166 = arith.constant 166 : index
    %c0_313 = arith.constant 0 : index
    %238 = tpu.strided_load %arg13[%c166, %c0_313] {strides = array<i32: 2, 1>} : memref<209x16xf32, #tpu.memory_space<vmem>>, vector<7x16xf32>
    %c35_314 = arith.constant 35 : index
    %c48_315 = arith.constant 48 : index
    %239 = vector.load %arg14[%c35_314, %c48_315] : memref<49x64xf32, #tpu.memory_space<vmem>>, vector<7x16xf32>
    tpu.vector_store %arg14[%c35_314, %c48_315], %238 {strides = array<i32>} : memref<49x64xf32, #tpu.memory_space<vmem>>, vector<7x16xf32>,
    %c196 = arith.constant 196 : index
    %c0_316 = arith.constant 0 : index
    %240 = tpu.strided_load %arg13[%c196, %c0_316] {strides = array<i32: 2, 1>} : memref<209x16xf32, #tpu.memory_space<vmem>>, vector<7x16xf32>
    %c42_317 = arith.constant 42 : index
    %c48_318 = arith.constant 48 : index
    %241 = vector.load %arg14[%c42_317, %c48_318] : memref<49x64xf32, #tpu.memory_space<vmem>>, vector<7x16xf32>
    tpu.vector_store %arg14[%c42_317, %c48_318], %240 {strides = array<i32>} : memref<49x64xf32, #tpu.memory_space<vmem>>, vector<7x16xf32>,
    %c0_319 = arith.constant 0 : index
    %c0_320 = arith.constant 0 : index
    %242 = vector.load %arg14[%c0_319, %c0_320] : memref<49x64xf32, #tpu.memory_space<vmem>>, vector<41x64xf32>
    %c0_321 = arith.constant 0 : index
    %c0_322 = arith.constant 0 : index
    %c0_323 = arith.constant 0 : index
    %243 = vector.load %arg6[%c0_321, %c0_322, %c0_323] : memref<4x64x32xf32, #tpu.memory_space<vmem>>, vector<1x64x32xf32>
    %244 = vector.shape_cast %243 : vector<1x64x32xf32> to vector<64x32xf32>
    %cst_324 = arith.constant dense<0.000000e+00> : vector<41x32xf32>
    %245 = tpu.matmul %242, %244, %cst_324 {dimension_numbers = #tpu.dot_dimension_numbers<[1], [0], [0], [1], [0, 0, 1, 1], [], []>} : vector<41x64xf32>, vector<64x32xf32>, vector<41x32xf32> -> vector<41x32xf32>
    %c1_325 = arith.constant 1 : index
    %c0_326 = arith.constant 0 : index
    %246 = vector.load %arg14[%c1_325, %c0_326] : memref<49x64xf32, #tpu.memory_space<vmem>>, vector<41x64xf32>
    %c1_327 = arith.constant 1 : index
    %c0_328 = arith.constant 0 : index
    %c0_329 = arith.constant 0 : index
    %247 = vector.load %arg6[%c1_327, %c0_328, %c0_329] : memref<4x64x32xf32, #tpu.memory_space<vmem>>, vector<1x64x32xf32>
    %248 = vector.shape_cast %247 : vector<1x64x32xf32> to vector<64x32xf32>
    %cst_330 = arith.constant dense<0.000000e+00> : vector<41x32xf32>
    %249 = tpu.matmul %246, %248, %cst_330 {dimension_numbers = #tpu.dot_dimension_numbers<[1], [0], [0], [1], [0, 0, 1, 1], [], []>} : vector<41x64xf32>, vector<64x32xf32>, vector<41x32xf32> -> vector<41x32xf32>
    %250 = arith.addf %245, %249 : vector<41x32xf32>
    %c7_331 = arith.constant 7 : index
    %c0_332 = arith.constant 0 : index
    %251 = vector.load %arg14[%c7_331, %c0_332] : memref<49x64xf32, #tpu.memory_space<vmem>>, vector<41x64xf32>
    %c2_333 = arith.constant 2 : index
    %c0_334 = arith.constant 0 : index
    %c0_335 = arith.constant 0 : index
    %252 = vector.load %arg6[%c2_333, %c0_334, %c0_335] : memref<4x64x32xf32, #tpu.memory_space<vmem>>, vector<1x64x32xf32>
    %253 = vector.shape_cast %252 : vector<1x64x32xf32> to vector<64x32xf32>
    %cst_336 = arith.constant dense<0.000000e+00> : vector<41x32xf32>
    %254 = tpu.matmul %251, %253, %cst_336 {dimension_numbers = #tpu.dot_dimension_numbers<[1], [0], [0], [1], [0, 0, 1, 1], [], []>} : vector<41x64xf32>, vector<64x32xf32>, vector<41x32xf32> -> vector<41x32xf32>
    %255 = arith.addf %250, %254 : vector<41x32xf32>
    %c8_337 = arith.constant 8 : index
    %c0_338 = arith.constant 0 : index
    %256 = vector.load %arg14[%c8_337, %c0_338] : memref<49x64xf32, #tpu.memory_space<vmem>>, vector<41x64xf32>
    %c3_339 = arith.constant 3 : index
    %c0_340 = arith.constant 0 : index
    %c0_341 = arith.constant 0 : index
    %257 = vector.load %arg6[%c3_339, %c0_340, %c0_341] : memref<4x64x32xf32, #tpu.memory_space<vmem>>, vector<1x64x32xf32>
    %258 = vector.shape_cast %257 : vector<1x64x32xf32> to vector<64x32xf32>
    %cst_342 = arith.constant dense<0.000000e+00> : vector<41x32xf32>
    %259 = tpu.matmul %256, %258, %cst_342 {dimension_numbers = #tpu.dot_dimension_numbers<[1], [0], [0], [1], [0, 0, 1, 1], [], []>} : vector<41x64xf32>, vector<64x32xf32>, vector<41x32xf32> -> vector<41x32xf32>
    %260 = arith.addf %255, %259 : vector<41x32xf32>
    %c0_343 = arith.constant 0 : index
    %c0_344 = arith.constant 0 : index
    %261 = vector.load %arg7[%c0_343, %c0_344] : memref<1x32xf32, #tpu.memory_space<vmem>>, vector<1x32xf32>
    %262 = vector.broadcast %261 : vector<1x32xf32> to vector<41x32xf32>
    %263 = arith.addf %260, %262 : vector<41x32xf32>
    %cst_345 = arith.constant 0.000000e+00 : f32
    %264 = vector.broadcast %cst_345 : f32 to vector<41x32xf32>
    %265 = arith.cmpf ogt, %263, %264 : vector<41x32xf32>
    %cst_346 = arith.constant 0.000000e+00 : f32
    %266 = vector.broadcast %cst_346 : f32 to vector<41x32xf32>
    %267 = arith.minimumf %263, %266 : vector<41x32xf32>
    %268 = math.exp %267 : vector<41x32xf32>
    %cst_347 = arith.constant 1.000000e+00 : f32
    %269 = vector.broadcast %cst_347 : f32 to vector<41x32xf32>
    %270 = arith.subf %268, %269 : vector<41x32xf32>
    %271 = arith.select %265, %263, %270 : vector<41x32xi1>, vector<41x32xf32>
    %c0_348 = arith.constant 0 : index
    %c0_349 = arith.constant 0 : index
    %272 = vector.load %arg15[%c0_348, %c0_349] : memref<41x32xf32, #tpu.memory_space<vmem>>, vector<41x32xf32>
    tpu.vector_store %arg15[%c0_348, %c0_349], %271 {strides = array<i32>} : memref<41x32xf32, #tpu.memory_space<vmem>>, vector<41x32xf32>,
    %c0_350 = arith.constant 0 : index
    %c0_351 = arith.constant 0 : index
    %273 = tpu.strided_load %arg15[%c0_350, %c0_351] {strides = array<i32: 2, 1>} : memref<41x32xf32, #tpu.memory_space<vmem>>, vector<3x32xf32>
    %c0_352 = arith.constant 0 : index
    %c0_353 = arith.constant 0 : index
    %274 = vector.load %arg16[%c0_352, %c0_353] : memref<9x128xf32, #tpu.memory_space<vmem>>, vector<3x32xf32>
    tpu.vector_store %arg16[%c0_352, %c0_353], %273 {strides = array<i32>} : memref<9x128xf32, #tpu.memory_space<vmem>>, vector<3x32xf32>,
    %c14_354 = arith.constant 14 : index
    %c0_355 = arith.constant 0 : index
    %275 = tpu.strided_load %arg15[%c14_354, %c0_355] {strides = array<i32: 2, 1>} : memref<41x32xf32, #tpu.memory_space<vmem>>, vector<3x32xf32>
    %c3_356 = arith.constant 3 : index
    %c0_357 = arith.constant 0 : index
    %276 = vector.load %arg16[%c3_356, %c0_357] : memref<9x128xf32, #tpu.memory_space<vmem>>, vector<3x32xf32>
    tpu.vector_store %arg16[%c3_356, %c0_357], %275 {strides = array<i32>} : memref<9x128xf32, #tpu.memory_space<vmem>>, vector<3x32xf32>,
    %c28_358 = arith.constant 28 : index
    %c0_359 = arith.constant 0 : index
    %277 = tpu.strided_load %arg15[%c28_358, %c0_359] {strides = array<i32: 2, 1>} : memref<41x32xf32, #tpu.memory_space<vmem>>, vector<3x32xf32>
    %c6 = arith.constant 6 : index
    %c0_360 = arith.constant 0 : index
    %278 = vector.load %arg16[%c6, %c0_360] : memref<9x128xf32, #tpu.memory_space<vmem>>, vector<3x32xf32>
    tpu.vector_store %arg16[%c6, %c0_360], %277 {strides = array<i32>} : memref<9x128xf32, #tpu.memory_space<vmem>>, vector<3x32xf32>,
    %c1_361 = arith.constant 1 : index
    %c0_362 = arith.constant 0 : index
    %279 = tpu.strided_load %arg15[%c1_361, %c0_362] {strides = array<i32: 2, 1>} : memref<41x32xf32, #tpu.memory_space<vmem>>, vector<3x32xf32>
    %c0_363 = arith.constant 0 : index
    %c32_364 = arith.constant 32 : index
    %280 = vector.load %arg16[%c0_363, %c32_364] : memref<9x128xf32, #tpu.memory_space<vmem>>, vector<3x32xf32>
    tpu.vector_store %arg16[%c0_363, %c32_364], %279 {strides = array<i32>} : memref<9x128xf32, #tpu.memory_space<vmem>>, vector<3x32xf32>,
    %c15_365 = arith.constant 15 : index
    %c0_366 = arith.constant 0 : index
    %281 = tpu.strided_load %arg15[%c15_365, %c0_366] {strides = array<i32: 2, 1>} : memref<41x32xf32, #tpu.memory_space<vmem>>, vector<3x32xf32>
    %c3_367 = arith.constant 3 : index
    %c32_368 = arith.constant 32 : index
    %282 = vector.load %arg16[%c3_367, %c32_368] : memref<9x128xf32, #tpu.memory_space<vmem>>, vector<3x32xf32>
    tpu.vector_store %arg16[%c3_367, %c32_368], %281 {strides = array<i32>} : memref<9x128xf32, #tpu.memory_space<vmem>>, vector<3x32xf32>,
    %c29 = arith.constant 29 : index
    %c0_369 = arith.constant 0 : index
    %283 = tpu.strided_load %arg15[%c29, %c0_369] {strides = array<i32: 2, 1>} : memref<41x32xf32, #tpu.memory_space<vmem>>, vector<3x32xf32>
    %c6_370 = arith.constant 6 : index
    %c32_371 = arith.constant 32 : index
    %284 = vector.load %arg16[%c6_370, %c32_371] : memref<9x128xf32, #tpu.memory_space<vmem>>, vector<3x32xf32>
    tpu.vector_store %arg16[%c6_370, %c32_371], %283 {strides = array<i32>} : memref<9x128xf32, #tpu.memory_space<vmem>>, vector<3x32xf32>,
    %c7_372 = arith.constant 7 : index
    %c0_373 = arith.constant 0 : index
    %285 = tpu.strided_load %arg15[%c7_372, %c0_373] {strides = array<i32: 2, 1>} : memref<41x32xf32, #tpu.memory_space<vmem>>, vector<3x32xf32>
    %c0_374 = arith.constant 0 : index
    %c64_375 = arith.constant 64 : index
    %286 = vector.load %arg16[%c0_374, %c64_375] : memref<9x128xf32, #tpu.memory_space<vmem>>, vector<3x32xf32>
    tpu.vector_store %arg16[%c0_374, %c64_375], %285 {strides = array<i32>} : memref<9x128xf32, #tpu.memory_space<vmem>>, vector<3x32xf32>,
    %c21_376 = arith.constant 21 : index
    %c0_377 = arith.constant 0 : index
    %287 = tpu.strided_load %arg15[%c21_376, %c0_377] {strides = array<i32: 2, 1>} : memref<41x32xf32, #tpu.memory_space<vmem>>, vector<3x32xf32>
    %c3_378 = arith.constant 3 : index
    %c64_379 = arith.constant 64 : index
    %288 = vector.load %arg16[%c3_378, %c64_379] : memref<9x128xf32, #tpu.memory_space<vmem>>, vector<3x32xf32>
    tpu.vector_store %arg16[%c3_378, %c64_379], %287 {strides = array<i32>} : memref<9x128xf32, #tpu.memory_space<vmem>>, vector<3x32xf32>,
    %c35_380 = arith.constant 35 : index
    %c0_381 = arith.constant 0 : index
    %289 = tpu.strided_load %arg15[%c35_380, %c0_381] {strides = array<i32: 2, 1>} : memref<41x32xf32, #tpu.memory_space<vmem>>, vector<3x32xf32>
    %c6_382 = arith.constant 6 : index
    %c64_383 = arith.constant 64 : index
    %290 = vector.load %arg16[%c6_382, %c64_383] : memref<9x128xf32, #tpu.memory_space<vmem>>, vector<3x32xf32>
    tpu.vector_store %arg16[%c6_382, %c64_383], %289 {strides = array<i32>} : memref<9x128xf32, #tpu.memory_space<vmem>>, vector<3x32xf32>,
    %c8_384 = arith.constant 8 : index
    %c0_385 = arith.constant 0 : index
    %291 = tpu.strided_load %arg15[%c8_384, %c0_385] {strides = array<i32: 2, 1>} : memref<41x32xf32, #tpu.memory_space<vmem>>, vector<3x32xf32>
    %c0_386 = arith.constant 0 : index
    %c96_387 = arith.constant 96 : index
    %292 = vector.load %arg16[%c0_386, %c96_387] : memref<9x128xf32, #tpu.memory_space<vmem>>, vector<3x32xf32>
    tpu.vector_store %arg16[%c0_386, %c96_387], %291 {strides = array<i32>} : memref<9x128xf32, #tpu.memory_space<vmem>>, vector<3x32xf32>,
    %c22 = arith.constant 22 : index
    %c0_388 = arith.constant 0 : index
    %293 = tpu.strided_load %arg15[%c22, %c0_388] {strides = array<i32: 2, 1>} : memref<41x32xf32, #tpu.memory_space<vmem>>, vector<3x32xf32>
    %c3_389 = arith.constant 3 : index
    %c96_390 = arith.constant 96 : index
    %294 = vector.load %arg16[%c3_389, %c96_390] : memref<9x128xf32, #tpu.memory_space<vmem>>, vector<3x32xf32>
    tpu.vector_store %arg16[%c3_389, %c96_390], %293 {strides = array<i32>} : memref<9x128xf32, #tpu.memory_space<vmem>>, vector<3x32xf32>,
    %c36 = arith.constant 36 : index
    %c0_391 = arith.constant 0 : index
    %295 = tpu.strided_load %arg15[%c36, %c0_391] {strides = array<i32: 2, 1>} : memref<41x32xf32, #tpu.memory_space<vmem>>, vector<3x32xf32>
    %c6_392 = arith.constant 6 : index
    %c96_393 = arith.constant 96 : index
    %296 = vector.load %arg16[%c6_392, %c96_393] : memref<9x128xf32, #tpu.memory_space<vmem>>, vector<3x32xf32>
    tpu.vector_store %arg16[%c6_392, %c96_393], %295 {strides = array<i32>} : memref<9x128xf32, #tpu.memory_space<vmem>>, vector<3x32xf32>,
    %c0_394 = arith.constant 0 : index
    %c0_395 = arith.constant 0 : index
    %297 = vector.load %arg16[%c0_394, %c0_395] : memref<9x128xf32, #tpu.memory_space<vmem>>, vector<5x128xf32>
    %c0_396 = arith.constant 0 : index
    %c0_397 = arith.constant 0 : index
    %c0_398 = arith.constant 0 : index
    %298 = vector.load %arg8[%c0_396, %c0_397, %c0_398] : memref<4x128x64xf32, #tpu.memory_space<vmem>>, vector<1x128x64xf32>
    %299 = vector.shape_cast %298 : vector<1x128x64xf32> to vector<128x64xf32>
    %cst_399 = arith.constant dense<0.000000e+00> : vector<5x64xf32>
    %300 = tpu.matmul %297, %299, %cst_399 {dimension_numbers = #tpu.dot_dimension_numbers<[1], [0], [0], [1], [0, 0, 1, 1], [], []>} : vector<5x128xf32>, vector<128x64xf32>, vector<5x64xf32> -> vector<5x64xf32>
    %c1_400 = arith.constant 1 : index
    %c0_401 = arith.constant 0 : index
    %301 = vector.load %arg16[%c1_400, %c0_401] : memref<9x128xf32, #tpu.memory_space<vmem>>, vector<5x128xf32>
    %c1_402 = arith.constant 1 : index
    %c0_403 = arith.constant 0 : index
    %c0_404 = arith.constant 0 : index
    %302 = vector.load %arg8[%c1_402, %c0_403, %c0_404] : memref<4x128x64xf32, #tpu.memory_space<vmem>>, vector<1x128x64xf32>
    %303 = vector.shape_cast %302 : vector<1x128x64xf32> to vector<128x64xf32>
    %cst_405 = arith.constant dense<0.000000e+00> : vector<5x64xf32>
    %304 = tpu.matmul %301, %303, %cst_405 {dimension_numbers = #tpu.dot_dimension_numbers<[1], [0], [0], [1], [0, 0, 1, 1], [], []>} : vector<5x128xf32>, vector<128x64xf32>, vector<5x64xf32> -> vector<5x64xf32>
    %305 = arith.addf %300, %304 : vector<5x64xf32>
    %c3_406 = arith.constant 3 : index
    %c0_407 = arith.constant 0 : index
    %306 = vector.load %arg16[%c3_406, %c0_407] : memref<9x128xf32, #tpu.memory_space<vmem>>, vector<5x128xf32>
    %c2_408 = arith.constant 2 : index
    %c0_409 = arith.constant 0 : index
    %c0_410 = arith.constant 0 : index
    %307 = vector.load %arg8[%c2_408, %c0_409, %c0_410] : memref<4x128x64xf32, #tpu.memory_space<vmem>>, vector<1x128x64xf32>
    %308 = vector.shape_cast %307 : vector<1x128x64xf32> to vector<128x64xf32>
    %cst_411 = arith.constant dense<0.000000e+00> : vector<5x64xf32>
    %309 = tpu.matmul %306, %308, %cst_411 {dimension_numbers = #tpu.dot_dimension_numbers<[1], [0], [0], [1], [0, 0, 1, 1], [], []>} : vector<5x128xf32>, vector<128x64xf32>, vector<5x64xf32> -> vector<5x64xf32>
    %310 = arith.addf %305, %309 : vector<5x64xf32>
    %c4 = arith.constant 4 : index
    %c0_412 = arith.constant 0 : index
    %311 = vector.load %arg16[%c4, %c0_412] : memref<9x128xf32, #tpu.memory_space<vmem>>, vector<5x128xf32>
    %c3_413 = arith.constant 3 : index
    %c0_414 = arith.constant 0 : index
    %c0_415 = arith.constant 0 : index
    %312 = vector.load %arg8[%c3_413, %c0_414, %c0_415] : memref<4x128x64xf32, #tpu.memory_space<vmem>>, vector<1x128x64xf32>
    %313 = vector.shape_cast %312 : vector<1x128x64xf32> to vector<128x64xf32>
    %cst_416 = arith.constant dense<0.000000e+00> : vector<5x64xf32>
    %314 = tpu.matmul %311, %313, %cst_416 {dimension_numbers = #tpu.dot_dimension_numbers<[1], [0], [0], [1], [0, 0, 1, 1], [], []>} : vector<5x128xf32>, vector<128x64xf32>, vector<5x64xf32> -> vector<5x64xf32>
    %315 = arith.addf %310, %314 : vector<5x64xf32>
    %c0_417 = arith.constant 0 : index
    %c0_418 = arith.constant 0 : index
    %316 = vector.load %arg9[%c0_417, %c0_418] : memref<1x64xf32, #tpu.memory_space<vmem>>, vector<1x64xf32>
    %317 = vector.broadcast %316 : vector<1x64xf32> to vector<5x64xf32>
    %318 = arith.addf %315, %317 : vector<5x64xf32>
    %cst_419 = arith.constant 0.000000e+00 : f32
    %319 = vector.broadcast %cst_419 : f32 to vector<5x64xf32>
    %320 = arith.cmpf ogt, %318, %319 : vector<5x64xf32>
    %cst_420 = arith.constant 0.000000e+00 : f32
    %321 = vector.broadcast %cst_420 : f32 to vector<5x64xf32>
    %322 = arith.minimumf %318, %321 : vector<5x64xf32>
    %323 = math.exp %322 : vector<5x64xf32>
    %cst_421 = arith.constant 1.000000e+00 : f32
    %324 = vector.broadcast %cst_421 : f32 to vector<5x64xf32>
    %325 = arith.subf %323, %324 : vector<5x64xf32>
    %326 = arith.select %320, %318, %325 : vector<5x64xi1>, vector<5x64xf32>
    %327 = vector.extract_strided_slice %326 {offsets = [0, 0], sizes = [2, 64], strides = [1, 1]} : vector<5x64xf32> to vector<2x64xf32>
    %c0_422 = arith.constant 0 : index
    %c0_423 = arith.constant 0 : index
    %c0_424 = arith.constant 0 : index
    %328 = vector.load %arg10[%c0_422, %c0_423, %c0_424] : memref<1x4x64xf32, #tpu.memory_space<vmem>>, vector<1x2x64xf32>
    %329 = vector.shape_cast %328 : vector<1x2x64xf32> to vector<2x64xf32>
    %330 = vector.shape_cast %327 : vector<2x64xf32> to vector<1x2x64xf32>
    tpu.vector_store %arg10[%c0_422, %c0_423, %c0_424], %330 {strides = array<i32>} : memref<1x4x64xf32, #tpu.memory_space<vmem>>, vector<1x2x64xf32>,
    %331 = vector.extract_strided_slice %326 {offsets = [3, 0], sizes = [2, 64], strides = [1, 1]} : vector<5x64xf32> to vector<2x64xf32>
    %c0_425 = arith.constant 0 : index
    %c2_426 = arith.constant 2 : index
    %c0_427 = arith.constant 0 : index
    %332 = vector.load %arg10[%c0_425, %c2_426, %c0_427] : memref<1x4x64xf32, #tpu.memory_space<vmem>>, vector<1x2x64xf32>
    %333 = vector.shape_cast %332 : vector<1x2x64xf32> to vector<2x64xf32>
    %334 = vector.shape_cast %331 : vector<2x64xf32> to vector<1x2x64xf32>
    tpu.vector_store %arg10[%c0_425, %c2_426, %c0_427], %334 {strides = array<i32>} : memref<1x4x64xf32, #tpu.memory_space<vmem>>, vector<1x2x64xf32>,
    return
  }
  func.func @transform_0(%arg0: i32) -> (i32, i32, i32) {
    %c0_i32 = arith.constant 0 : i32
    %c0_i32_0 = arith.constant 0 : i32
    %c0_i32_1 = arith.constant 0 : i32
    return %arg0, %c0_i32, %c0_i32_0 : i32, i32, i32
  }
  func.func @transform_1(%arg0: i32) -> (i32, i32, i32) {
    %c0_i32 = arith.constant 0 : i32
    %c0_i32_0 = arith.constant 0 : i32
    %c0_i32_1 = arith.constant 0 : i32
    %c0_i32_2 = arith.constant 0 : i32
    return %c0_i32, %c0_i32_0, %c0_i32_1 : i32, i32, i32
  }
  func.func @transform_2(%arg0: i32) -> (i32, i32) {
    %c0_i32 = arith.constant 0 : i32
    %c0_i32_0 = arith.constant 0 : i32
    %c0_i32_1 = arith.constant 0 : i32
    return %c0_i32, %c0_i32_0 : i32, i32
  }
  func.func @transform_3(%arg0: i32) -> (i32, i32, i32) {
    %c0_i32 = arith.constant 0 : i32
    %c0_i32_0 = arith.constant 0 : i32
    %c0_i32_1 = arith.constant 0 : i32
    %c0_i32_2 = arith.constant 0 : i32
    return %c0_i32, %c0_i32_0, %c0_i32_1 : i32, i32, i32
  }
  func.func @transform_4(%arg0: i32) -> (i32, i32) {
    %c0_i32 = arith.constant 0 : i32
    %c0_i32_0 = arith.constant 0 : i32
    %c0_i32_1 = arith.constant 0 : i32
    return %c0_i32, %c0_i32_0 : i32, i32
  }
  func.func @transform_5(%arg0: i32) -> (i32, i32, i32) {
    %c0_i32 = arith.constant 0 : i32
    %c0_i32_0 = arith.constant 0 : i32
    %c0_i32_1 = arith.constant 0 : i32
    %c0_i32_2 = arith.constant 0 : i32
    return %c0_i32, %c0_i32_0, %c0_i32_1 : i32, i32, i32
  }
  func.func @transform_6(%arg0: i32) -> (i32, i32) {
    %c0_i32 = arith.constant 0 : i32
    %c0_i32_0 = arith.constant 0 : i32
    %c0_i32_1 = arith.constant 0 : i32
    return %c0_i32, %c0_i32_0 : i32, i32
  }
  func.func @transform_7(%arg0: i32) -> (i32, i32, i32) {
    %c0_i32 = arith.constant 0 : i32
    %c0_i32_0 = arith.constant 0 : i32
    %c0_i32_1 = arith.constant 0 : i32
    %c0_i32_2 = arith.constant 0 : i32
    return %c0_i32, %c0_i32_0, %c0_i32_1 : i32, i32, i32
  }
  func.func @transform_8(%arg0: i32) -> (i32, i32) {
    %c0_i32 = arith.constant 0 : i32
    %c0_i32_0 = arith.constant 0 : i32
    %c0_i32_1 = arith.constant 0 : i32
    return %c0_i32, %c0_i32_0 : i32, i32
  }
  func.func @transform_9(%arg0: i32) -> (i32, i32, i32) {
    %c0_i32 = arith.constant 0 : i32
    %c0_i32_0 = arith.constant 0 : i32
    %c0_i32_1 = arith.constant 0 : i32
    return %arg0, %c0_i32, %c0_i32_0 : i32, i32, i32
  }
}

</mosaic_0001>

<bundles_post_ra>
// kernel: conv_encoder_forward.1
= control target key start
LH: loop header
LB: loop body
LE: loop exit
PB: predicated region body
PF: predicated region fallthrough
CT: control target
= control target key end

     0   :  { %s13245_s30 = smov 0   ;;  %s17625_s0 = inlined_call_operand.vmem [shape: f32[2,1024,12], index: 0, kind: input, shape index: {}]   ;;  %s17626_s1 = inlined_call_operand.vmem [shape: f32[4,12,8], index: 1, kind: input, shape index: {}]   ;;  %s17627_s2 = inlined_call_operand.vmem [shape: f32[1,8], index: 2, kind: input, shape index: {}]   ;;  %s17628_s3 = inlined_call_operand.vmem [shape: f32[4,32,16], index: 3, kind: input, shape index: {}]   ;;  %s17629_s4 = inlined_call_operand.vmem [shape: f32[1,16], index: 4, kind: input, shape index: {}]   ;;  %s17630_s5 = inlined_call_operand.vmem [shape: f32[4,64,32], index: 5, kind: input, shape index: {}]   ;;  %s17631_s6 = inlined_call_operand.vmem [shape: f32[1,32], index: 6, kind: input, shape index: {}]   ;;  %s17632_s7 = inlined_call_operand.vmem [shape: f32[4,128,64], index: 7, kind: input, shape index: {}]   ;;  %s17633_s8 = inlined_call_operand.vmem [shape: f32[1,64], index: 8, kind: input, shape index: {}]   ;;  %s17634_s9 = inlined_call_operand.vmem [shape: f32[2,4,64], index: 9, kind: output, shape index: {}]  }
   0x1 LB: > { %s9835_s10 = sadd.s32 4294967295, %s13184_s30   ;;  %p9839_p0 = scmp.ge.s32.totalorder %s13184_s30, 1  ;;  %s13184_s30 = sphi %s13245_s30, %s19_s30  }
   0x2   : > { %p287_p1 = scmp.lt.s32.totalorder %s13184_s30, 3 }
   0x4   : > { %p288_p2 = pnand %p9839_p0, %p287_p1 }
   0x6   : > { %291 = sbr.rel (%p288_p2) target bundleno = 1946 (0x79a), region = 56 }
   0xb   : > { %v9844_v0 = vld [vmem:[%s17626_s1 + $0x18] sm:$0xf]  ;;  %vm957_vm0 = vcmask 1043456   ;;  %v456_v1 = vld [vmem:[%s17626_s1 + $0x8] sm:$0xf]  ;;  %v9843_v2 = vld [vmem:[%s17626_s1 + $0x10] sm:$0xff] }
   0xc   : > { %11482 = vmatprep.subr.msk.mxu0 %vm957_vm0, %v9844_v0  ;;  %11672 = vmatprep.subr.msk.mxu1 %vm957_vm0, %v456_v1  ;;  %v455_v3 = vld [vmem:[%s17626_s1] sm:$0xff]  ;;  %p322_p3 = scmp.lt.s32.totalorder %s9835_s10, 1  ;;  %v10096_v4 = vld [vmem:[%s17626_s1 + $0x28] sm:$0xf]  ;;  %v10223_v5 = vld [vmem:[%s17626_s1 + $0x38] sm:$0xf] }
   0xd   : > { %11483 = vmatpush3.msk.msra.mxu0 %vm957_vm0, %v9844_v0  ;;  %11673 = vmatpush3.msk.msra.mxu1 %vm957_vm0, %v456_v1  ;;  %vm584_vm1 = vcmask 97280   ;;  %v10095_v12 = vld [vmem:[%s17626_s1 + $0x20] sm:$0xff]  ;;  %v10222_v13 = vld [vmem:[%s17626_s1 + $0x30] sm:$0xff]  ;;  %vm6203_vm2 = vcmask 64512   ;;  %vm6327_vm9 = vcmask 63488   ;;  %s13187_s22 = smov 8  }
   0xe   : > { %11484 = vmatprep.subr.mxu0 %v9843_v2  ;;  %11674 = vmatprep.subr.mxu1 %v455_v3  ;;  %s17801_s10 = smov (!%p322_p3, %s9835_s10), 1  ;;  %s13189_s24 = smov 24  }
   0xf   : > { %11485 = vmatpush3.msra.mxu0 %v9843_v2  ;;  %11675 = vmatpush3.msra.mxu1 %v455_v3  ;;  %s10729_s23 = sshll.u32 %s17801_s10, 10  ;;  %s13193_s25 = smov 64  }
  0x10   : > { %11862 = vmatprep.subr.msk.mxu0 %vm957_vm0, %v10096_v4  ;;  %12052 = vmatprep.subr.msk.mxu1 %vm957_vm0, %v10223_v5  ;;  %s13283_s26 = scalar_lea.vmem %s17625_s0, %s10729_s23  ;;  %s13188_s23 = smov 16  }
  0x11   : > { %v457_v6 = vld [vmem:[%s13283_s26 + $0x1] sm:$0xff]  ;;  %v458_v8 = vld [vmem:[%s13283_s26 + $0x9] sm:$0xff]  ;;  %v459_v10 = vld [vmem:[%s13283_s26 + $0x11] sm:$0xff]  ;;  %s13194_s13 = smov 96  }
  0x12   : > { %v331_v7 = vld [vmem:[%s13283_s26] sm:$0xff]  ;;  %11486 = vmatprep.mubr.msk.f32.mxu0 %vm584_vm1, %v457_v6  ;;  %v332_v9 = vld [vmem:[%s13283_s26 + $0x8] sm:$0xff]  ;;  %v333_v11 = vld [vmem:[%s13283_s26 + $0x10] sm:$0xff] }
  0x13   : > { %11676 = vmatprep.mubr.msk.f32.mxu1 %vm584_vm1, %v331_v7  ;;  %11487 = vmatmul.mubr.msk.f32.vlgmr.msra.gmra.mxu0 %vm584_vm1, %v458_v8  ;;  %v460_v14 = vld [vmem:[%s13283_s26 + $0x19] sm:$0xff]  ;;  %v461_v16 = vld [vmem:[%s13283_s26 + $0x21] sm:$0xff]  ;;  %v462_v18 = vld [vmem:[%s13283_s26 + $0x29] sm:$0xff] }
  0x14   : > { %11677 = vmatmul.mubr.msk.f32.vlgmr.msra.gmra.mxu1 %vm584_vm1, %v332_v9  ;;  %11863 = vmatpush3.msk.msra.mxu0 %vm957_vm0, %v10096_v4  ;;  %v334_v15 = vld [vmem:[%s13283_s26 + $0x18] sm:$0xff]  ;;  %v335_v17 = vld [vmem:[%s13283_s26 + $0x20] sm:$0xff]  ;;  %v336_v19 = vld [vmem:[%s13283_s26 + $0x28] sm:$0xff] }
  0x15   : > { %12053 = vmatpush3.msk.msra.mxu1 %vm957_vm0, %v10223_v5  ;;  %11489 = vmatprep.mubr.msk.f32.mxu0 %vm584_vm1, %v459_v10  ;;  %v463_v20 = vld [vmem:[%s13283_s26 + $0x31] sm:$0xff]  ;;  %v464_v22 = vld [vmem:[%s13283_s26 + $0x39] sm:$0xff]  ;;  %v465_v24 = vld [vmem:[%s13283_s26 + $0x41] sm:$0xff] }
  0x16   : > { %11679 = vmatprep.mubr.msk.f32.mxu1 %vm584_vm1, %v333_v11  ;;  %11864 = vmatprep.subr.mxu0 %v10095_v12  ;;  %v337_v21 = vld [vmem:[%s13283_s26 + $0x30] sm:$0xff]  ;;  %v338_v23 = vld [vmem:[%s13283_s26 + $0x38] sm:$0xff]  ;;  %v339_v25 = vld [vmem:[%s13283_s26 + $0x40] sm:$0xff] }
  0x17   : > { %12054 = vmatprep.subr.mxu1 %v10222_v13  ;;  %11490 = vmatmul.mubr.msk.f32.gmra.mxu0 %vm584_vm1, %v460_v14  ;;  %v466_v26 = vld [vmem:[%s13283_s26 + $0x49] sm:$0xff]  ;;  %v467_v28 = vld [vmem:[%s13283_s26 + $0x51] sm:$0xff]  ;;  %v468_v30 = vld [vmem:[%s13283_s26 + $0x59] sm:$0xff] }
  0x18   : > { %11680 = vmatmul.mubr.msk.f32.gmra.mxu1 %vm584_vm1, %v334_v15  ;;  %11492 = vmatprep.mubr.msk.f32.mxu0 %vm584_vm1, %v461_v16  ;;  %v340_v27 = vld [vmem:[%s13283_s26 + $0x48] sm:$0xff]  ;;  %v341_v29 = vld [vmem:[%s13283_s26 + $0x50] sm:$0xff]  ;;  %v342_v31 = vld [vmem:[%s13283_s26 + $0x58] sm:$0xff] }
  0x19   : > { %11682 = vmatprep.mubr.msk.f32.mxu1 %vm584_vm1, %v335_v17  ;;  %11865 = vmatpush3.msra.mxu0 %v10095_v12  ;;  %v469_v32 = vld [vmem:[%s13283_s26 + $0x61] sm:$0xff]  ;;  %v470_v34 = vld [vmem:[%s13283_s26 + $0x69] sm:$0xff]  ;;  %v471_v36 = vld [vmem:[%s13283_s26 + $0x71] sm:$0xff] }
  0x1a   : > { %12055 = vmatpush3.msra.mxu1 %v10222_v13  ;;  %v343_v33 = vld [vmem:[%s13283_s26 + $0x60] sm:$0xff]  ;;  %v344_v35 = vld [vmem:[%s13283_s26 + $0x68] sm:$0xff]  ;;  %v345_v37 = vld [vmem:[%s13283_s26 + $0x70] sm:$0xff] }
  0x1b   : > { %11493 = vmatmul.mubr.msk.f32.gmra.mxu0 %vm584_vm1, %v462_v18  ;;  %v472_v38 = vld [vmem:[%s13283_s26 + $0x79] sm:$0xff]  ;;  %v473_v40 = vld [vmem:[%s13283_s26 + $0x81] sm:$0xff]  ;;  %v474_v42 = vld [vmem:[%s13283_s26 + $0x89] sm:$0xff] }
  0x1c   : > { %11683 = vmatmul.mubr.msk.f32.gmra.mxu1 %vm584_vm1, %v336_v19  ;;  %11495 = vmatprep.mubr.msk.f32.mxu0 %vm584_vm1, %v463_v20  ;;  %v346_v39 = vld [vmem:[%s13283_s26 + $0x78] sm:$0xff]  ;;  %v347_v41 = vld [vmem:[%s13283_s26 + $0x80] sm:$0xff]  ;;  %v348_v43 = vld [vmem:[%s13283_s26 + $0x88] sm:$0xff] }
  0x1d   : > { %11685 = vmatprep.mubr.msk.f32.mxu1 %vm584_vm1, %v337_v21  ;;  %v475_v44 = vld [vmem:[%s13283_s26 + $0x91] sm:$0xff]  ;;  %v476_v46 = vld [vmem:[%s13283_s26 + $0x99] sm:$0xff]  ;;  %v477_v48 = vld [vmem:[%s13283_s26 + $0xa1] sm:$0xff] }
  0x1e   : > { %v349_v45 = vld [vmem:[%s13283_s26 + $0x90] sm:$0xff]  ;;  %v350_v47 = vld [vmem:[%s13283_s26 + $0x98] sm:$0xff]  ;;  %v351_v49 = vld [vmem:[%s13283_s26 + $0xa0] sm:$0xff] }
  0x1f   : > { %11496 = vmatmul.mubr.msk.f32.gmra.mxu0 %vm584_vm1, %v464_v22  ;;  %v478_v50 = vld [vmem:[%s13283_s26 + $0xa9] sm:$0xff]  ;;  %v479_v52 = vld [vmem:[%s13283_s26 + $0xb1] sm:$0xff]  ;;  %v480_v54 = vld [vmem:[%s13283_s26 + $0xb9] sm:$0xff] }
  0x20   : > { %11686 = vmatmul.mubr.msk.f32.gmra.mxu1 %vm584_vm1, %v338_v23  ;;  %11498 = vmatprep.mubr.msk.f32.mxu0 %vm584_vm1, %v465_v24  ;;  %v352_v51 = vld [vmem:[%s13283_s26 + $0xa8] sm:$0xff]  ;;  %v353_v53 = vld [vmem:[%s13283_s26 + $0xb0] sm:$0xff]  ;;  %v354_v55 = vld [vmem:[%s13283_s26 + $0xb8] sm:$0xff] }
  0x21   : > { %11688 = vmatprep.mubr.msk.f32.mxu1 %vm584_vm1, %v339_v25  ;;  %v481_v56 = vld [vmem:[%s13283_s26 + $0xc1] sm:$0xff]  ;;  %v482_v58 = vld [vmem:[%s13283_s26 + $0xc9] sm:$0xff]  ;;  %v483_v60 = vld [vmem:[%s13283_s26 + $0xd1] sm:$0xff] }
  0x22   : > { %v355_v57 = vld [vmem:[%s13283_s26 + $0xc0] sm:$0xff]  ;;  %v356_v59 = vld [vmem:[%s13283_s26 + $0xc8] sm:$0xff]  ;;  %v357_v61 = vld [vmem:[%s13283_s26 + $0xd0] sm:$0xff] }
  0x23   : > { %11499 = vmatmul.mubr.msk.f32.gmra.mxu0 %vm584_vm1, %v466_v26  ;;  %v484_v62 = vld [vmem:[%s13283_s26 + $0xd9] sm:$0xff]  ;;  %v485_v0 = vld [vmem:[%s13283_s26 + $0xe1] sm:$0xff]  ;;  %v486_v2 = vld [vmem:[%s13283_s26 + $0xe9] sm:$0xff] }
  0x24   : > { %11689 = vmatmul.mubr.msk.f32.gmra.mxu1 %vm584_vm1, %v340_v27  ;;  %11501 = vmatprep.mubr.msk.f32.mxu0 %vm584_vm1, %v467_v28  ;;  %v358_v63 = vld [vmem:[%s13283_s26 + $0xd8] sm:$0xff]  ;;  %v359_v1 = vld [vmem:[%s13283_s26 + $0xe0] sm:$0xff]  ;;  %v360_v3 = vld [vmem:[%s13283_s26 + $0xe8] sm:$0xff] }
  0x25   : > { %11691 = vmatprep.mubr.msk.f32.mxu1 %vm584_vm1, %v341_v29  ;;  %v487_v4 = vld [vmem:[%s13283_s26 + $0xf1] sm:$0xff]  ;;  %v488_v6 = vld [vmem:[%s13283_s26 + $0xf9] sm:$0xff]  ;;  %v489_v8 = vld [vmem:[%s13283_s26 + $0x101] sm:$0xff] }
  0x26   : > { %v361_v5 = vld [vmem:[%s13283_s26 + $0xf0] sm:$0xff]  ;;  %v362_v7 = vld [vmem:[%s13283_s26 + $0xf8] sm:$0xff]  ;;  %v363_v9 = vld [vmem:[%s13283_s26 + $0x100] sm:$0xff] }
  0x27   : > { %11502 = vmatmul.mubr.msk.f32.gmra.mxu0 %vm584_vm1, %v468_v30  ;;  %v490_v10 = vld [vmem:[%s13283_s26 + $0x109] sm:$0xff]  ;;  %v491_v12 = vld [vmem:[%s13283_s26 + $0x111] sm:$0xff]  ;;  %v492_v14 = vld [vmem:[%s13283_s26 + $0x119] sm:$0xff] }
  0x28   : > { %11692 = vmatmul.mubr.msk.f32.gmra.mxu1 %vm584_vm1, %v342_v31  ;;  %11504 = vmatprep.mubr.msk.f32.mxu0 %vm584_vm1, %v469_v32  ;;  %v364_v11 = vld [vmem:[%s13283_s26 + $0x108] sm:$0xff]  ;;  %v365_v13 = vld [vmem:[%s13283_s26 + $0x110] sm:$0xff]  ;;  %v366_v15 = vld [vmem:[%s13283_s26 + $0x118] sm:$0xff] }
  0x29   : > { %11694 = vmatprep.mubr.msk.f32.mxu1 %vm584_vm1, %v343_v33  ;;  %v493_v16 = vld [vmem:[%s13283_s26 + $0x121] sm:$0xff]  ;;  %v494_v18 = vld [vmem:[%s13283_s26 + $0x129] sm:$0xff]  ;;  %v495_v20 = vld [vmem:[%s13283_s26 + $0x131] sm:$0xff] }
  0x2a   : > { %v367_v17 = vld [vmem:[%s13283_s26 + $0x120] sm:$0xff]  ;;  %v368_v19 = vld [vmem:[%s13283_s26 + $0x128] sm:$0xff]  ;;  %v369_v21 = vld [vmem:[%s13283_s26 + $0x130] sm:$0xff] }
  0x2b   : > { %11505 = vmatmul.mubr.msk.f32.gmra.mxu0 %vm584_vm1, %v470_v34  ;;  %v496_v22 = vld [vmem:[%s13283_s26 + $0x139] sm:$0xff]  ;;  %v497_v24 = vld [vmem:[%s13283_s26 + $0x141] sm:$0xff]  ;;  %v498_v26 = vld [vmem:[%s13283_s26 + $0x149] sm:$0xff] }
  0x2c   : > { %11695 = vmatmul.mubr.msk.f32.gmra.mxu1 %vm584_vm1, %v344_v35  ;;  %11507 = vmatprep.mubr.msk.f32.mxu0 %vm584_vm1, %v471_v36  ;;  %v370_v23 = vld [vmem:[%s13283_s26 + $0x138] sm:$0xff]  ;;  %v371_v25 = vld [vmem:[%s13283_s26 + $0x140] sm:$0xff]  ;;  %v372_v27 = vld [vmem:[%s13283_s26 + $0x148] sm:$0xff] }
  0x2d   : > { %11697 = vmatprep.mubr.msk.f32.mxu1 %vm584_vm1, %v345_v37  ;;  %v499_v28 = vld [vmem:[%s13283_s26 + $0x151] sm:$0xff]  ;;  %v500_v30 = vld [vmem:[%s13283_s26 + $0x159] sm:$0xff]  ;;  %v501_v32 = vld [vmem:[%s13283_s26 + $0x161] sm:$0xff] }
  0x2e   : > { %v373_v29 = vld [vmem:[%s13283_s26 + $0x150] sm:$0xff]  ;;  %v374_v31 = vld [vmem:[%s13283_s26 + $0x158] sm:$0xff]  ;;  %v375_v33 = vld [vmem:[%s13283_s26 + $0x160] sm:$0xff] }
  0x2f   : > { %11508 = vmatmul.mubr.msk.f32.gmra.mxu0 %vm584_vm1, %v472_v38  ;;  %v502_v34 = vld [vmem:[%s13283_s26 + $0x169] sm:$0xff]  ;;  %v503_v36 = vld [vmem:[%s13283_s26 + $0x171] sm:$0xff]  ;;  %v504_v38 = vld [vmem:[%s13283_s26 + $0x179] sm:$0xff] }
  0x30   : > { %11698 = vmatmul.mubr.msk.f32.gmra.mxu1 %vm584_vm1, %v346_v39  ;;  %11510 = vmatprep.mubr.msk.f32.mxu0 %vm584_vm1, %v473_v40  ;;  %v376_v35 = vld [vmem:[%s13283_s26 + $0x168] sm:$0xff]  ;;  %v377_v37 = vld [vmem:[%s13283_s26 + $0x170] sm:$0xff]  ;;  %v378_v39 = vld [vmem:[%s13283_s26 + $0x178] sm:$0xff] }
  0x31   : > { %11700 = vmatprep.mubr.msk.f32.mxu1 %vm584_vm1, %v347_v41  ;;  %v505_v40 = vld [vmem:[%s13283_s26 + $0x181] sm:$0xff] }
  0x32   : > { %v379_v41 = vld [vmem:[%s13283_s26 + $0x180] sm:$0xff] }
  0x33   : > { %11511 = vmatmul.mubr.msk.f32.gmra.mxu0 %vm584_vm1, %v474_v42  ;;  %v506_v42 = vld [vmem:[%s13283_s26 + $0x189] sm:$0xff] }
  0x34   : > { %11701 = vmatmul.mubr.msk.f32.gmra.mxu1 %vm584_vm1, %v348_v43  ;;  %11513 = vmatprep.mubr.msk.f32.mxu0 %vm584_vm1, %v475_v44  ;;  %v380_v43 = vld [vmem:[%s13283_s26 + $0x188] sm:$0xff]  ;;  %v507_v44 = vld [vmem:[%s13283_s26 + $0x191] sm:$0xff] }
  0x35   : > { %11703 = vmatprep.mubr.msk.f32.mxu1 %vm584_vm1, %v349_v45  ;;  %v381_v45 = vld [vmem:[%s13283_s26 + $0x190] sm:$0xff] }
  0x37   : > { %11514 = vmatmul.mubr.msk.f32.gmra.mxu0 %vm584_vm1, %v476_v46  ;;  %v508_v46 = vld [vmem:[%s13283_s26 + $0x199] sm:$0xff] }
  0x38   : > { %11704 = vmatmul.mubr.msk.f32.gmra.mxu1 %vm584_vm1, %v350_v47  ;;  %11516 = vmatprep.mubr.msk.f32.mxu0 %vm584_vm1, %v477_v48  ;;  %v382_v47 = vld [vmem:[%s13283_s26 + $0x198] sm:$0xff]  ;;  %v509_v48 = vld [vmem:[%s13283_s26 + $0x1a1] sm:$0xff] }
  0x39   : > { %11706 = vmatprep.mubr.msk.f32.mxu1 %vm584_vm1, %v351_v49  ;;  %v383_v49 = vld [vmem:[%s13283_s26 + $0x1a0] sm:$0xff] }
  0x3b   : > { %11517 = vmatmul.mubr.msk.f32.gmra.mxu0 %vm584_vm1, %v478_v50  ;;  %v510_v50 = vld [vmem:[%s13283_s26 + $0x1a9] sm:$0xff] }
  0x3c   : > { %11707 = vmatmul.mubr.msk.f32.gmra.mxu1 %vm584_vm1, %v352_v51  ;;  %11519 = vmatprep.mubr.msk.f32.mxu0 %vm584_vm1, %v479_v52  ;;  %v384_v51 = vld [vmem:[%s13283_s26 + $0x1a8] sm:$0xff]  ;;  %v511_v52 = vld [vmem:[%s13283_s26 + $0x1b1] sm:$0xff] }
  0x3d   : > { %11709 = vmatprep.mubr.msk.f32.mxu1 %vm584_vm1, %v353_v53  ;;  %v385_v53 = vld [vmem:[%s13283_s26 + $0x1b0] sm:$0xff] }
  0x3f   : > { %11520 = vmatmul.mubr.msk.f32.gmra.mxu0 %vm584_vm1, %v480_v54  ;;  %v512_v54 = vld [vmem:[%s13283_s26 + $0x1b9] sm:$0xff] }
  0x40   : > { %11710 = vmatmul.mubr.msk.f32.gmra.mxu1 %vm584_vm1, %v354_v55  ;;  %11522 = vmatprep.mubr.msk.f32.mxu0 %vm584_vm1, %v481_v56  ;;  %v386_v55 = vld [vmem:[%s13283_s26 + $0x1b8] sm:$0xff]  ;;  %v513_v56 = vld [vmem:[%s13283_s26 + $0x1c1] sm:$0xff] }
  0x41   : > { %11712 = vmatprep.mubr.msk.f32.mxu1 %vm584_vm1, %v355_v57  ;;  %v387_v57 = vld [vmem:[%s13283_s26 + $0x1c0] sm:$0xff] }
  0x43   : > { %11523 = vmatmul.mubr.msk.f32.gmra.mxu0 %vm584_vm1, %v482_v58  ;;  %v514_v58 = vld [vmem:[%s13283_s26 + $0x1c9] sm:$0xff] }
  0x44   : > { %11713 = vmatmul.mubr.msk.f32.gmra.mxu1 %vm584_vm1, %v356_v59  ;;  %11525 = vmatprep.mubr.msk.f32.mxu0 %vm584_vm1, %v483_v60  ;;  %v388_v59 = vld [vmem:[%s13283_s26 + $0x1c8] sm:$0xff]  ;;  %v515_v60 = vld [vmem:[%s13283_s26 + $0x1d1] sm:$0xff] }
  0x45   : > { %11715 = vmatprep.mubr.msk.f32.mxu1 %vm584_vm1, %v357_v61  ;;  %v389_v61 = vld [vmem:[%s13283_s26 + $0x1d0] sm:$0xff] }
  0x47   : > { %11526 = vmatmul.mubr.msk.f32.gmra.mxu0 %vm584_vm1, %v484_v62  ;;  %v516_v62 = vld [vmem:[%s13283_s26 + $0x1d9] sm:$0xff] }
  0x48   : > { %11716 = vmatmul.mubr.msk.f32.gmra.mxu1 %vm584_vm1, %v358_v63  ;;  %11528 = vmatprep.mubr.msk.f32.mxu0 %vm584_vm1, %v485_v0  ;;  %v390_v63 = vld [vmem:[%s13283_s26 + $0x1d8] sm:$0xff]  ;;  %v517_v0 = vld [vmem:[%s13283_s26 + $0x1e1] sm:$0xff] }
  0x49   : > { %11718 = vmatprep.mubr.msk.f32.mxu1 %vm584_vm1, %v359_v1  ;;  %v391_v1 = vld [vmem:[%s13283_s26 + $0x1e0] sm:$0xff] }
  0x4b   : > { %11529 = vmatmul.mubr.msk.f32.gmra.mxu0 %vm584_vm1, %v486_v2  ;;  %v518_v2 = vld [vmem:[%s13283_s26 + $0x1e9] sm:$0xff] }
  0x4c   : > { %11719 = vmatmul.mubr.msk.f32.gmra.mxu1 %vm584_vm1, %v360_v3  ;;  %11531 = vmatprep.mubr.msk.f32.mxu0 %vm584_vm1, %v487_v4  ;;  %v392_v3 = vld [vmem:[%s13283_s26 + $0x1e8] sm:$0xff]  ;;  %v519_v4 = vld [vmem:[%s13283_s26 + $0x1f1] sm:$0xff] }
  0x4d   : > { %11721 = vmatprep.mubr.msk.f32.mxu1 %vm584_vm1, %v361_v5  ;;  %v393_v5 = vld [vmem:[%s13283_s26 + $0x1f0] sm:$0xff] }
  0x4f   : > { %11532 = vmatmul.mubr.msk.f32.gmra.mxu0 %vm584_vm1, %v488_v6  ;;  %v520_v6 = vld [vmem:[%s13283_s26 + $0x1f9] sm:$0xff] }
  0x50   : > { %11722 = vmatmul.mubr.msk.f32.gmra.mxu1 %vm584_vm1, %v362_v7  ;;  %11534 = vmatprep.mubr.msk.f32.mxu0 %vm584_vm1, %v489_v8  ;;  %v394_v7 = vld [vmem:[%s13283_s26 + $0x1f8] sm:$0xff]  ;;  %v521_v8 = vld [vmem:[%s13283_s26 + $0x201] sm:$0xff] }
  0x51   : > { %11724 = vmatprep.mubr.msk.f32.mxu1 %vm584_vm1, %v363_v9  ;;  %v395_v9 = vld [vmem:[%s13283_s26 + $0x200] sm:$0xff] }
  0x53   : > { %11535 = vmatmul.mubr.msk.f32.gmra.mxu0 %vm584_vm1, %v490_v10  ;;  %v522_v10 = vld [vmem:[%s13283_s26 + $0x209] sm:$0xff] }
  0x54   : > { %11725 = vmatmul.mubr.msk.f32.gmra.mxu1 %vm584_vm1, %v364_v11  ;;  %11537 = vmatprep.mubr.msk.f32.mxu0 %vm584_vm1, %v491_v12  ;;  %v396_v11 = vld [vmem:[%s13283_s26 + $0x208] sm:$0xff]  ;;  %v523_v12 = vld [vmem:[%s13283_s26 + $0x211] sm:$0xff] }
  0x55   : > { %11727 = vmatprep.mubr.msk.f32.mxu1 %vm584_vm1, %v365_v13  ;;  %v397_v13 = vld [vmem:[%s13283_s26 + $0x210] sm:$0xff] }
  0x57   : > { %11538 = vmatmul.mubr.msk.f32.gmra.mxu0 %vm584_vm1, %v492_v14  ;;  %v524_v14 = vld [vmem:[%s13283_s26 + $0x219] sm:$0xff] }
  0x58   : > { %11728 = vmatmul.mubr.msk.f32.gmra.mxu1 %vm584_vm1, %v366_v15  ;;  %11540 = vmatprep.mubr.msk.f32.mxu0 %vm584_vm1, %v493_v16  ;;  %v398_v15 = vld [vmem:[%s13283_s26 + $0x218] sm:$0xff]  ;;  %v525_v16 = vld [vmem:[%s13283_s26 + $0x221] sm:$0xff] }
  0x59   : > { %11730 = vmatprep.mubr.msk.f32.mxu1 %vm584_vm1, %v367_v17  ;;  %v399_v17 = vld [vmem:[%s13283_s26 + $0x220] sm:$0xff] }
  0x5b   : > { %11541 = vmatmul.mubr.msk.f32.gmra.mxu0 %vm584_vm1, %v494_v18  ;;  %v526_v18 = vld [vmem:[%s13283_s26 + $0x229] sm:$0xff] }
  0x5c   : > { %11731 = vmatmul.mubr.msk.f32.gmra.mxu1 %vm584_vm1, %v368_v19  ;;  %11543 = vmatprep.mubr.msk.f32.mxu0 %vm584_vm1, %v495_v20  ;;  %v400_v19 = vld [vmem:[%s13283_s26 + $0x228] sm:$0xff]  ;;  %v527_v20 = vld [vmem:[%s13283_s26 + $0x231] sm:$0xff] }
  0x5d   : > { %11733 = vmatprep.mubr.msk.f32.mxu1 %vm584_vm1, %v369_v21  ;;  %v401_v21 = vld [vmem:[%s13283_s26 + $0x230] sm:$0xff] }
  0x5f   : > { %11544 = vmatmul.mubr.msk.f32.gmra.mxu0 %vm584_vm1, %v496_v22  ;;  %v528_v22 = vld [vmem:[%s13283_s26 + $0x239] sm:$0xff] }
  0x60   : > { %11734 = vmatmul.mubr.msk.f32.gmra.mxu1 %vm584_vm1, %v370_v23  ;;  %11546 = vmatprep.mubr.msk.f32.mxu0 %vm584_vm1, %v497_v24  ;;  %v402_v23 = vld [vmem:[%s13283_s26 + $0x238] sm:$0xff]  ;;  %v529_v24 = vld [vmem:[%s13283_s26 + $0x241] sm:$0xff] }
  0x61   : > { %11736 = vmatprep.mubr.msk.f32.mxu1 %vm584_vm1, %v371_v25  ;;  %v403_v25 = vld [vmem:[%s13283_s26 + $0x240] sm:$0xff] }
  0x63   : > { %11547 = vmatmul.mubr.msk.f32.gmra.mxu0 %vm584_vm1, %v498_v26  ;;  %v530_v26 = vld [vmem:[%s13283_s26 + $0x249] sm:$0xff] }
  0x64   : > { %11737 = vmatmul.mubr.msk.f32.gmra.mxu1 %vm584_vm1, %v372_v27  ;;  %11549 = vmatprep.mubr.msk.f32.mxu0 %vm584_vm1, %v499_v28  ;;  %v404_v27 = vld [vmem:[%s13283_s26 + $0x248] sm:$0xff]  ;;  %v531_v28 = vld [vmem:[%s13283_s26 + $0x251] sm:$0xff] }
  0x65   : > { %11739 = vmatprep.mubr.msk.f32.mxu1 %vm584_vm1, %v373_v29  ;;  %v405_v29 = vld [vmem:[%s13283_s26 + $0x250] sm:$0xff] }
  0x67   : > { %11550 = vmatmul.mubr.msk.f32.gmra.mxu0 %vm584_vm1, %v500_v30  ;;  %v532_v30 = vld [vmem:[%s13283_s26 + $0x259] sm:$0xff] }
  0x68   : > { %11740 = vmatmul.mubr.msk.f32.gmra.mxu1 %vm584_vm1, %v374_v31  ;;  %11552 = vmatprep.mubr.msk.f32.mxu0 %vm584_vm1, %v501_v32  ;;  %v406_v31 = vld [vmem:[%s13283_s26 + $0x258] sm:$0xff]  ;;  %v533_v32 = vld [vmem:[%s13283_s26 + $0x261] sm:$0xff] }
  0x69   : > { %11742 = vmatprep.mubr.msk.f32.mxu1 %vm584_vm1, %v375_v33  ;;  %v407_v33 = vld [vmem:[%s13283_s26 + $0x260] sm:$0xff] }
  0x6b   : > { %11553 = vmatmul.mubr.msk.f32.gmra.mxu0 %vm584_vm1, %v502_v34  ;;  %v534_v34 = vld [vmem:[%s13283_s26 + $0x269] sm:$0xff] }
  0x6c   : > { %11743 = vmatmul.mubr.msk.f32.gmra.mxu1 %vm584_vm1, %v376_v35  ;;  %11555 = vmatprep.mubr.msk.f32.mxu0 %vm584_vm1, %v503_v36  ;;  %v408_v35 = vld [vmem:[%s13283_s26 + $0x268] sm:$0xff]  ;;  %v535_v36 = vld [vmem:[%s13283_s26 + $0x271] sm:$0xff] }
  0x6d   : > { %11745 = vmatprep.mubr.msk.f32.mxu1 %vm584_vm1, %v377_v37  ;;  %v409_v37 = vld [vmem:[%s13283_s26 + $0x270] sm:$0xff] }
  0x6f   : > { %11556 = vmatmul.mubr.msk.f32.gmra.mxu0 %vm584_vm1, %v504_v38  ;;  %v536_v38 = vld [vmem:[%s13283_s26 + $0x279] sm:$0xff] }
  0x70   : > { %11746 = vmatmul.mubr.msk.f32.gmra.mxu1 %vm584_vm1, %v378_v39  ;;  %11558 = vmatprep.mubr.msk.f32.mxu0 %vm584_vm1, %v505_v40  ;;  %v410_v39 = vld [vmem:[%s13283_s26 + $0x278] sm:$0xff]  ;;  %v537_v40 = vld [vmem:[%s13283_s26 + $0x281] sm:$0xff] }
  0x71   : > { %11748 = vmatprep.mubr.msk.f32.mxu1 %vm584_vm1, %v379_v41  ;;  %v411_v41 = vld [vmem:[%s13283_s26 + $0x280] sm:$0xff] }
  0x73   : > { %11559 = vmatmul.mubr.msk.f32.gmra.mxu0 %vm584_vm1, %v506_v42  ;;  %v538_v42 = vld [vmem:[%s13283_s26 + $0x289] sm:$0xff] }
  0x74   : > { %11749 = vmatmul.mubr.msk.f32.gmra.mxu1 %vm584_vm1, %v380_v43  ;;  %11561 = vmatprep.mubr.msk.f32.mxu0 %vm584_vm1, %v507_v44  ;;  %v412_v43 = vld [vmem:[%s13283_s26 + $0x288] sm:$0xff]  ;;  %v539_v44 = vld [vmem:[%s13283_s26 + $0x291] sm:$0xff] }
  0x75   : > { %11751 = vmatprep.mubr.msk.f32.mxu1 %vm584_vm1, %v381_v45  ;;  %v413_v45 = vld [vmem:[%s13283_s26 + $0x290] sm:$0xff] }
  0x77   : > { %11562 = vmatmul.mubr.msk.f32.gmra.mxu0 %vm584_vm1, %v508_v46  ;;  %v540_v46 = vld [vmem:[%s13283_s26 + $0x299] sm:$0xff] }
  0x78   : > { %11752 = vmatmul.mubr.msk.f32.gmra.mxu1 %vm584_vm1, %v382_v47  ;;  %11564 = vmatprep.mubr.msk.f32.mxu0 %vm584_vm1, %v509_v48  ;;  %v414_v47 = vld [vmem:[%s13283_s26 + $0x298] sm:$0xff]  ;;  %v541_v48 = vld [vmem:[%s13283_s26 + $0x2a1] sm:$0xff] }
  0x79   : > { %11754 = vmatprep.mubr.msk.f32.mxu1 %vm584_vm1, %v383_v49  ;;  %v415_v49 = vld [vmem:[%s13283_s26 + $0x2a0] sm:$0xff] }
  0x7b   : > { %11565 = vmatmul.mubr.msk.f32.gmra.mxu0 %vm584_vm1, %v510_v50  ;;  %v542_v50 = vld [vmem:[%s13283_s26 + $0x2a9] sm:$0xff] }
  0x7c   : > { %11755 = vmatmul.mubr.msk.f32.gmra.mxu1 %vm584_vm1, %v384_v51  ;;  %11567 = vmatprep.mubr.msk.f32.mxu0 %vm584_vm1, %v511_v52  ;;  %v416_v51 = vld [vmem:[%s13283_s26 + $0x2a8] sm:$0xff]  ;;  %v543_v52 = vld [vmem:[%s13283_s26 + $0x2b1] sm:$0xff] }
  0x7d   : > { %11757 = vmatprep.mubr.msk.f32.mxu1 %vm584_vm1, %v385_v53  ;;  %v417_v53 = vld [vmem:[%s13283_s26 + $0x2b0] sm:$0xff] }
  0x7f   : > { %11568 = vmatmul.mubr.msk.f32.gmra.mxu0 %vm584_vm1, %v512_v54  ;;  %v544_v54 = vld [vmem:[%s13283_s26 + $0x2b9] sm:$0xff] }
  0x80   : > { %11758 = vmatmul.mubr.msk.f32.gmra.mxu1 %vm584_vm1, %v386_v55  ;;  %11570 = vmatprep.mubr.msk.f32.mxu0 %vm584_vm1, %v513_v56  ;;  %v418_v55 = vld [vmem:[%s13283_s26 + $0x2b8] sm:$0xff]  ;;  %v545_v56 = vld [vmem:[%s13283_s26 + $0x2c1] sm:$0xff] }
  0x81   : > { %11760 = vmatprep.mubr.msk.f32.mxu1 %vm584_vm1, %v387_v57  ;;  %v419_v57 = vld [vmem:[%s13283_s26 + $0x2c0] sm:$0xff] }
  0x83   : > { %11571 = vmatmul.mubr.msk.f32.gmra.mxu0 %vm584_vm1, %v514_v58  ;;  %v546_v58 = vld [vmem:[%s13283_s26 + $0x2c9] sm:$0xff] }
  0x84   : > { %11761 = vmatmul.mubr.msk.f32.gmra.mxu1 %vm584_vm1, %v388_v59  ;;  %11573 = vmatprep.mubr.msk.f32.mxu0 %vm584_vm1, %v515_v60  ;;  %v420_v59 = vld [vmem:[%s13283_s26 + $0x2c8] sm:$0xff]  ;;  %v547_v60 = vld [vmem:[%s13283_s26 + $0x2d1] sm:$0xff] }
  0x85   : > { %11763 = vmatprep.mubr.msk.f32.mxu1 %vm584_vm1, %v389_v61  ;;  %v421_v61 = vld [vmem:[%s13283_s26 + $0x2d0] sm:$0xff] }
  0x87   : > { %11574 = vmatmul.mubr.msk.f32.gmra.mxu0 %vm584_vm1, %v516_v62  ;;  %v548_v62 = vld [vmem:[%s13283_s26 + $0x2d9] sm:$0xff] }
  0x88   : > { %11764 = vmatmul.mubr.msk.f32.gmra.mxu1 %vm584_vm1, %v390_v63  ;;  %11576 = vmatprep.mubr.msk.f32.mxu0 %vm584_vm1, %v517_v0  ;;  %v422_v63 = vld [vmem:[%s13283_s26 + $0x2d8] sm:$0xff]  ;;  %v549_v0 = vld [vmem:[%s13283_s26 + $0x2e1] sm:$0xff] }
  0x89   : > { %11766 = vmatprep.mubr.msk.f32.mxu1 %vm584_vm1, %v391_v1  ;;  %v423_v1 = vld [vmem:[%s13283_s26 + $0x2e0] sm:$0xff] }
  0x8b   : > { %11577 = vmatmul.mubr.msk.f32.gmra.mxu0 %vm584_vm1, %v518_v2  ;;  %v550_v2 = vld [vmem:[%s13283_s26 + $0x2e9] sm:$0xff] }
  0x8c   : > { %11767 = vmatmul.mubr.msk.f32.gmra.mxu1 %vm584_vm1, %v392_v3  ;;  %11579 = vmatprep.mubr.msk.f32.mxu0 %vm584_vm1, %v519_v4  ;;  %v424_v3 = vld [vmem:[%s13283_s26 + $0x2e8] sm:$0xff]  ;;  %v551_v4 = vld [vmem:[%s13283_s26 + $0x2f1] sm:$0xff] }
  0x8d   : > { %11769 = vmatprep.mubr.msk.f32.mxu1 %vm584_vm1, %v393_v5  ;;  %v425_v5 = vld [vmem:[%s13283_s26 + $0x2f0] sm:$0xff] }
  0x8f   : > { %11580 = vmatmul.mubr.msk.f32.gmra.mxu0 %vm584_vm1, %v520_v6  ;;  %v552_v6 = vld [vmem:[%s13283_s26 + $0x2f9] sm:$0xff] }
  0x90   : > { %11770 = vmatmul.mubr.msk.f32.gmra.mxu1 %vm584_vm1, %v394_v7  ;;  %11582 = vmatprep.mubr.msk.f32.mxu0 %vm584_vm1, %v521_v8  ;;  %v426_v7 = vld [vmem:[%s13283_s26 + $0x2f8] sm:$0xff]  ;;  %v553_v8 = vld [vmem:[%s13283_s26 + $0x301] sm:$0xff] }
  0x91   : > { %11772 = vmatprep.mubr.msk.f32.mxu1 %vm584_vm1, %v395_v9  ;;  %v427_v9 = vld [vmem:[%s13283_s26 + $0x300] sm:$0xff] }
  0x93   : > { %11583 = vmatmul.mubr.msk.f32.gmra.mxu0 %vm584_vm1, %v522_v10  ;;  %v554_v10 = vld [vmem:[%s13283_s26 + $0x309] sm:$0xff] }
  0x94   : > { %11773 = vmatmul.mubr.msk.f32.gmra.mxu1 %vm584_vm1, %v396_v11  ;;  %11585 = vmatprep.mubr.msk.f32.mxu0 %vm584_vm1, %v523_v12  ;;  %v428_v11 = vld [vmem:[%s13283_s26 + $0x308] sm:$0xff]  ;;  %v555_v12 = vld [vmem:[%s13283_s26 + $0x311] sm:$0xff] }
  0x95   : > { %11775 = vmatprep.mubr.msk.f32.mxu1 %vm584_vm1, %v397_v13  ;;  %v429_v13 = vld [vmem:[%s13283_s26 + $0x310] sm:$0xff] }
  0x97   : > { %11586 = vmatmul.mubr.msk.f32.gmra.mxu0 %vm584_vm1, %v524_v14 }
  0x98   : > { %11776 = vmatmul.mubr.msk.f32.gmra.mxu1 %vm584_vm1, %v398_v15  ;;  %11588 = vmatprep.mubr.msk.f32.mxu0 %vm584_vm1, %v525_v16 }
  0x99   : > { %11778 = vmatprep.mubr.msk.f32.mxu1 %vm584_vm1, %v399_v17  ;;  %v556_v17 = vld [vmem:[%s13283_s26 + $0x319] sm:$0xff] }
  0x9b   : > { %11589 = vmatmul.mubr.msk.f32.gmra.mxu0 %vm584_vm1, %v526_v18  ;;  %v430_v18 = vld [vmem:[%s13283_s26 + $0x318] sm:$0xff] }
  0x9c   : > { %11779 = vmatmul.mubr.msk.f32.gmra.mxu1 %vm584_vm1, %v400_v19  ;;  %11591 = vmatprep.mubr.msk.f32.mxu0 %vm584_vm1, %v527_v20 }
  0x9d   : > { %11781 = vmatprep.mubr.msk.f32.mxu1 %vm584_vm1, %v401_v21  ;;  %v557_v21 = vld [vmem:[%s13283_s26 + $0x321] sm:$0xff] }
  0x9f   : > { %11592 = vmatmul.mubr.msk.f32.gmra.mxu0 %vm584_vm1, %v528_v22  ;;  %v431_v22 = vld [vmem:[%s13283_s26 + $0x320] sm:$0xff] }
  0xa0   : > { %11782 = vmatmul.mubr.msk.f32.gmra.mxu1 %vm584_vm1, %v402_v23  ;;  %11594 = vmatprep.mubr.msk.f32.mxu0 %vm584_vm1, %v529_v24 }
  0xa1   : > { %11784 = vmatprep.mubr.msk.f32.mxu1 %vm584_vm1, %v403_v25 }
  0xa3   : > { %11595 = vmatmul.mubr.msk.f32.gmra.mxu0 %vm584_vm1, %v530_v26 }
  0xa4   : > { %11785 = vmatmul.mubr.msk.f32.gmra.mxu1 %vm584_vm1, %v404_v27  ;;  %11597 = vmatprep.mubr.msk.f32.mxu0 %vm584_vm1, %v531_v28  ;;  %v558_v27 = vld [vmem:[%s13283_s26 + $0x329] sm:$0xff] }
  0xa5   : > { %11787 = vmatprep.mubr.msk.f32.mxu1 %vm584_vm1, %v405_v29  ;;  %v432_v28 = vld [vmem:[%s13283_s26 + $0x328] sm:$0xff] }
  0xa7   : > { %11598 = vmatmul.mubr.msk.f32.gmra.mxu0 %vm584_vm1, %v532_v30 }
  0xa8   : > { %11788 = vmatmul.mubr.msk.f32.gmra.mxu1 %vm584_vm1, %v406_v31  ;;  %11600 = vmatprep.mubr.msk.f32.mxu0 %vm584_vm1, %v533_v32  ;;  %v559_v31 = vld [vmem:[%s13283_s26 + $0x331] sm:$0xff] }
  0xa9   : > { %11790 = vmatprep.mubr.msk.f32.mxu1 %vm584_vm1, %v407_v33  ;;  %v433_v32 = vld [vmem:[%s13283_s26 + $0x330] sm:$0xff] }
  0xab   : > { %11601 = vmatmul.mubr.msk.f32.gmra.mxu0 %vm584_vm1, %v534_v34 }
  0xac   : > { %11791 = vmatmul.mubr.msk.f32.gmra.mxu1 %vm584_vm1, %v408_v35  ;;  %11603 = vmatprep.mubr.msk.f32.mxu0 %vm584_vm1, %v535_v36 }
  0xad   : > { %11793 = vmatprep.mubr.msk.f32.mxu1 %vm584_vm1, %v409_v37  ;;  %v560_v37 = vld [vmem:[%s13283_s26 + $0x339] sm:$0xff] }
  0xaf   : > { %11604 = vmatmul.mubr.msk.f32.gmra.mxu0 %vm584_vm1, %v536_v38  ;;  %v434_v38 = vld [vmem:[%s13283_s26 + $0x338] sm:$0xff] }
  0xb0   : > { %11794 = vmatmul.mubr.msk.f32.gmra.mxu1 %vm584_vm1, %v410_v39  ;;  %11606 = vmatprep.mubr.msk.f32.mxu0 %vm584_vm1, %v537_v40 }
  0xb1   : > { %11796 = vmatprep.mubr.msk.f32.mxu1 %vm584_vm1, %v411_v41  ;;  %v561_v41 = vld [vmem:[%s13283_s26 + $0x341] sm:$0xff] }
  0xb3   : > { %11607 = vmatmul.mubr.msk.f32.gmra.mxu0 %vm584_vm1, %v538_v42  ;;  %v435_v42 = vld [vmem:[%s13283_s26 + $0x340] sm:$0xff] }
  0xb4   : > { %11797 = vmatmul.mubr.msk.f32.gmra.mxu1 %vm584_vm1, %v412_v43  ;;  %11609 = vmatprep.mubr.msk.f32.mxu0 %vm584_vm1, %v539_v44 }
  0xb5   : > { %11799 = vmatprep.mubr.msk.f32.mxu1 %vm584_vm1, %v413_v45 }
  0xb7   : > { %11610 = vmatmul.mubr.msk.f32.gmra.mxu0 %vm584_vm1, %v540_v46 }
  0xb8   : > { %11800 = vmatmul.mubr.msk.f32.gmra.mxu1 %vm584_vm1, %v414_v47  ;;  %11612 = vmatprep.mubr.msk.f32.mxu0 %vm584_vm1, %v541_v48  ;;  %v562_v47 = vld [vmem:[%s13283_s26 + $0x349] sm:$0xff] }
  0xb9   : > { %11802 = vmatprep.mubr.msk.f32.mxu1 %vm584_vm1, %v415_v49  ;;  %v436_v48 = vld [vmem:[%s13283_s26 + $0x348] sm:$0xff] }
  0xbb   : > { %11613 = vmatmul.mubr.msk.f32.gmra.mxu0 %vm584_vm1, %v542_v50 }
  0xbc   : > { %11803 = vmatmul.mubr.msk.f32.gmra.mxu1 %vm584_vm1, %v416_v51  ;;  %11615 = vmatprep.mubr.msk.f32.mxu0 %vm584_vm1, %v543_v52  ;;  %v563_v51 = vld [vmem:[%s13283_s26 + $0x351] sm:$0xff] }
  0xbd   : > { %11805 = vmatprep.mubr.msk.f32.mxu1 %vm584_vm1, %v417_v53  ;;  %v437_v52 = vld [vmem:[%s13283_s26 + $0x350] sm:$0xff] }
  0xbf   : > { %11616 = vmatmul.mubr.msk.f32.gmra.mxu0 %vm584_vm1, %v544_v54 }
  0xc0   : > { %11806 = vmatmul.mubr.msk.f32.gmra.mxu1 %vm584_vm1, %v418_v55  ;;  %11618 = vmatprep.mubr.msk.f32.mxu0 %vm584_vm1, %v545_v56 }
  0xc1   : > { %11808 = vmatprep.mubr.msk.f32.mxu1 %vm584_vm1, %v419_v57  ;;  %v564_v57 = vld [vmem:[%s13283_s26 + $0x359] sm:$0xff] }
  0xc3   : > { %11619 = vmatmul.mubr.msk.f32.gmra.mxu0 %vm584_vm1, %v546_v58  ;;  %v438_v58 = vld [vmem:[%s13283_s26 + $0x358] sm:$0xff] }
  0xc4   : > { %11809 = vmatmul.mubr.msk.f32.gmra.mxu1 %vm584_vm1, %v420_v59  ;;  %11621 = vmatprep.mubr.msk.f32.mxu0 %vm584_vm1, %v547_v60 }
  0xc5   : > { %11811 = vmatprep.mubr.msk.f32.mxu1 %vm584_vm1, %v421_v61  ;;  %v565_v61 = vld [vmem:[%s13283_s26 + $0x361] sm:$0xff] }
  0xc7   : > { %11622 = vmatmul.mubr.msk.f32.gmra.mxu0 %vm584_vm1, %v548_v62  ;;  %v439_v62 = vld [vmem:[%s13283_s26 + $0x360] sm:$0xff] }
  0xc8   : > { %11812 = vmatmul.mubr.msk.f32.gmra.mxu1 %vm584_vm1, %v422_v63  ;;  %11624 = vmatprep.mubr.msk.f32.mxu0 %vm584_vm1, %v549_v0 }
  0xc9   : > { %11814 = vmatprep.mubr.msk.f32.mxu1 %vm584_vm1, %v423_v1 }
  0xcb   : > { %11625 = vmatmul.mubr.msk.f32.gmra.mxu0 %vm584_vm1, %v550_v2 }
  0xcc   : > { %11815 = vmatmul.mubr.msk.f32.gmra.mxu1 %vm584_vm1, %v424_v3  ;;  %11627 = vmatprep.mubr.msk.f32.mxu0 %vm584_vm1, %v551_v4  ;;  %v566_v3 = vld [vmem:[%s13283_s26 + $0x369] sm:$0xff] }
  0xcd   : > { %11817 = vmatprep.mubr.msk.f32.mxu1 %vm584_vm1, %v425_v5  ;;  %v440_v4 = vld [vmem:[%s13283_s26 + $0x368] sm:$0xff] }
  0xcf   : > { %11628 = vmatmul.mubr.msk.f32.gmra.mxu0 %vm584_vm1, %v552_v6 }
  0xd0   : > { %11818 = vmatmul.mubr.msk.f32.gmra.mxu1 %vm584_vm1, %v426_v7  ;;  %11630 = vmatprep.mubr.msk.f32.mxu0 %vm584_vm1, %v553_v8  ;;  %v567_v7 = vld [vmem:[%s13283_s26 + $0x371] sm:$0xff] }
  0xd1   : > { %11820 = vmatprep.mubr.msk.f32.mxu1 %vm584_vm1, %v427_v9  ;;  %v441_v8 = vld [vmem:[%s13283_s26 + $0x370] sm:$0xff] }
  0xd3   : > { %v11488_v14 = vpop.f32.mrf.mxu0  ;;  %11631 = vmatmul.mubr.msk.f32.gmra.mxu0 %vm584_vm1, %v554_v10 }
  0xd4   : > { %v11678_v15 = vpop.f32.mrf.mxu1  ;;  %11821 = vmatmul.mubr.msk.f32.gmra.mxu1 %vm584_vm1, %v428_v11  ;;  %11633 = vmatprep.mubr.msk.f32.mxu0 %vm584_vm1, %v555_v12 }
  0xd5   : > { %v13687_v16 = vadd.f32 %v11678_v15, %v11488_v14  ;;  %11823 = vmatprep.mubr.msk.f32.mxu1 %vm584_vm1, %v429_v13  ;;  %v1027_v19 = vpop.f32.mrf.mxu0  ;;  %v568_v13 = vld [vmem:[%s13283_s26 + $0x379] sm:$0xff] }
  0xd6   : > { %v2087_v20 = vpop.f32.mrf.mxu1  ;;  %v442_v14 = vld [vmem:[%s13283_s26 + $0x378] sm:$0xff] }
  0xd7   : > { %v13695_v23 = vadd.f32 %v2087_v20, %v1027_v19  ;;  %v11491_v24 = vpop.f32.mrf.mxu0  ;;  %11634 = vmatmul.mubr.msk.f32.gmra.mxu0 %vm584_vm1, %v556_v17  ;;  %v443_v19 = vld [vmem:[%s13283_s26 + $0x380] sm:$0xff] }
  0xd8   : > { %v11681_v25 = vpop.f32.mrf.mxu1  ;;  %11824 = vmatmul.mubr.msk.f32.gmra.mxu1 %vm584_vm1, %v430_v18  ;;  %11636 = vmatprep.mubr.msk.f32.mxu0 %vm584_vm1, %v557_v21  ;;  %v569_v18 = vld [vmem:[%s13283_s26 + $0x381] sm:$0xff] }
  0xd9   : > { %v13699_v26 = vadd.f32 %v11681_v25, %v11491_v24  ;;  %11826 = vmatprep.mubr.msk.f32.mxu1 %vm584_vm1, %v431_v22  ;;  %v1037_v29 = vpop.f32.mrf.mxu0  ;;  %v570_v25 = vld [vmem:[%s13283_s26 + $0x389] sm:$0xff] }
  0xda   : > { %v2097_v30 = vpop.f32.mrf.mxu1 }
  0xdb   : > { %v13707_v33 = vadd.f32 %v2097_v30, %v1037_v29  ;;  %v11494_v34 = vpop.f32.mrf.mxu0  ;;  %11637 = vmatmul.mubr.msk.f32.gmra.mxu0 %vm584_vm1, %v558_v27  ;;  %v444_v27 = vld [vmem:[%s13283_s26 + $0x388] sm:$0xff]  ;;  %v571_v30 = vld [vmem:[%s13283_s26 + $0x391] sm:$0xff] }
  0xdc   : > { %v11684_v35 = vpop.f32.mrf.mxu1  ;;  %11827 = vmatmul.mubr.msk.f32.gmra.mxu1 %vm584_vm1, %v432_v28  ;;  %11639 = vmatprep.mubr.msk.f32.mxu0 %vm584_vm1, %v559_v31  ;;  %v445_v31 = vld [vmem:[%s13283_s26 + $0x390] sm:$0xff] }
  0xdd   : > { %v13711_v36 = vadd.f32 %v11684_v35, %v11494_v34  ;;  %11829 = vmatprep.mubr.msk.f32.mxu1 %vm584_vm1, %v433_v32  ;;  %v1047_v39 = vpop.f32.mrf.mxu0 }
  0xde   : > { %v2107_v40 = vpop.f32.mrf.mxu1 }
  0xdf   : > { %v13719_v43 = vadd.f32 %v2107_v40, %v1047_v39  ;;  %v11497_v44 = vpop.f32.mrf.mxu0  ;;  %11640 = vmatmul.mubr.msk.f32.gmra.mxu0 %vm584_vm1, %v560_v37  ;;  %v446_v39 = vld [vmem:[%s13283_s26 + $0x398] sm:$0xff] }
  0xe0   : > { %v11687_v45 = vpop.f32.mrf.mxu1  ;;  %11830 = vmatmul.mubr.msk.f32.gmra.mxu1 %vm584_vm1, %v434_v38  ;;  %11642 = vmatprep.mubr.msk.f32.mxu0 %vm584_vm1, %v561_v41  ;;  %v572_v38 = vld [vmem:[%s13283_s26 + $0x399] sm:$0xff] }
  0xe1   : > { %v13723_v46 = vadd.f32 %v11687_v45, %v11497_v44  ;;  %11832 = vmatprep.mubr.msk.f32.mxu1 %vm584_vm1, %v435_v42  ;;  %v1057_v49 = vpop.f32.mrf.mxu0  ;;  %v573_v42 = vld [vmem:[%s13283_s26 + $0x3a1] sm:$0xff] }
  0xe2   : > { %v2117_v50 = vpop.f32.mrf.mxu1  ;;  %v447_v44 = vld [vmem:[%s13283_s26 + $0x3a0] sm:$0xff] }
  0xe3   : > { %v13731_v53 = vadd.f32 %v2117_v50, %v1057_v49  ;;  %v11500_v54 = vpop.f32.mrf.mxu0  ;;  %11643 = vmatmul.mubr.msk.f32.gmra.mxu0 %vm584_vm1, %v562_v47  ;;  %v574_v50 = vld [vmem:[%s13283_s26 + $0x3a9] sm:$0xff] }
  0xe4   : > { %v11690_v55 = vpop.f32.mrf.mxu1  ;;  %11833 = vmatmul.mubr.msk.f32.gmra.mxu1 %vm584_vm1, %v436_v48  ;;  %11645 = vmatprep.mubr.msk.f32.mxu0 %vm584_vm1, %v563_v51  ;;  %v448_v51 = vld [vmem:[%s13283_s26 + $0x3a8] sm:$0xff] }
  0xe5   : > { %v13735_v56 = vadd.f32 %v11690_v55, %v11500_v54  ;;  %11835 = vmatprep.mubr.msk.f32.mxu1 %vm584_vm1, %v437_v52  ;;  %v1067_v59 = vpop.f32.mrf.mxu0  ;;  %v575_v55 = vld [vmem:[%s13283_s26 + $0x3b1] sm:$0xff] }
  0xe6   : > { %v2127_v60 = vpop.f32.mrf.mxu1 }
  0xe7   : > { %v13743_v63 = vadd.f32 %v2127_v60, %v1067_v59  ;;  %v11503_v0 = vpop.f32.mrf.mxu0  ;;  %11646 = vmatmul.mubr.msk.f32.gmra.mxu0 %vm584_vm1, %v564_v57  ;;  %v449_v57 = vld [vmem:[%s13283_s26 + $0x3b0] sm:$0xff] }
  0xe8   : > { %v11693_v1 = vpop.f32.mrf.mxu1  ;;  %11836 = vmatmul.mubr.msk.f32.gmra.mxu1 %vm584_vm1, %v438_v58  ;;  %11648 = vmatprep.mubr.msk.f32.mxu0 %vm584_vm1, %v565_v61 }
  0xe9   : > { %v13747_v2 = vadd.f32 %v11693_v1, %v11503_v0  ;;  %11838 = vmatprep.mubr.msk.f32.mxu1 %vm584_vm1, %v439_v62  ;;  %v1077_v5 = vpop.f32.mrf.mxu0  ;;  %v576_v62 = vld [vmem:[%s13283_s26 + $0x3b9] sm:$0xff] }
  0xea   : > { %v2137_v6 = vpop.f32.mrf.mxu1  ;;  %v450_v0 = vld [vmem:[%s13283_s26 + $0x3b8] sm:$0xff] }
  0xeb   : > { %v13755_v9 = vadd.f32 %v2137_v6, %v1077_v5  ;;  %v11506_v10 = vpop.f32.mrf.mxu0  ;;  %11649 = vmatmul.mubr.msk.f32.gmra.mxu0 %vm584_vm1, %v566_v3  ;;  %v451_v5 = vld [vmem:[%s13283_s26 + $0x3c0] sm:$0xff] }
  0xec   : > { %v11696_v11 = vpop.f32.mrf.mxu1  ;;  %11839 = vmatmul.mubr.msk.f32.gmra.mxu1 %vm584_vm1, %v440_v4  ;;  %11651 = vmatprep.mubr.msk.f32.mxu0 %vm584_vm1, %v567_v7  ;;  %v577_v4 = vld [vmem:[%s13283_s26 + $0x3c1] sm:$0xff] }
  0xed   : > { %v13759_v12 = vadd.f32 %v11696_v11, %v11506_v10  ;;  %11841 = vmatprep.mubr.msk.f32.mxu1 %vm584_vm1, %v441_v8  ;;  %v1087_v15 = vpop.f32.mrf.mxu0  ;;  %v578_v11 = vld [vmem:[%s13283_s26 + $0x3c9] sm:$0xff] }
  0xee   : > { %v2147_v17 = vpop.f32.mrf.mxu1 }
  0xef   : > { %v13767_v20 = vadd.f32 %v2147_v17, %v1087_v15  ;;  %v11509_v21 = vpop.f32.mrf.mxu0  ;;  %11652 = vmatmul.mubr.msk.f32.gmra.mxu0 %vm584_vm1, %v568_v13  ;;  %v452_v13 = vld [vmem:[%s13283_s26 + $0x3c8] sm:$0xff]  ;;  %v579_v17 = vld [vmem:[%s13283_s26 + $0x3d1] sm:$0xff] }
  0xf0   : > { %v11699_v22 = vpop.f32.mrf.mxu1  ;;  %11842 = vmatmul.mubr.msk.f32.gmra.mxu1 %vm584_vm1, %v442_v14  ;;  %11654 = vmatprep.mubr.msk.f32.mxu0 %vm584_vm1, %v569_v18  ;;  %v453_v18 = vld [vmem:[%s13283_s26 + $0x3d0] sm:$0xff] }
  0xf1   : > { %v13771_v24 = vadd.f32 %v11699_v22, %v11509_v21  ;;  %11844 = vmatprep.mubr.msk.f32.mxu1 %vm584_vm1, %v443_v19  ;;  %v1097_v28 = vpop.f32.mrf.mxu0 }
  0xf2   : > { %v2157_v29 = vpop.f32.mrf.mxu1 }
  0xf3   : > { %v13779_v32 = vadd.f32 %v2157_v29, %v1097_v28  ;;  %v11512_v34 = vpop.f32.mrf.mxu0  ;;  %11655 = vmatmul.mubr.msk.f32.gmra.mxu0 %vm584_vm1, %v570_v25  ;;  %v454_v28 = vld [vmem:[%s13283_s26 + $0x3d8] sm:$0x7f] }
  0xf4   : > { %v11702_v35 = vpop.f32.mrf.mxu1  ;;  %11845 = vmatmul.mubr.msk.f32.gmra.mxu1 %vm584_vm1, %v444_v27  ;;  %11657 = vmatprep.mubr.msk.f32.mxu0 %vm584_vm1, %v571_v30  ;;  %v580_v27 = vld [vmem:[%s13283_s26 + $0x3d9] sm:$0x7f] }
  0xf5   : > { %v13783_v37 = vadd.f32 %v11702_v35, %v11512_v34  ;;  %11847 = vmatprep.mubr.msk.f32.mxu1 %vm584_vm1, %v445_v31  ;;  %v1107_v40 = vpop.f32.mrf.mxu0  ;;  %v2706_v31 = vld [vmem:[%s13283_s26 + $0x20] sm:$0xff] }
  0xf6   : > { %v2167_v41 = vpop.f32.mrf.mxu1  ;;  %v4017_v34 = vld [vmem:[%s13283_s26 + $0x21] sm:$0xff] }
  0xf7   : > { %v13791_v45 = vadd.f32 %v2167_v41, %v1107_v40  ;;  %v11515_v47 = vpop.f32.mrf.mxu0  ;;  %11658 = vmatmul.mubr.msk.f32.gmra.mxu0 %vm584_vm1, %v572_v38  ;;  %v2707_v41 = vld [vmem:[%s13283_s26 + $0x28] sm:$0xff] }
  0xf8   : > { %v11705_v48 = vpop.f32.mrf.mxu1  ;;  %11848 = vmatmul.mubr.msk.f32.gmra.mxu1 %vm584_vm1, %v446_v39  ;;  %11660 = vmatprep.mubr.msk.f32.mxu0 %vm584_vm1, %v573_v42  ;;  %v4018_v42 = vld [vmem:[%s13283_s26 + $0x29] sm:$0xff] }
  0xf9   : > { %v13795_v49 = vadd.f32 %v11705_v48, %v11515_v47  ;;  %11850 = vmatprep.mubr.msk.f32.mxu1 %vm584_vm1, %v447_v44  ;;  %v1117_v52 = vpop.f32.mrf.mxu0  ;;  %v2708_v48 = vld [vmem:[%s13283_s26 + $0x30] sm:$0xff] }
  0xfa   : > { %v2177_v54 = vpop.f32.mrf.mxu1 }
  0xfb   : > { %v13803_v58 = vadd.f32 %v2177_v54, %v1117_v52  ;;  %v11518_v59 = vpop.f32.mrf.mxu0  ;;  %11661 = vmatmul.mubr.msk.f32.gmra.mxu0 %vm584_vm1, %v574_v50  ;;  %v4019_v50 = vld [vmem:[%s13283_s26 + $0x31] sm:$0xff] }
  0xfc   : > { %v11708_v60 = vpop.f32.mrf.mxu1  ;;  %11851 = vmatmul.mubr.msk.f32.gmra.mxu1 %vm584_vm1, %v448_v51  ;;  %11663 = vmatprep.mubr.msk.f32.mxu0 %vm584_vm1, %v575_v55 }
  0xfd   : > { %v13807_v61 = vadd.f32 %v11708_v60, %v11518_v59  ;;  %11853 = vmatprep.mubr.msk.f32.mxu1 %vm584_vm1, %v449_v57  ;;  %v1127_v1 = vpop.f32.mrf.mxu0  ;;  %v2709_v57 = vld [vmem:[%s13283_s26 + $0x38] sm:$0xff] }
  0xfe   : > { %v2187_v3 = vpop.f32.mrf.mxu1  ;;  %v4020_v59 = vld [vmem:[%s13283_s26 + $0x39] sm:$0xff] }
  0xff   : > { %v13815_v6 = vadd.f32 %v2187_v3, %v1127_v1  ;;  %v11521_v7 = vpop.f32.mrf.mxu0  ;;  %11664 = vmatmul.mubr.msk.f32.gmra.mxu0 %vm584_vm1, %v576_v62  ;;  %v4021_v1 = vld [vmem:[%s13283_s26 + $0x41] sm:$0xff] }
 0x100   : > { %v11711_v8 = vpop.f32.mrf.mxu1  ;;  %11854 = vmatmul.mubr.msk.f32.gmra.mxu1 %vm584_vm1, %v450_v0  ;;  %11666 = vmatprep.mubr.msk.f32.mxu0 %vm584_vm1, %v577_v4  ;;  %v2710_v0 = vld [vmem:[%s13283_s26 + $0x40] sm:$0xff] }
 0x101   : > { %v13819_v10 = vadd.f32 %v11711_v8, %v11521_v7  ;;  %11856 = vmatprep.mubr.msk.f32.mxu1 %vm584_vm1, %v451_v5  ;;  %v1137_v14 = vpop.f32.mrf.mxu0  ;;  %v2711_v8 = vld [vmem:[%s13283_s26 + $0x48] sm:$0xff] }
 0x102   : > { %v2197_v15 = vpop.f32.mrf.mxu1 }
 0x103   : > { %v13827_v19 = vadd.f32 %v2197_v15, %v1137_v14  ;;  %v11524_v21 = vpop.f32.mrf.mxu0  ;;  %11667 = vmatmul.mubr.msk.f32.gmra.mxu0 %vm584_vm1, %v578_v11  ;;  %v4022_v11 = vld [vmem:[%s13283_s26 + $0x49] sm:$0xff] }
 0x104   : > { %v11714_v22 = vpop.f32.mrf.mxu1  ;;  %11857 = vmatmul.mubr.msk.f32.gmra.mxu1 %vm584_vm1, %v452_v13  ;;  %11669 = vmatprep.mubr.msk.f32.mxu0 %vm584_vm1, %v579_v17  ;;  %v2712_v15 = vld [vmem:[%s13283_s26 + $0x50] sm:$0xff] }
 0x105   : > { %v13831_v25 = vadd.f32 %v11714_v22, %v11524_v21  ;;  %11859 = vmatprep.mubr.msk.f32.mxu1 %vm584_vm1, %v453_v18  ;;  %v1147_v29 = vpop.f32.mrf.mxu0  ;;  %v4023_v17 = vld [vmem:[%s13283_s26 + $0x51] sm:$0xff] }
 0x106   : > { %v2207_v30 = vpop.f32.mrf.mxu1 }
 0x107   : > { %v13839_v35 = vadd.f32 %v2207_v30, %v1147_v29  ;;  %v11527_v38 = vpop.f32.mrf.mxu0  ;;  %11670 = vmatmul.mubr.msk.f32.gmra.mxu0 %vm584_vm1, %v580_v27  ;;  %v4024_v29 = vld [vmem:[%s13283_s26 + $0x59] sm:$0xff] }
 0x108   : > { %v11717_v39 = vpop.f32.mrf.mxu1  ;;  %11860 = vmatmul.mubr.msk.f32.gmra.mxu1 %vm584_vm1, %v454_v28  ;;  %11866 = vmatprep.mubr.msk.f32.mxu0 %vm584_vm1, %v2706_v31  ;;  %v2713_v28 = vld [vmem:[%s13283_s26 + $0x58] sm:$0xff] }
 0x109   : > { %v13843_v40 = vadd.f32 %v11717_v39, %v11527_v38  ;;  %12056 = vmatprep.mubr.msk.f32.mxu1 %vm584_vm1, %v4017_v34  ;;  %v1157_v44 = vpop.f32.mrf.mxu0  ;;  %v2714_v34 = vld [vmem:[%s13283_s26 + $0x60] sm:$0xff] }
 0x10a   : > { %v2217_v47 = vpop.f32.mrf.mxu1  ;;  %v4025_v38 = vld [vmem:[%s13283_s26 + $0x61] sm:$0xff] }
 0x10b   : > { %v13851_v51 = vadd.f32 %v2217_v47, %v1157_v44  ;;  %v11530_v52 = vpop.f32.mrf.mxu0  ;;  %11867 = vmatmul.mubr.msk.f32.vlgmr.msra.gmra.mxu0 %vm584_vm1, %v2707_v41  ;;  %v2715_v47 = vld [vmem:[%s13283_s26 + $0x68] sm:$0xff] }
 0x10c   : > { %v11720_v54 = vpop.f32.mrf.mxu1  ;;  %12057 = vmatmul.mubr.msk.f32.vlgmr.msra.gmra.mxu1 %vm584_vm1, %v4018_v42  ;;  %11869 = vmatprep.mubr.msk.f32.mxu0 %vm584_vm1, %v2708_v48  ;;  %v4026_v48 = vld [vmem:[%s13283_s26 + $0x69] sm:$0xff] }
 0x10d   : > { %v13855_v55 = vadd.f32 %v11720_v54, %v11530_v52  ;;  %12059 = vmatprep.mubr.msk.f32.mxu1 %vm584_vm1, %v4019_v50  ;;  %v1167_v60 = vpop.f32.mrf.mxu0  ;;  %v2716_v54 = vld [vmem:[%s13283_s26 + $0x70] sm:$0xff] }
 0x10e   : > { %v2227_v62 = vpop.f32.mrf.mxu1 }
 0x10f   : > { %v13863_v3 = vadd.f32 %v2227_v62, %v1167_v60  ;;  %v11533_v4 = vpop.f32.mrf.mxu0  ;;  %11870 = vmatmul.mubr.msk.f32.gmra.mxu0 %vm584_vm1, %v2709_v57  ;;  %v4027_v57 = vld [vmem:[%s13283_s26 + $0x71] sm:$0xff] }
 0x110   : > { %v11723_v5 = vpop.f32.mrf.mxu1  ;;  %12060 = vmatmul.mubr.msk.f32.gmra.mxu1 %vm584_vm1, %v4020_v59  ;;  %11872 = vmatprep.mubr.msk.f32.mxu0 %vm584_vm1, %v2710_v0 }
 0x111   : > { %v13867_v7 = vadd.f32 %v11723_v5, %v11533_v4  ;;  %12062 = vmatprep.mubr.msk.f32.mxu1 %vm584_vm1, %v4021_v1  ;;  %v1177_v13 = vpop.f32.mrf.mxu0  ;;  %v2717_v1 = vld [vmem:[%s13283_s26 + $0x78] sm:$0xff] }
 0x112   : > { %v2237_v14 = vpop.f32.mrf.mxu1  ;;  %v4028_v4 = vld [vmem:[%s13283_s26 + $0x79] sm:$0xff] }
 0x113   : > { %v13875_v18 = vadd.f32 %v2237_v14, %v1177_v13  ;;  %v11536_v21 = vpop.f32.mrf.mxu0  ;;  %11873 = vmatmul.mubr.msk.f32.gmra.mxu0 %vm584_vm1, %v2711_v8  ;;  %v4029_v13 = vld [vmem:[%s13283_s26 + $0x81] sm:$0xff] }
 0x114   : > { %v11726_v22 = vpop.f32.mrf.mxu1  ;;  %12063 = vmatmul.mubr.msk.f32.gmra.mxu1 %vm584_vm1, %v4022_v11  ;;  %11875 = vmatprep.mubr.msk.f32.mxu0 %vm584_vm1, %v2712_v15  ;;  %v2718_v11 = vld [vmem:[%s13283_s26 + $0x80] sm:$0xff] }
 0x115   : > { %v13879_v27 = vadd.f32 %v11726_v22, %v11536_v21  ;;  %12065 = vmatprep.mubr.msk.f32.mxu1 %vm584_vm1, %v4023_v17  ;;  %v1187_v30 = vpop.f32.mrf.mxu0  ;;  %v2719_v22 = vld [vmem:[%s13283_s26 + $0x88] sm:$0xff] }
 0x116   : > { %v2247_v31 = vpop.f32.mrf.mxu1 }
 0x117   : > { %v13887_v39 = vadd.f32 %v2247_v31, %v1187_v30  ;;  %v11539_v41 = vpop.f32.mrf.mxu0  ;;  %11876 = vmatmul.mubr.msk.f32.gmra.mxu0 %vm584_vm1, %v2713_v28  ;;  %v4030_v28 = vld [vmem:[%s13283_s26 + $0x89] sm:$0xff] }
 0x118   : > { %v11729_v42 = vpop.f32.mrf.mxu1  ;;  %12066 = vmatmul.mubr.msk.f32.gmra.mxu1 %vm584_vm1, %v4024_v29  ;;  %11878 = vmatprep.mubr.msk.f32.mxu0 %vm584_vm1, %v2714_v34  ;;  %v2720_v31 = vld [vmem:[%s13283_s26 + $0x90] sm:$0xff] }
 0x119   : > { %v13891_v44 = vadd.f32 %v11729_v42, %v11539_v41  ;;  %12068 = vmatprep.mubr.msk.f32.mxu1 %vm584_vm1, %v4025_v38  ;;  %v1197_v50 = vpop.f32.mrf.mxu0  ;;  %v4031_v34 = vld [vmem:[%s13283_s26 + $0x91] sm:$0xff] }
 0x11a   : > { %v2257_v52 = vpop.f32.mrf.mxu1 }
 0x11b   : > { %v13899_v59 = vadd.f32 %v2257_v52, %v1197_v50  ;;  %v11542_v60 = vpop.f32.mrf.mxu0  ;;  %11879 = vmatmul.mubr.msk.f32.gmra.mxu0 %vm584_vm1, %v2715_v47  ;;  %v4032_v50 = vld [vmem:[%s13283_s26 + $0x99] sm:$0xff] }
 0x11c   : > { %v11732_v62 = vpop.f32.mrf.mxu1  ;;  %12069 = vmatmul.mubr.msk.f32.gmra.mxu1 %vm584_vm1, %v4026_v48  ;;  %11881 = vmatprep.mubr.msk.f32.mxu0 %vm584_vm1, %v2716_v54  ;;  %v2721_v48 = vld [vmem:[%s13283_s26 + $0x98] sm:$0xff] }
 0x11d   : > { %v13903_v0 = vadd.f32 %v11732_v62, %v11542_v60  ;;  %12071 = vmatprep.mubr.msk.f32.mxu1 %vm584_vm1, %v4027_v57  ;;  %v1207_v5 = vpop.f32.mrf.mxu0  ;;  %v2722_v57 = vld [vmem:[%s13283_s26 + $0xa0] sm:$0xff] }
 0x11e   : > { %v2267_v8 = vpop.f32.mrf.mxu1  ;;  %v4033_v60 = vld [vmem:[%s13283_s26 + $0xa1] sm:$0xff] }
 0x11f   : > { %v13911_v14 = vadd.f32 %v2267_v8, %v1207_v5  ;;  %v11545_v15 = vpop.f32.mrf.mxu0  ;;  %11882 = vmatmul.mubr.msk.f32.gmra.mxu0 %vm584_vm1, %v2717_v1  ;;  %v2723_v8 = vld [vmem:[%s13283_s26 + $0xa8] sm:$0xff] }
 0x120   : > { %v11735_v17 = vpop.f32.mrf.mxu1  ;;  %12072 = vmatmul.mubr.msk.f32.gmra.mxu1 %vm584_vm1, %v4028_v4  ;;  %11884 = vmatprep.mubr.msk.f32.mxu0 %vm584_vm1, %v2718_v11  ;;  %v4034_v11 = vld [vmem:[%s13283_s26 + $0xa9] sm:$0xff] }
 0x121   : > { %v13915_v21 = vadd.f32 %v11735_v17, %v11545_v15  ;;  %12074 = vmatprep.mubr.msk.f32.mxu1 %vm584_vm1, %v4029_v13  ;;  %v1217_v29 = vpop.f32.mrf.mxu0  ;;  %v2724_v17 = vld [vmem:[%s13283_s26 + $0xb0] sm:$0xff] }
 0x122   : > { %v2277_v30 = vpop.f32.mrf.mxu1 }
 0x123   : > { %v13923_v38 = vadd.f32 %v2277_v30, %v1217_v29  ;;  %v11548_v41 = vpop.f32.mrf.mxu0  ;;  %11885 = vmatmul.mubr.msk.f32.gmra.mxu0 %vm584_vm1, %v2719_v22  ;;  %v4035_v22 = vld [vmem:[%s13283_s26 + $0xb1] sm:$0xff] }
 0x124   : > { %v11738_v42 = vpop.f32.mrf.mxu1  ;;  %12075 = vmatmul.mubr.msk.f32.gmra.mxu1 %vm584_vm1, %v4030_v28  ;;  %11887 = vmatprep.mubr.msk.f32.mxu0 %vm584_vm1, %v2720_v31 }
 0x125   : > { %v13927_v47 = vadd.f32 %v11738_v42, %v11548_v41  ;;  %12077 = vmatprep.mubr.msk.f32.mxu1 %vm584_vm1, %v4031_v34  ;;  %v1227_v52 = vpop.f32.mrf.mxu0  ;;  %v2725_v34 = vld [vmem:[%s13283_s26 + $0xb8] sm:$0xff] }
 0x126   : > { %v2287_v54 = vpop.f32.mrf.mxu1  ;;  %v4036_v41 = vld [vmem:[%s13283_s26 + $0xb9] sm:$0xff] }
 0x127   : > { %v13935_v62 = vadd.f32 %v2287_v54, %v1227_v52  ;;  %v11551_v1 = vpop.f32.mrf.mxu0  ;;  %11888 = vmatmul.mubr.msk.f32.gmra.mxu0 %vm584_vm1, %v2721_v48  ;;  %v4037_v52 = vld [vmem:[%s13283_s26 + $0xc1] sm:$0xff] }
 0x128   : > { %v11741_v4 = vpop.f32.mrf.mxu1  ;;  %12078 = vmatmul.mubr.msk.f32.gmra.mxu1 %vm584_vm1, %v4032_v50  ;;  %11890 = vmatprep.mubr.msk.f32.mxu0 %vm584_vm1, %v2722_v57  ;;  %v2726_v50 = vld [vmem:[%s13283_s26 + $0xc0] sm:$0xff] }
 0x129   : > { %v13939_v5 = vadd.f32 %v11741_v4, %v11551_v1  ;;  %12080 = vmatprep.mubr.msk.f32.mxu1 %vm584_vm1, %v4033_v60  ;;  %v1237_v13 = vpop.f32.mrf.mxu0  ;;  %v2727_v4 = vld [vmem:[%s13283_s26 + $0xc8] sm:$0xff] }
 0x12a   : > { %v2297_v15 = vpop.f32.mrf.mxu1 }
 0x12b   : > { %v13947_v28 = vadd.f32 %v2297_v15, %v1237_v13  ;;  %v11554_v29 = vpop.f32.mrf.mxu0  ;;  %11891 = vmatmul.mubr.msk.f32.gmra.mxu0 %vm584_vm1, %v2723_v8  ;;  %v4038_v8 = vld [vmem:[%s13283_s26 + $0xc9] sm:$0xff] }
 0x12c   : > { %v11744_v30 = vpop.f32.mrf.mxu1  ;;  %12081 = vmatmul.mubr.msk.f32.gmra.mxu1 %vm584_vm1, %v4034_v11  ;;  %11893 = vmatprep.mubr.msk.f32.mxu0 %vm584_vm1, %v2724_v17  ;;  %v2728_v15 = vld [vmem:[%s13283_s26 + $0xd0] sm:$0xff] }
 0x12d   : > { %17637 = vst [vmem:[#allocation8_spill] sm:$0xff] %v13947_v28  ;;  %v13951_v31 = vadd.f32 %v11744_v30, %v11554_v29  ;;  %12083 = vmatprep.mubr.msk.f32.mxu1 %vm584_vm1, %v4035_v22  ;;  %v1247_v42 = vpop.f32.mrf.mxu0  ;;  %v4039_v17 = vld [vmem:[%s13283_s26 + $0xd1] sm:$0xff] }
 0x12e   : > { %v2307_v48 = vpop.f32.mrf.mxu1 }
 0x12f   : > { %17638 = vst [vmem:[#allocation9_spill] sm:$0xff] %v13951_v31  ;;  %v13959_v54 = vadd.f32 %v2307_v48, %v1247_v42  ;;  %v11557_v57 = vpop.f32.mrf.mxu0  ;;  %11894 = vmatmul.mubr.msk.f32.gmra.mxu0 %vm584_vm1, %v2725_v34  ;;  %v4040_v42 = vld [vmem:[%s13283_s26 + $0xd9] sm:$0xff]  ;;  %v4121_v31 = vld [vmem:[%s13283_s26 + $0x361] sm:$0xff] }
 0x130   : > { %v11747_v60 = vpop.f32.mrf.mxu1  ;;  %12084 = vmatmul.mubr.msk.f32.gmra.mxu1 %vm584_vm1, %v4036_v41  ;;  %11896 = vmatprep.mubr.msk.f32.mxu0 %vm584_vm1, %v2726_v50  ;;  %v2729_v41 = vld [vmem:[%s13283_s26 + $0xd8] sm:$0xff] }
 0x131   : > { %17639 = vst [vmem:[#allocation10_spill] sm:$0xff] %v13959_v54  ;;  %v13963_v1 = vadd.f32 %v11747_v60, %v11557_v57  ;;  %12086 = vmatprep.mubr.msk.f32.mxu1 %vm584_vm1, %v4037_v52  ;;  %v1257_v11 = vpop.f32.mrf.mxu0  ;;  %v2730_v52 = vld [vmem:[%s13283_s26 + $0xe0] sm:$0xff] }
 0x132   : > { %v2317_v13 = vpop.f32.mrf.mxu1  ;;  %v4041_v57 = vld [vmem:[%s13283_s26 + $0xe1] sm:$0xff] }
 0x133   : > { %17640 = vst [vmem:[#allocation11_spill] sm:$0xff] %v13963_v1  ;;  %v13971_v22 = vadd.f32 %v2317_v13, %v1257_v11  ;;  %v11560_v29 = vpop.f32.mrf.mxu0  ;;  %11897 = vmatmul.mubr.msk.f32.gmra.mxu0 %vm584_vm1, %v2727_v4  ;;  %v2731_v13 = vld [vmem:[%s13283_s26 + $0xe8] sm:$0xff]  ;;  %v2810_v54 = vld [vmem:[%s13283_s26 + $0x360] sm:$0xff] }
 0x134   : > { %v11750_v30 = vpop.f32.mrf.mxu1  ;;  %12087 = vmatmul.mubr.msk.f32.gmra.mxu1 %vm584_vm1, %v4038_v8  ;;  %11899 = vmatprep.mubr.msk.f32.mxu0 %vm584_vm1, %v2728_v15  ;;  %v4042_v15 = vld [vmem:[%s13283_s26 + $0xe9] sm:$0xff] }
 0x135   : > { %17641 = vst [vmem:[#allocation12_spill] sm:$0xff] %v13971_v22  ;;  %v13975_v34 = vadd.f32 %v11750_v30, %v11560_v29  ;;  %12089 = vmatprep.mubr.msk.f32.mxu1 %vm584_vm1, %v4039_v17  ;;  %v1267_v48 = vpop.f32.mrf.mxu0  ;;  %v2732_v30 = vld [vmem:[%s13283_s26 + $0xf0] sm:$0xff] }
 0x136   : > { %v2327_v50 = vpop.f32.mrf.mxu1 }
 0x137   : > { %17642 = vst [vmem:[#allocation13_spill] sm:$0xff] %v13975_v34  ;;  %v13983_v60 = vadd.f32 %v2327_v50, %v1267_v48  ;;  %v11563_v4 = vpop.f32.mrf.mxu0  ;;  %11900 = vmatmul.mubr.msk.f32.gmra.mxu0 %vm584_vm1, %v2729_v41  ;;  %v4043_v48 = vld [vmem:[%s13283_s26 + $0xf1] sm:$0xff] }
 0x138   : > { %v11753_v8 = vpop.f32.mrf.mxu1  ;;  %12090 = vmatmul.mubr.msk.f32.gmra.mxu1 %vm584_vm1, %v4040_v42  ;;  %11902 = vmatprep.mubr.msk.f32.mxu0 %vm584_vm1, %v2730_v52 }
 0x139   : > { %17643 = vst [vmem:[#allocation14_spill] sm:$0xff] %v13983_v60  ;;  %v13987_v11 = vadd.f32 %v11753_v8, %v11563_v4  ;;  %12092 = vmatprep.mubr.msk.f32.mxu1 %vm584_vm1, %v4041_v57  ;;  %v1277_v17 = vpop.f32.mrf.mxu0  ;;  %v2733_v57 = vld [vmem:[%s13283_s26 + $0xf8] sm:$0xff] }
 0x13a   : > { %v2337_v29 = vpop.f32.mrf.mxu1  ;;  %v4044_v4 = vld [vmem:[%s13283_s26 + $0xf9] sm:$0xff] }
 0x13b   : > { %17644 = vst [vmem:[#allocation15_spill] sm:$0xff] %v13987_v11  ;;  %v13995_v50 = vadd.f32 %v2337_v29, %v1277_v17  ;;  %v11566_v41 = vpop.f32.mrf.mxu0  ;;  %11903 = vmatmul.mubr.msk.f32.gmra.mxu0 %vm584_vm1, %v2731_v13  ;;  %v2734_v29 = vld [vmem:[%s13283_s26 + $0x100] sm:$0xff] }
 0x13c   : > { %v11756_v42 = vpop.f32.mrf.mxu1  ;;  %12093 = vmatmul.mubr.msk.f32.gmra.mxu1 %vm584_vm1, %v4042_v15  ;;  %11905 = vmatprep.mubr.msk.f32.mxu0 %vm584_vm1, %v2732_v30 }
 0x13d   : > { %17645 = vst [vmem:[#allocation16_spill] sm:$0xff] %v13995_v50  ;;  %v13999_v52 = vadd.f32 %v11756_v42, %v11566_v41  ;;  %12095 = vmatprep.mubr.msk.f32.mxu1 %vm584_vm1, %v4043_v48  ;;  %v1287_v8 = vpop.f32.mrf.mxu0  ;;  %v4045_v50 = vld [vmem:[%s13283_s26 + $0x101] sm:$0xff]  ;;  %v4046_v41 = vld [vmem:[%s13283_s26 + $0x109] sm:$0xff] }
 0x13e   : > { %v2347_v17 = vpop.f32.mrf.mxu1  ;;  %v2735_v48 = vld [vmem:[%s13283_s26 + $0x108] sm:$0xff] }
 0x13f   : > { %17646 = vst [vmem:[#allocation17_spill] sm:$0xff] %v13999_v52  ;;  %v14007_v11 = vadd.f32 %v2347_v17, %v1287_v8  ;;  %v11569_v13 = vpop.f32.mrf.mxu0  ;;  %11906 = vmatmul.mubr.msk.f32.gmra.mxu0 %vm584_vm1, %v2733_v57  ;;  %v2736_v17 = vld [vmem:[%s13283_s26 + $0x110] sm:$0xff] }
 0x140   : > { %v11759_v15 = vpop.f32.mrf.mxu1  ;;  %12096 = vmatmul.mubr.msk.f32.gmra.mxu1 %vm584_vm1, %v4044_v4  ;;  %11908 = vmatprep.mubr.msk.f32.mxu0 %vm584_vm1, %v2734_v29 }
 0x141   : > { %17647 = vst [vmem:[#allocation18_spill] sm:$0xff] %v14007_v11  ;;  %v14011_v30 = vadd.f32 %v11759_v15, %v11569_v13  ;;  %12098 = vmatprep.mubr.msk.f32.mxu1 %vm584_vm1, %v4045_v50  ;;  %v1297_v42 = vpop.f32.mrf.mxu0  ;;  %v4047_v11 = vld [vmem:[%s13283_s26 + $0x111] sm:$0xff]  ;;  %v4048_v13 = vld [vmem:[%s13283_s26 + $0x119] sm:$0xff] }
 0x142   : > { %v2357_v8 = vpop.f32.mrf.mxu1  ;;  %v2737_v50 = vld [vmem:[%s13283_s26 + $0x118] sm:$0xff] }
 0x143   : > { %17648 = vst [vmem:[#allocation19_spill] sm:$0xff] %v14011_v30  ;;  %v14019_v52 = vadd.f32 %v2357_v8, %v1297_v42  ;;  %v11572_v57 = vpop.f32.mrf.mxu0  ;;  %11909 = vmatmul.mubr.msk.f32.gmra.mxu0 %vm584_vm1, %v2735_v48  ;;  %v2738_v8 = vld [vmem:[%s13283_s26 + $0x120] sm:$0xff] }
 0x144   : > { %v11762_v4 = vpop.f32.mrf.mxu1  ;;  %12099 = vmatmul.mubr.msk.f32.gmra.mxu1 %vm584_vm1, %v4046_v41  ;;  %11911 = vmatprep.mubr.msk.f32.mxu0 %vm584_vm1, %v2736_v17 }
 0x145   : > { %17649 = vst [vmem:[#allocation20_spill] sm:$0xff] %v14019_v52  ;;  %v14023_v29 = vadd.f32 %v11762_v4, %v11572_v57  ;;  %12101 = vmatprep.mubr.msk.f32.mxu1 %vm584_vm1, %v4047_v11  ;;  %v1307_v15 = vpop.f32.mrf.mxu0  ;;  %v4049_v52 = vld [vmem:[%s13283_s26 + $0x121] sm:$0xff]  ;;  %v4050_v57 = vld [vmem:[%s13283_s26 + $0x129] sm:$0xff] }
 0x146   : > { %v2367_v42 = vpop.f32.mrf.mxu1  ;;  %v2739_v11 = vld [vmem:[%s13283_s26 + $0x128] sm:$0xff] }
 0x147   : > { %17650 = vst [vmem:[#allocation21_spill] sm:$0xff] %v14023_v29  ;;  %v14031_v30 = vadd.f32 %v2367_v42, %v1307_v15  ;;  %v11575_v48 = vpop.f32.mrf.mxu0  ;;  %11912 = vmatmul.mubr.msk.f32.gmra.mxu0 %vm584_vm1, %v2737_v50  ;;  %v2740_v42 = vld [vmem:[%s13283_s26 + $0x130] sm:$0xff] }
 0x148   : > { %v11765_v41 = vpop.f32.mrf.mxu1  ;;  %12102 = vmatmul.mubr.msk.f32.gmra.mxu1 %vm584_vm1, %v4048_v13  ;;  %11914 = vmatprep.mubr.msk.f32.mxu0 %vm584_vm1, %v2738_v8 }
 0x149   : > { %17651 = vst [vmem:[#allocation22_spill] sm:$0xff] %v14031_v30  ;;  %v14035_v17 = vadd.f32 %v11765_v41, %v11575_v48  ;;  %12104 = vmatprep.mubr.msk.f32.mxu1 %vm584_vm1, %v4049_v52  ;;  %v1317_v4 = vpop.f32.mrf.mxu0  ;;  %v4051_v30 = vld [vmem:[%s13283_s26 + $0x131] sm:$0xff]  ;;  %v4052_v48 = vld [vmem:[%s13283_s26 + $0x139] sm:$0xff] }
 0x14a   : > { %v2377_v15 = vpop.f32.mrf.mxu1  ;;  %v2741_v52 = vld [vmem:[%s13283_s26 + $0x138] sm:$0xff] }
 0x14b   : > { %17652 = vst [vmem:[#allocation23_spill] sm:$0xff] %v14035_v17  ;;  %v14043_v29 = vadd.f32 %v2377_v15, %v1317_v4  ;;  %v11578_v50 = vpop.f32.mrf.mxu0  ;;  %11915 = vmatmul.mubr.msk.f32.gmra.mxu0 %vm584_vm1, %v2739_v11  ;;  %v2742_v15 = vld [vmem:[%s13283_s26 + $0x140] sm:$0xff] }
 0x14c   : > { %v11768_v13 = vpop.f32.mrf.mxu1  ;;  %12105 = vmatmul.mubr.msk.f32.gmra.mxu1 %vm584_vm1, %v4050_v57  ;;  %11917 = vmatprep.mubr.msk.f32.mxu0 %vm584_vm1, %v2740_v42 }
 0x14d   : > { %17653 = vst [vmem:[#allocation24_spill] sm:$0xff] %v14043_v29  ;;  %v14047_v8 = vadd.f32 %v11768_v13, %v11578_v50  ;;  %12107 = vmatprep.mubr.msk.f32.mxu1 %vm584_vm1, %v4051_v30  ;;  %v1327_v41 = vpop.f32.mrf.mxu0  ;;  %v4053_v29 = vld [vmem:[%s13283_s26 + $0x141] sm:$0xff]  ;;  %v4054_v50 = vld [vmem:[%s13283_s26 + $0x149] sm:$0xff] }
 0x14e   : > { %v2387_v4 = vpop.f32.mrf.mxu1  ;;  %v2743_v30 = vld [vmem:[%s13283_s26 + $0x148] sm:$0xff] }
 0x14f   : > { %17654 = vst [vmem:[#allocation25_spill] sm:$0xff] %v14047_v8  ;;  %v14055_v17 = vadd.f32 %v2387_v4, %v1327_v41  ;;  %v11581_v11 = vpop.f32.mrf.mxu0  ;;  %11918 = vmatmul.mubr.msk.f32.gmra.mxu0 %vm584_vm1, %v2741_v52  ;;  %v2744_v4 = vld [vmem:[%s13283_s26 + $0x150] sm:$0xff] }
 0x150   : > { %v11771_v57 = vpop.f32.mrf.mxu1  ;;  %12108 = vmatmul.mubr.msk.f32.gmra.mxu1 %vm584_vm1, %v4052_v48  ;;  %11920 = vmatprep.mubr.msk.f32.mxu0 %vm584_vm1, %v2742_v15 }
 0x151   : > { %17655 = vst [vmem:[#allocation26_spill] sm:$0xff] %v14055_v17  ;;  %v14059_v42 = vadd.f32 %v11771_v57, %v11581_v11  ;;  %12110 = vmatprep.mubr.msk.f32.mxu1 %vm584_vm1, %v4053_v29  ;;  %v1337_v13 = vpop.f32.mrf.mxu0  ;;  %v4055_v17 = vld [vmem:[%s13283_s26 + $0x151] sm:$0xff]  ;;  %v4056_v11 = vld [vmem:[%s13283_s26 + $0x159] sm:$0xff] }
 0x152   : > { %v2397_v41 = vpop.f32.mrf.mxu1  ;;  %v2745_v29 = vld [vmem:[%s13283_s26 + $0x158] sm:$0xff] }
 0x153   : > { %17656 = vst [vmem:[#allocation27_spill] sm:$0xff] %v14059_v42  ;;  %v14067_v8 = vadd.f32 %v2397_v41, %v1337_v13  ;;  %v11584_v52 = vpop.f32.mrf.mxu0  ;;  %11921 = vmatmul.mubr.msk.f32.gmra.mxu0 %vm584_vm1, %v2743_v30  ;;  %v2746_v41 = vld [vmem:[%s13283_s26 + $0x160] sm:$0xff] }
 0x154   : > { %v11774_v48 = vpop.f32.mrf.mxu1  ;;  %12111 = vmatmul.mubr.msk.f32.gmra.mxu1 %vm584_vm1, %v4054_v50  ;;  %11923 = vmatprep.mubr.msk.f32.mxu0 %vm584_vm1, %v2744_v4 }
 0x155   : > { %17657 = vst [vmem:[#allocation28_spill] sm:$0xff] %v14067_v8  ;;  %v14071_v15 = vadd.f32 %v11774_v48, %v11584_v52  ;;  %12113 = vmatprep.mubr.msk.f32.mxu1 %vm584_vm1, %v4055_v17  ;;  %v1347_v57 = vpop.f32.mrf.mxu0  ;;  %v4057_v8 = vld [vmem:[%s13283_s26 + $0x161] sm:$0xff]  ;;  %v4058_v52 = vld [vmem:[%s13283_s26 + $0x169] sm:$0xff] }
 0x156   : > { %v2407_v13 = vpop.f32.mrf.mxu1  ;;  %v2747_v17 = vld [vmem:[%s13283_s26 + $0x168] sm:$0xff] }
 0x157   : > { %17658 = vst [vmem:[#allocation29_spill] sm:$0xff] %v14071_v15  ;;  %v14079_v42 = vadd.f32 %v2407_v13, %v1347_v57  ;;  %v11587_v30 = vpop.f32.mrf.mxu0  ;;  %11924 = vmatmul.mubr.msk.f32.gmra.mxu0 %vm584_vm1, %v2745_v29  ;;  %v2748_v13 = vld [vmem:[%s13283_s26 + $0x170] sm:$0xff] }
 0x158   : > { %v11777_v50 = vpop.f32.mrf.mxu1  ;;  %12114 = vmatmul.mubr.msk.f32.gmra.mxu1 %vm584_vm1, %v4056_v11  ;;  %11926 = vmatprep.mubr.msk.f32.mxu0 %vm584_vm1, %v2746_v41 }
 0x159   : > { %17659 = vst [vmem:[#allocation30_spill] sm:$0xff] %v14079_v42  ;;  %v14083_v4 = vadd.f32 %v11777_v50, %v11587_v30  ;;  %12116 = vmatprep.mubr.msk.f32.mxu1 %vm584_vm1, %v4057_v8  ;;  %v1357_v48 = vpop.f32.mrf.mxu0  ;;  %v4059_v42 = vld [vmem:[%s13283_s26 + $0x171] sm:$0xff]  ;;  %v4060_v30 = vld [vmem:[%s13283_s26 + $0x179] sm:$0xff] }
 0x15a   : > { %v2417_v57 = vpop.f32.mrf.mxu1  ;;  %v2749_v8 = vld [vmem:[%s13283_s26 + $0x178] sm:$0xff] }
 0x15b   : > { %17660 = vst [vmem:[#allocation31_spill] sm:$0xff] %v14083_v4  ;;  %v14091_v15 = vadd.f32 %v2417_v57, %v1357_v48  ;;  %v11590_v29 = vpop.f32.mrf.mxu0  ;;  %11927 = vmatmul.mubr.msk.f32.gmra.mxu0 %vm584_vm1, %v2747_v17  ;;  %v2750_v57 = vld [vmem:[%s13283_s26 + $0x180] sm:$0xff] }
 0x15c   : > { %v11780_v11 = vpop.f32.mrf.mxu1  ;;  %12117 = vmatmul.mubr.msk.f32.gmra.mxu1 %vm584_vm1, %v4058_v52  ;;  %11929 = vmatprep.mubr.msk.f32.mxu0 %vm584_vm1, %v2748_v13 }
 0x15d   : > { %17661 = vst [vmem:[#allocation32_spill] sm:$0xff] %v14091_v15  ;;  %v14095_v41 = vadd.f32 %v11780_v11, %v11590_v29  ;;  %12119 = vmatprep.mubr.msk.f32.mxu1 %vm584_vm1, %v4059_v42  ;;  %v1367_v50 = vpop.f32.mrf.mxu0  ;;  %v4061_v15 = vld [vmem:[%s13283_s26 + $0x181] sm:$0xff]  ;;  %v4062_v29 = vld [vmem:[%s13283_s26 + $0x189] sm:$0xff] }
 0x15e   : > { %v2427_v48 = vpop.f32.mrf.mxu1  ;;  %v2751_v42 = vld [vmem:[%s13283_s26 + $0x188] sm:$0xff] }
 0x15f   : > { %17662 = vst [vmem:[#allocation33_spill] sm:$0xff] %v14095_v41  ;;  %v14103_v4 = vadd.f32 %v2427_v48, %v1367_v50  ;;  %v11593_v17 = vpop.f32.mrf.mxu0  ;;  %11930 = vmatmul.mubr.msk.f32.gmra.mxu0 %vm584_vm1, %v2749_v8  ;;  %v2752_v48 = vld [vmem:[%s13283_s26 + $0x190] sm:$0xff] }
 0x160   : > { %v11783_v52 = vpop.f32.mrf.mxu1  ;;  %12120 = vmatmul.mubr.msk.f32.gmra.mxu1 %vm584_vm1, %v4060_v30  ;;  %11932 = vmatprep.mubr.msk.f32.mxu0 %vm584_vm1, %v2750_v57 }
 0x161   : > { %17663 = vst [vmem:[#allocation34_spill] sm:$0xff] %v14103_v4  ;;  %v14107_v13 = vadd.f32 %v11783_v52, %v11593_v17  ;;  %12122 = vmatprep.mubr.msk.f32.mxu1 %vm584_vm1, %v4061_v15  ;;  %v1377_v11 = vpop.f32.mrf.mxu0  ;;  %v4063_v4 = vld [vmem:[%s13283_s26 + $0x191] sm:$0xff]  ;;  %v4064_v17 = vld [vmem:[%s13283_s26 + $0x199] sm:$0xff] }
 0x162   : > { %v2437_v50 = vpop.f32.mrf.mxu1  ;;  %v2753_v15 = vld [vmem:[%s13283_s26 + $0x198] sm:$0xff] }
 0x163   : > { %17664 = vst [vmem:[#allocation35_spill] sm:$0xff] %v14107_v13  ;;  %v14115_v41 = vadd.f32 %v2437_v50, %v1377_v11  ;;  %v11596_v8 = vpop.f32.mrf.mxu0  ;;  %11933 = vmatmul.mubr.msk.f32.gmra.mxu0 %vm584_vm1, %v2751_v42  ;;  %v2754_v50 = vld [vmem:[%s13283_s26 + $0x1a0] sm:$0xff] }
 0x164   : > { %v11786_v30 = vpop.f32.mrf.mxu1  ;;  %12123 = vmatmul.mubr.msk.f32.gmra.mxu1 %vm584_vm1, %v4062_v29  ;;  %11935 = vmatprep.mubr.msk.f32.mxu0 %vm584_vm1, %v2752_v48 }
 0x165   : > { %17665 = vst [vmem:[#allocation36_spill] sm:$0xff] %v14115_v41  ;;  %v14119_v57 = vadd.f32 %v11786_v30, %v11596_v8  ;;  %12125 = vmatprep.mubr.msk.f32.mxu1 %vm584_vm1, %v4063_v4  ;;  %v1387_v52 = vpop.f32.mrf.mxu0  ;;  %v4065_v41 = vld [vmem:[%s13283_s26 + $0x1a1] sm:$0xff]  ;;  %v4066_v8 = vld [vmem:[%s13283_s26 + $0x1a9] sm:$0xff] }
 0x166   : > { %v2447_v11 = vpop.f32.mrf.mxu1  ;;  %v2755_v4 = vld [vmem:[%s13283_s26 + $0x1a8] sm:$0xff] }
 0x167   : > { %17666 = vst [vmem:[#allocation37_spill] sm:$0xff] %v14119_v57  ;;  %v14127_v13 = vadd.f32 %v2447_v11, %v1387_v52  ;;  %v11599_v42 = vpop.f32.mrf.mxu0  ;;  %11936 = vmatmul.mubr.msk.f32.gmra.mxu0 %vm584_vm1, %v2753_v15  ;;  %v2756_v11 = vld [vmem:[%s13283_s26 + $0x1b0] sm:$0xff] }
 0x168   : > { %v11789_v29 = vpop.f32.mrf.mxu1  ;;  %12126 = vmatmul.mubr.msk.f32.gmra.mxu1 %vm584_vm1, %v4064_v17  ;;  %11938 = vmatprep.mubr.msk.f32.mxu0 %vm584_vm1, %v2754_v50 }
 0x169   : > { %17667 = vst [vmem:[#allocation38_spill] sm:$0xff] %v14127_v13  ;;  %v14131_v48 = vadd.f32 %v11789_v29, %v11599_v42  ;;  %12128 = vmatprep.mubr.msk.f32.mxu1 %vm584_vm1, %v4065_v41  ;;  %v1397_v30 = vpop.f32.mrf.mxu0  ;;  %v4067_v13 = vld [vmem:[%s13283_s26 + $0x1b1] sm:$0xff]  ;;  %v4068_v42 = vld [vmem:[%s13283_s26 + $0x1b9] sm:$0xff] }
 0x16a   : > { %v2457_v52 = vpop.f32.mrf.mxu1  ;;  %v2757_v41 = vld [vmem:[%s13283_s26 + $0x1b8] sm:$0xff] }
 0x16b   : > { %17668 = vst [vmem:[#allocation39_spill] sm:$0xff] %v14131_v48  ;;  %v14139_v57 = vadd.f32 %v2457_v52, %v1397_v30  ;;  %v11602_v15 = vpop.f32.mrf.mxu0  ;;  %11939 = vmatmul.mubr.msk.f32.gmra.mxu0 %vm584_vm1, %v2755_v4  ;;  %v2758_v52 = vld [vmem:[%s13283_s26 + $0x1c0] sm:$0xff] }
 0x16c   : > { %v11792_v17 = vpop.f32.mrf.mxu1  ;;  %12129 = vmatmul.mubr.msk.f32.gmra.mxu1 %vm584_vm1, %v4066_v8  ;;  %11941 = vmatprep.mubr.msk.f32.mxu0 %vm584_vm1, %v2756_v11 }
 0x16d   : > { %17669 = vst [vmem:[#allocation40_spill] sm:$0xff] %v14139_v57  ;;  %v14143_v50 = vadd.f32 %v11792_v17, %v11602_v15  ;;  %12131 = vmatprep.mubr.msk.f32.mxu1 %vm584_vm1, %v4067_v13  ;;  %v1407_v29 = vpop.f32.mrf.mxu0  ;;  %v4069_v57 = vld [vmem:[%s13283_s26 + $0x1c1] sm:$0xff]  ;;  %v4070_v15 = vld [vmem:[%s13283_s26 + $0x1c9] sm:$0xff] }
 0x16e   : > { %v2467_v30 = vpop.f32.mrf.mxu1  ;;  %v2759_v13 = vld [vmem:[%s13283_s26 + $0x1c8] sm:$0xff] }
 0x16f   : > { %17670 = vst [vmem:[#allocation41_spill] sm:$0xff] %v14143_v50  ;;  %v14151_v48 = vadd.f32 %v2467_v30, %v1407_v29  ;;  %v11605_v4 = vpop.f32.mrf.mxu0  ;;  %11942 = vmatmul.mubr.msk.f32.gmra.mxu0 %vm584_vm1, %v2757_v41  ;;  %v2760_v30 = vld [vmem:[%s13283_s26 + $0x1d0] sm:$0xff] }
 0x170   : > { %v11795_v8 = vpop.f32.mrf.mxu1  ;;  %12132 = vmatmul.mubr.msk.f32.gmra.mxu1 %vm584_vm1, %v4068_v42  ;;  %11944 = vmatprep.mubr.msk.f32.mxu0 %vm584_vm1, %v2758_v52 }
 0x171   : > { %17671 = vst [vmem:[#allocation42_spill] sm:$0xff] %v14151_v48  ;;  %v14155_v11 = vadd.f32 %v11795_v8, %v11605_v4  ;;  %12134 = vmatprep.mubr.msk.f32.mxu1 %vm584_vm1, %v4069_v57  ;;  %v1417_v17 = vpop.f32.mrf.mxu0  ;;  %v4071_v48 = vld [vmem:[%s13283_s26 + $0x1d1] sm:$0xff]  ;;  %v4072_v4 = vld [vmem:[%s13283_s26 + $0x1d9] sm:$0xff] }
 0x172   : > { %v2477_v29 = vpop.f32.mrf.mxu1  ;;  %v2761_v57 = vld [vmem:[%s13283_s26 + $0x1d8] sm:$0xff] }
 0x173   : > { %17672 = vst [vmem:[#allocation43_spill] sm:$0xff] %v14155_v11  ;;  %v14163_v50 = vadd.f32 %v2477_v29, %v1417_v17  ;;  %v11608_v41 = vpop.f32.mrf.mxu0  ;;  %11945 = vmatmul.mubr.msk.f32.gmra.mxu0 %vm584_vm1, %v2759_v13  ;;  %v2762_v29 = vld [vmem:[%s13283_s26 + $0x1e0] sm:$0xff] }
 0x174   : > { %v11798_v42 = vpop.f32.mrf.mxu1  ;;  %12135 = vmatmul.mubr.msk.f32.gmra.mxu1 %vm584_vm1, %v4070_v15  ;;  %11947 = vmatprep.mubr.msk.f32.mxu0 %vm584_vm1, %v2760_v30 }
 0x175   : > { %17673 = vst [vmem:[#allocation44_spill] sm:$0xff] %v14163_v50  ;;  %v14167_v52 = vadd.f32 %v11798_v42, %v11608_v41  ;;  %12137 = vmatprep.mubr.msk.f32.mxu1 %vm584_vm1, %v4071_v48  ;;  %v1427_v8 = vpop.f32.mrf.mxu0  ;;  %v4073_v50 = vld [vmem:[%s13283_s26 + $0x1e1] sm:$0xff]  ;;  %v4074_v41 = vld [vmem:[%s13283_s26 + $0x1e9] sm:$0xff] }
 0x176   : > { %v2487_v17 = vpop.f32.mrf.mxu1  ;;  %v2763_v48 = vld [vmem:[%s13283_s26 + $0x1e8] sm:$0xff] }
 0x177   : > { %17674 = vst [vmem:[#allocation45_spill] sm:$0xff] %v14167_v52  ;;  %v14175_v11 = vadd.f32 %v2487_v17, %v1427_v8  ;;  %v11611_v13 = vpop.f32.mrf.mxu0  ;;  %11948 = vmatmul.mubr.msk.f32.gmra.mxu0 %vm584_vm1, %v2761_v57  ;;  %v2764_v17 = vld [vmem:[%s13283_s26 + $0x1f0] sm:$0xff] }
 0x178   : > { %v11801_v15 = vpop.f32.mrf.mxu1  ;;  %12138 = vmatmul.mubr.msk.f32.gmra.mxu1 %vm584_vm1, %v4072_v4  ;;  %11950 = vmatprep.mubr.msk.f32.mxu0 %vm584_vm1, %v2762_v29 }
 0x179   : > { %17675 = vst [vmem:[#allocation46_spill] sm:$0xff] %v14175_v11  ;;  %v14179_v30 = vadd.f32 %v11801_v15, %v11611_v13  ;;  %12140 = vmatprep.mubr.msk.f32.mxu1 %vm584_vm1, %v4073_v50  ;;  %v1437_v42 = vpop.f32.mrf.mxu0  ;;  %v4075_v11 = vld [vmem:[%s13283_s26 + $0x1f1] sm:$0xff]  ;;  %v4076_v13 = vld [vmem:[%s13283_s26 + $0x1f9] sm:$0xff] }
 0x17a   : > { %v2497_v8 = vpop.f32.mrf.mxu1  ;;  %v2765_v50 = vld [vmem:[%s13283_s26 + $0x1f8] sm:$0xff] }
 0x17b   : > { %17676 = vst [vmem:[#allocation47_spill] sm:$0xff] %v14179_v30  ;;  %v14187_v52 = vadd.f32 %v2497_v8, %v1437_v42  ;;  %v11614_v57 = vpop.f32.mrf.mxu0  ;;  %11951 = vmatmul.mubr.msk.f32.gmra.mxu0 %vm584_vm1, %v2763_v48  ;;  %v2766_v8 = vld [vmem:[%s13283_s26 + $0x200] sm:$0xff] }
 0x17c   : > { %v11804_v4 = vpop.f32.mrf.mxu1  ;;  %12141 = vmatmul.mubr.msk.f32.gmra.mxu1 %vm584_vm1, %v4074_v41  ;;  %11953 = vmatprep.mubr.msk.f32.mxu0 %vm584_vm1, %v2764_v17 }
 0x17d   : > { %17677 = vst [vmem:[#allocation48_spill] sm:$0xff] %v14187_v52  ;;  %v14191_v29 = vadd.f32 %v11804_v4, %v11614_v57  ;;  %12143 = vmatprep.mubr.msk.f32.mxu1 %vm584_vm1, %v4075_v11  ;;  %v1447_v15 = vpop.f32.mrf.mxu0  ;;  %v4077_v52 = vld [vmem:[%s13283_s26 + $0x201] sm:$0xff]  ;;  %v4078_v57 = vld [vmem:[%s13283_s26 + $0x209] sm:$0xff] }
 0x17e   : > { %v2507_v42 = vpop.f32.mrf.mxu1  ;;  %v2767_v11 = vld [vmem:[%s13283_s26 + $0x208] sm:$0xff] }
 0x17f   : > { %17678 = vst [vmem:[#allocation49_spill] sm:$0xff] %v14191_v29  ;;  %v14199_v30 = vadd.f32 %v2507_v42, %v1447_v15  ;;  %v11617_v48 = vpop.f32.mrf.mxu0  ;;  %11954 = vmatmul.mubr.msk.f32.gmra.mxu0 %vm584_vm1, %v2765_v50  ;;  %v2768_v42 = vld [vmem:[%s13283_s26 + $0x210] sm:$0xff] }
 0x180   : > { %v11807_v41 = vpop.f32.mrf.mxu1  ;;  %12144 = vmatmul.mubr.msk.f32.gmra.mxu1 %vm584_vm1, %v4076_v13  ;;  %11956 = vmatprep.mubr.msk.f32.mxu0 %vm584_vm1, %v2766_v8 }
 0x181   : > { %17679 = vst [vmem:[#allocation50_spill] sm:$0xff] %v14199_v30  ;;  %v14203_v17 = vadd.f32 %v11807_v41, %v11617_v48  ;;  %12146 = vmatprep.mubr.msk.f32.mxu1 %vm584_vm1, %v4077_v52  ;;  %v1457_v4 = vpop.f32.mrf.mxu0  ;;  %v4079_v30 = vld [vmem:[%s13283_s26 + $0x211] sm:$0xff]  ;;  %v4080_v48 = vld [vmem:[%s13283_s26 + $0x219] sm:$0xff] }
 0x182   : > { %v2517_v15 = vpop.f32.mrf.mxu1  ;;  %v2769_v52 = vld [vmem:[%s13283_s26 + $0x218] sm:$0xff] }
 0x183   : > { %17680 = vst [vmem:[#allocation51_spill] sm:$0xff] %v14203_v17  ;;  %v14211_v29 = vadd.f32 %v2517_v15, %v1457_v4  ;;  %v11620_v50 = vpop.f32.mrf.mxu0  ;;  %11957 = vmatmul.mubr.msk.f32.gmra.mxu0 %vm584_vm1, %v2767_v11  ;;  %v2770_v15 = vld [vmem:[%s13283_s26 + $0x220] sm:$0xff] }
 0x184   : > { %v11810_v13 = vpop.f32.mrf.mxu1  ;;  %12147 = vmatmul.mubr.msk.f32.gmra.mxu1 %vm584_vm1, %v4078_v57  ;;  %11959 = vmatprep.mubr.msk.f32.mxu0 %vm584_vm1, %v2768_v42 }
 0x185   : > { %17681 = vst [vmem:[#allocation52_spill] sm:$0xff] %v14211_v29  ;;  %v14215_v8 = vadd.f32 %v11810_v13, %v11620_v50  ;;  %12149 = vmatprep.mubr.msk.f32.mxu1 %vm584_vm1, %v4079_v30  ;;  %v1467_v41 = vpop.f32.mrf.mxu0  ;;  %v4081_v29 = vld [vmem:[%s13283_s26 + $0x221] sm:$0xff]  ;;  %v4082_v50 = vld [vmem:[%s13283_s26 + $0x229] sm:$0xff] }
 0x186   : > { %v2527_v4 = vpop.f32.mrf.mxu1  ;;  %v2771_v30 = vld [vmem:[%s13283_s26 + $0x228] sm:$0xff] }
 0x187   : > { %17682 = vst [vmem:[#allocation53_spill] sm:$0xff] %v14215_v8  ;;  %v14223_v17 = vadd.f32 %v2527_v4, %v1467_v41  ;;  %v11623_v11 = vpop.f32.mrf.mxu0  ;;  %11960 = vmatmul.mubr.msk.f32.gmra.mxu0 %vm584_vm1, %v2769_v52  ;;  %v2772_v4 = vld [vmem:[%s13283_s26 + $0x230] sm:$0xff] }
 0x188   : > { %v11813_v57 = vpop.f32.mrf.mxu1  ;;  %12150 = vmatmul.mubr.msk.f32.gmra.mxu1 %vm584_vm1, %v4080_v48  ;;  %11962 = vmatprep.mubr.msk.f32.mxu0 %vm584_vm1, %v2770_v15 }
 0x189   : > { %17683 = vst [vmem:[#allocation54_spill] sm:$0xff] %v14223_v17  ;;  %v14227_v42 = vadd.f32 %v11813_v57, %v11623_v11  ;;  %12152 = vmatprep.mubr.msk.f32.mxu1 %vm584_vm1, %v4081_v29  ;;  %v1477_v13 = vpop.f32.mrf.mxu0  ;;  %v4083_v17 = vld [vmem:[%s13283_s26 + $0x231] sm:$0xff]  ;;  %v4084_v11 = vld [vmem:[%s13283_s26 + $0x239] sm:$0xff] }
 0x18a   : > { %v2537_v41 = vpop.f32.mrf.mxu1  ;;  %v2773_v29 = vld [vmem:[%s13283_s26 + $0x238] sm:$0xff] }
 0x18b   : > { %17684 = vst [vmem:[#allocation55_spill] sm:$0xff] %v14227_v42  ;;  %v14235_v8 = vadd.f32 %v2537_v41, %v1477_v13  ;;  %v11626_v52 = vpop.f32.mrf.mxu0  ;;  %11963 = vmatmul.mubr.msk.f32.gmra.mxu0 %vm584_vm1, %v2771_v30  ;;  %v2774_v13 = vld [vmem:[%s13283_s26 + $0x240] sm:$0xff] }
 0x18c   : > { %v11816_v48 = vpop.f32.mrf.mxu1  ;;  %12153 = vmatmul.mubr.msk.f32.gmra.mxu1 %vm584_vm1, %v4082_v50  ;;  %11965 = vmatprep.mubr.msk.f32.mxu0 %vm584_vm1, %v2772_v4  ;;  %v4085_v41 = vld [vmem:[%s13283_s26 + $0x241] sm:$0xff] }
 0x18d   : > { %17685 = vst [vmem:[#allocation56_spill] sm:$0xff] %v14235_v8  ;;  %v14239_v15 = vadd.f32 %v11816_v48, %v11626_v52  ;;  %12155 = vmatprep.mubr.msk.f32.mxu1 %vm584_vm1, %v4083_v17  ;;  %v1487_v57 = vpop.f32.mrf.mxu0  ;;  %v10477_v17 = vld [vmem:[%s17628_s3 + $0x38] sm:$0xff]  ;;  %v2775_v52 = vld [vmem:[%s13283_s26 + $0x248] sm:$0xff] }
 0x18e   : > { %v2547_v42 = vpop.f32.mrf.mxu1  ;;  %v4086_v48 = vld [vmem:[%s13283_s26 + $0x249] sm:$0xff] }
 0x18f   : > { %17686 = vst [vmem:[#allocation57_spill] sm:$0xff] %v14239_v15  ;;  %v14247_v8 = vadd.f32 %v2547_v42, %v1487_v57  ;;  %v11629_v30 = vpop.f32.mrf.mxu0  ;;  %11966 = vmatmul.mubr.msk.f32.gmra.mxu0 %vm584_vm1, %v2773_v29  ;;  %v7084_v42 = vld [vmem:[%s17628_s3 + $0x18] sm:$0xff]  ;;  %v17635_v15 = vmov 0.0  }
 0x190   : > { %v11819_v50 = vpop.f32.mrf.mxu1  ;;  %12156 = vmatmul.mubr.msk.f32.gmra.mxu1 %vm584_vm1, %v4084_v11  ;;  %11968 = vmatprep.mubr.msk.f32.mxu0 %vm584_vm1, %v2774_v13  ;;  %v2776_v11 = vld [vmem:[%s13283_s26 + $0x250] sm:$0xff] }
 0x191   : > { %17687 = vst [vmem:[#allocation58_spill] sm:$0xff] %v14247_v8  ;;  %v14254_v4 = vadd.f32 %v11819_v50, %v11629_v30  ;;  %12158 = vmatprep.mubr.msk.f32.mxu1 %vm584_vm1, %v4085_v41  ;;  %v1497_v57 = vpop.f32.mrf.mxu0  ;;  %v4087_v8 = vld [vmem:[%s13283_s26 + $0x251] sm:$0xff]  ;;  %12242 = vmatprep.subr.mxu0 %v17635_v15 }
 0x192   : > { %v2557_v29 = vpop.f32.mrf.mxu1  ;;  %12331 = vmatprep.subr.mxu1 %v17635_v15  ;;  %12243 = vmatpush3.msra.mxu0 %v10477_v17  ;;  %v4088_v15 = vld [vmem:[%s13283_s26 + $0x259] sm:$0xff] }
 0x193   : > { %17688 = vst [vmem:[#allocation59_spill] sm:$0xff] %v14254_v4  ;;  %v14267_v13 = vadd.f32 %v2557_v29, %v1497_v57  ;;  %12332 = vmatpush3.msra.mxu1 %v7084_v42  ;;  %v11632_v41 = vpop.f32.mrf.mxu0  ;;  %11969 = vmatmul.mubr.msk.f32.gmra.mxu0 %vm584_vm1, %v2775_v52  ;;  %v2777_v4 = vld [vmem:[%s13283_s26 + $0x258] sm:$0xff]  ;;  %v2778_v17 = vld [vmem:[%s13283_s26 + $0x260] sm:$0xff] }
 0x194   : > { %v11822_v30 = vpop.f32.mrf.mxu1  ;;  %12159 = vmatmul.mubr.msk.f32.gmra.mxu1 %vm584_vm1, %v4086_v48  ;;  %11971 = vmatprep.mubr.msk.f32.mxu0 %vm584_vm1, %v2776_v11  ;;  %v4089_v42 = vld [vmem:[%s13283_s26 + $0x261] sm:$0xff] }
 0x195   : > { %17689 = vst [vmem:[#allocation60_spill] sm:$0xff] %v14267_v13  ;;  %v14271_v50 = vadd.f32 %v11822_v30, %v11632_v41  ;;  %12161 = vmatprep.mubr.msk.f32.mxu1 %vm584_vm1, %v4087_v8  ;;  %v1507_v57 = vpop.f32.mrf.mxu0  ;;  %v17691_v13 = vmov 0.0   ;;  %v2779_v41 = vld [vmem:[%s13283_s26 + $0x268] sm:$0xff] }
 0x196   : > { %v2567_v29 = vpop.f32.mrf.mxu1  ;;  %12244 = vmatprep.subr.mxu0 %v17691_v13  ;;  %12333 = vmatprep.subr.mxu1 %v17691_v13  ;;  %v4090_v30 = vld [vmem:[%s13283_s26 + $0x269] sm:$0xff] }
 0x197   : > { %17690 = vst [vmem:[#allocation61_spill] sm:$0xff] %v14271_v50  ;;  %v14281_v52 = vadd.f32 %v2567_v29, %v1507_v57  ;;  %v11635_v48 = vpop.f32.mrf.mxu0  ;;  %11972 = vmatmul.mubr.msk.f32.gmra.mxu0 %vm584_vm1, %v2777_v4  ;;  %v2780_v29 = vld [vmem:[%s13283_s26 + $0x270] sm:$0xff] }
 0x198   : > { %v11825_v11 = vpop.f32.mrf.mxu1  ;;  %12162 = vmatmul.mubr.msk.f32.gmra.mxu1 %vm584_vm1, %v4088_v15  ;;  %11974 = vmatprep.mubr.msk.f32.mxu0 %vm584_vm1, %v2778_v17 }
 0x199   : > { %17692 = vst [vmem:[#allocation62_spill] sm:$0xff] %v14281_v52  ;;  %v14285_v8 = vadd.f32 %v11825_v11, %v11635_v48  ;;  %12164 = vmatprep.mubr.msk.f32.mxu1 %vm584_vm1, %v4089_v42  ;;  %v1517_v50 = vpop.f32.mrf.mxu0  ;;  %v4091_v52 = vld [vmem:[%s13283_s26 + $0x271] sm:$0xff]  ;;  %v4092_v48 = vld [vmem:[%s13283_s26 + $0x279] sm:$0xff] }
 0x19a   : > { %v2577_v57 = vpop.f32.mrf.mxu1  ;;  %v2781_v42 = vld [vmem:[%s13283_s26 + $0x278] sm:$0xff] }
 0x19b   : > { %17693 = vst [vmem:[#allocation63_spill] sm:$0xff] %v14285_v8  ;;  %v14293_v60 = vadd.f32 %v2577_v57, %v1517_v50  ;;  %v11638_v4 = vpop.f32.mrf.mxu0  ;;  %11975 = vmatmul.mubr.msk.f32.gmra.mxu0 %vm584_vm1, %v2779_v41  ;;  %v2782_v57 = vld [vmem:[%s13283_s26 + $0x280] sm:$0xff] }
 0x19c   : > { %v11828_v15 = vpop.f32.mrf.mxu1  ;;  %12165 = vmatmul.mubr.msk.f32.gmra.mxu1 %vm584_vm1, %v4090_v30  ;;  %11977 = vmatprep.mubr.msk.f32.mxu0 %vm584_vm1, %v2780_v29 }
 0x19d   : > { %17694 = vst [vmem:[#allocation64_spill] sm:$0xff] %v14293_v60  ;;  %v14297_v17 = vadd.f32 %v11828_v15, %v11638_v4  ;;  %12167 = vmatprep.mubr.msk.f32.mxu1 %vm584_vm1, %v4091_v52  ;;  %v1527_v11 = vpop.f32.mrf.mxu0  ;;  %v4093_v60 = vld [vmem:[%s13283_s26 + $0x281] sm:$0xff]  ;;  %v4094_v4 = vld [vmem:[%s13283_s26 + $0x289] sm:$0xff] }
 0x19e   : > { %v2587_v50 = vpop.f32.mrf.mxu1  ;;  %v2783_v52 = vld [vmem:[%s13283_s26 + $0x288] sm:$0xff] }
 0x19f   : > { %17695 = vst [vmem:[#allocation65_spill] sm:$0xff] %v14297_v17  ;;  %v14305_v8 = vadd.f32 %v2587_v50, %v1527_v11  ;;  %v11641_v41 = vpop.f32.mrf.mxu0  ;;  %11978 = vmatmul.mubr.msk.f32.gmra.mxu0 %vm584_vm1, %v2781_v42  ;;  %v2784_v50 = vld [vmem:[%s13283_s26 + $0x290] sm:$0xff] }
 0x1a0   : > { %v11831_v30 = vpop.f32.mrf.mxu1  ;;  %12168 = vmatmul.mubr.msk.f32.gmra.mxu1 %vm584_vm1, %v4092_v48  ;;  %11980 = vmatprep.mubr.msk.f32.mxu0 %vm584_vm1, %v2782_v57 }
 0x1a1   : > { %17696 = vst [vmem:[#allocation66_spill] sm:$0xff] %v14305_v8  ;;  %v14309_v29 = vadd.f32 %v11831_v30, %v11641_v41  ;;  %12170 = vmatprep.mubr.msk.f32.mxu1 %vm584_vm1, %v4093_v60  ;;  %v1537_v15 = vpop.f32.mrf.mxu0  ;;  %v4095_v8 = vld [vmem:[%s13283_s26 + $0x291] sm:$0xff]  ;;  %v4096_v41 = vld [vmem:[%s13283_s26 + $0x299] sm:$0xff] }
 0x1a2   : > { %v2597_v11 = vpop.f32.mrf.mxu1  ;;  %v2785_v60 = vld [vmem:[%s13283_s26 + $0x298] sm:$0xff] }
 0x1a3   : > { %17697 = vst [vmem:[#allocation67_spill] sm:$0xff] %v14309_v29  ;;  %v14317_v17 = vadd.f32 %v2597_v11, %v1537_v15  ;;  %v11644_v42 = vpop.f32.mrf.mxu0  ;;  %11981 = vmatmul.mubr.msk.f32.gmra.mxu0 %vm584_vm1, %v2783_v52  ;;  %v2786_v11 = vld [vmem:[%s13283_s26 + $0x2a0] sm:$0xff] }
 0x1a4   : > { %v11834_v48 = vpop.f32.mrf.mxu1  ;;  %12171 = vmatmul.mubr.msk.f32.gmra.mxu1 %vm584_vm1, %v4094_v4  ;;  %11983 = vmatprep.mubr.msk.f32.mxu0 %vm584_vm1, %v2784_v50 }
 0x1a5   : > { %17698 = vst [vmem:[#allocation68_spill] sm:$0xff] %v14317_v17  ;;  %v14321_v57 = vadd.f32 %v11834_v48, %v11644_v42  ;;  %12173 = vmatprep.mubr.msk.f32.mxu1 %vm584_vm1, %v4095_v8  ;;  %v1547_v30 = vpop.f32.mrf.mxu0  ;;  %v4097_v17 = vld [vmem:[%s13283_s26 + $0x2a1] sm:$0xff]  ;;  %v4098_v42 = vld [vmem:[%s13283_s26 + $0x2a9] sm:$0xff] }
 0x1a6   : > { %v2607_v15 = vpop.f32.mrf.mxu1  ;;  %v2787_v8 = vld [vmem:[%s13283_s26 + $0x2a8] sm:$0xff] }
 0x1a7   : > { %17699 = vst [vmem:[#allocation69_spill] sm:$0xff] %v14321_v57  ;;  %v14329_v29 = vadd.f32 %v2607_v15, %v1547_v30  ;;  %v11647_v52 = vpop.f32.mrf.mxu0  ;;  %11984 = vmatmul.mubr.msk.f32.gmra.mxu0 %vm584_vm1, %v2785_v60  ;;  %v2788_v15 = vld [vmem:[%s13283_s26 + $0x2b0] sm:$0xff] }
 0x1a8   : > { %v11837_v4 = vpop.f32.mrf.mxu1  ;;  %12174 = vmatmul.mubr.msk.f32.gmra.mxu1 %vm584_vm1, %v4096_v41  ;;  %11986 = vmatprep.mubr.msk.f32.mxu0 %vm584_vm1, %v2786_v11 }
 0x1a9   : > { %17700 = vst [vmem:[#allocation70_spill] sm:$0xff] %v14329_v29  ;;  %v14333_v50 = vadd.f32 %v11837_v4, %v11647_v52  ;;  %12176 = vmatprep.mubr.msk.f32.mxu1 %vm584_vm1, %v4097_v17  ;;  %v1557_v48 = vpop.f32.mrf.mxu0  ;;  %v4099_v29 = vld [vmem:[%s13283_s26 + $0x2b1] sm:$0xff]  ;;  %v4100_v52 = vld [vmem:[%s13283_s26 + $0x2b9] sm:$0xff] }
 0x1aa   : > { %v2617_v30 = vpop.f32.mrf.mxu1  ;;  %v2789_v17 = vld [vmem:[%s13283_s26 + $0x2b8] sm:$0xff] }
 0x1ab   : > { %17701 = vst [vmem:[#allocation71_spill] sm:$0xff] %v14333_v50  ;;  %v14341_v57 = vadd.f32 %v2617_v30, %v1557_v48  ;;  %v11650_v60 = vpop.f32.mrf.mxu0  ;;  %11987 = vmatmul.mubr.msk.f32.gmra.mxu0 %vm584_vm1, %v2787_v8  ;;  %v2790_v30 = vld [vmem:[%s13283_s26 + $0x2c0] sm:$0xff] }
 0x1ac   : > { %v11840_v41 = vpop.f32.mrf.mxu1  ;;  %12177 = vmatmul.mubr.msk.f32.gmra.mxu1 %vm584_vm1, %v4098_v42  ;;  %11989 = vmatprep.mubr.msk.f32.mxu0 %vm584_vm1, %v2788_v15 }
 0x1ad   : > { %17702 = vst [vmem:[#allocation72_spill] sm:$0xff] %v14341_v57  ;;  %v14345_v11 = vadd.f32 %v11840_v41, %v11650_v60  ;;  %12179 = vmatprep.mubr.msk.f32.mxu1 %vm584_vm1, %v4099_v29  ;;  %v1567_v4 = vpop.f32.mrf.mxu0  ;;  %v4101_v57 = vld [vmem:[%s13283_s26 + $0x2c1] sm:$0xff]  ;;  %v4102_v60 = vld [vmem:[%s13283_s26 + $0x2c9] sm:$0xff] }
 0x1ae   : > { %v2627_v48 = vpop.f32.mrf.mxu1  ;;  %v2791_v29 = vld [vmem:[%s13283_s26 + $0x2c8] sm:$0xff] }
 0x1af   : > { %17703 = vst [vmem:[#allocation73_spill] sm:$0xff] %v14345_v11  ;;  %v14353_v50 = vadd.f32 %v2627_v48, %v1567_v4  ;;  %v11653_v8 = vpop.f32.mrf.mxu0  ;;  %11990 = vmatmul.mubr.msk.f32.gmra.mxu0 %vm584_vm1, %v2789_v17  ;;  %v2792_v48 = vld [vmem:[%s13283_s26 + $0x2d0] sm:$0xff] }
 0x1b0   : > { %v11843_v42 = vpop.f32.mrf.mxu1  ;;  %12180 = vmatmul.mubr.msk.f32.gmra.mxu1 %vm584_vm1, %v4100_v52  ;;  %11992 = vmatprep.mubr.msk.f32.mxu0 %vm584_vm1, %v2790_v30 }
 0x1b1   : > { %17704 = vst [vmem:[#allocation74_spill] sm:$0xff] %v14353_v50  ;;  %v14357_v15 = vadd.f32 %v11843_v42, %v11653_v8  ;;  %12182 = vmatprep.mubr.msk.f32.mxu1 %vm584_vm1, %v4101_v57  ;;  %v1577_v41 = vpop.f32.mrf.mxu0  ;;  %v4103_v50 = vld [vmem:[%s13283_s26 + $0x2d1] sm:$0xff]  ;;  %v4104_v8 = vld [vmem:[%s13283_s26 + $0x2d9] sm:$0xff] }
 0x1b2   : > { %v2637_v4 = vpop.f32.mrf.mxu1  ;;  %v2793_v57 = vld [vmem:[%s13283_s26 + $0x2d8] sm:$0xff] }
 0x1b3   : > { %17705 = vst [vmem:[#allocation75_spill] sm:$0xff] %v14357_v15  ;;  %v14365_v11 = vadd.f32 %v2637_v4, %v1577_v41  ;;  %v11656_v17 = vpop.f32.mrf.mxu0  ;;  %11993 = vmatmul.mubr.msk.f32.gmra.mxu0 %vm584_vm1, %v2791_v29  ;;  %v2794_v4 = vld [vmem:[%s13283_s26 + $0x2e0] sm:$0xff] }
 0x1b4   : > { %v11846_v52 = vpop.f32.mrf.mxu1  ;;  %12183 = vmatmul.mubr.msk.f32.gmra.mxu1 %vm584_vm1, %v4102_v60  ;;  %11995 = vmatprep.mubr.msk.f32.mxu0 %vm584_vm1, %v2792_v48 }
 0x1b5   : > { %17706 = vst [vmem:[#allocation76_spill] sm:$0xff] %v14365_v11  ;;  %v14369_v30 = vadd.f32 %v11846_v52, %v11656_v17  ;;  %12185 = vmatprep.mubr.msk.f32.mxu1 %vm584_vm1, %v4103_v50  ;;  %v1587_v42 = vpop.f32.mrf.mxu0  ;;  %v4105_v11 = vld [vmem:[%s13283_s26 + $0x2e1] sm:$0xff]  ;;  %v4106_v17 = vld [vmem:[%s13283_s26 + $0x2e9] sm:$0xff] }
 0x1b6   : > { %v2647_v41 = vpop.f32.mrf.mxu1  ;;  %v2795_v50 = vld [vmem:[%s13283_s26 + $0x2e8] sm:$0xff] }
 0x1b7   : > { %17707 = vst [vmem:[#allocation77_spill] sm:$0xff] %v14369_v30  ;;  %v14377_v15 = vadd.f32 %v2647_v41, %v1587_v42  ;;  %v11659_v29 = vpop.f32.mrf.mxu0  ;;  %11996 = vmatmul.mubr.msk.f32.gmra.mxu0 %vm584_vm1, %v2793_v57  ;;  %v2796_v41 = vld [vmem:[%s13283_s26 + $0x2f0] sm:$0xff] }
 0x1b8   : > { %v11849_v60 = vpop.f32.mrf.mxu1  ;;  %12186 = vmatmul.mubr.msk.f32.gmra.mxu1 %vm584_vm1, %v4104_v8  ;;  %11998 = vmatprep.mubr.msk.f32.mxu0 %vm584_vm1, %v2794_v4 }
 0x1b9   : > { %17708 = vst [vmem:[#allocation78_spill] sm:$0xff] %v14377_v15  ;;  %v14381_v48 = vadd.f32 %v11849_v60, %v11659_v29  ;;  %12188 = vmatprep.mubr.msk.f32.mxu1 %vm584_vm1, %v4105_v11  ;;  %v1597_v52 = vpop.f32.mrf.mxu0  ;;  %v4107_v15 = vld [vmem:[%s13283_s26 + $0x2f1] sm:$0xff]  ;;  %v4108_v29 = vld [vmem:[%s13283_s26 + $0x2f9] sm:$0xff] }
 0x1ba   : > { %v2657_v42 = vpop.f32.mrf.mxu1  ;;  %v2797_v11 = vld [vmem:[%s13283_s26 + $0x2f8] sm:$0xff] }
 0x1bb   : > { %17709 = vst [vmem:[#allocation79_spill] sm:$0xff] %v14381_v48  ;;  %v14389_v30 = vadd.f32 %v2657_v42, %v1597_v52  ;;  %v11662_v57 = vpop.f32.mrf.mxu0  ;;  %11999 = vmatmul.mubr.msk.f32.gmra.mxu0 %vm584_vm1, %v2795_v50  ;;  %v2798_v42 = vld [vmem:[%s13283_s26 + $0x300] sm:$0xff] }
 0x1bc   : > { %v11852_v8 = vpop.f32.mrf.mxu1  ;;  %12189 = vmatmul.mubr.msk.f32.gmra.mxu1 %vm584_vm1, %v4106_v17  ;;  %12001 = vmatprep.mubr.msk.f32.mxu0 %vm584_vm1, %v2796_v41 }
 0x1bd   : > { %17710 = vst [vmem:[#allocation80_spill] sm:$0xff] %v14389_v30  ;;  %v14393_v4 = vadd.f32 %v11852_v8, %v11662_v57  ;;  %12191 = vmatprep.mubr.msk.f32.mxu1 %vm584_vm1, %v4107_v15  ;;  %v1607_v60 = vpop.f32.mrf.mxu0  ;;  %v4109_v30 = vld [vmem:[%s13283_s26 + $0x301] sm:$0xff]  ;;  %v4110_v57 = vld [vmem:[%s13283_s26 + $0x309] sm:$0xff] }
 0x1be   : > { %v2667_v52 = vpop.f32.mrf.mxu1  ;;  %v2799_v15 = vld [vmem:[%s13283_s26 + $0x308] sm:$0xff] }
 0x1bf   : > { %17711 = vst [vmem:[#allocation81_spill] sm:$0xff] %v14393_v4  ;;  %v14401_v48 = vadd.f32 %v2667_v52, %v1607_v60  ;;  %v11665_v50 = vpop.f32.mrf.mxu0  ;;  %12002 = vmatmul.mubr.msk.f32.gmra.mxu0 %vm584_vm1, %v2797_v11  ;;  %v2800_v52 = vld [vmem:[%s13283_s26 + $0x310] sm:$0xff] }
 0x1c0   : > { %v11855_v17 = vpop.f32.mrf.mxu1  ;;  %12192 = vmatmul.mubr.msk.f32.gmra.mxu1 %vm584_vm1, %v4108_v29  ;;  %12004 = vmatprep.mubr.msk.f32.mxu0 %vm584_vm1, %v2798_v42 }
 0x1c1   : > { %17712 = vst [vmem:[#allocation82_spill] sm:$0xff] %v14401_v48  ;;  %v14405_v41 = vadd.f32 %v11855_v17, %v11665_v50  ;;  %12194 = vmatprep.mubr.msk.f32.mxu1 %vm584_vm1, %v4109_v30  ;;  %v1617_v8 = vpop.f32.mrf.mxu0  ;;  %v4111_v48 = vld [vmem:[%s13283_s26 + $0x311] sm:$0xff]  ;;  %v4112_v50 = vld [vmem:[%s13283_s26 + $0x319] sm:$0xff] }
 0x1c2   : > { %v2677_v60 = vpop.f32.mrf.mxu1  ;;  %v2801_v30 = vld [vmem:[%s13283_s26 + $0x318] sm:$0xff] }
 0x1c3   : > { %17713 = vst [vmem:[#allocation83_spill] sm:$0xff] %v14405_v41  ;;  %v14413_v4 = vadd.f32 %v2677_v60, %v1617_v8  ;;  %v11668_v11 = vpop.f32.mrf.mxu0  ;;  %12005 = vmatmul.mubr.msk.f32.gmra.mxu0 %vm584_vm1, %v2799_v15  ;;  %v2802_v60 = vld [vmem:[%s13283_s26 + $0x320] sm:$0xff] }
 0x1c4   : > { %v11858_v29 = vpop.f32.mrf.mxu1  ;;  %12195 = vmatmul.mubr.msk.f32.gmra.mxu1 %vm584_vm1, %v4110_v57  ;;  %12007 = vmatprep.mubr.msk.f32.mxu0 %vm584_vm1, %v2800_v52 }
 0x1c5   : > { %17714 = vst [vmem:[#allocation84_spill] sm:$0xff] %v14413_v4  ;;  %v14417_v42 = vadd.f32 %v11858_v29, %v11668_v11  ;;  %12197 = vmatprep.mubr.msk.f32.mxu1 %vm584_vm1, %v4111_v48  ;;  %v1627_v17 = vpop.f32.mrf.mxu0  ;;  %v4113_v4 = vld [vmem:[%s13283_s26 + $0x321] sm:$0xff]  ;;  %v4114_v11 = vld [vmem:[%s13283_s26 + $0x329] sm:$0xff] }
 0x1c6   : > { %v2687_v8 = vpop.f32.mrf.mxu1  ;;  %v2803_v48 = vld [vmem:[%s13283_s26 + $0x328] sm:$0xff] }
 0x1c7   : > { %17715 = vst [vmem:[#allocation85_spill] sm:$0xff] %v14417_v42  ;;  %v14425_v41 = vadd.f32 %v2687_v8, %v1627_v17  ;;  %v11671_v15 = vpop.f32.mrf.mxu0  ;;  %12008 = vmatmul.mubr.msk.f32.gmra.mxu0 %vm584_vm1, %v2801_v30  ;;  %v2804_v17 = vld [vmem:[%s13283_s26 + $0x330] sm:$0xff] }
 0x1c8   : > { %v11861_v57 = vpop.f32.mrf.mxu1  ;;  %12198 = vmatmul.mubr.msk.f32.gmra.mxu1 %vm584_vm1, %v4112_v50  ;;  %12010 = vmatprep.mubr.msk.f32.mxu0 %vm584_vm1, %v2802_v60  ;;  %v4115_v8 = vld [vmem:[%s13283_s26 + $0x331] sm:$0xff] }
 0x1c9   : > { %17716 = vst [vmem:[#allocation86_spill] sm:$0xff] %v14425_v41  ;;  %v14429_v52 = vadd.f32 %v11861_v57, %v11671_v15  ;;  %12200 = vmatprep.mubr.msk.f32.mxu1 %vm584_vm1, %v4113_v4  ;;  %v1637_v29 = vpop.f32.mrf.mxu0  ;;  %v2805_v4 = vld [vmem:[%s13283_s26 + $0x338] sm:$0xff]  ;;  %v14449_v57 = vld [vmem:[%s17627_s2] ss:$0 sm:$0xff] }
 0x1ca   : > { %v2697_v42 = vpop.f32.mrf.mxu1  ;;  %v4116_v15 = vld [vmem:[%s13283_s26 + $0x339] sm:$0xff] }
 0x1cb   : > { %17717 = vst [vmem:[#allocation87_spill] sm:$0xff] %v14429_v52  ;;  %v14437_v41 = vadd.f32 %v2697_v42, %v1637_v29  ;;  %v11868_v30 = vpop.f32.mrf.mxu0  ;;  %12011 = vmatmul.mubr.msk.f32.gmra.mxu0 %vm584_vm1, %v2803_v48  ;;  %v2806_v29 = vld [vmem:[%s13283_s26 + $0x340] sm:$0xff] }
 0x1cc   : > { %v12058_v50 = vpop.f32.mrf.mxu1  ;;  %12201 = vmatmul.mubr.msk.f32.gmra.mxu1 %vm584_vm1, %v4114_v11  ;;  %v3894_v60 = vadd.f32 %v11868_v30, %v13687_v16  ;;  %12013 = vmatprep.mubr.msk.f32.mxu0 %vm584_vm1, %v2804_v17 }
 0x1cd   : > { %17718 = vst [vmem:[#allocation88_spill] sm:$0xff] %v14437_v41  ;;  %12203 = vmatprep.mubr.msk.f32.mxu1 %vm584_vm1, %v4115_v8  ;;  %v3274_v42 = vpop.f32.mrf.mxu0  ;;  %v4117_v41 = vld [vmem:[%s13283_s26 + $0x341] sm:$0xff] }
 0x1ce   : > { %v4585_v48 = vpop.f32.mrf.mxu1  ;;  %v5205_v11 = vadd.f32 %v12058_v50, %v3894_v60  ;;  %v3893_v16 = vadd.f32 %v3274_v42, %v13695_v23  ;;  %v2807_v50 = vld [vmem:[%s13283_s26 + $0x348] sm:$0xff]  ;;  %v2808_v42 = vld [vmem:[%s13283_s26 + $0x350] sm:$0xff] }
 0x1cf   : > { %v11871_v17 = vpop.f32.mrf.mxu0  ;;  %12014 = vmatmul.mubr.msk.f32.gmra.mxu0 %vm584_vm1, %v2805_v4  ;;  %v4118_v60 = vld [vmem:[%s13283_s26 + $0x349] sm:$0xff]  ;;  %v4119_v4 = vld [vmem:[%s13283_s26 + $0x351] sm:$0xff] }
 0x1d0   : > { %v12061_v8 = vpop.f32.mrf.mxu1  ;;  %12204 = vmatmul.mubr.msk.f32.gmra.mxu1 %vm584_vm1, %v4116_v15  ;;  %v14457_v30 = vadd.f32 %v14449_v57, %v5205_v11  ;;  %v5204_v52 = vadd.f32 %v4585_v48, %v3893_v16  ;;  %v3896_v34 = vadd.f32 %v11871_v17, %v13699_v26  ;;  %12016 = vmatprep.mubr.msk.f32.mxu0 %vm584_vm1, %v2806_v29 }
 0x1d1   : > { %12206 = vmatprep.mubr.msk.f32.mxu1 %vm584_vm1, %v4117_v41  ;;  %v3284_v22 = vpop.f32.mrf.mxu0 }
 0x1d2   : > { %v4595_v23 = vpop.f32.mrf.mxu1  ;;  %v5584_v15 = vmin.f32 %v14457_v30, 0.0  ;;  %v14468_v11 = vadd.f32 %v14449_v57, %v5204_v52  ;;  %v5207_v48 = vadd.f32 %v12061_v8, %v3896_v34  ;;  %v3895_v26 = vadd.f32 %v3284_v22, %v13707_v33  ;;  %v2809_v34 = vld [vmem:[%s13283_s26 + $0x358] sm:$0xff] }
 0x1d3   : > { %v11874_v29 = vpop.f32.mrf.mxu0  ;;  %12017 = vmatmul.mubr.msk.f32.gmra.mxu0 %vm584_vm1, %v2807_v50  ;;  %v4120_v33 = vld [vmem:[%s13283_s26 + $0x359] sm:$0xff]  ;;  %vm5460_vm3 = vcmp.gt.f32.partialorder %v14457_v30, 0.0 }
 0x1d4   : > { %v12064_v41 = vpop.f32.mrf.mxu1  ;;  %12207 = vmatmul.mubr.msk.f32.gmra.mxu1 %vm584_vm1, %v4118_v60  ;;  %v5709_v16 = vmul.f32 1.442695, %v5584_v15  ;;  %v5583_v17 = vmin.f32 %v14468_v11, 0.0  ;;  %v14475_v1 = vadd.f32 %v14449_v57, %v5207_v48  ;;  %12019 = vmatprep.mubr.msk.f32.mxu0 %vm584_vm1, %v2808_v42  ;;  %v5206_v22 = vadd.f32 %v4595_v23, %v3895_v26  ;;  %v10476_v42 = vld [vmem:[%s17628_s3 + $0x30] sm:$0xff] }
 0x1d5   : > { %12209 = vmatprep.mubr.msk.f32.mxu1 %vm584_vm1, %v4119_v4  ;;  %v3898_v52 = vadd.f32 %v11874_v29, %v13711_v36  ;;  %v3294_v8 = vpop.f32.mrf.mxu0  ;;  %12245 = vmatpush3.msra.mxu0 %v10476_v42  ;;  %vm5459_vm4 = vcmp.gt.f32.partialorder %v14468_v11, 0.0 }
 0x1d6   : > { %v4605_v50 = vpop.f32.mrf.mxu1  ;;  %12855 = vpow2.f32 %v5709_v16  ;;  %v5707_v60 = vmul.f32 1.442695, %v5583_v17  ;;  %v5586_v15 = vmin.f32 %v14475_v1, 0.0  ;;  %v14489_v4 = vadd.f32 %v14449_v57, %v5206_v22  ;;  %v2811_v17 = vld [vmem:[%s13283_s26 + $0x368] sm:$0xff]  ;;  %12246 = vmatprep.subr.mxu0 %v17691_v13 }
 0x1d7   : > { %v5209_v23 = vadd.f32 %v12064_v41, %v3898_v52  ;;  %v3897_v36 = vadd.f32 %v3294_v8, %v13719_v43  ;;  %v11877_v48 = vpop.f32.mrf.mxu0  ;;  %12020 = vmatmul.mubr.msk.f32.gmra.mxu0 %vm584_vm1, %v2809_v34  ;;  %v4122_v41 = vld [vmem:[%s13283_s26 + $0x369] sm:$0xff]  ;;  %vm5462_vm5 = vcmp.gt.f32.partialorder %v14475_v1, 0.0 }
 0x1d8   : > { %v12067_v26 = vpop.f32.mrf.mxu1  ;;  %12210 = vmatmul.mubr.msk.f32.gmra.mxu1 %vm584_vm1, %v4120_v33  ;;  %12857 = vpow2.f32 %v5707_v60  ;;  %v5713_v29 = vmul.f32 1.442695, %v5586_v15  ;;  %v3900_v16 = vadd.f32 %v11877_v48, %v13723_v46  ;;  %12022 = vmatprep.mubr.msk.f32.mxu0 %vm584_vm1, %v2810_v54  ;;  %v7083_v43 = vld [vmem:[%s17628_s3 + $0x10] sm:$0xff]  ;;  %v5585_v34 = vmin.f32 %v14489_v4, 0.0 }
 0x1d9   : > { %12212 = vmatprep.mubr.msk.f32.mxu1 %vm584_vm1, %v4121_v31  ;;  %v14504_v22 = vadd.f32 %v14449_v57, %v5209_v23  ;;  %v5208_v33 = vadd.f32 %v4605_v50, %v3897_v36  ;;  %v3304_v52 = vpop.f32.mrf.mxu0  ;;  %v2812_v60 = vld [vmem:[%s13283_s26 + $0x370] sm:$0xff]  ;;  %12334 = vmatpush3.msra.mxu1 %v7083_v43  ;;  %vm5461_vm6 = vcmp.gt.f32.partialorder %v14489_v4, 0.0 }
 0x1da   : > { %v4615_v8 = vpop.f32.mrf.mxu1  ;;  %v4123_v46 = vld [vmem:[%s13283_s26 + $0x371] sm:$0xff]  ;;  %12859 = vpow2.f32 %v5713_v29  ;;  %v5211_v31 = vadd.f32 %v12067_v26, %v3900_v16  ;;  %v3899_v54 = vadd.f32 %v3304_v52, %v13731_v53  ;;  %12335 = vmatprep.subr.mxu1 %v17691_v13  ;;  %v5711_v15 = vmul.f32 1.442695, %v5585_v34  ;;  %v4124_v16 = vld [vmem:[%s13283_s26 + $0x379] sm:$0xff] }
 0x1db   : > { %v5588_v23 = vmin.f32 %v14504_v22, 0.0  ;;  %v14513_v50 = vadd.f32 %v14449_v57, %v5208_v33  ;;  %v11880_v36 = vpop.f32.mrf.mxu0  ;;  %12023 = vmatmul.mubr.msk.f32.gmra.mxu0 %vm584_vm1, %v2811_v17  ;;  %v2813_v29 = vld [vmem:[%s13283_s26 + $0x378] sm:$0xff]  ;;  %v2814_v52 = vld [vmem:[%s13283_s26 + $0x380] sm:$0xff]  ;;  %vm5464_vm7 = vcmp.gt.f32.partialorder %v14504_v22, 0.0 }
 0x1dc   : > { %v12070_v42 = vpop.f32.mrf.mxu1  ;;  %12213 = vmatmul.mubr.msk.f32.gmra.mxu1 %vm584_vm1, %v4122_v41  ;;  %v14518_v53 = vadd.f32 %v14449_v57, %v5211_v31  ;;  %v5210_v48 = vadd.f32 %v4615_v8, %v3899_v54  ;;  %v3902_v26 = vadd.f32 %v11880_v36, %v13735_v56  ;;  %12025 = vmatprep.mubr.msk.f32.mxu0 %vm584_vm1, %v2812_v60  ;;  %12861 = vpow2.f32 %v5711_v15  ;;  %v4125_v41 = vld [vmem:[%s13283_s26 + $0x381] sm:$0xff] }
 0x1dd   : > { %12215 = vmatprep.mubr.msk.f32.mxu1 %vm584_vm1, %v4123_v46  ;;  %v5717_v43 = vmul.f32 1.442695, %v5588_v23  ;;  %v5587_v17 = vmin.f32 %v14513_v50, 0.0  ;;  %v3314_v34 = vpop.f32.mrf.mxu0  ;;  %vm5463_vm8 = vcmp.gt.f32.partialorder %v14513_v50, 0.0 }
 0x1de   : > { %v4625_v33 = vpop.f32.mrf.mxu1  ;;  %v5590_v31 = vmin.f32 %v14518_v53, 0.0  ;;  %v14530_v56 = vadd.f32 %v14449_v57, %v5210_v48  ;;  %v5213_v8 = vadd.f32 %v12070_v42, %v3902_v26  ;;  %v3901_v46 = vadd.f32 %v3314_v34, %v13743_v63  ;;  %v2815_v42 = vld [vmem:[%s13283_s26 + $0x388] sm:$0xff] }
 0x1df   : > { %12863 = vpow2.f32 %v5717_v43  ;;  %v5715_v60 = vmul.f32 1.442695, %v5587_v17  ;;  %v11883_v54 = vpop.f32.mrf.mxu0  ;;  %12026 = vmatmul.mubr.msk.f32.gmra.mxu0 %vm584_vm1, %v2813_v29  ;;  %v4126_v63 = vld [vmem:[%s13283_s26 + $0x389] sm:$0xff]  ;;  %v4127_v17 = vld [vmem:[%s13283_s26 + $0x391] sm:$0xff]  ;;  %vm5466_vm10 = vcmp.gt.f32.partialorder %v14518_v53, 0.0 }
 0x1e0   : > { %v12073_v15 = vpop.f32.mrf.mxu1  ;;  %12216 = vmatmul.mubr.msk.f32.gmra.mxu1 %vm584_vm1, %v4124_v16  ;;  %v5721_v23 = vmul.f32 1.442695, %v5590_v31  ;;  %v5589_v36 = vmin.f32 %v14530_v56, 0.0  ;;  %v14537_v28 = vadd.f32 %v14449_v57, %v5213_v8  ;;  %12028 = vmatprep.mubr.msk.f32.mxu0 %vm584_vm1, %v2814_v52  ;;  %v5212_v48 = vadd.f32 %v4625_v33, %v3901_v46  ;;  %v2816_v16 = vld [vmem:[%s13283_s26 + $0x390] sm:$0xff] }
 0x1e1   : > { %12218 = vmatprep.mubr.msk.f32.mxu1 %vm584_vm1, %v4125_v41  ;;  %12865 = vpow2.f32 %v5715_v60  ;;  %v3904_v26 = vadd.f32 %v11883_v54, %v13747_v2  ;;  %v3324_v29 = vpop.f32.mrf.mxu0  ;;  %vm5465_vm11 = vcmp.gt.f32.partialorder %v14530_v56, 0.0 }
 0x1e2   : > { %v4635_v43 = vpop.f32.mrf.mxu1  ;;  %12867 = vpow2.f32 %v5721_v23  ;;  %v5719_v34 = vmul.f32 1.442695, %v5589_v36  ;;  %v5592_v52 = vmin.f32 %v14537_v28, 0.0  ;;  %v14550_v41 = vadd.f32 %v14449_v57, %v5212_v48  ;;  %v2817_v36 = vld [vmem:[%s13283_s26 + $0x398] sm:$0xff] }
 0x1e3   : > { %v12856_v31 = vpop.eup %12855  ;;  %v5215_v33 = vadd.f32 %v12073_v15, %v3904_v26  ;;  %v3903_v2 = vadd.f32 %v3324_v29, %v13755_v9  ;;  %v11886_v8 = vpop.f32.mrf.mxu0  ;;  %12029 = vmatmul.mubr.msk.f32.gmra.mxu0 %vm584_vm1, %v2815_v42  ;;  %v4128_v15 = vld [vmem:[%s13283_s26 + $0x399] sm:$0xff]  ;;  %vm5468_vm12 = vcmp.gt.f32.partialorder %v14537_v28, 0.0 }
 0x1e4   : > { %v12076_v60 = vpop.f32.mrf.mxu1  ;;  %12219 = vmatmul.mubr.msk.f32.gmra.mxu1 %vm584_vm1, %v4126_v63  ;;  %v10351_v46 = vadd.f32 -1.0, %v12856_v31  ;;  %12869 = vpow2.f32 %v5719_v34  ;;  %v5725_v54 = vmul.f32 1.442695, %v5592_v52  ;;  %v3906_v23 = vadd.f32 %v11886_v8, %v13759_v12  ;;  %12031 = vmatprep.mubr.msk.f32.mxu0 %vm584_vm1, %v2816_v16  ;;  %v2818_v34 = vld [vmem:[%s13283_s26 + $0x3a0] sm:$0xff] }
 0x1e5   : > { %12221 = vmatprep.mubr.msk.f32.mxu1 %vm584_vm1, %v4127_v17  ;;  %v12858_v9 = vpop.eup %12857  ;;  %v5591_v42 = vmin.f32 %v14550_v41, 0.0  ;;  %v14563_v63 = vadd.f32 %v14449_v57, %v5215_v33  ;;  %v5214_v48 = vadd.f32 %v4635_v43, %v3903_v2  ;;  %v3334_v26 = vpop.f32.mrf.mxu0  ;;  %v4129_v52 = vld [vmem:[%s13283_s26 + $0x3a1] sm:$0xff]  ;;  %vm5467_vm13 = vcmp.gt.f32.partialorder %v14550_v41, 0.0 }
 0x1e6   : > { %v4645_v29 = vpop.f32.mrf.mxu1  ;;  %v6080_v12 = vsel %vm5460_vm3, %v14457_v30, %v10351_v46  ;;  %v10350_v16 = vadd.f32 -1.0, %v12858_v9  ;;  %12871 = vpow2.f32 %v5725_v54  ;;  %v5217_v17 = vadd.f32 %v12076_v60, %v3906_v23  ;;  %v2819_v9 = vld [vmem:[%s13283_s26 + $0x3a8] sm:$0xff] }
 0x1e7   : > { %v12860_v31 = vpop.eup %12859  ;;  %6205 = vst.msk [vmem:[#allocation2 + $0x8] sm:$0xff] %vm6203_vm2, %v6080_v12  ;;  %v5723_v33 = vmul.f32 1.442695, %v5591_v42  ;;  %v5594_v43 = vmin.f32 %v14563_v63, 0.0  ;;  %v14574_v2 = vadd.f32 %v14449_v57, %v5214_v48  ;;  %v11889_v8 = vpop.f32.mrf.mxu0  ;;  %12032 = vmatmul.mubr.msk.f32.gmra.mxu0 %vm584_vm1, %v2817_v36  ;;  %v3905_v23 = vadd.f32 %v3334_v26, %v13767_v20  ;;  %v4130_v36 = vld [vmem:[%s13283_s26 + $0x3a9] sm:$0xff] }
 0x1e8   : > { %v12079_v30 = vpop.f32.mrf.mxu1  ;;  %12222 = vmatmul.mubr.msk.f32.gmra.mxu1 %vm584_vm1, %v4128_v15  ;;  %v6079_v60 = vsel %vm5459_vm4, %v14468_v11, %v10350_v16  ;;  %v10353_v46 = vadd.f32 -1.0, %v12860_v31  ;;  %v14582_v54 = vadd.f32 %v14449_v57, %v5217_v17  ;;  %12034 = vmatprep.mubr.msk.f32.mxu0 %vm584_vm1, %v2818_v34  ;;  %v2820_v12 = vld [vmem:[%s13283_s26 + $0x3b0] sm:$0xff]  ;;  %vm5470_vm14 = vcmp.gt.f32.partialorder %v14563_v63, 0.0 }
 0x1e9   : > { %12224 = vmatprep.mubr.msk.f32.mxu1 %vm584_vm1, %v4129_v52  ;;  %6204 = vst.msk [vmem:[#allocation2] sm:$0xff] %vm6203_vm2, %v6079_v60  ;;  %12873 = vpow2.f32 %v5723_v33  ;;  %v5729_v15 = vmul.f32 1.442695, %v5594_v43  ;;  %v5593_v11 = vmin.f32 %v14574_v2, 0.0  ;;  %v3344_v42 = vpop.f32.mrf.mxu0  ;;  %v4131_v16 = vld [vmem:[%s13283_s26 + $0x3b1] sm:$0xff]  ;;  %v12862_v17 = vpop.eup %12861  ;;  %v5216_v34 = vadd.f32 %v4645_v29, %v3905_v23 }
 0x1ea   : > { %v4655_v48 = vpop.f32.mrf.mxu1  ;;  %v6082_v20 = vsel %vm5462_vm5, %v14475_v1, %v10353_v46  ;;  %v5596_v26 = vmin.f32 %v14582_v54, 0.0  ;;  %v10352_v52 = vadd.f32 -1.0, %v12862_v17  ;;  %v3908_v33 = vadd.f32 %v11889_v8, %v13771_v24  ;;  %v2821_v24 = vld [vmem:[%s13283_s26 + $0x3b8] sm:$0xff] }
 0x1eb   : > { %6207 = vst.msk [vmem:[#allocation2 + $0x18] sm:$0xff] %vm6203_vm2, %v6082_v20  ;;  %12875 = vpow2.f32 %v5729_v15  ;;  %v5727_v31 = vmul.f32 1.442695, %v5593_v11  ;;  %v11892_v43 = vpop.f32.mrf.mxu0  ;;  %12035 = vmatmul.mubr.msk.f32.gmra.mxu0 %vm584_vm1, %v2819_v9  ;;  %v14604_v29 = vadd.f32 %v14449_v57, %v5216_v34  ;;  %v3907_v23 = vadd.f32 %v3344_v42, %v13779_v32  ;;  %v4132_v8 = vld [vmem:[%s13283_s26 + $0x3b9] sm:$0xff]  ;;  %v4133_v32 = vld [vmem:[%s13283_s26 + $0x3c1] sm:$0xff] }
 0x1ec   : > { %v12082_v60 = vpop.f32.mrf.mxu1  ;;  %12225 = vmatmul.mubr.msk.f32.gmra.mxu1 %vm584_vm1, %v4130_v36  ;;  %v12864_v1 = vpop.eup %12863  ;;  %v5733_v46 = vmul.f32 1.442695, %v5596_v26  ;;  %v3910_v15 = vadd.f32 %v11892_v43, %v13783_v37  ;;  %12037 = vmatprep.mubr.msk.f32.mxu0 %vm584_vm1, %v2820_v12  ;;  %v6081_v9 = vsel %vm5461_vm6, %v14489_v4, %v10352_v52  ;;  %v5219_v11 = vadd.f32 %v12079_v30, %v3908_v33  ;;  %v2822_v26 = vld [vmem:[%s13283_s26 + $0x3c0] sm:$0xff]  ;;  %v2823_v43 = vld [vmem:[%s13283_s26 + $0x3c8] sm:$0xff] }
 0x1ed   : > { %12227 = vmatprep.mubr.msk.f32.mxu1 %vm584_vm1, %v4131_v16  ;;  %v10355_v36 = vadd.f32 -1.0, %v12864_v1  ;;  %12877 = vpow2.f32 %v5727_v31  ;;  %v3354_v17 = vpop.f32.mrf.mxu0  ;;  %6206 = vst.msk [vmem:[#allocation2 + $0x10] sm:$0xff] %vm6203_vm2, %v6081_v9  ;;  %v5595_v42 = vmin.f32 %v14604_v29, 0.0  ;;  %v5218_v12 = vadd.f32 %v4655_v48, %v3907_v23 }
 0x1ee   : > { %v4665_v20 = vpop.f32.mrf.mxu1  ;;  %v12866_v37 = vpop.eup %12865  ;;  %12879 = vpow2.f32 %v5733_v46  ;;  %v14624_v34 = vadd.f32 %v14449_v57, %v5219_v11  ;;  %v5221_v52 = vadd.f32 %v12082_v60, %v3910_v15  ;;  %v3909_v46 = vadd.f32 %v3354_v17, %v13791_v45  ;;  %v4134_v60 = vld [vmem:[%s13283_s26 + $0x3c9] sm:$0xff]  ;;  %v4135_v17 = vld [vmem:[%s13283_s26 + $0x3d1] sm:$0xff] }
 0x1ef   : > { %v12868_v16 = vpop.eup %12867  ;;  %v6084_v4 = vsel %vm5464_vm7, %v14504_v22, %v10355_v36  ;;  %v10354_v30 = vadd.f32 -1.0, %v12866_v37  ;;  %v11895_v31 = vpop.f32.mrf.mxu0  ;;  %12038 = vmatmul.mubr.msk.f32.gmra.mxu0 %vm584_vm1, %v2821_v24  ;;  %v5731_v1 = vmul.f32 1.442695, %v5595_v42  ;;  %v14631_v22 = vadd.f32 %v14449_v57, %v5218_v12  ;;  %v2824_v11 = vld [vmem:[%s13283_s26 + $0x3d0] sm:$0xff] }
 0x1f0   : > { %v12085_v33 = vpop.f32.mrf.mxu1  ;;  %12228 = vmatmul.mubr.msk.f32.gmra.mxu1 %vm584_vm1, %v4132_v8  ;;  %6209 = vst.msk [vmem:[#allocation2 + $0x28] sm:$0xff] %vm6203_vm2, %v6084_v4  ;;  %v10357_v48 = vadd.f32 -1.0, %v12868_v16  ;;  %v6419_v23 = vld [vmem:[#allocation2 + $0x1] ss:$2 sm:$0xff]  ;;  %12040 = vmatprep.mubr.msk.f32.mxu0 %vm584_vm1, %v2822_v26  ;;  %v5598_v8 = vmin.f32 %v14624_v34, 0.0  ;;  %v14643_v9 = vadd.f32 %v14449_v57, %v5221_v52  ;;  %vm5469_vm15 = vcmp.gt.f32.partialorder %v14574_v2, 0.0 }
 0x1f1   : > { %12230 = vmatprep.mubr.msk.f32.mxu1 %vm584_vm1, %v4133_v32  ;;  %v12870_v15 = vpop.eup %12869  ;;  %v6083_v24 = vsel %vm5463_vm8, %v14513_v50, %v10354_v30  ;;  %v3364_v36 = vpop.f32.mrf.mxu0  ;;  %6424 = vrot.lane.b32.xlu0 %v6419_v23, %s13187_s22  ;;  %v6329_v26 = vld [vmem:[#allocation2] ss:$2 sm:$0xff]  ;;  %12881 = vpow2.f32 %v5731_v1  ;;  %v5597_v12 = vmin.f32 %v14631_v22, 0.0  ;;  %v3912_v1 = vadd.f32 %v11895_v31, %v13795_v49  ;;  %v2825_v23 = vld [vmem:[%s13283_s26 + $0x3d8] sm:$0xff] }
 0x1f2   : > { %v4675_v45 = vpop.f32.mrf.mxu1  ;;  %6208 = vst.msk [vmem:[#allocation2 + $0x20] sm:$0xff] %vm6203_vm2, %v6083_v24  ;;  %v6086_v50 = vsel %vm5466_vm10, %v14518_v53, %v10357_v48  ;;  %v10356_v32 = vadd.f32 -1.0, %v12870_v15  ;;  %6332 = vst.msk [vmem:[#allocation3] sm:$0xff] %vm6203_vm2, %v6329_v26  ;;  %v5737_v42 = vmul.f32 1.442695, %v5598_v8  ;;  %v5600_v16 = vmin.f32 %v14643_v9, 0.0 }
 0x1f3   : > { %v12872_v37 = vpop.eup %12871  ;;  %6211 = vst.msk [vmem:[#allocation2 + $0x38] sm:$0xff] %vm6203_vm2, %v6086_v50  ;;  %v11898_v4 = vpop.f32.mrf.mxu0  ;;  %12041 = vmatmul.mubr.msk.f32.gmra.mxu0 %vm584_vm1, %v2823_v43  ;;  %v5220_v48 = vadd.f32 %v4665_v20, %v3909_v46  ;;  %v4136_v15 = vld [vmem:[%s13283_s26 + $0x3d9] sm:$0xff]  ;;  %v5735_v43 = vmul.f32 1.442695, %v5597_v12  ;;  %v3911_v24 = vadd.f32 %v3364_v36, %v13803_v58  ;;  %v4137_v50 = vld [vmem:[%s13283_s26 + $0x3e1] sm:$0xff]  ;;  %v5223_v46 = vadd.f32 %v12085_v33, %v3912_v1  ;;  %v4138_v12 = vld [vmem:[%s13283_s26 + $0x3e9] sm:$0xff] }
 0x1f4   : > { %v12088_v53 = vpop.f32.mrf.mxu1  ;;  %12231 = vmatmul.mubr.msk.f32.gmra.mxu1 %vm584_vm1, %v4134_v60  ;;  %v6085_v30 = vsel %vm5465_vm11, %v14530_v56, %v10356_v32  ;;  %v10359_v52 = vadd.f32 -1.0, %v12872_v37  ;;  %12043 = vmatprep.mubr.msk.f32.mxu0 %vm584_vm1, %v2824_v11  ;;  %12883 = vpow2.f32 %v5737_v42  ;;  %v5741_v60 = vmul.f32 1.442695, %v5600_v16  ;;  %v2826_v26 = vld [vmem:[%s13283_s26 + $0x3e0] sm:$0xff] }
 0x1f5   : > { %12233 = vmatprep.mubr.msk.f32.mxu1 %vm584_vm1, %v4135_v17  ;;  %6210 = vst.msk [vmem:[#allocation2 + $0x30] sm:$0xff] %vm6203_vm2, %v6085_v30  ;;  %v3374_v8 = vpop.f32.mrf.mxu0  ;;  %v14676_v31 = vadd.f32 %v14449_v57, %v5220_v48  ;;  %v3914_v11 = vadd.f32 %v11898_v4, %v13807_v61  ;;  %v6421_v17 = vld [vmem:[#allocation2 + $0x11] ss:$2 sm:$0x7f]  ;;  %12885 = vpow2.f32 %v5735_v43  ;;  %v5222_v36 = vadd.f32 %v4675_v45, %v3911_v24 }
 0x1f6   : > { %v4685_v56 = vpop.f32.mrf.mxu1  ;;  %v12874_v20 = vpop.eup %12873  ;;  %v6088_v49 = vsel %vm5468_vm12, %v14537_v28, %v10359_v52  ;;  %v6331_v32 = vld [vmem:[#allocation2 + $0x10] ss:$2 sm:$0x7f]  ;;  %v3913_v37 = vadd.f32 %v3374_v8, %v13815_v6  ;;  %6426 = vrot.lane.b32.xlu0 %v6421_v17, %s13187_s22  ;;  %12887 = vpow2.f32 %v5741_v60  ;;  %v14689_v45 = vadd.f32 %v14449_v57, %v5223_v46  ;;  %v2827_v6 = vld [vmem:[%s13283_s26 + $0x3e8] sm:$0xff] }
 0x1f7   : > { %6213 = vst.msk [vmem:[#allocation2 + $0x48] sm:$0xff] %vm6203_vm2, %v6088_v49  ;;  %v10358_v58 = vadd.f32 -1.0, %v12874_v20  ;;  %v11901_v28 = vpop.f32.mrf.mxu0  ;;  %12044 = vmatmul.mubr.msk.f32.gmra.mxu0 %vm584_vm1, %v2825_v23  ;;  %v5599_v33 = vmin.f32 %v14676_v31, 0.0  ;;  %v14699_v30 = vadd.f32 %v14449_v57, %v5222_v36  ;;  %v5225_v52 = vadd.f32 %v12088_v53, %v3914_v11  ;;  %v4139_v53 = vld [vmem:[%s13283_s26 + $0x3f1] sm:$0xff] }
 0x1f8   : > { %v14683_v42 = vpop.f32.mrf.mxu1  ;;  %6333 = vst.msk [vmem:[#allocation3 + $0x8] sm:$0x7f] %vm6327_vm9, %v6331_v32  ;;  %v12876_v61 = vpop.eup %12875  ;;  %12234 = vmatmul.mubr.msk.f32.gmra.mxu1 %vm584_vm1, %v4136_v15  ;;  %12046 = vmatprep.mubr.msk.f32.mxu0 %vm584_vm1, %v2826_v26  ;;  %v2828_v15 = vld [vmem:[%s13283_s26 + $0x3f0] sm:$0xff]  ;;  %v5602_v24 = vmin.f32 %v14689_v45, 0.0  ;;  %v5224_v8 = vadd.f32 %v4685_v56, %v3913_v37  ;;  %vm5472_vm0 = vcmp.gt.f32.partialorder %v14582_v54, 0.0  ;;  %vm5471_vm3 = vcmp.gt.f32.partialorder %v14604_v29, 0.0 }
 0x1f9   : > { %v6087_v16 = vsel %vm5467_vm13, %v14550_v41, %v10358_v58  ;;  %v10361_v4 = vadd.f32 -1.0, %v12876_v61  ;;  %v3384_v48 = vpop.f32.mrf.mxu0  ;;  %v6631_v23 = vld [vmem:[#allocation2 + $0x20] ss:$2 sm:$0xff]  ;;  %v6843_v43 = vld [vmem:[#allocation2 + $0x21] ss:$2 sm:$0xff]  ;;  %12236 = vmatprep.mubr.msk.f32.mxu1 %vm584_vm1, %v4137_v50  ;;  %v5601_v49 = vmin.f32 %v14699_v30, 0.0 }
 0x1fa   : > { %v14701_v1 = vpop.f32.mrf.mxu1  ;;  %v12878_v60 = vpop.eup %12877  ;;  %6212 = vst.msk [vmem:[#allocation2 + $0x40] sm:$0xff] %vm6203_vm2, %v6087_v16  ;;  %v5739_v41 = vmul.f32 1.442695, %v5599_v33  ;;  %6636 = vrot.lane.b32.xlu1 %v6631_v23, %s13188_s23  ;;  %6848 = vrot.lane.b32.xlu0 %v6843_v43, %s13189_s24  ;;  %v2829_v11 = vld [vmem:[%s13283_s26 + $0x3f8] sm:$0x7f]  ;;  %v14728_v61 = vadd.f32 %v14449_v57, %v5224_v8  ;;  %v3916_v33 = vadd.f32 %v11901_v28, %v13819_v10  ;;  %vm5474_vm4 = vcmp.gt.f32.partialorder %v14624_v34, 0.0 }
 0x1fb   : > { %v12880_v26 = vpop.eup %12879  ;;  %v6090_v50 = vsel %vm5470_vm14, %v14563_v63, %v10361_v4  ;;  %v10360_v20 = vadd.f32 -1.0, %v12878_v60  ;;  %v11904_v46 = vpop.f32.mrf.mxu0  ;;  %12047 = vmatmul.mubr.msk.f32.gmra.mxu0 %vm584_vm1, %v2827_v6  ;;  %v5745_v32 = vmul.f32 1.442695, %v5602_v24  ;;  %v14720_v63 = vadd.f32 %v14449_v57, %v5225_v52  ;;  %v4140_v4 = vld [vmem:[%s13283_s26 + $0x3f9] sm:$0x7f] }
 0x1fc   : > { %v12094_v56 = vpop.f32.mrf.mxu1  ;;  %6215 = vst.msk [vmem:[#allocation2 + $0x58] sm:$0xff] %vm6203_vm2, %v6090_v50  ;;  %v10363_v17 = vadd.f32 -1.0, %v12880_v26  ;;  %12889 = vpow2.f32 %v5739_v41  ;;  %12237 = vmatmul.mubr.msk.f32.gmra.mxu1 %vm584_vm1, %v4138_v12  ;;  %v6633_v58 = vld [vmem:[#allocation2 + $0x30] ss:$2 sm:$0x7f]  ;;  %12049 = vmatprep.mubr.msk.f32.mxu0 %vm584_vm1, %v2828_v15  ;;  %v5603_v10 = vmin.f32 %v14728_v61, 0.0  ;;  %v5227_v28 = vadd.f32 %v14683_v42, %v3916_v33 }
 0x1fd   : > { %v6089_v36 = vsel %vm5469_vm15, %v14574_v2, %v10360_v20  ;;  %v5743_v37 = vmul.f32 1.442695, %v5601_v49  ;;  %v3394_v6 = vpop.f32.mrf.mxu0  ;;  %12239 = vmatprep.mubr.msk.f32.mxu1 %vm584_vm1, %v4139_v53  ;;  %12891 = vpow2.f32 %v5745_v32  ;;  %v5604_v2 = vmin.f32 %v14720_v63, 0.0  ;;  %v6845_v24 = vld [vmem:[#allocation2 + $0x31] ss:$2 sm:$0x7f] }
 0x1fe   : > { %v4705_v16 = vpop.f32.mrf.mxu1  ;;  %6214 = vst.msk [vmem:[#allocation2 + $0x50] sm:$0xff] %vm6203_vm2, %v6089_v36  ;;  %v6092_v12 = vsel %vm5472_vm0, %v14582_v54, %v10363_v17  ;;  %6638 = vrot.lane.b32.xlu1 %v6633_v58, %s13188_s23  ;;  %v12882_v52 = vpop.eup %12881  ;;  %v3915_v60 = vadd.f32 %v3384_v48, %v13827_v19  ;;  %v3918_v41 = vadd.f32 %v11904_v46, %v13831_v25  ;;  %v5747_v8 = vmul.f32 1.442695, %v5603_v10 }
 0x1ff   : > { %6217 = vst.msk [vmem:[#allocation2 + $0x68] sm:$0xff] %vm6203_vm2, %v6092_v12  ;;  %12893 = vpow2.f32 %v5743_v37  ;;  %v11907_v23 = vpop.f32.mrf.mxu0  ;;  %12050 = vmatmul.mubr.msk.f32.gmra.mxu0 %vm584_vm1, %v2829_v11  ;;  %v10362_v43 = vadd.f32 -1.0, %v12882_v52  ;;  %v5749_v15 = vmul.f32 1.442695, %v5604_v2  ;;  %v14749_v53 = vadd.f32 %v14449_v57, %v5227_v28 }
 0x200   : > { %v12097_v54 = vpop.f32.mrf.mxu1  ;;  %12240 = vmatmul.mubr.msk.f32.gmra.mxu1 %vm584_vm1, %v4140_v4  ;;  %v3917_v26 = vadd.f32 %v3394_v6, %v13839_v35  ;;  %v3920_v42 = vadd.f32 %v11907_v23, %v13843_v40  ;;  %v5226_v25 = vadd.f32 %v14701_v1, %v3915_v60  ;;  %v5229_v48 = vadd.f32 %v12094_v56, %v3918_v41 }
 0x201   : > { %v3404_v50 = vpop.f32.mrf.mxu0  ;;  %v6435_v49 = vld [vmem:[#allocation2 + $0x41] ss:$2 sm:$0xff]  ;;  %v6335_v11 = vld [vmem:[#allocation2 + $0x40] ss:$2 sm:$0xff]  ;;  %v12884_v17 = vpop.eup %12883  ;;  %v6091_v19 = vsel %vm5471_vm3, %v14604_v29, %v10362_v43  ;;  %12895 = vpow2.f32 %v5749_v15  ;;  %vm5473_vm1 = vcmp.gt.f32.partialorder %v14631_v22, 0.0  ;;  %v5606_v40 = vmin.f32 %v14749_v53, 0.0 }
 0x202   : > { %v4715_v20 = vpop.f32.mrf.mxu1  ;;  %6850 = vrot.lane.b32.xlu1 %v6845_v24, %s13189_s24  ;;  %6440 = vrot.lane.b32.xlu0 %v6435_v49, %s13187_s22  ;;  %6338 = vst.msk [vmem:[#allocation3 + $0xf] sm:$0xff] %vm6203_vm2, %v6335_v11  ;;  %6216 = vst.msk [vmem:[#allocation2 + $0x60] sm:$0xff] %vm6203_vm2, %v6091_v19  ;;  %v10365_v35 = vadd.f32 -1.0, %v12884_v17  ;;  %12897 = vpow2.f32 %v5747_v8  ;;  %v12886_v32 = vpop.eup %12885  ;;  %v14764_v1 = vadd.f32 %v14449_v57, %v5226_v25  ;;  %vm5476_vm5 = vcmp.gt.f32.partialorder %v14643_v9, 0.0  ;;  %v7082_v15 = vld [vmem:[%s17628_s3 + $0x8] sm:$0xff] }
 0x203   : > { %v11910_v46 = vpop.f32.mrf.mxu0  ;;  %v14767_v56 = vadd.f32 %v14449_v57, %v5229_v48  ;;  %v5228_v58 = vadd.f32 %v4705_v16, %v3917_v26  ;;  %v5231_v36 = vadd.f32 %v12097_v54, %v3920_v42  ;;  %v12888_v37 = vpop.eup %12887  ;;  %v10364_v6 = vadd.f32 -1.0, %v12886_v32  ;;  %12336 = vmatpush3.msra.mxu1 %v7082_v15 }
 0x204   : > { %v12100_v29 = vpop.f32.mrf.mxu1  ;;  %v6094_v33 = vsel %vm5474_vm4, %v14624_v34, %v10365_v35  ;;  %v5753_v4 = vmul.f32 1.442695, %v5606_v40  ;;  %v3919_v12 = vadd.f32 %v3404_v50, %v13851_v51  ;;  %v10367_v28 = vadd.f32 -1.0, %v12888_v37  ;;  %12337 = vmatprep.subr.mxu1 %v17691_v13 }
 0x205   : > { %v3414_v2 = vpop.f32.mrf.mxu0  ;;  %v6437_v10 = vld [vmem:[#allocation2 + $0x51] ss:$2 sm:$0x7f]  ;;  %6219 = vst.msk [vmem:[#allocation2 + $0x78] sm:$0xff] %vm6203_vm2, %v6094_v33  ;;  %vm5475_vm6 = vcmp.gt.f32.partialorder %v14676_v31, 0.0  ;;  %v5605_v16 = vmin.f32 %v14764_v1, 0.0  ;;  %v6093_v34 = vsel %vm5473_vm1, %v14631_v22, %v10364_v6  ;;  %v14785_v23 = vadd.f32 %v14449_v57, %v5228_v58 }
 0x206   : > { %v14773_v52 = vpop.f32.mrf.mxu1  ;;  %6442 = vrot.lane.b32.xlu1 %v6437_v10, %s13187_s22  ;;  %12899 = vpow2.f32 %v5753_v4  ;;  %v5608_v51 = vmin.f32 %v14767_v56, 0.0  ;;  %v6337_v60 = vld [vmem:[#allocation2 + $0x50] ss:$2 sm:$0x7f]  ;;  %6218 = vst.msk [vmem:[#allocation2 + $0x70] sm:$0xff] %vm6203_vm2, %v6093_v34  ;;  %v6096_v41 = vsel %vm5476_vm5, %v14643_v9, %v10367_v28  ;;  %v14795_v22 = vadd.f32 %v14449_v57, %v5231_v36 }
 0x207   : > { %v11913_v54 = vpop.f32.mrf.mxu0  ;;  %v5751_v24 = vmul.f32 1.442695, %v5605_v16  ;;  %v5230_v8 = vadd.f32 %v4715_v20, %v3919_v12  ;;  %6339 = vst.msk [vmem:[#allocation3 + $0x17] sm:$0x7f] %vm6327_vm9, %v6337_v60  ;;  %vm5478_vm7 = vcmp.gt.f32.partialorder %v14689_v45, 0.0  ;;  %v5607_v50 = vmin.f32 %v14785_v23, 0.0 }
 0x208   : > { %v14787_v43 = vpop.f32.mrf.mxu1  ;;  %6221 = vst.msk [vmem:[#allocation2 + $0x88] sm:$0xff] %vm6203_vm2, %v6096_v41  ;;  %v5757_v42 = vmul.f32 1.442695, %v5608_v51  ;;  %v3922_v49 = vadd.f32 %v11910_v46, %v13855_v55  ;;  %v7081_v20 = vld [vmem:[%s17628_s3] sm:$0xff]  ;;  %vm5477_vm8 = vcmp.gt.f32.partialorder %v14699_v30, 0.0  ;;  %v5610_v19 = vmin.f32 %v14795_v22, 0.0 }
 0x209   : > { %v12890_v26 = vpop.eup %12889  ;;  %v3424_v11 = vpop.f32.mrf.mxu0  ;;  %12901 = vpow2.f32 %v5751_v24  ;;  %v6647_v25 = vld [vmem:[#allocation2 + $0x60] ss:$2 sm:$0xff]  ;;  %12338 = vmatpush3.msra.mxu1 %v7081_v20  ;;  %v5755_v35 = vmul.f32 1.442695, %v5607_v50  ;;  %v14809_v55 = vadd.f32 %v14449_v57, %v5230_v8  ;;  %v6859_v46 = vld [vmem:[#allocation2 + $0x61] ss:$2 sm:$0xff]  ;;  %v3921_v4 = vadd.f32 %v3414_v2, %v13863_v3 }
 0x20a   : > { %v4735_v9 = vpop.f32.mrf.mxu1  ;;  %v10366_v17 = vadd.f32 -1.0, %v12890_v26  ;;  %v12892_v48 = vpop.eup %12891  ;;  %12903 = vpow2.f32 %v5757_v42  ;;  %v5233_v40 = vadd.f32 %v12100_v29, %v3922_v49  ;;  %6652 = vrot.lane.b32.xlu1 %v6647_v25, %s13188_s23  ;;  %12509 = vmatprep.subr.mxu1 %v17691_v13  ;;  %v5761_v6 = vmul.f32 1.442695, %v5610_v19  ;;  %v14866_v25 = vld [vmem:[%s17627_s2] ss:$0 sm:$0xff] }
 0x20b   : > { %v11916_v32 = vpop.f32.mrf.mxu0  ;;  %v10369_v33 = vadd.f32 -1.0, %v12892_v48  ;;  %6864 = vrot.lane.b32.xlu0 %v6859_v46, %s13189_s24  ;;  %vm5480_vm10 = vcmp.gt.f32.partialorder %v14720_v63, 0.0  ;;  %12905 = vpow2.f32 %v5755_v35  ;;  %v5609_v12 = vmin.f32 %v14809_v55, 0.0 }
 0x20c   : > { %v14812_v58 = vpop.f32.mrf.mxu1  ;;  %v12894_v36 = vpop.eup %12893  ;;  %v6095_v37 = vsel %vm5475_vm6, %v14676_v31, %v10366_v17  ;;  %v10475_v31 = vld [vmem:[%s17628_s3 + $0x28] sm:$0xff]  ;;  %12907 = vpow2.f32 %v5761_v6  ;;  %v14832_v2 = vadd.f32 %v14449_v57, %v5233_v40  ;;  %v5232_v16 = vadd.f32 %v14773_v52, %v3921_v4 }
 0x20d   : > { %6220 = vst.msk [vmem:[#allocation2 + $0x80] sm:$0xff] %vm6203_vm2, %v6095_v37  ;;  %v10368_v29 = vadd.f32 -1.0, %v12894_v36  ;;  %v3434_v10 = vpop.f32.mrf.mxu0  ;;  %v6098_v3 = vsel %vm5478_vm7, %v14689_v45, %v10369_v33  ;;  %12247 = vmatpush3.msra.mxu0 %v10475_v31  ;;  %v5759_v15 = vmul.f32 1.442695, %v5609_v12  ;;  %v3924_v60 = vadd.f32 %v11913_v54, %v13867_v7  ;;  %v10474_v33 = vld [vmem:[%s17628_s3 + $0x20] sm:$0xff] }
 0x20e   : > { %v14823_v28 = vpop.f32.mrf.mxu1  ;;  %v12896_v34 = vpop.eup %12895  ;;  %6223 = vst.msk [vmem:[#allocation2 + $0x98] sm:$0xff] %vm6203_vm2, %v6098_v3  ;;  %v3923_v41 = vadd.f32 %v3424_v11, %v13875_v18  ;;  %v6861_v45 = vld [vmem:[#allocation2 + $0x71] ss:$2 sm:$0x7f]  ;;  %12248 = vmatprep.subr.mxu0 %v17691_v13  ;;  %vm5479_vm11 = vcmp.gt.f32.partialorder %v14728_v61, 0.0  ;;  %v5612_v42 = vmin.f32 %v14832_v2, 0.0  ;;  %v3926_v48 = vadd.f32 %v11916_v32, %v13879_v27 }
 0x20f   : > { %v6097_v51 = vsel %vm5477_vm8, %v14699_v30, %v10368_v29  ;;  %v11919_v24 = vpop.f32.mrf.mxu0  ;;  %v12898_v26 = vpop.eup %12897  ;;  %v10371_v52 = vadd.f32 -1.0, %v12896_v34  ;;  %v14846_v30 = vadd.f32 %v14449_v57, %v5232_v16  ;;  %6866 = vrot.lane.b32.xlu1 %v6861_v45, %s13189_s24  ;;  %v6649_v7 = vld [vmem:[#allocation2 + $0x70] ss:$2 sm:$0x7f]  ;;  %12909 = vpow2.f32 %v5759_v15  ;;  %12249 = vmatpush3.msra.mxu0 %v10474_v33 }
 0x210   : > { %v12109_v8 = vpop.f32.mrf.mxu1  ;;  %6222 = vst.msk [vmem:[#allocation2 + $0x90] sm:$0xff] %vm6203_vm2, %v6097_v51  ;;  %v10370_v18 = vadd.f32 -1.0, %v12898_v26  ;;  %v5235_v54 = vadd.f32 %v14787_v43, %v3924_v60  ;;  %v5234_v50 = vadd.f32 %v4735_v9, %v3923_v41  ;;  %6654 = vrot.lane.b32.xlu0 %v6649_v7, %s13188_s23  ;;  %vm5482_vm12 = vcmp.gt.f32.partialorder %v14749_v53, 0.0  ;;  %12420 = vmatprep.subr.mxu0 %v17691_v13 }
 0x211   : > { %v3444_v49 = vpop.f32.mrf.mxu0  ;;  %v6100_v20 = vsel %vm5480_vm10, %v14720_v63, %v10371_v52  ;;  %v5765_v17 = vmul.f32 1.442695, %v5612_v42  ;;  %v5611_v19 = vmin.f32 %v14846_v30, 0.0  ;;  %v3928_v36 = vadd.f32 %v11919_v24, %v13891_v44 }
 0x212   : > { %v4755_v11 = vpop.f32.mrf.mxu1  ;;  %6225 = vst.msk [vmem:[#allocation2 + $0xa8] sm:$0xff] %vm6203_vm2, %v6100_v20  ;;  %v6099_v43 = vsel %vm5479_vm11, %v14728_v61, %v10370_v18  ;;  %v14861_v9 = vadd.f32 %v14449_v57, %v5235_v54  ;;  %v14869_v63 = vadd.f32 %v14866_v25, %v5234_v50  ;;  %v3925_v61 = vadd.f32 %v3434_v10, %v13887_v39 }
 0x213   : > { %v14872_v35 = vpop.f32.mrf.mxu0  ;;  %v12900_v46 = vpop.eup %12899  ;;  %6224 = vst.msk [vmem:[#allocation2 + $0xa0] sm:$0xff] %vm6203_vm2, %v6099_v43  ;;  %12911 = vpow2.f32 %v5765_v17  ;;  %v5763_v57 = vmul.f32 1.442695, %v5611_v19  ;;  %vm5481_vm13 = vcmp.gt.f32.partialorder %v14764_v1, 0.0  ;;  %vm5484_vm14 = vcmp.gt.f32.partialorder %v14767_v56, 0.0 }
 0x214   : > { %v14874_v40 = vpop.f32.mrf.mxu1  ;;  %v6449_v37 = vld [vmem:[#allocation2 + $0x81] ss:$2 sm:$0xff]  ;;  %v10373_v6 = vadd.f32 -1.0, %v12900_v46  ;;  %v5614_v27 = vmin.f32 %v14861_v9, 0.0  ;;  %v6341_v39 = vld [vmem:[#allocation2 + $0x80] ss:$2 sm:$0xff]  ;;  %v5237_v29 = vadd.f32 %v14812_v58, %v3926_v48  ;;  %v5236_v12 = vadd.f32 %v14823_v28, %v3925_v61 }
 0x215   : > { %6454 = vrot.lane.b32.xlu0 %v6449_v37, %s13187_s22  ;;  %v14886_v32 = vpop.f32.mrf.mxu0  ;;  %12913 = vpow2.f32 %v5763_v57  ;;  %v5613_v44 = vmin.f32 %v14869_v63, 0.0  ;;  %6344 = vst.msk [vmem:[#allocation3 + $0x1e] sm:$0xff] %vm6203_vm2, %v6341_v39  ;;  %v5239_v16 = vadd.f32 %v12109_v8, %v3928_v36  ;;  %v3927_v34 = vadd.f32 %v3444_v49, %v13899_v59 }
 0x216   : > { %v14888_v4 = vpop.f32.mrf.mxu1  ;;  %v12902_v10 = vpop.eup %12901  ;;  %v6102_v31 = vsel %vm5482_vm12, %v14749_v53, %v10373_v6  ;;  %v5769_v3 = vmul.f32 1.442695, %v5614_v27  ;;  %v14903_v45 = vadd.f32 %v14866_v25, %v5237_v29  ;;  %v14906_v24 = vadd.f32 %v14866_v25, %v5236_v12 }
 0x217   : > { %v6451_v51 = vld [vmem:[#allocation2 + $0x91] ss:$2 sm:$0x7f]  ;;  %v11925_v15 = vpop.f32.mrf.mxu0  ;;  %v12904_v58 = vpop.eup %12903  ;;  %6227 = vst.msk [vmem:[#allocation2 + $0xb8] sm:$0xff] %vm6203_vm2, %v6102_v31  ;;  %v10372_v28 = vadd.f32 -1.0, %v12902_v10  ;;  %v14910_v59 = vadd.f32 %v14866_v25, %v5239_v16  ;;  %v5238_v26 = vadd.f32 %v4755_v11, %v3927_v34  ;;  %vm5483_vm15 = vcmp.gt.f32.partialorder %v14785_v23, 0.0 }
 0x218   : > { %v14899_v60 = vpop.f32.mrf.mxu1  ;;  %v5767_v41 = vmul.f32 1.442695, %v5613_v44  ;;  %6456 = vrot.lane.b32.xlu1 %v6451_v51, %s13187_s22  ;;  %v6343_v53 = vld [vmem:[#allocation2 + $0x90] ss:$2 sm:$0x7f]  ;;  %v10375_v8 = vadd.f32 -1.0, %v12904_v58  ;;  %12915 = vpow2.f32 %v5769_v3  ;;  %v12906_v7 = vpop.eup %12905  ;;  %v3930_v36 = vadd.f32 %v14872_v35, %v13903_v0 }
 0x219   : > { %v3464_v52 = vpop.f32.mrf.mxu0  ;;  %6345 = vst.msk [vmem:[#allocation3 + $0x26] sm:$0x7f] %vm6327_vm9, %v6343_v53  ;;  %v6101_v18 = vsel %vm5481_vm13, %v14764_v1, %v10372_v28  ;;  %v5616_v54 = vmin.f32 %v14903_v45, 0.0  ;;  %v12908_v50 = vpop.eup %12907  ;;  %v10374_v11 = vadd.f32 -1.0, %v12906_v7  ;;  %vm5486_vm0 = vcmp.gt.f32.partialorder %v14795_v22, 0.0 }
 0x21a   : > { %v4775_v42 = vpop.f32.mrf.mxu1  ;;  %12917 = vpow2.f32 %v5767_v41  ;;  %6226 = vst.msk [vmem:[#allocation2 + $0xb0] sm:$0xff] %vm6203_vm2, %v6101_v18  ;;  %v6104_v49 = vsel %vm5484_vm14, %v14767_v56, %v10375_v8  ;;  %v5615_v20 = vmin.f32 %v14906_v24, 0.0  ;;  %v6661_v17 = vld [vmem:[#allocation2 + $0xa0] ss:$2 sm:$0xff]  ;;  %v10377_v43 = vadd.f32 -1.0, %v12908_v50 }
 0x21b   : > { %v11928_v19 = vpop.f32.mrf.mxu0  ;;  %6229 = vst.msk [vmem:[#allocation2 + $0xc8] sm:$0xff] %vm6203_vm2, %v6104_v49  ;;  %vm5485_vm3 = vcmp.gt.f32.partialorder %v14809_v55, 0.0  ;;  %v5773_v48 = vmul.f32 1.442695, %v5616_v54  ;;  %v5618_v46 = vmin.f32 %v14910_v59, 0.0  ;;  %v6103_v56 = vsel %vm5483_vm15, %v14785_v23, %v10374_v11 }
 0x21c   : > { %v12118_v1 = vpop.f32.mrf.mxu1  ;;  %6666 = vrot.lane.b32.xlu1 %v6661_v17, %s13188_s23  ;;  %v5771_v57 = vmul.f32 1.442695, %v5615_v20  ;;  %v14932_v61 = vadd.f32 %v14866_v25, %v5238_v26  ;;  %v6873_v37 = vld [vmem:[#allocation2 + $0xa1] ss:$2 sm:$0xff]  ;;  %v12910_v27 = vpop.eup %12909  ;;  %6228 = vst.msk [vmem:[#allocation2 + $0xc0] sm:$0xff] %vm6203_vm2, %v6103_v56  ;;  %v6106_v39 = vsel %vm5486_vm0, %v14795_v22, %v10377_v43  ;;  %v3929_v23 = vadd.f32 %v14886_v32, %v13911_v14 }
 0x21d   : > { %v3474_v33 = vpop.f32.mrf.mxu0  ;;  %12919 = vpow2.f32 %v5773_v48  ;;  %v5777_v44 = vmul.f32 1.442695, %v5618_v46  ;;  %6878 = vrot.lane.b32.xlu0 %v6873_v37, %s13189_s24  ;;  %6231 = vst.msk [vmem:[#allocation2 + $0xd8] sm:$0xff] %vm6203_vm2, %v6106_v39  ;;  %v10376_v0 = vadd.f32 -1.0, %v12910_v27  ;;  %vm5488_vm4 = vcmp.gt.f32.partialorder %v14832_v2, 0.0 }
 0x21e   : > { %v4785_v6 = vpop.f32.mrf.mxu1  ;;  %12921 = vpow2.f32 %v5771_v57  ;;  %v5617_v35 = vmin.f32 %v14932_v61, 0.0  ;;  %v5241_v22 = vadd.f32 %v14874_v40, %v3930_v36  ;;  %v5240_v10 = vadd.f32 %v14888_v4, %v3929_v23 }
 0x21f   : > { %v14946_v29 = vpop.f32.mrf.mxu0  ;;  %12923 = vpow2.f32 %v5777_v44  ;;  %v3932_v14 = vadd.f32 %v11925_v15, %v13915_v21  ;;  %v6105_v31 = vsel %vm5485_vm3, %v14809_v55, %v10376_v0  ;;  %v3931_v16 = vadd.f32 %v3464_v52, %v13923_v38 }
 0x220   : > { %v14948_v12 = vpop.f32.mrf.mxu1  ;;  %v12912_v32 = vpop.eup %12911  ;;  %v5775_v3 = vmul.f32 1.442695, %v5617_v35  ;;  %v3934_v34 = vadd.f32 %v11928_v19, %v13927_v47  ;;  %6230 = vst.msk [vmem:[#allocation2 + $0xd0] sm:$0xff] %vm6203_vm2, %v6105_v31  ;;  %v14964_v4 = vadd.f32 %v14866_v25, %v5241_v22  ;;  %v14967_v21 = vadd.f32 %v14866_v25, %v5240_v10 }
 0x221   : > { %v14958_v51 = vpop.f32.mrf.mxu0  ;;  %v10379_v40 = vadd.f32 -1.0, %v12912_v32  ;;  %v5243_v55 = vadd.f32 %v14899_v60, %v3932_v14  ;;  %v6875_v15 = vld [vmem:[#allocation2 + $0xb1] ss:$2 sm:$0x7f]  ;;  %v5242_v38 = vadd.f32 %v4775_v42, %v3931_v16  ;;  %v3933_v41 = vadd.f32 %v3474_v33, %v13935_v62 }
 0x222   : > { %v14960_v58 = vpop.f32.mrf.mxu1  ;;  %v12914_v28 = vpop.eup %12913  ;;  %12925 = vpow2.f32 %v5775_v3  ;;  %v5245_v47 = vadd.f32 %v12118_v1, %v3934_v34  ;;  %6880 = vrot.lane.b32.xlu1 %v6875_v15, %s13189_s24  ;;  %v6663_v53 = vld [vmem:[#allocation2 + $0xb0] ss:$2 sm:$0x7f]  ;;  %vm5487_vm1 = vcmp.gt.f32.partialorder %v14846_v30, 0.0  ;;  %v5620_v7 = vmin.f32 %v14964_v4, 0.0 }
 0x223   : > { %v11934_v8 = vpop.f32.mrf.mxu0  ;;  %v6108_v52 = vsel %vm5488_vm4, %v14832_v2, %v10379_v40  ;;  %v10378_v60 = vadd.f32 -1.0, %v12914_v28  ;;  %6668 = vrot.lane.b32.xlu0 %v6663_v53, %s13188_s23  ;;  %vm5490_vm5 = vcmp.gt.f32.partialorder %v14861_v9, 0.0  ;;  %v5619_v62 = vmin.f32 %v14967_v21, 0.0  ;;  %v6463_v2 = vld [vmem:[#allocation2 + $0xc1] ss:$2 sm:$0xff]  ;;  %v17719_v32 = vld [vmem:[#allocation8_spill] sm:$0xff] }
 0x224   : > { %v14972_v26 = vpop.f32.mrf.mxu1  ;;  %6233 = vst.msk [vmem:[#allocation2 + $0xe8] sm:$0xff] %vm6203_vm2, %v6108_v52  ;;  %v14984_v42 = vadd.f32 %v14866_v25, %v5243_v55  ;;  %v14987_v18 = vadd.f32 %v14866_v25, %v5242_v38  ;;  %v6347_v49 = vld [vmem:[#allocation2 + $0xc0] ss:$2 sm:$0xff]  ;;  %v5781_v17 = vmul.f32 1.442695, %v5620_v7  ;;  %v14995_v19 = vadd.f32 %v14866_v25, %v5245_v47 }
 0x225   : > { %v14989_v54 = vpop.f32.mrf.mxu0  ;;  %v12916_v11 = vpop.eup %12915  ;;  %v6107_v20 = vsel %vm5487_vm1, %v14846_v30, %v10378_v60  ;;  %v5244_v1 = vadd.f32 %v4785_v6, %v3933_v41  ;;  %6350 = vst.msk [vmem:[#allocation3 + $0x2d] sm:$0xff] %vm6203_vm2, %v6347_v49  ;;  %vm5489_vm6 = vcmp.gt.f32.partialorder %v14869_v63, 0.0  ;;  %v5779_v46 = vmul.f32 1.442695, %v5619_v62 }
 0x226   : > { %v14991_v50 = vpop.f32.mrf.mxu1  ;;  %6232 = vst.msk [vmem:[#allocation2 + $0xe0] sm:$0xff] %vm6203_vm2, %v6107_v20  ;;  %v10381_v48 = vadd.f32 -1.0, %v12916_v11  ;;  %v5622_v56 = vmin.f32 %v14984_v42, 0.0  ;;  %vm5492_vm7 = vcmp.gt.f32.partialorder %v14903_v45, 0.0  ;;  %12927 = vpow2.f32 %v5781_v17  ;;  %v17721_v20 = vld [vmem:[#allocation10_spill] sm:$0xff] }
 0x227   : > { %v12918_v43 = vpop.eup %12917  ;;  %v11937_v57 = vpop.f32.mrf.mxu0  ;;  %v5621_v37 = vmin.f32 %v14987_v18, 0.0  ;;  %6468 = vrot.lane.b32.xlu0 %v6463_v2, %s13187_s22  ;;  %vm5491_vm8 = vcmp.gt.f32.partialorder %v14906_v24, 0.0  ;;  %12929 = vpow2.f32 %v5779_v46  ;;  %v6465_v27 = vld [vmem:[#allocation2 + $0xd1] ss:$2 sm:$0x7f]  ;;  %v5624_v35 = vmin.f32 %v14995_v19, 0.0 }
 0x228   : > { %v15001_v36 = vpop.f32.mrf.mxu1  ;;  %v10380_v30 = vadd.f32 -1.0, %v12918_v43  ;;  %v6110_v33 = vsel %vm5490_vm5, %v14861_v9, %v10381_v48  ;;  %v5785_v6 = vmul.f32 1.442695, %v5622_v56  ;;  %v15020_v9 = vadd.f32 %v14866_v25, %v5244_v1  ;;  %6470 = vrot.lane.b32.xlu1 %v6465_v27, %s13187_s22  ;;  %v6349_v22 = vld [vmem:[#allocation2 + $0xd0] ss:$2 sm:$0x7f] }
 0x229   : > { %v15010_v39 = vpop.f32.mrf.mxu0  ;;  %6235 = vst.msk [vmem:[#allocation2 + $0xf8] sm:$0xff] %vm6203_vm2, %v6110_v33  ;;  %v5783_v0 = vmul.f32 1.442695, %v5621_v37  ;;  %v3936_v14 = vadd.f32 %v14946_v29, %v13939_v5  ;;  %v3935_v31 = vadd.f32 %v14958_v51, %v17719_v32  ;;  %vm5494_vm10 = vcmp.gt.f32.partialorder %v14910_v59, 0.0  ;;  %v17722_v1 = vld [vmem:[#allocation11_spill] sm:$0xff]  ;;  %v17724_v32 = vld [vmem:[#allocation13_spill] sm:$0xff] }
 0x22a   : > { %v15012_v44 = vpop.f32.mrf.mxu1  ;;  %v6109_v23 = vsel %vm5489_vm6, %v14869_v63, %v10380_v30  ;;  %v12920_v10 = vpop.eup %12919  ;;  %12931 = vpow2.f32 %v5785_v6  ;;  %v17720_v63 = vld [vmem:[#allocation9_spill] sm:$0xff]  ;;  %6351 = vst.msk [vmem:[#allocation3 + $0x35] sm:$0x7f] %vm6327_vm9, %v6349_v22  ;;  %v5789_v15 = vmul.f32 1.442695, %v5624_v35  ;;  %v5623_v5 = vmin.f32 %v15020_v9, 0.0 }
 0x22b   : > { %6234 = vst.msk [vmem:[#allocation2 + $0xf0] sm:$0xff] %vm6203_vm2, %v6109_v23  ;;  %v3938_v3 = vadd.f32 %v11934_v8, %v17720_v63  ;;  %v11940_v16 = vpop.f32.mrf.mxu0  ;;  %v12922_v40 = vpop.eup %12921  ;;  %v10383_v55 = vadd.f32 -1.0, %v12920_v10  ;;  %12933 = vpow2.f32 %v5783_v0  ;;  %v5247_v29 = vadd.f32 %v14948_v12, %v3936_v14  ;;  %v17723_v10 = vld [vmem:[#allocation12_spill] sm:$0xff] }
 0x22c   : > { %v15029_v34 = vpop.f32.mrf.mxu1  ;;  %v12924_v28 = vpop.eup %12923  ;;  %v10382_v38 = vadd.f32 -1.0, %v12922_v40  ;;  %v5246_v51 = vadd.f32 %v14960_v58, %v3935_v31  ;;  %12935 = vpow2.f32 %v5789_v15  ;;  %v5787_v58 = vmul.f32 1.442695, %v5623_v5 }
 0x22d   : > { %v15036_v47 = vpop.f32.mrf.mxu0  ;;  %v6112_v53 = vsel %vm5492_vm7, %v14903_v45, %v10383_v55  ;;  %v10385_v8 = vadd.f32 -1.0, %v12924_v28  ;;  %v5249_v52 = vadd.f32 %v14972_v26, %v3938_v3  ;;  %v6675_v60 = vld [vmem:[#allocation2 + $0xe0] ss:$2 sm:$0xff]  ;;  %v6887_v7 = vld [vmem:[#allocation2 + $0xe1] ss:$2 sm:$0xff]  ;;  %v15049_v62 = vadd.f32 %v14866_v25, %v5247_v29 }
 0x22e   : > { %v15038_v41 = vpop.f32.mrf.mxu1  ;;  %6237 = vst.msk [vmem:[#allocation2 + $0x108] sm:$0xff] %vm6203_vm2, %v6112_v53  ;;  %v6111_v12 = vsel %vm5491_vm8, %v14906_v24, %v10382_v38  ;;  %v15052_v2 = vadd.f32 %v14866_v25, %v5246_v51  ;;  %6680 = vrot.lane.b32.xlu1 %v6675_v60, %s13188_s23  ;;  %6892 = vrot.lane.b32.xlu0 %v6887_v7, %s13189_s24  ;;  %vm5493_vm11 = vcmp.gt.f32.partialorder %v14932_v61, 0.0  ;;  %12937 = vpow2.f32 %v5787_v58 }
 0x22f   : > { %v15056_v45 = vpop.f32.mrf.mxu0  ;;  %v12926_v49 = vpop.eup %12925  ;;  %6236 = vst.msk [vmem:[#allocation2 + $0x100] sm:$0xff] %vm6203_vm2, %v6111_v12  ;;  %v6114_v24 = vsel %vm5494_vm10, %v14910_v59, %v10385_v8  ;;  %v15065_v11 = vadd.f32 %v14866_v25, %v5249_v52  ;;  %v3937_v17 = vadd.f32 %v14989_v54, %v17721_v20  ;;  %v3940_v43 = vadd.f32 %v11937_v57, %v17722_v1  ;;  %v17725_v52 = vld [vmem:[#allocation14_spill] sm:$0xff] }
 0x230   : > { %v15058_v26 = vpop.f32.mrf.mxu1  ;;  %6239 = vst.msk [vmem:[#allocation2 + $0x118] sm:$0xff] %vm6203_vm2, %v6114_v24  ;;  %v10384_v48 = vadd.f32 -1.0, %v12926_v49  ;;  %v5626_v46 = vmin.f32 %v15049_v62, 0.0  ;;  %vm5496_vm12 = vcmp.gt.f32.partialorder %v14964_v4, 0.0  ;;  %vm5495_vm13 = vcmp.gt.f32.partialorder %v14967_v21, 0.0 }
 0x231   : > { %v15073_v56 = vpop.f32.mrf.mxu0  ;;  %v5625_v59 = vmin.f32 %v15052_v2, 0.0  ;;  %v5628_v54 = vmin.f32 %v15065_v11, 0.0  ;;  %v5248_v33 = vadd.f32 %v14991_v50, %v3937_v17  ;;  %v5251_v6 = vadd.f32 %v15001_v36, %v3940_v43 }
 0x232   : > { %v15075_v30 = vpop.f32.mrf.mxu1  ;;  %v6113_v57 = vsel %vm5493_vm11, %v14932_v61, %v10384_v48  ;;  %v5793_v37 = vmul.f32 1.442695, %v5626_v46  ;;  %v6889_v27 = vld [vmem:[#allocation2 + $0xf1] ss:$2 sm:$0x7f]  ;;  %v3939_v14 = vadd.f32 %v15010_v39, %v17723_v10  ;;  %v3942_v31 = vadd.f32 %v11940_v16, %v17724_v32 }
 0x233   : > { %v15084_v23 = vpop.f32.mrf.mxu0  ;;  %6238 = vst.msk [vmem:[#allocation2 + $0x110] sm:$0xff] %vm6203_vm2, %v6113_v57  ;;  %v5791_v35 = vmul.f32 1.442695, %v5625_v59  ;;  %v5797_v22 = vmul.f32 1.442695, %v5628_v54  ;;  %6894 = vrot.lane.b32.xlu1 %v6889_v27, %s13189_s24  ;;  %v12928_v61 = vpop.eup %12927  ;;  %vm5498_vm14 = vcmp.gt.f32.partialorder %v14984_v42, 0.0  ;;  %v15095_v50 = vadd.f32 %v14866_v25, %v5248_v33 }
 0x234   : > { %v15086_v0 = vpop.f32.mrf.mxu1  ;;  %12939 = vpow2.f32 %v5793_v37  ;;  %v15098_v36 = vadd.f32 %v14866_v25, %v5251_v6  ;;  %v6677_v63 = vld [vmem:[#allocation2 + $0xf0] ss:$2 sm:$0x7f]  ;;  %v12930_v39 = vpop.eup %12929  ;;  %v10387_v55 = vadd.f32 -1.0, %v12928_v61  ;;  %v5250_v16 = vadd.f32 %v15012_v44, %v3939_v14 }
 0x235   : > { %v15100_v3 = vpop.f32.mrf.mxu0  ;;  %12941 = vpow2.f32 %v5791_v35  ;;  %v5253_v15 = vadd.f32 %v15029_v34, %v3942_v31  ;;  %6682 = vrot.lane.b32.xlu0 %v6677_v63, %s13188_s23  ;;  %v10386_v28 = vadd.f32 -1.0, %v12930_v39  ;;  %vm5497_vm15 = vcmp.gt.f32.partialorder %v14987_v18, 0.0  ;;  %v17727_v14 = vld [vmem:[#allocation16_spill] sm:$0xff]  ;;  %v17728_v39 = vld [vmem:[#allocation17_spill] sm:$0xff] }
 0x236   : > { %v15102_v40 = vpop.f32.mrf.mxu1  ;;  %12943 = vpow2.f32 %v5797_v22  ;;  %v5627_v38 = vmin.f32 %v15095_v50, 0.0  ;;  %v6477_v5 = vld [vmem:[#allocation2 + $0x101] ss:$2 sm:$0xff]  ;;  %v6116_v8 = vsel %vm5496_vm12, %v14964_v4, %v10387_v55  ;;  %v5630_v44 = vmin.f32 %v15098_v36, 0.0  ;;  %v6353_v7 = vld [vmem:[#allocation2 + $0x100] ss:$2 sm:$0xff] }
 0x237   : > { %v11949_v29 = vpop.f32.mrf.mxu0  ;;  %v12932_v53 = vpop.eup %12931  ;;  %v15116_v34 = vadd.f32 %v14866_v25, %v5250_v16  ;;  %v3941_v60 = vadd.f32 %v15036_v47, %v17725_v52  ;;  %6241 = vst.msk [vmem:[#allocation2 + $0x128] sm:$0xff] %vm6203_vm2, %v6116_v8  ;;  %v6115_v58 = vsel %vm5495_vm13, %v14967_v21, %v10386_v28  ;;  %v15125_v4 = vadd.f32 %v14866_v25, %v5253_v15  ;;  %v17726_v22 = vld [vmem:[#allocation15_spill] sm:$0xff]  ;;  %v17729_v55 = vld [vmem:[#allocation18_spill] sm:$0xff] }
 0x238   : > { %v15109_v51 = vpop.f32.mrf.mxu1  ;;  %v12934_v12 = vpop.eup %12933  ;;  %v10389_v49 = vadd.f32 -1.0, %v12932_v53  ;;  %v5795_v24 = vmul.f32 1.442695, %v5627_v38  ;;  %6356 = vst.msk [vmem:[#allocation3 + $0x3c] sm:$0xff] %vm6203_vm2, %v6353_v7  ;;  %6240 = vst.msk [vmem:[#allocation2 + $0x120] sm:$0xff] %vm6203_vm2, %v6115_v58  ;;  %vm5500_vm0 = vcmp.gt.f32.partialorder %v14995_v19, 0.0  ;;  %v3944_v10 = vadd.f32 %v15056_v45, %v17726_v22 }
 0x239   : > { %v15127_v20 = vpop.f32.mrf.mxu0  ;;  %v10388_v47 = vadd.f32 -1.0, %v12934_v12  ;;  %v5801_v1 = vmul.f32 1.442695, %v5630_v44  ;;  %v5629_v43 = vmin.f32 %v15116_v34, 0.0  ;;  %6482 = vrot.lane.b32.xlu0 %v6477_v5, %s13187_s22  ;;  %v12936_v21 = vpop.eup %12935  ;;  %vm5499_vm3 = vcmp.gt.f32.partialorder %v15020_v9, 0.0 }
 0x23a   : > { %v15129_v17 = vpop.f32.mrf.mxu1  ;;  %v6118_v48 = vsel %vm5498_vm14, %v14984_v42, %v10389_v49  ;;  %12945 = vpow2.f32 %v5795_v24  ;;  %v5632_v46 = vmin.f32 %v15125_v4, 0.0  ;;  %v6479_v59 = vld [vmem:[#allocation2 + $0x111] ss:$2 sm:$0x7f]  ;;  %v10391_v33 = vadd.f32 -1.0, %v12936_v21 }
 0x23b   : > { %v15141_v54 = vpop.f32.mrf.mxu0  ;;  %6243 = vst.msk [vmem:[#allocation2 + $0x138] sm:$0xff] %vm6203_vm2, %v6118_v48  ;;  %v6117_v37 = vsel %vm5497_vm15, %v14987_v18, %v10388_v47  ;;  %12947 = vpow2.f32 %v5801_v1  ;;  %v5799_v6 = vmul.f32 1.442695, %v5629_v43  ;;  %6484 = vrot.lane.b32.xlu1 %v6479_v59, %s13187_s22  ;;  %v6355_v42 = vld [vmem:[#allocation2 + $0x110] ss:$2 sm:$0x7f]  ;;  %v5252_v35 = vadd.f32 %v15038_v41, %v3941_v60  ;;  %v12938_v61 = vpop.eup %12937 }
 0x23c   : > { %v15143_v57 = vpop.f32.mrf.mxu1  ;;  %6242 = vst.msk [vmem:[#allocation2 + $0x130] sm:$0xff] %vm6203_vm2, %v6117_v37  ;;  %v5805_v27 = vmul.f32 1.442695, %v5632_v46  ;;  %v3943_v32 = vadd.f32 %v15073_v56, %v17727_v14  ;;  %v6120_v63 = vsel %vm5500_vm0, %v14995_v19, %v10391_v33  ;;  %v3946_v41 = vadd.f32 %v15084_v23, %v17728_v39 }
 0x23d   : > { %v15156_v31 = vpop.f32.mrf.mxu0  ;;  %6357 = vst.msk [vmem:[#allocation3 + $0x44] sm:$0x7f] %vm6327_vm9, %v6355_v42  ;;  %12949 = vpow2.f32 %v5799_v6  ;;  %v3945_v45 = vadd.f32 %v15100_v3, %v17729_v55  ;;  %v10390_v56 = vadd.f32 -1.0, %v12938_v61  ;;  %v15170_v16 = vadd.f32 %v14866_v25, %v5252_v35  ;;  %v17730_v3 = vld [vmem:[#allocation19_spill] sm:$0xff] }
 0x23e   : > { %v15158_v18 = vpop.f32.mrf.mxu1  ;;  %6245 = vst.msk [vmem:[#allocation2 + $0x148] sm:$0xff] %vm6203_vm2, %v6120_v63  ;;  %12951 = vpow2.f32 %v5805_v27  ;;  %v5255_v15 = vadd.f32 %v15058_v26, %v3944_v10  ;;  %v5254_v19 = vadd.f32 %v15075_v30, %v3943_v32  ;;  %v5257_v23 = vadd.f32 %v15086_v0, %v3946_v41  ;;  %v17731_v41 = vld [vmem:[#allocation20_spill] sm:$0xff] }
 0x23f   : > { %v15173_v28 = vpop.f32.mrf.mxu0  ;;  %v5256_v5 = vadd.f32 %v15102_v40, %v3945_v45  ;;  %v3948_v53 = vadd.f32 %v11949_v29, %v17730_v3  ;;  %v6119_v8 = vsel %vm5499_vm3, %v15020_v9, %v10390_v56  ;;  %vm5502_vm4 = vcmp.gt.f32.partialorder %v15049_v62, 0.0  ;;  %v6689_v52 = vld [vmem:[#allocation2 + $0x120] ss:$2 sm:$0xff]  ;;  %v6901_v60 = vld [vmem:[#allocation2 + $0x121] ss:$2 sm:$0xff] }
 0x240   : > { %v15175_v38 = vpop.f32.mrf.mxu1  ;;  %v5631_v26 = vmin.f32 %v15170_v16, 0.0  ;;  %v15187_v44 = vadd.f32 %v14866_v25, %v5255_v15  ;;  %6244 = vst.msk [vmem:[#allocation2 + $0x140] sm:$0xff] %vm6203_vm2, %v6119_v8  ;;  %vm5501_vm1 = vcmp.gt.f32.partialorder %v15052_v2, 0.0  ;;  %v15196_v9 = vadd.f32 %v14866_v25, %v5254_v19  ;;  %6694 = vrot.lane.b32.xlu1 %v6689_v52, %s13188_s23  ;;  %6906 = vrot.lane.b32.xlu0 %v6901_v60, %s13189_s24 }
 0x241   : > { %v15189_v30 = vpop.f32.mrf.mxu0  ;;  %v12940_v40 = vpop.eup %12939  ;;  %v15199_v29 = vadd.f32 %v14866_v25, %v5257_v23  ;;  %v15202_v7 = vadd.f32 %v14866_v25, %v5256_v5  ;;  %v5259_v47 = vadd.f32 %v15109_v51, %v3948_v53  ;;  %vm5504_vm5 = vcmp.gt.f32.partialorder %v15065_v11, 0.0 }
 0x242   : > { %v15191_v0 = vpop.f32.mrf.mxu1  ;;  %v12942_v12 = vpop.eup %12941  ;;  %v10393_v58 = vadd.f32 -1.0, %v12940_v40  ;;  %v5803_v49 = vmul.f32 1.442695, %v5631_v26  ;;  %v5634_v24 = vmin.f32 %v15187_v44, 0.0  ;;  %vm5503_vm6 = vcmp.gt.f32.partialorder %v15095_v50, 0.0 }
 0x243   : > { %v15208_v1 = vpop.f32.mrf.mxu0  ;;  %v12944_v21 = vpop.eup %12943  ;;  %v10392_v48 = vadd.f32 -1.0, %v12942_v12  ;;  %v5633_v46 = vmin.f32 %v15196_v9, 0.0  ;;  %v6903_v33 = vld [vmem:[#allocation2 + $0x131] ss:$2 sm:$0x7f]  ;;  %vm5506_vm7 = vcmp.gt.f32.partialorder %v15098_v36, 0.0  ;;  %v15235_v14 = vadd.f32 %v14866_v25, %v5259_v47 }
 0x244   : > { %v15210_v43 = vpop.f32.mrf.mxu1  ;;  %v6122_v59 = vsel %vm5502_vm4, %v15049_v62, %v10393_v58  ;;  %v10395_v37 = vadd.f32 -1.0, %v12944_v21  ;;  %12953 = vpow2.f32 %v5803_v49  ;;  %v5809_v51 = vmul.f32 1.442695, %v5634_v24  ;;  %6908 = vrot.lane.b32.xlu1 %v6903_v33, %s13189_s24  ;;  %v17733_v12 = vld [vmem:[#allocation22_spill] sm:$0xff] }
 0x245   : > { %v15218_v6 = vpop.f32.mrf.mxu0  ;;  %6247 = vst.msk [vmem:[#allocation2 + $0x158] sm:$0xff] %vm6203_vm2, %v6122_v59  ;;  %v6121_v27 = vsel %vm5501_vm1, %v15052_v2, %v10392_v48  ;;  %v5807_v35 = vmul.f32 1.442695, %v5633_v46  ;;  %v5636_v22 = vmin.f32 %v15199_v29, 0.0  ;;  %v5635_v10 = vmin.f32 %v15202_v7, 0.0  ;;  %v17734_v46 = vld [vmem:[#allocation23_spill] sm:$0xff] }
 0x246   : > { %v15220_v42 = vpop.f32.mrf.mxu1  ;;  %6246 = vst.msk [vmem:[#allocation2 + $0x150] sm:$0xff] %vm6203_vm2, %v6121_v27  ;;  %v6124_v62 = vsel %vm5504_vm5, %v15065_v11, %v10395_v37  ;;  %12955 = vpow2.f32 %v5809_v51  ;;  %v6691_v2 = vld [vmem:[#allocation2 + $0x130] ss:$2 sm:$0x7f]  ;;  %v3947_v55 = vadd.f32 %v15127_v20, %v17731_v41  ;;  %v17732_v11 = vld [vmem:[#allocation21_spill] sm:$0xff]  ;;  %vm5505_vm8 = vcmp.gt.f32.partialorder %v15116_v34, 0.0 }
 0x247   : > { %v15237_v32 = vpop.f32.mrf.mxu0  ;;  %v12946_v63 = vpop.eup %12945  ;;  %6249 = vst.msk [vmem:[#allocation2 + $0x168] sm:$0xff] %vm6203_vm2, %v6124_v62  ;;  %12957 = vpow2.f32 %v5807_v35  ;;  %v5813_v39 = vmul.f32 1.442695, %v5636_v22  ;;  %v3950_v45 = vadd.f32 %v15141_v54, %v17732_v11  ;;  %6696 = vrot.lane.b32.xlu0 %v6691_v2, %s13188_s23  ;;  %v5811_v19 = vmul.f32 1.442695, %v5635_v10 }
 0x248   : > { %v15239_v61 = vpop.f32.mrf.mxu1  ;;  %v12948_v56 = vpop.eup %12947  ;;  %v10394_v15 = vadd.f32 -1.0, %v12946_v63  ;;  %v5638_v23 = vmin.f32 %v15235_v14, 0.0  ;;  %v5258_v20 = vadd.f32 %v15129_v17, %v3947_v55  ;;  %v6491_v54 = vld [vmem:[#allocation2 + $0x141] ss:$2 sm:$0xff]  ;;  %v6359_v26 = vld [vmem:[#allocation2 + $0x140] ss:$2 sm:$0xff]  ;;  %v3949_v58 = vadd.f32 %v15156_v31, %v17733_v12 }
 0x249   : > { %v15249_v5 = vpop.f32.mrf.mxu0  ;;  %v10397_v53 = vadd.f32 -1.0, %v12948_v56  ;;  %12959 = vpow2.f32 %v5813_v39  ;;  %v5261_v8 = vadd.f32 %v15143_v57, %v3950_v45  ;;  %6362 = vst.msk [vmem:[#allocation3 + $0x4b] sm:$0xff] %vm6203_vm2, %v6359_v26  ;;  %v3952_v59 = vadd.f32 %v15173_v28, %v17734_v46  ;;  %v17735_v63 = vld [vmem:[#allocation24_spill] sm:$0xff]  ;;  %v17736_v39 = vld [vmem:[#allocation25_spill] sm:$0xff]  ;;  %v17737_v55 = vld [vmem:[#allocation26_spill] sm:$0xff] }
 0x24a   : > { %v15251_v3 = vpop.f32.mrf.mxu1  ;;  %v12950_v52 = vpop.eup %12949  ;;  %v6123_v60 = vsel %vm5503_vm6, %v15095_v50, %v10394_v15  ;;  %12961 = vpow2.f32 %v5811_v19  ;;  %v5817_v40 = vmul.f32 1.442695, %v5638_v23  ;;  %v15270_v50 = vadd.f32 %v14866_v25, %v5258_v20 }
 0x24b   : > { %v15260_v49 = vpop.f32.mrf.mxu0  ;;  %v12952_v17 = vpop.eup %12951  ;;  %6248 = vst.msk [vmem:[#allocation2 + $0x160] sm:$0xff] %vm6203_vm2, %v6123_v60  ;;  %v6126_v57 = vsel %vm5506_vm7, %v15098_v36, %v10397_v53  ;;  %v10396_v47 = vadd.f32 -1.0, %v12950_v52  ;;  %v15273_v21 = vadd.f32 %v14866_v25, %v5261_v8  ;;  %6496 = vrot.lane.b32.xlu0 %v6491_v54, %s13187_s22  ;;  %v5260_v48 = vadd.f32 %v15158_v18, %v3949_v58 }
 0x24c   : > { %v15262_v24 = vpop.f32.mrf.mxu1  ;;  %6251 = vst.msk [vmem:[#allocation2 + $0x178] sm:$0xff] %vm6203_vm2, %v6126_v57  ;;  %v10399_v31 = vadd.f32 -1.0, %v12952_v17  ;;  %12963 = vpow2.f32 %v5817_v40  ;;  %vm5508_vm10 = vcmp.gt.f32.partialorder %v15125_v4, 0.0  ;;  %vm5507_vm11 = vcmp.gt.f32.partialorder %v15170_v16, 0.0  ;;  %v17738_v57 = vld [vmem:[#allocation27_spill] sm:$0xff] }
 0x24d   : > { %v15280_v37 = vpop.f32.mrf.mxu0  ;;  %v6125_v51 = vsel %vm5505_vm8, %v15116_v34, %v10396_v47  ;;  %v5637_v33 = vmin.f32 %v15270_v50, 0.0  ;;  %v6493_v27 = vld [vmem:[#allocation2 + $0x151] ss:$2 sm:$0x7f]  ;;  %v5640_v28 = vmin.f32 %v15273_v21, 0.0  ;;  %v15294_v35 = vadd.f32 %v14866_v25, %v5260_v48 }
 0x24e   : > { %v15282_v36 = vpop.f32.mrf.mxu1  ;;  %6250 = vst.msk [vmem:[#allocation2 + $0x170] sm:$0xff] %vm6203_vm2, %v6125_v51  ;;  %v6128_v18 = vsel %vm5508_vm10, %v15125_v4, %v10399_v31  ;;  %v5263_v22 = vadd.f32 %v15175_v38, %v3952_v59  ;;  %6498 = vrot.lane.b32.xlu1 %v6493_v27, %s13187_s22  ;;  %v6361_v10 = vld [vmem:[#allocation2 + $0x150] ss:$2 sm:$0x7f]  ;;  %v3951_v4 = vadd.f32 %v15189_v30, %v17735_v63  ;;  %vm5510_vm12 = vcmp.gt.f32.partialorder %v15187_v44, 0.0 }
 0x24f   : > { %v15298_v34 = vpop.f32.mrf.mxu0  ;;  %6253 = vst.msk [vmem:[#allocation2 + $0x188] sm:$0xff] %vm6203_vm2, %v6128_v18  ;;  %v5815_v2 = vmul.f32 1.442695, %v5637_v33  ;;  %v3954_v41 = vadd.f32 %v15208_v1, %v17736_v39  ;;  %v3953_v11 = vadd.f32 %v15218_v6, %v17737_v55  ;;  %v5821_v38 = vmul.f32 1.442695, %v5640_v28 }
 0x250   : > { %v15300_v62 = vpop.f32.mrf.mxu1  ;;  %6363 = vst.msk [vmem:[#allocation3 + $0x53] sm:$0x7f] %vm6327_vm9, %v6361_v10  ;;  %v5639_v45 = vmin.f32 %v15294_v35, 0.0  ;;  %v15313_v56 = vadd.f32 %v14866_v25, %v5263_v22  ;;  %v5262_v1 = vadd.f32 %v15191_v0, %v3951_v4  ;;  %vm5509_vm13 = vcmp.gt.f32.partialorder %v15196_v9, 0.0 }
 0x251   : > { %v15315_v15 = vpop.f32.mrf.mxu0  ;;  %v12954_v30 = vpop.eup %12953  ;;  %12965 = vpow2.f32 %v5815_v2  ;;  %v5265_v6 = vadd.f32 %v15210_v43, %v3954_v41  ;;  %v5264_v23 = vadd.f32 %v15220_v42, %v3953_v11  ;;  %v3956_v47 = vadd.f32 %v15237_v32, %v17738_v57 }
 0x252   : > { %v15317_v19 = vpop.f32.mrf.mxu1  ;;  %v10398_v53 = vadd.f32 -1.0, %v12954_v30  ;;  %12967 = vpow2.f32 %v5821_v38  ;;  %v5819_v20 = vmul.f32 1.442695, %v5639_v45  ;;  %v6703_v8 = vld [vmem:[#allocation2 + $0x160] ss:$2 sm:$0xff]  ;;  %v5642_v60 = vmin.f32 %v15313_v56, 0.0 }
 0x253   : > { %v15323_v54 = vpop.f32.mrf.mxu0  ;;  %v12956_v52 = vpop.eup %12955  ;;  %v15329_v40 = vadd.f32 %v14866_v25, %v5262_v1  ;;  %v15332_v0 = vadd.f32 %v14866_v25, %v5265_v6  ;;  %v15335_v43 = vadd.f32 %v14866_v25, %v5264_v23  ;;  %6708 = vrot.lane.b32.xlu1 %v6703_v8, %s13188_s23  ;;  %v6915_v42 = vld [vmem:[#allocation2 + $0x161] ss:$2 sm:$0xff]  ;;  %vm5512_vm14 = vcmp.gt.f32.partialorder %v15199_v29, 0.0  ;;  %v17739_v30 = vld [vmem:[#allocation28_spill] sm:$0xff] }
 0x254   : > { %v15325_v26 = vpop.f32.mrf.mxu1  ;;  %v12958_v12 = vpop.eup %12957  ;;  %v6127_v58 = vsel %vm5507_vm11, %v15170_v16, %v10398_v53  ;;  %v10401_v17 = vadd.f32 -1.0, %v12956_v52  ;;  %12969 = vpow2.f32 %v5819_v20  ;;  %6920 = vrot.lane.b32.xlu0 %v6915_v42, %s13189_s24  ;;  %v5825_v59 = vmul.f32 1.442695, %v5642_v60  ;;  %v17740_v6 = vld [vmem:[#allocation29_spill] sm:$0xff]  ;;  %v17741_v60 = vld [vmem:[#allocation30_spill] sm:$0xff] }
 0x255   : > { %v15344_v31 = vpop.f32.mrf.mxu0  ;;  %6252 = vst.msk [vmem:[#allocation2 + $0x180] sm:$0xff] %vm6203_vm2, %v6127_v58  ;;  %v10400_v46 = vadd.f32 -1.0, %v12958_v12  ;;  %v5641_v51 = vmin.f32 %v15329_v40, 0.0  ;;  %vm5511_vm15 = vcmp.gt.f32.partialorder %v15202_v7, 0.0  ;;  %vm5514_vm0 = vcmp.gt.f32.partialorder %v15235_v14, 0.0  ;;  %v17742_v12 = vld [vmem:[#allocation31_spill] sm:$0xff] }
 0x256   : > { %v15346_v48 = vpop.f32.mrf.mxu1  ;;  %v12960_v16 = vpop.eup %12959  ;;  %v6130_v33 = vsel %vm5510_vm12, %v15187_v44, %v10401_v17  ;;  %v5644_v32 = vmin.f32 %v15332_v0, 0.0  ;;  %v6917_v27 = vld [vmem:[#allocation2 + $0x171] ss:$2 sm:$0x7f]  ;;  %12971 = vpow2.f32 %v5825_v59  ;;  %vm5513_vm3 = vcmp.gt.f32.partialorder %v15270_v50, 0.0 }
 0x257   : > { %v15357_v18 = vpop.f32.mrf.mxu0  ;;  %v12962_v22 = vpop.eup %12961  ;;  %6255 = vst.msk [vmem:[#allocation2 + $0x198] sm:$0xff] %vm6203_vm2, %v6130_v33  ;;  %v6129_v10 = vsel %vm5509_vm13, %v15196_v9, %v10400_v46  ;;  %v10403_v2 = vadd.f32 -1.0, %v12960_v16  ;;  %v5823_v44 = vmul.f32 1.442695, %v5641_v51  ;;  %6922 = vrot.lane.b32.xlu1 %v6917_v27, %s13189_s24  ;;  %v5643_v41 = vmin.f32 %v15335_v43, 0.0  ;;  %v17743_v17 = vld [vmem:[#allocation32_spill] sm:$0xff] }
 0x258   : > { %v15359_v28 = vpop.f32.mrf.mxu1  ;;  %v6705_v63 = vld [vmem:[#allocation2 + $0x170] ss:$2 sm:$0x7f]  ;;  %6254 = vst.msk [vmem:[#allocation2 + $0x190] sm:$0xff] %vm6203_vm2, %v6129_v10  ;;  %v10402_v4 = vadd.f32 -1.0, %v12962_v22  ;;  %v5267_v55 = vadd.f32 %v15239_v61, %v3956_v47  ;;  %v3955_v1 = vadd.f32 %v15249_v5, %v17739_v30  ;;  %v3958_v23 = vadd.f32 %v15260_v49, %v17740_v6 }
 0x259   : > { %v5829_v39 = vmul.f32 1.442695, %v5644_v32  ;;  %6710 = vrot.lane.b32.xlu0 %v6705_v63, %s13188_s23  ;;  %v15371_v11 = vpop.f32.mrf.mxu0  ;;  %v12964_v38 = vpop.eup %12963  ;;  %v6132_v45 = vsel %vm5512_vm14, %v15199_v29, %v10403_v2  ;;  %12973 = vpow2.f32 %v5823_v44  ;;  %v5827_v20 = vmul.f32 1.442695, %v5643_v41 }
 0x25a   : > { %v15373_v9 = vpop.f32.mrf.mxu1  ;;  %6257 = vst.msk [vmem:[#allocation2 + $0x1a8] sm:$0xff] %vm6203_vm2, %v6132_v45  ;;  %v6131_v61 = vsel %vm5511_vm15, %v15202_v7, %v10402_v4  ;;  %v10405_v53 = vadd.f32 -1.0, %v12964_v38  ;;  %v15392_v29 = vadd.f32 %v14866_v25, %v5267_v55  ;;  %v5266_v5 = vadd.f32 %v15251_v3, %v3955_v1 }
 0x25b   : > { %12975 = vpow2.f32 %v5829_v39  ;;  %v15386_v8 = vpop.f32.mrf.mxu0  ;;  %6256 = vst.msk [vmem:[#allocation2 + $0x1a0] sm:$0xff] %vm6203_vm2, %v6131_v61  ;;  %v5269_v49 = vadd.f32 %v15262_v24, %v3958_v23  ;;  %v3957_v42 = vadd.f32 %v15280_v37, %v17741_v60  ;;  %v3960_v58 = vadd.f32 %v15298_v34, %v17742_v12 }
 0x25c   : > { %v15388_v52 = vpop.f32.mrf.mxu1  ;;  %v6134_v7 = vsel %vm5514_vm0, %v15235_v14, %v10405_v53  ;;  %12977 = vpow2.f32 %v5827_v20  ;;  %v3959_v57 = vadd.f32 %v15315_v15, %v17743_v17  ;;  %v6505_v25 = vld [vmem:[#allocation2 + $0x181] ss:$2 sm:$0xff]  ;;  %v6365_v24 = vld [vmem:[#allocation2 + $0x180] ss:$2 sm:$0xff]  ;;  %vm5516_vm4 = vcmp.gt.f32.partialorder %v15273_v21, 0.0 }
 0x25d   : > { %v15405_v47 = vpop.f32.mrf.mxu0  ;;  %6259 = vst.msk [vmem:[#allocation2 + $0x1b8] sm:$0xff] %vm6203_vm2, %v6134_v7  ;;  %v5646_v37 = vmin.f32 %v15392_v29, 0.0  ;;  %v15415_v14 = vld [vmem:[%s17627_s2] ss:$0 sm:$0xff]  ;;  %6510 = vrot.lane.b32.xlu0 %v6505_v25, %s13187_s22  ;;  %6368 = vst.msk [vmem:[#allocation3 + $0x5a] sm:$0xff] %vm6203_vm2, %v6365_v24  ;;  %vm5515_vm1 = vcmp.gt.f32.partialorder %v15294_v35, 0.0  ;;  %v5268_v59 = vadd.f32 %v15282_v36, %v3957_v42  ;;  %v5271_v51 = vadd.f32 %v15300_v62, %v3960_v58 }
 0x25e   : > { %v15407_v3 = vpop.f32.mrf.mxu1  ;;  %v15418_v34 = vadd.f32 %v15415_v14, %v5266_v5  ;;  %v15421_v15 = vadd.f32 %v15415_v14, %v5269_v49  ;;  %v12966_v46 = vpop.eup %12965  ;;  %vm5518_vm5 = vcmp.gt.f32.partialorder %v15313_v56, 0.0  ;;  %v5270_v2 = vadd.f32 %v15317_v19, %v3959_v57  ;;  %v17744_v36 = vld [vmem:[#allocation33_spill] sm:$0xff] }
 0x25f   : > { %v15429_v16 = vpop.f32.mrf.mxu0  ;;  %v12968_v32 = vpop.eup %12967  ;;  %v10404_v27 = vadd.f32 -1.0, %v12966_v46  ;;  %v5833_v22 = vmul.f32 1.442695, %v5646_v37  ;;  %v15437_v4 = vadd.f32 %v15415_v14, %v5268_v59  ;;  %v3962_v62 = vadd.f32 %v15323_v54, %v17744_v36  ;;  %v6507_v39 = vld [vmem:[#allocation2 + $0x191] ss:$2 sm:$0x7f] }
 0x260   : > { %v15431_v33 = vpop.f32.mrf.mxu1  ;;  %v5645_v10 = vmin.f32 %v15418_v34, 0.0  ;;  %v10407_v44 = vadd.f32 -1.0, %v12968_v32  ;;  %v5648_v63 = vmin.f32 %v15421_v15, 0.0  ;;  %v15449_v30 = vadd.f32 %v15415_v14, %v5271_v51  ;;  %6512 = vrot.lane.b32.xlu1 %v6507_v39, %s13187_s22  ;;  %v6367_v1 = vld [vmem:[#allocation2 + $0x190] ss:$2 sm:$0x7f] }
 0x261   : > { %v15441_v41 = vpop.f32.mrf.mxu0  ;;  %v12970_v38 = vpop.eup %12969  ;;  %v6133_v45 = vsel %vm5513_vm3, %v15270_v50, %v10404_v27  ;;  %12979 = vpow2.f32 %v5833_v22  ;;  %vm5517_vm6 = vcmp.gt.f32.partialorder %v15329_v40, 0.0  ;;  %6369 = vst.msk [vmem:[#allocation3 + $0x62] sm:$0x7f] %vm6327_vm9, %v6367_v1  ;;  %vm5520_vm7 = vcmp.gt.f32.partialorder %v15332_v0, 0.0  ;;  %v17745_v37 = vld [vmem:[#allocation34_spill] sm:$0xff]  ;;  %v17746_v51 = vld [vmem:[#allocation35_spill] sm:$0xff] }
 0x262   : > { %v15443_v55 = vpop.f32.mrf.mxu1  ;;  %v5831_v19 = vmul.f32 1.442695, %v5645_v10  ;;  %6258 = vst.msk [vmem:[#allocation2 + $0x1b0] sm:$0xff] %vm6203_vm2, %v6133_v45  ;;  %v6136_v54 = vsel %vm5516_vm4, %v15273_v21, %v10407_v44  ;;  %v10406_v6 = vadd.f32 -1.0, %v12970_v38  ;;  %v5837_v23 = vmul.f32 1.442695, %v5648_v63 }
 0x263   : > { %v6717_v61 = vld [vmem:[#allocation2 + $0x1a0] ss:$2 sm:$0xff]  ;;  %v15457_v50 = vpop.f32.mrf.mxu0  ;;  %6261 = vst.msk [vmem:[#allocation2 + $0x1c8] sm:$0xff] %vm6203_vm2, %v6136_v54  ;;  %v5647_v20 = vmin.f32 %v15437_v4, 0.0  ;;  %v5650_v21 = vmin.f32 %v15449_v30, 0.0  ;;  %v15466_v49 = vpop.permute.xlu0 %6424  ;;  %v15472_v7 = vadd.f32 %v15415_v14, %v5270_v2  ;;  %v5273_v12 = vadd.f32 %v15325_v26, %v3962_v62 }
 0x264   : > { %v15459_v53 = vpop.f32.mrf.mxu1  ;;  %12981 = vpow2.f32 %v5831_v19  ;;  %v6929_v5 = vld [vmem:[#allocation2 + $0x1a1] ss:$2 sm:$0xff]  ;;  %v12972_v60 = vpop.eup %12971  ;;  %v6135_v42 = vsel %vm5515_vm1, %v15294_v35, %v10406_v6  ;;  %v3961_v35 = vadd.f32 %v15344_v31, %v17745_v37  ;;  %6722 = vrot.lane.b32.xlu1 %v6717_v61, %s13188_s23  ;;  %vm5519_vm8 = vcmp.gt.f32.partialorder %v15335_v43, 0.0  ;;  %v17747_v6 = vld [vmem:[#allocation36_spill] sm:$0xff] }
 0x265   : > { %12983 = vpow2.f32 %v5837_v23  ;;  %6934 = vrot.lane.b32.xlu0 %v6929_v5, %s13189_s24  ;;  %v15476_v58 = vpop.f32.mrf.mxu0  ;;  %6260 = vst.msk [vmem:[#allocation2 + $0x1c0] sm:$0xff] %vm6203_vm2, %v6135_v42  ;;  %v10409_v57 = vadd.f32 -1.0, %v12972_v60  ;;  %v5835_v25 = vmul.f32 1.442695, %v5647_v20  ;;  %v5841_v24 = vmul.f32 1.442695, %v5650_v21 }
 0x266   : > { %v15478_v17 = vpop.f32.mrf.mxu1  ;;  %v12974_v46 = vpop.eup %12973  ;;  %v5649_v26 = vmin.f32 %v15472_v7, 0.0  ;;  %v15487_v59 = vadd.f32 %v15415_v14, %v5273_v12  ;;  %v3964_v32 = vadd.f32 %v15357_v18, %v17746_v51  ;;  %v5272_v44 = vadd.f32 %v15346_v48, %v3961_v35  ;;  %v17748_v12 = vld [vmem:[#allocation37_spill] sm:$0xff] }
 0x267   : > { %v15491_v27 = vpop.f32.mrf.mxu0  ;;  %v6138_v31 = vsel %vm5518_vm5, %v15313_v56, %v10409_v57  ;;  %v10408_v2 = vadd.f32 -1.0, %v12974_v46  ;;  %12985 = vpow2.f32 %v5835_v25  ;;  %vm5522_vm10 = vcmp.gt.f32.partialorder %v15392_v29, 0.0  ;;  %v17749_v25 = vld [vmem:[#allocation38_spill] sm:$0xff] }
 0x268   : > { %v15493_v22 = vpop.f32.mrf.mxu1  ;;  %v12976_v10 = vpop.eup %12975  ;;  %6263 = vst.msk [vmem:[#allocation2 + $0x1d8] sm:$0xff] %vm6203_vm2, %v6138_v31  ;;  %12987 = vpow2.f32 %v5841_v24  ;;  %v5839_v18 = vmul.f32 1.442695, %v5649_v26  ;;  %v5652_v56 = vmin.f32 %v15487_v59, 0.0  ;;  %v15508_v38 = vadd.f32 %v15415_v14, %v5272_v44 }
 0x269   : > { %v10411_v63 = vadd.f32 -1.0, %v12976_v10  ;;  %v15501_v36 = vpop.f32.mrf.mxu0  ;;  %v12978_v62 = vpop.eup %12977  ;;  %v6137_v39 = vsel %vm5517_vm6, %v15329_v40, %v10408_v2  ;;  %v5275_v48 = vadd.f32 %v15359_v28, %v3964_v32  ;;  %v6931_v45 = vld [vmem:[#allocation2 + $0x1b1] ss:$2 sm:$0x7f]  ;;  %v3963_v40 = vadd.f32 %v15371_v11, %v17747_v6 }
 0x26a   : > { %v15511_v19 = vpop.f32.mrf.mxu1  ;;  %6262 = vst.msk [vmem:[#allocation2 + $0x1d0] sm:$0xff] %vm6203_vm2, %v6137_v39  ;;  %v10410_v54 = vadd.f32 -1.0, %v12978_v62  ;;  %12989 = vpow2.f32 %v5839_v18  ;;  %6936 = vrot.lane.b32.xlu1 %v6931_v45, %s13189_s24  ;;  %v6719_v23 = vld [vmem:[#allocation2 + $0x1b0] ss:$2 sm:$0x7f]  ;;  %v15520_v61 = vpop.permute.xlu0 %6426  ;;  %vm5521_vm11 = vcmp.gt.f32.partialorder %v15418_v34, 0.0  ;;  %v3966_v57 = vadd.f32 %v15386_v8, %v17748_v12 }
 0x26b   : > { %v6140_v1 = vsel %vm5520_vm7, %v15332_v0, %v10411_v63  ;;  %v15522_v28 = vpop.f32.mrf.mxu0  ;;  %v5845_v20 = vmul.f32 1.442695, %v5652_v56  ;;  %v5651_v21 = vmin.f32 %v15508_v38, 0.0  ;;  %v15528_v0 = vadd.f32 %v15415_v14, %v5275_v48  ;;  %6724 = vrot.lane.b32.xlu0 %v6719_v23, %s13188_s23  ;;  %v17750_v10 = vld [vmem:[#allocation39_spill] sm:$0xff]  ;;  %v17751_v56 = vld [vmem:[#allocation40_spill] sm:$0xff] }
 0x26c   : > { %6265 = vst.msk [vmem:[#allocation2 + $0x1e8] sm:$0xff] %vm6203_vm2, %v6140_v1  ;;  %v15531_v11 = vpop.f32.mrf.mxu1  ;;  %v15533_v5 = vpop.permute.xlu1 %6636  ;;  %v6139_v60 = vsel %vm5519_vm8, %v15335_v43, %v10410_v54  ;;  %v5274_v42 = vadd.f32 %v15373_v9, %v3963_v40  ;;  %v3965_v24 = vadd.f32 %v15405_v47, %v17749_v25  ;;  %v6519_v37 = vld [vmem:[#allocation2 + $0x1c1] ss:$2 sm:$0xff]  ;;  %v6371_v46 = vld [vmem:[#allocation2 + $0x1c0] ss:$2 sm:$0xff]  ;;  %vm5524_vm12 = vcmp.gt.f32.partialorder %v15421_v15, 0.0 }
 0x26d   : > { %v15543_v35 = vpop.f32.mrf.mxu0  ;;  %6264 = vst.msk [vmem:[#allocation2 + $0x1e0] sm:$0xff] %vm6203_vm2, %v6139_v60  ;;  %12991 = vpow2.f32 %v5845_v20  ;;  %v5843_v26 = vmul.f32 1.442695, %v5651_v21  ;;  %v5654_v43 = vmin.f32 %v15528_v0, 0.0  ;;  %6374 = vst.msk [vmem:[#allocation3 + $0x69] sm:$0xff] %vm6203_vm2, %v6371_v46  ;;  %v5277_v47 = vadd.f32 %v15388_v52, %v3966_v57 }
 0x26e   : > { %v15548_v51 = vpop.f32.mrf.mxu1  ;;  %v12980_v9 = vpop.eup %12979  ;;  %v15552_v8 = vadd.f32 %v15415_v14, %v5274_v42  ;;  %v5276_v32 = vadd.f32 %v15407_v3, %v3965_v24  ;;  %v3968_v31 = vadd.f32 %v15429_v16, %v17750_v10  ;;  %vm5523_vm13 = vcmp.gt.f32.partialorder %v15437_v4, 0.0 }
 0x26f   : > { %v15558_v2 = vpop.f32.mrf.mxu0  ;;  %v10413_v44 = vadd.f32 -1.0, %v12980_v9  ;;  %12993 = vpow2.f32 %v5843_v26  ;;  %v5849_v63 = vmul.f32 1.442695, %v5654_v43  ;;  %6524 = vrot.lane.b32.xlu0 %v6519_v37, %s13187_s22  ;;  %v15568_v3 = vadd.f32 %v15415_v14, %v5277_v47  ;;  %v15581_v20 = vpop.permute.xlu0 %6848 }
 0x270   : > { %v15562_v18 = vpop.f32.mrf.mxu1  ;;  %v15564_v62 = vpop.permute.xlu1 %6638  ;;  %v5653_v52 = vmin.f32 %v15552_v8, 0.0  ;;  %v15571_v16 = vadd.f32 %v15415_v14, %v5276_v32  ;;  %v3967_v48 = vadd.f32 %v15441_v41, %v17751_v56  ;;  %v5279_v40 = vadd.f32 %v15431_v33, %v3968_v31  ;;  %v17752_v56 = vld [vmem:[#allocation41_spill] sm:$0xff] }
 0x271   : > { %v12982_v39 = vpop.eup %12981  ;;  %v15575_v45 = vpop.f32.mrf.mxu0  ;;  %v6142_v54 = vsel %vm5522_vm10, %v15392_v29, %v10413_v44  ;;  %12995 = vpow2.f32 %v5849_v63  ;;  %v6521_v23 = vld [vmem:[#allocation2 + $0x1d1] ss:$2 sm:$0x7f]  ;;  %vm5526_vm14 = vcmp.gt.f32.partialorder %v15449_v30, 0.0  ;;  %v5656_v42 = vmin.f32 %v15568_v3, 0.0 }
 0x272   : > { %v12984_v1 = vpop.eup %12983  ;;  %v10412_v6 = vadd.f32 -1.0, %v12982_v39  ;;  %v15583_v21 = vpop.f32.mrf.mxu1  ;;  %6267 = vst.msk [vmem:[#allocation2 + $0x1f8] sm:$0xff] %vm6203_vm2, %v6142_v54  ;;  %v5847_v41 = vmul.f32 1.442695, %v5653_v52  ;;  %6526 = vrot.lane.b32.xlu1 %v6521_v23, %s13187_s22  ;;  %vm5525_vm15 = vcmp.gt.f32.partialorder %v15472_v7, 0.0  ;;  %v5655_v12 = vmin.f32 %v15571_v16, 0.0 }
 0x273   : > { %v10415_v60 = vadd.f32 -1.0, %v12984_v1  ;;  %v15589_v29 = vpop.f32.mrf.mxu0  ;;  %v15597_v57 = vadd.f32 %v15415_v14, %v5279_v40  ;;  %v6373_v37 = vld [vmem:[#allocation2 + $0x1d0] ss:$2 sm:$0x7f]  ;;  %v5278_v43 = vadd.f32 %v15443_v55, %v3967_v48  ;;  %vm5528_vm0 = vcmp.gt.f32.partialorder %v15487_v59, 0.0 }
 0x274   : > { %v6141_v33 = vsel %vm5521_vm11, %v15418_v34, %v10412_v6  ;;  %v15599_v25 = vpop.f32.mrf.mxu1  ;;  %v15601_v24 = vpop.permute.xlu1 %6850  ;;  %12997 = vpow2.f32 %v5847_v41  ;;  %v5853_v34 = vmul.f32 1.442695, %v5656_v42  ;;  %v6731_v9 = vld [vmem:[#allocation2 + $0x1e0] ss:$2 sm:$0xff]  ;;  %v6943_v47 = vld [vmem:[#allocation2 + $0x1e1] ss:$2 sm:$0xff]  ;;  %v3970_v48 = vadd.f32 %v15457_v50, %v17752_v56 }
 0x275   : > { %v12986_v46 = vpop.eup %12985  ;;  %6266 = vst.msk [vmem:[#allocation2 + $0x1f0] sm:$0xff] %vm6203_vm2, %v6141_v33  ;;  %v6144_v26 = vsel %vm5524_vm12, %v15421_v15, %v10415_v60  ;;  %v15608_v32 = vpop.f32.mrf.mxu0  ;;  %v5851_v44 = vmul.f32 1.442695, %v5655_v12  ;;  %v5658_v63 = vmin.f32 %v15597_v57, 0.0  ;;  %6948 = vrot.lane.b32.xlu0 %v6943_v47, %s13189_s24  ;;  %v15618_v52 = vadd.f32 %v15415_v14, %v5278_v43  ;;  %v17753_v12 = vld [vmem:[#allocation42_spill] sm:$0xff] }
 0x276   : > { %6375 = vst.msk [vmem:[#allocation3 + $0x71] sm:$0x7f] %vm6327_vm9, %v6373_v37  ;;  %v12988_v10 = vpop.eup %12987  ;;  %v10414_v31 = vadd.f32 -1.0, %v12986_v46  ;;  %v6441_v15 = vpop.permute.xlu0 %6440  ;;  %12999 = vpow2.f32 %v5853_v34  ;;  %6736 = vrot.lane.b32.xlu1 %v6731_v9, %s13188_s23  ;;  %vm6430_vm3 = vcmask 130112   ;;  %vm5527_vm4 = vcmp.gt.f32.partialorder %v15508_v38, 0.0  ;;  %v17754_v37 = vld [vmem:[#allocation43_spill] sm:$0xff] }
 0x277   : > { %6269 = vst.msk [vmem:[#allocation2 + $0x208] sm:$0xff] %vm6203_vm2, %v6144_v26  ;;  %v15615_v39 = vpop.f32.mrf.mxu1  ;;  %v10417_v55 = vadd.f32 -1.0, %v12988_v10  ;;  %v15623_v1 = vpop.f32.mrf.mxu0  ;;  %13001 = vpow2.f32 %v5851_v44  ;;  %v5857_v40 = vmul.f32 1.442695, %v5658_v63  ;;  %v5657_v42 = vmin.f32 %v15618_v52, 0.0  ;;  %v17755_v9 = vld [vmem:[#allocation44_spill] sm:$0xff] }
 0x278   : > { %v12990_v54 = vpop.eup %12989  ;;  %v6143_v6 = vsel %vm5523_vm13, %v15437_v4, %v10414_v31  ;;  %v6443_v60 = vpop.permute.xlu1 %6442  ;;  %6431 = vst.msk [vmem:[#allocation3] sm:$0xff] %vm6430_vm3, %v15466_v49  ;;  %6446 = vst.msk [vmem:[#allocation3 + $0xf] sm:$0xff] %vm6430_vm3, %v6441_v15  ;;  %v5281_v33 = vadd.f32 %v15459_v53, %v3970_v48  ;;  %v3972_v46 = vadd.f32 %v15491_v27, %v17754_v37  ;;  %vm6432_vm1 = vcmask 129088   ;;  %v17756_v15 = vld [vmem:[#allocation45_spill] sm:$0xff] }
 0x279   : > { %v15628_v23 = vpop.f32.mrf.mxu1  ;;  %6268 = vst.msk [vmem:[#allocation2 + $0x200] sm:$0xff] %vm6203_vm2, %v6143_v6  ;;  %v6146_v50 = vsel %vm5526_vm14, %v15449_v30, %v10417_v55  ;;  %v10416_v41 = vadd.f32 -1.0, %v12990_v54  ;;  %v15639_v4 = vpop.f32.mrf.mxu0  ;;  %13003 = vpow2.f32 %v5857_v40  ;;  %v3969_v30 = vadd.f32 %v15476_v58, %v17753_v12 }
 0x27a   : > { %6271 = vst.msk [vmem:[#allocation2 + $0x218] sm:$0xff] %vm6203_vm2, %v6146_v50  ;;  %v12992_v34 = vpop.eup %12991  ;;  %v5855_v43 = vmul.f32 1.442695, %v5657_v42  ;;  %v3971_v47 = vadd.f32 %v15501_v36, %v17755_v9  ;;  %v15658_v58 = vadd.f32 %v15415_v14, %v5281_v33  ;;  %v5283_v31 = vadd.f32 %v15493_v22, %v3972_v46 }
 0x27b   : > { %v15647_v26 = vpop.f32.mrf.mxu1  ;;  %v6145_v49 = vsel %vm5525_vm15, %v15472_v7, %v10416_v41  ;;  %v15654_v10 = vpop.f32.mrf.mxu0  ;;  %v10419_v53 = vadd.f32 -1.0, %v12992_v34  ;;  %v5280_v27 = vadd.f32 %v15478_v17, %v3969_v30  ;;  %6433 = vst.msk [vmem:[#allocation3 + $0x8] sm:$0x7f] %vm6432_vm1, %v15520_v61  ;;  %6447 = vst.msk [vmem:[#allocation3 + $0x17] sm:$0x7f] %vm6432_vm1, %v6443_v60  ;;  %v3974_v55 = vadd.f32 %v15522_v28, %v17756_v15 }
 0x27c   : > { %6270 = vst.msk [vmem:[#allocation2 + $0x210] sm:$0xff] %vm6203_vm2, %v6145_v49  ;;  %v6733_v7 = vld [vmem:[#allocation2 + $0x1f0] ss:$2 sm:$0x7f]  ;;  %v12994_v36 = vpop.eup %12993  ;;  %13005 = vpow2.f32 %v5855_v43  ;;  %v5282_v63 = vadd.f32 %v15511_v19, %v3971_v47  ;;  %vm6642_vm5 = vcmask 195712   ;;  %v6653_v17 = vpop.permute.xlu1 %6652  ;;  %vm5530_vm6 = vcmp.gt.f32.partialorder %v15528_v0, 0.0 }
 0x27d   : > { %v15665_v44 = vpop.f32.mrf.mxu1  ;;  %6738 = vrot.lane.b32.xlu1 %v6733_v7, %s13188_s23  ;;  %v15671_v22 = vpop.f32.mrf.mxu0  ;;  %v6148_v61 = vsel %vm5528_vm0, %v15487_v59, %v10419_v53  ;;  %v10418_v56 = vadd.f32 -1.0, %v12994_v36  ;;  %v5660_v48 = vmin.f32 %v15658_v58, 0.0  ;;  %6643 = vst.msk [vmem:[#allocation3] sm:$0xff] %vm6642_vm5, %v15533_v5  ;;  %6658 = vst.msk [vmem:[#allocation3 + $0xf] sm:$0xff] %vm6642_vm5, %v6653_v17  ;;  %v15685_v6 = vadd.f32 %v15415_v14, %v5280_v27 }
 0x27e   : > { %v6865_v19 = vpop.permute.xlu0 %6864  ;;  %v12996_v54 = vpop.eup %12995  ;;  %6273 = vst.msk [vmem:[#allocation2 + $0x228] sm:$0xff] %vm6203_vm2, %v6148_v61  ;;  %v15688_v59 = vadd.f32 %v15415_v14, %v5283_v31  ;;  %v15691_v40 = vadd.f32 %v15415_v14, %v5282_v63  ;;  %v5285_v60 = vadd.f32 %v15531_v11, %v3974_v55  ;;  %v6945_v5 = vld [vmem:[#allocation2 + $0x1f1] ss:$2 sm:$0x7f]  ;;  %vm6854_vm7 = vcmask 261312   ;;  %v17757_v63 = vld [vmem:[#allocation46_spill] sm:$0xff] }
 0x27f   : > { %v15681_v28 = vpop.f32.mrf.mxu1  ;;  %v15694_v50 = vpop.f32.mrf.mxu0  ;;  %v6147_v41 = vsel %vm5527_vm4, %v15508_v38, %v10418_v56  ;;  %v10421_v42 = vadd.f32 -1.0, %v12996_v54  ;;  %v5861_v33 = vmul.f32 1.442695, %v5660_v48  ;;  %vm5529_vm8 = vcmp.gt.f32.partialorder %v15552_v8, 0.0  ;;  %6855 = vst.msk [vmem:[#allocation3] sm:$0xff] %vm6854_vm7, %v15581_v20  ;;  %6870 = vst.msk [vmem:[#allocation3 + $0xf] sm:$0xff] %vm6854_vm7, %v6865_v19 }
 0x280   : > { %v6533_v12 = vld [vmem:[#allocation2 + $0x201] ss:$2 sm:$0xff]  ;;  %6272 = vst.msk [vmem:[#allocation2 + $0x220] sm:$0xff] %vm6203_vm2, %v6147_v41  ;;  %vm5532_vm10 = vcmp.gt.f32.partialorder %v15568_v3, 0.0  ;;  %v5659_v11 = vmin.f32 %v15685_v6, 0.0  ;;  %v5662_v37 = vmin.f32 %v15688_v59, 0.0  ;;  %v15723_v27 = vadd.f32 %v15415_v14, %v5285_v60 }
 0x281   : > { %v15699_v30 = vpop.f32.mrf.mxu1  ;;  %6950 = vrot.lane.b32.xlu1 %v6945_v5, %s13189_s24  ;;  %6538 = vrot.lane.b32.xlu0 %v6533_v12, %s13187_s22  ;;  %v15711_v38 = vpop.f32.mrf.mxu0  ;;  %v6377_v46 = vld [vmem:[#allocation2 + $0x200] ss:$2 sm:$0xff]  ;;  %v6150_v49 = vsel %vm5530_vm6, %v15528_v0, %v10421_v42  ;;  %vm5531_vm11 = vcmp.gt.f32.partialorder %v15571_v16, 0.0  ;;  %13007 = vpow2.f32 %v5861_v33  ;;  %v5661_v43 = vmin.f32 %v15691_v40, 0.0  ;;  %v17758_v55 = vld [vmem:[#allocation47_spill] sm:$0xff] }
 0x282   : > { %v12998_v34 = vpop.eup %12997  ;;  %6380 = vst.msk [vmem:[#allocation3 + $0x78] sm:$0xff] %vm6203_vm2, %v6377_v46  ;;  %6275 = vst.msk [vmem:[#allocation2 + $0x238] sm:$0xff] %vm6203_vm2, %v6150_v49  ;;  %v5859_v47 = vmul.f32 1.442695, %v5659_v11  ;;  %v5865_v53 = vmul.f32 1.442695, %v5662_v37  ;;  %v6655_v31 = vpop.permute.xlu0 %6654  ;;  %v3973_v15 = vadd.f32 %v15543_v35, %v17757_v63  ;;  %v3976_v17 = vadd.f32 %v15558_v2, %v17758_v55 }
 0x283   : > { %v15718_v20 = vpop.f32.mrf.mxu1  ;;  %v10420_v9 = vadd.f32 -1.0, %v12998_v34  ;;  %v15725_v7 = vpop.f32.mrf.mxu0  ;;  %v5863_v36 = vmul.f32 1.442695, %v5661_v43  ;;  %vm6644_vm12 = vcmask 194688   ;;  %vm5534_vm13 = vcmp.gt.f32.partialorder %v15597_v57, 0.0  ;;  %v17759_v11 = vld [vmem:[#allocation48_spill] sm:$0xff] }
 0x284   : > { %v13000_v0 = vpop.eup %12999  ;;  %v6535_v61 = vld [vmem:[#allocation2 + $0x211] ss:$2 sm:$0x7f]  ;;  %13009 = vpow2.f32 %v5859_v47  ;;  %6645 = vst.msk [vmem:[#allocation3 + $0x8] sm:$0x7f] %vm6644_vm12, %v15564_v62  ;;  %v5284_v5 = vadd.f32 %v15548_v51, %v3973_v15  ;;  %v6867_v41 = vpop.permute.xlu1 %6866  ;;  %v5287_v12 = vadd.f32 %v15562_v18, %v3976_v17  ;;  %v3975_v37 = vadd.f32 %v15575_v45, %v17759_v11 }
 0x285   : > { %v15731_v56 = vpop.f32.mrf.mxu1  ;;  %v13002_v48 = vpop.eup %13001  ;;  %v6149_v19 = vsel %vm5529_vm8, %v15552_v8, %v10420_v9  ;;  %v10423_v54 = vadd.f32 -1.0, %v13000_v0  ;;  %6540 = vrot.lane.b32.xlu1 %v6535_v61, %s13187_s22  ;;  %6659 = vst.msk [vmem:[#allocation3 + $0x17] sm:$0x7f] %vm6644_vm12, %v6655_v31  ;;  %v6379_v2 = vld [vmem:[#allocation2 + $0x210] ss:$2 sm:$0x7f]  ;;  %13011 = vpow2.f32 %v5865_v53 }
 0x286   : > { %v15741_v35 = vpop.f32.mrf.mxu0  ;;  %6274 = vst.msk [vmem:[#allocation2 + $0x230] sm:$0xff] %vm6203_vm2, %v6149_v19  ;;  %v10422_v60 = vadd.f32 -1.0, %v13002_v48  ;;  %v5664_v8 = vmin.f32 %v15723_v27, 0.0  ;;  %v13004_v62 = vpop.eup %13003  ;;  %13013 = vpow2.f32 %v5863_v36  ;;  %v15762_v9 = vadd.f32 %v15415_v14, %v5284_v5  ;;  %v17760_v53 = vld [vmem:[#allocation49_spill] sm:$0xff]  ;;  %v17761_v48 = vld [vmem:[#allocation50_spill] sm:$0xff] }
 0x287   : > { %v15746_v42 = vpop.f32.mrf.mxu1  ;;  %6381 = vst.msk [vmem:[#allocation3 + $0x80] sm:$0x7f] %vm6327_vm9, %v6379_v2  ;;  %v6152_v33 = vsel %vm5532_vm10, %v15568_v3, %v10423_v54  ;;  %v6455_v46 = vpop.permute.xlu0 %6454  ;;  %v10425_v49 = vadd.f32 -1.0, %v13004_v62  ;;  %v6745_v3 = vld [vmem:[#allocation2 + $0x220] ss:$2 sm:$0xff]  ;;  %v15769_v45 = vadd.f32 %v15415_v14, %v5287_v12  ;;  %v5286_v47 = vadd.f32 %v15583_v21, %v3975_v37 }
 0x288   : > { %v15755_v34 = vpop.f32.mrf.mxu0  ;;  %6277 = vst.msk [vmem:[#allocation2 + $0x248] sm:$0xff] %vm6203_vm2, %v6152_v33  ;;  %v6151_v51 = vsel %vm5531_vm11, %v15571_v16, %v10422_v60  ;;  %v5869_v43 = vmul.f32 1.442695, %v5664_v8  ;;  %v3978_v16 = vadd.f32 %v15589_v29, %v17760_v53  ;;  %vm6856_vm14 = vcmask 260288   ;;  %6750 = vrot.lane.b32.xlu0 %v6745_v3, %s13188_s23  ;;  %v7054_v54 = vld [vmem:[#allocation3] sm:$0xff] }
 0x289   : > { %6460 = vst.msk [vmem:[#allocation3 + $0x1e] sm:$0xff] %vm6430_vm3, %v6455_v46  ;;  %v15765_v18 = vpop.f32.mrf.mxu1  ;;  %v13006_v0 = vpop.eup %13005  ;;  %v6154_v36 = vsel %vm5534_vm13, %v15597_v57, %v10425_v49  ;;  %v5663_v63 = vmin.f32 %v15762_v9, 0.0  ;;  %vm5533_vm15 = vcmp.gt.f32.partialorder %v15618_v52, 0.0  ;;  %v5666_v55 = vmin.f32 %v15769_v45, 0.0 }
 0x28a   : > { %6276 = vst.msk [vmem:[#allocation2 + $0x240] sm:$0xff] %vm6203_vm2, %v6151_v51  ;;  %v15775_v31 = vpop.f32.mrf.mxu0  ;;  %13015 = vpow2.f32 %v5869_v43  ;;  %v6457_v21 = vpop.permute.xlu1 %6456  ;;  %6279 = vst.msk [vmem:[#allocation2 + $0x258] sm:$0xff] %vm6203_vm2, %v6154_v36  ;;  %v10424_v15 = vadd.f32 -1.0, %v13006_v0  ;;  %v15790_v57 = vadd.f32 %v15415_v14, %v5286_v47  ;;  %v5289_v61 = vadd.f32 %v15599_v25, %v3978_v16  ;;  %v17762_v51 = vld [vmem:[#allocation51_spill] sm:$0xff]  ;;  %v17763_v43 = vld [vmem:[#allocation52_spill] sm:$0xff] }
 0x28b   : > { %6857 = vst.msk [vmem:[#allocation3 + $0x8] sm:$0x7f] %vm6856_vm14, %v15601_v24  ;;  %6871 = vst.msk [vmem:[#allocation3 + $0x17] sm:$0x7f] %vm6856_vm14, %v6867_v41  ;;  %v15784_v29 = vpop.f32.mrf.mxu1  ;;  %v5867_v24 = vmul.f32 1.442695, %v5663_v63  ;;  %v3977_v19 = vadd.f32 %v15608_v32, %v17761_v48  ;;  %v3980_v49 = vadd.f32 %v15623_v1, %v17762_v51  ;;  %v3979_v3 = vadd.f32 %v15639_v4, %v17763_v43 }
 0x28c   : > { %6461 = vst.msk [vmem:[#allocation3 + $0x26] sm:$0x7f] %vm6432_vm1, %v6457_v21  ;;  %v15793_v17 = vpop.f32.mrf.mxu0  ;;  %v6153_v60 = vsel %vm5533_vm15, %v15618_v52, %v10424_v15  ;;  %v5873_v8 = vmul.f32 1.442695, %v5666_v55  ;;  %v5665_v5 = vmin.f32 %v15790_v57, 0.0  ;;  %vm13190_vm0 = vmmov 0  }
 0x28d   : > { %v15798_v2 = vpop.f32.mrf.mxu1  ;;  %12339 = vmatprep.mubr.msk.f32.mxu1 %vm13190_vm0, %v17691_v13  ;;  %12250 = vmatprep.mubr.msk.f32.mxu0 %vm13190_vm0, %v17691_v13  ;;  %v6957_v41 = vld [vmem:[#allocation2 + $0x221] ss:$2 sm:$0xff]  ;;  %v10566_v32 = vld [vmem:[%s17628_s3 + $0x78] sm:$0xff]  ;;  %6278 = vst.msk [vmem:[#allocation2 + $0x250] sm:$0xff] %vm6203_vm2, %v6153_v60  ;;  %13017 = vpow2.f32 %v5867_v24  ;;  %v15813_v52 = vadd.f32 %v15415_v14, %v5289_v61  ;;  %v5288_v62 = vadd.f32 %v15615_v39, %v3977_v19  ;;  %vm7117_vm4 = vcmask 261120  }
 0x28e   : > { %v15806_v25 = vpop.f32.mrf.mxu0  ;;  %v6959_v33 = vld [vmem:[#allocation2 + $0x231] ss:$2 sm:$0x7f]  ;;  %6962 = vrot.lane.b32.xlu0 %v6957_v41, %s13189_s24  ;;  %v6667_v12 = vpop.permute.xlu1 %6666  ;;  %13019 = vpow2.f32 %v5873_v8  ;;  %v5871_v46 = vmul.f32 1.442695, %v5665_v5  ;;  %12340 = vmatmul.mubr.msk.f32.vlgmr.msra.gmra.mxu1 %vm7117_vm4, %v7054_v54  ;;  %vm5536_vm6 = vcmp.gt.f32.partialorder %v15658_v58, 0.0  ;;  %v5291_v36 = vadd.f32 %v15628_v23, %v3980_v49 }
 0x28f   : > { %v15817_v11 = vpop.f32.mrf.mxu1  ;;  %v13008_v37 = vpop.eup %13007  ;;  %6964 = vrot.lane.b32.xlu1 %v6959_v33, %s13189_s24  ;;  %6672 = vst.msk [vmem:[#allocation3 + $0x1e] sm:$0xff] %vm6642_vm5, %v6667_v12  ;;  %v5668_v53 = vmin.f32 %v15813_v52, 0.0  ;;  %v15831_v16 = vadd.f32 %v15415_v14, %v5288_v62  ;;  %12342 = vmatprep.mubr.msk.f32.mxu1 %vm13190_vm0, %v17691_v13  ;;  %v10535_v4 = vld [vmem:[%s17628_s3 + $0x58] sm:$0xff]  ;;  %v5290_v63 = vadd.f32 %v15647_v26, %v3979_v3  ;;  %v17764_v21 = vld [vmem:[#allocation53_spill] sm:$0xff]  ;;  %vm5535_vm8 = vcmp.gt.f32.partialorder %v15685_v6, 0.0  ;;  %v17765_v51 = vld [vmem:[#allocation54_spill] sm:$0xff] }
 0x290   : > { %v15826_v39 = vpop.f32.mrf.mxu0  ;;  %v10427_v47 = vadd.f32 -1.0, %v13008_v37  ;;  %v6879_v1 = vpop.permute.xlu0 %6878  ;;  %12510 = vmatpush3.msra.mxu1 %v10566_v32  ;;  %13021 = vpow2.f32 %v5871_v46  ;;  %v3982_v15 = vadd.f32 %v15654_v10, %v17764_v21  ;;  %v6747_v24 = vld [vmem:[#allocation2 + $0x230] ss:$2 sm:$0x7f]  ;;  %v15859_v5 = vadd.f32 %v15415_v14, %v5291_v36 }
 0x291   : > { %v15835_v0 = vpop.f32.mrf.mxu1  ;;  %6884 = vst.msk [vmem:[#allocation3 + $0x1e] sm:$0xff] %vm6854_vm7, %v6879_v1  ;;  %12511 = vmatprep.subr.mxu1 %v17691_v13  ;;  %v13010_v19 = vpop.eup %13009  ;;  %v5877_v23 = vmul.f32 1.442695, %v5668_v53  ;;  %v5667_v26 = vmin.f32 %v15831_v16, 0.0  ;;  %v6547_v32 = vld [vmem:[#allocation2 + $0x241] ss:$2 sm:$0xff]  ;;  %v3981_v49 = vadd.f32 %v15671_v22, %v17765_v51 }
 0x292   : > { %v7085_v55 = vld [vmem:[#allocation3 + $0x1] sm:$0xff]  ;;  %v15845_v48 = vpop.f32.mrf.mxu0  ;;  %v6156_v54 = vsel %vm5536_vm6, %v15658_v58, %v10427_v47  ;;  %6752 = vrot.lane.b32.xlu0 %v6747_v24, %s13188_s23  ;;  %v13012_v60 = vpop.eup %13011  ;;  %v10426_v8 = vadd.f32 -1.0, %v13010_v19  ;;  %v15862_v58 = vadd.f32 %v15415_v14, %v5290_v63  ;;  %v5293_v41 = vadd.f32 %v15665_v44, %v3982_v15  ;;  %v7086_v43 = vld [vmem:[#allocation3 + $0x9] sm:$0xff] }
 0x293   : > { %v7055_v61 = vld [vmem:[#allocation3 + $0x8] sm:$0xff]  ;;  %12251 = vmatmul.mubr.msk.f32.vlgmr.msra.gmra.mxu0 %vm7117_vm4, %v7085_v55  ;;  %v15855_v10 = vpop.f32.mrf.mxu1  ;;  %6281 = vst.msk [vmem:[#allocation2 + $0x268] sm:$0xff] %vm6203_vm2, %v6156_v54  ;;  %v13014_v12 = vpop.eup %13013  ;;  %v10429_v37 = vadd.f32 -1.0, %v13012_v60  ;;  %13023 = vpow2.f32 %v5877_v23  ;;  %v5875_v46 = vmul.f32 1.442695, %v5667_v26  ;;  %v7056_v44 = vld [vmem:[#allocation3 + $0x10] sm:$0xff]  ;;  %v5292_v54 = vadd.f32 %v15681_v28, %v3981_v49 }
 0x294   : > { %12253 = vmatprep.mubr.msk.f32.mxu0 %vm13190_vm0, %v17691_v13  ;;  %12343 = vmatmul.mubr.msk.f32.gmra.mxu1 %vm7117_vm4, %v7055_v61  ;;  %v15868_v62 = vpop.f32.mrf.mxu0  ;;  %v6383_v33 = vld [vmem:[#allocation2 + $0x240] ss:$2 sm:$0xff]  ;;  %v6155_v47 = vsel %vm5535_vm8, %v15685_v6, %v10426_v8  ;;  %vm5538_vm10 = vcmp.gt.f32.partialorder %v15688_v59, 0.0  ;;  %v10428_v53 = vadd.f32 -1.0, %v13014_v12  ;;  %v5670_v1 = vmin.f32 %v15859_v5, 0.0  ;;  %v6881_v36 = vpop.permute.xlu1 %6880  ;;  %v17766_v60 = vld [vmem:[#allocation55_spill] sm:$0xff] }
 0x295   : > { %12345 = vmatprep.mubr.msk.f32.mxu1 %vm13190_vm0, %v17691_v13  ;;  %v15874_v3 = vpop.f32.mrf.mxu1  ;;  %12421 = vmatpush3.msra.mxu0 %v10535_v4  ;;  %6386 = vst.msk [vmem:[#allocation3 + $0x87] sm:$0xff] %vm6203_vm2, %v6383_v33  ;;  %v6549_v22 = vld [vmem:[#allocation2 + $0x251] ss:$2 sm:$0x7f]  ;;  %6280 = vst.msk [vmem:[#allocation2 + $0x260] sm:$0xff] %vm6203_vm2, %v6155_v47  ;;  %v6158_v4 = vsel %vm5538_vm10, %v15688_v59, %v10429_v37  ;;  %vm5537_vm11 = vcmp.gt.f32.partialorder %v15691_v40, 0.0  ;;  %13025 = vpow2.f32 %v5875_v46  ;;  %v6669_v21 = vpop.permute.xlu0 %6668 }
 0x296   : > { %v15882_v63 = vpop.f32.mrf.mxu0  ;;  %12422 = vmatprep.subr.mxu0 %v17691_v13  ;;  %v5669_v6 = vmin.f32 %v15862_v58, 0.0  ;;  %6554 = vrot.lane.b32.xlu1 %v6549_v22, %s13187_s22  ;;  %v6385_v55 = vld [vmem:[#allocation2 + $0x250] ss:$2 sm:$0x7f]  ;;  %6283 = vst.msk [vmem:[#allocation2 + $0x278] sm:$0xff] %vm6203_vm2, %v6158_v4  ;;  %v6157_v61 = vsel %vm5537_vm11, %v15691_v40, %v10428_v53  ;;  %v15896_v59 = vadd.f32 %v15415_v14, %v5293_v41  ;;  %vm5540_vm13 = vcmp.gt.f32.partialorder %v15723_v27, 0.0 }
 0x297   : > { %6552 = vrot.lane.b32.xlu0 %v6547_v32, %s13187_s22  ;;  %v15891_v15 = vpop.f32.mrf.mxu1  ;;  %v13016_v24 = vpop.eup %13015  ;;  %v5881_v19 = vmul.f32 1.442695, %v5670_v1  ;;  %12254 = vmatmul.mubr.msk.f32.gmra.mxu0 %vm7117_vm4, %v7086_v43  ;;  %6673 = vst.msk [vmem:[#allocation3 + $0x26] sm:$0x7f] %vm6644_vm12, %v6669_v21  ;;  %v3984_v8 = vadd.f32 %v15694_v50, %v17766_v60  ;;  %v17767_v41 = vld [vmem:[#allocation56_spill] sm:$0xff]  ;;  %v15920_v37 = vadd.f32 %v15415_v14, %v5292_v54  ;;  %v10534_v47 = vld [vmem:[%s17628_s3 + $0x50] sm:$0xff] }
 0x298   : > { %12346 = vmatmul.mubr.msk.f32.gmra.mxu1 %vm7117_vm4, %v7056_v44  ;;  %v15902_v23 = vpop.f32.mrf.mxu0  ;;  %6387 = vst.msk [vmem:[#allocation3 + $0x8f] sm:$0x7f] %vm6327_vm9, %v6385_v55  ;;  %v10431_v26 = vadd.f32 -1.0, %v13016_v24  ;;  %v5879_v40 = vmul.f32 1.442695, %v5669_v6  ;;  %v3983_v28 = vadd.f32 %v15711_v38, %v17767_v41  ;;  %12256 = vmatprep.mubr.msk.f32.mxu0 %vm13190_vm0, %v17691_v13  ;;  %v7087_v32 = vld [vmem:[#allocation3 + $0x11] sm:$0xff] }
 0x299   : > { %6282 = vst.msk [vmem:[#allocation2 + $0x270] sm:$0xff] %vm6203_vm2, %v6157_v61  ;;  %12348 = vmatprep.mubr.msk.f32.mxu1 %vm13190_vm0, %v17691_v13  ;;  %v7057_v33 = vld [vmem:[#allocation3 + $0x18] sm:$0xff]  ;;  %v15915_v12 = vpop.f32.mrf.mxu1  ;;  %13027 = vpow2.f32 %v5881_v19  ;;  %v5672_v50 = vmin.f32 %v15896_v59, 0.0  ;;  %v5295_v51 = vadd.f32 %v15699_v30, %v3984_v8  ;;  %v6469_v43 = vpop.permute.xlu0 %6468  ;;  %v10565_v53 = vld [vmem:[%s17628_s3 + $0x70] sm:$0xff]  ;;  %vm5539_vm15 = vcmp.gt.f32.partialorder %v15762_v9, 0.0  ;;  %v17769_v24 = vld [vmem:[#allocation58_spill] sm:$0xff]  ;;  %12423 = vmatpush3.msra.mxu0 %v10534_v47 }
 0x29a   : > { %6885 = vst.msk [vmem:[#allocation3 + $0x26] sm:$0x7f] %vm6856_vm14, %v6881_v36  ;;  %v15922_v38 = vpop.f32.mrf.mxu0  ;;  %v6160_v46 = vsel %vm5540_vm13, %v15723_v27, %v10431_v26  ;;  %13029 = vpow2.f32 %v5879_v40  ;;  %v5294_v49 = vadd.f32 %v15718_v20, %v3983_v28  ;;  %v13018_v1 = vpop.eup %13017  ;;  %v5671_v30 = vmin.f32 %v15920_v37, 0.0  ;;  %v17768_v20 = vld [vmem:[#allocation57_spill] sm:$0xff]  ;;  %12512 = vmatpush3.msra.mxu1 %v10565_v53  ;;  %12424 = vmatprep.subr.mxu0 %v17691_v13 }
 0x29b   : > { %v15927_v44 = vpop.f32.mrf.mxu1  ;;  %6285 = vst.msk [vmem:[#allocation2 + $0x288] sm:$0xff] %vm6203_vm2, %v6160_v46  ;;  %v5885_v27 = vmul.f32 1.442695, %v5672_v50  ;;  %v3986_v22 = vadd.f32 %v15725_v7, %v17768_v20  ;;  %12257 = vmatmul.mubr.msk.f32.gmra.mxu0 %vm7117_vm4, %v7087_v32  ;;  %v13020_v4 = vpop.eup %13019  ;;  %v10430_v6 = vadd.f32 -1.0, %v13018_v1  ;;  %v15946_v21 = vadd.f32 %v15415_v14, %v5295_v51  ;;  %v7088_v7 = vld [vmem:[#allocation3 + $0x19] sm:$0xff]  ;;  %v17770_v1 = vld [vmem:[#allocation59_spill] sm:$0xff]  ;;  %12513 = vmatprep.subr.mxu1 %v17691_v13 }
 0x29c   : > { %6474 = vst.msk [vmem:[#allocation3 + $0x2d] sm:$0xff] %vm6430_vm3, %v6469_v43  ;;  %12349 = vmatmul.mubr.msk.f32.gmra.mxu1 %vm7117_vm4, %v7057_v33  ;;  %v15943_v36 = vpop.f32.mrf.mxu0  ;;  %v15949_v55 = vadd.f32 %v15415_v14, %v5294_v49  ;;  %v3985_v61 = vadd.f32 %v15741_v35, %v17769_v24  ;;  %12259 = vmatprep.mubr.msk.f32.mxu0 %vm13190_vm0, %v17691_v13  ;;  %v6471_v19 = vpop.permute.xlu1 %6470  ;;  %v10433_v26 = vadd.f32 -1.0, %v13020_v4  ;;  %v5883_v40 = vmul.f32 1.442695, %v5671_v30  ;;  %v6759_v14 = vld [vmem:[#allocation2 + $0x260] ss:$2 sm:$0xff] }
 0x29d   : > { %12351 = vmatprep.mubr.msk.f32.mxu1 %vm13190_vm0, %v17691_v13  ;;  %v15957_v54 = vpop.f32.mrf.mxu1  ;;  %13031 = vpow2.f32 %v5885_v27  ;;  %v5297_v60 = vadd.f32 %v15731_v56, %v3986_v22  ;;  %6475 = vst.msk [vmem:[#allocation3 + $0x35] sm:$0x7f] %vm6432_vm1, %v6471_v19  ;;  %v13022_v35 = vpop.eup %13021  ;;  %v6159_v41 = vsel %vm5539_vm15, %v15762_v9, %v10430_v6  ;;  %vm5542_vm6 = vcmp.gt.f32.partialorder %v15769_v45, 0.0  ;;  %6764 = vrot.lane.b32.xlu1 %v6759_v14, %s13188_s23  ;;  %v6971_v56 = vld [vmem:[#allocation2 + $0x261] ss:$2 sm:$0xff] }
 0x29e   : > { %v15961_v8 = vpop.f32.mrf.mxu0  ;;  %vm5541_vm8 = vcmp.gt.f32.partialorder %v15790_v57, 0.0  ;;  %v5674_v28 = vmin.f32 %v15946_v21, 0.0  ;;  %6284 = vst.msk [vmem:[#allocation2 + $0x280] sm:$0xff] %vm6203_vm2, %v6159_v41  ;;  %v6162_v33 = vsel %vm5542_vm6, %v15769_v45, %v10433_v26  ;;  %v10432_v50 = vadd.f32 -1.0, %v13022_v35  ;;  %6976 = vrot.lane.b32.xlu0 %v6971_v56, %s13189_s24  ;;  %v15984_v47 = vld [vmem:[%s17627_s2] ss:$0 sm:$0xff] }
 0x29f   : > { %v15970_v32 = vpop.f32.mrf.mxu1  ;;  %13033 = vpow2.f32 %v5883_v40  ;;  %v5673_v9 = vmin.f32 %v15949_v55, 0.0  ;;  %12260 = vmatmul.mubr.msk.f32.gmra.mxu0 %vm7117_vm4, %v7088_v7  ;;  %6287 = vst.msk [vmem:[#allocation2 + $0x298] sm:$0xff] %vm6203_vm2, %v6162_v33  ;;  %v15987_v45 = vadd.f32 %v15984_v47, %v5297_v60  ;;  %v5296_v53 = vadd.f32 %v15746_v42, %v3985_v61  ;;  %v17771_v7 = vld [vmem:[#allocation60_spill] sm:$0xff]  ;;  %v17772_v61 = vld [vmem:[#allocation61_spill] sm:$0xff] }
 0x2a0   : > { %v6973_v46 = vld [vmem:[#allocation2 + $0x271] ss:$2 sm:$0x7f]  ;;  %v15978_v49 = vpop.f32.mrf.mxu0  ;;  %v5889_v43 = vmul.f32 1.442695, %v5674_v28  ;;  %v3988_v27 = vadd.f32 %v15755_v34, %v17770_v1  ;;  %12262 = vmatprep.mubr.msk.f32.mxu0 %vm13190_vm0, %v17691_v13  ;;  %v13024_v4 = vpop.eup %13023  ;;  %v6161_v6 = vsel %vm5541_vm8, %v15790_v57, %v10432_v50  ;;  %v3987_v42 = vadd.f32 %v15775_v31, %v17771_v7 }
 0x2a1   : > { %v7089_v51 = vld [vmem:[#allocation3 + $0x21] sm:$0xff]  ;;  %v6761_v30 = vld [vmem:[#allocation2 + $0x270] ss:$2 sm:$0x7f]  ;;  %v15994_v22 = vpop.f32.mrf.mxu1  ;;  %v5887_v24 = vmul.f32 1.442695, %v5673_v9  ;;  %v3990_v34 = vadd.f32 %v15793_v17, %v17772_v61  ;;  %v6681_v19 = vpop.permute.xlu1 %6680  ;;  %6978 = vrot.lane.b32.xlu1 %v6973_v46, %s13189_s24  ;;  %v16017_v14 = vadd.f32 %v15984_v47, %v5296_v53 }
 0x2a2   : > { %v7058_v20 = vld [vmem:[#allocation3 + $0x20] sm:$0xff]  ;;  %v6893_v26 = vpop.permute.xlu0 %6892  ;;  %6286 = vst.msk [vmem:[#allocation2 + $0x290] sm:$0xff] %vm6203_vm2, %v6161_v6  ;;  %vm5544_vm10 = vcmp.gt.f32.partialorder %v15813_v52, 0.0  ;;  %v10435_v40 = vadd.f32 -1.0, %v13024_v4  ;;  %13035 = vpow2.f32 %v5889_v43  ;;  %v5676_v60 = vmin.f32 %v15987_v45, 0.0  ;;  %v16010_v31 = vpop.f32.mrf.mxu0  ;;  %6766 = vrot.lane.b32.xlu0 %v6761_v30, %s13188_s23  ;;  %v17773_v43 = vld [vmem:[#allocation62_spill] sm:$0xff] }
 0x2a3   : > { %12352 = vmatmul.mubr.msk.f32.gmra.mxu1 %vm7117_vm4, %v7058_v20  ;;  %6686 = vst.msk [vmem:[#allocation3 + $0x2d] sm:$0xff] %vm6642_vm5, %v6681_v19  ;;  %v16012_v57 = vpop.f32.mrf.mxu1  ;;  %v13026_v17 = vpop.eup %13025  ;;  %13037 = vpow2.f32 %v5887_v24  ;;  %v5299_v35 = vadd.f32 %v15765_v18, %v3988_v27  ;;  %v5298_v41 = vadd.f32 %v15784_v29, %v3987_v42  ;;  %12263 = vmatmul.mubr.msk.f32.gmra.mxu0 %vm7117_vm4, %v7089_v51  ;;  %vm5543_vm11 = vcmp.gt.f32.partialorder %v15831_v16, 0.0 }
 0x2a4   : > { %12354 = vmatprep.mubr.msk.f32.mxu1 %vm13190_vm0, %v17691_v13  ;;  %6898 = vst.msk [vmem:[#allocation3 + $0x2d] sm:$0xff] %vm6854_vm7, %v6893_v26  ;;  %v6164_v28 = vsel %vm5544_vm10, %v15813_v52, %v10435_v40  ;;  %v10434_v56 = vadd.f32 -1.0, %v13026_v17  ;;  %v5893_v33 = vmul.f32 1.442695, %v5676_v60  ;;  %v5301_v50 = vadd.f32 %v15798_v2, %v3990_v34  ;;  %v16028_v9 = vpop.f32.mrf.mxu0  ;;  %12265 = vmatprep.mubr.msk.f32.mxu0 %vm13190_vm0, %v17691_v13 }
 0x2a5   : > { %6289 = vst.msk [vmem:[#allocation2 + $0x2a8] sm:$0xff] %vm6203_vm2, %v6164_v28  ;;  %v5675_v18 = vmin.f32 %v16017_v14, 0.0  ;;  %v16036_v29 = vadd.f32 %v15984_v47, %v5299_v35  ;;  %v16039_v52 = vadd.f32 %v15984_v47, %v5298_v41  ;;  %v3989_v53 = vadd.f32 %v15806_v25, %v17773_v43  ;;  %v6561_v1 = vld [vmem:[#allocation2 + $0x281] ss:$2 sm:$0xff]  ;;  %v16047_v27 = vpop.f32.mrf.mxu1  ;;  %v6389_v20 = vld [vmem:[#allocation2 + $0x280] ss:$2 sm:$0xff]  ;;  %v6895_v7 = vpop.permute.xlu1 %6894 }
 0x2a6   : > { %v13028_v46 = vpop.eup %13027  ;;  %v6163_v2 = vsel %vm5543_vm11, %v15831_v16, %v10434_v56  ;;  %13039 = vpow2.f32 %v5893_v33  ;;  %v16043_v51 = vadd.f32 %v15984_v47, %v5301_v50  ;;  %v16049_v30 = vpop.f32.mrf.mxu0  ;;  %vm5546_vm13 = vcmp.gt.f32.partialorder %v15859_v5, 0.0  ;;  %6566 = vrot.lane.b32.xlu0 %v6561_v1, %s13187_s22  ;;  %6392 = vst.msk [vmem:[#allocation3 + $0x96] sm:$0xff] %vm6203_vm2, %v6389_v20  ;;  %v17774_v56 = vld [vmem:[#allocation63_spill] sm:$0xff] }
 0x2a7   : > { %v13030_v4 = vpop.eup %13029  ;;  %6288 = vst.msk [vmem:[#allocation2 + $0x2a0] sm:$0xff] %vm6203_vm2, %v6163_v2  ;;  %v10437_v6 = vadd.f32 -1.0, %v13028_v46  ;;  %v5891_v16 = vmul.f32 1.442695, %v5675_v18  ;;  %v5678_v24 = vmin.f32 %v16036_v29, 0.0  ;;  %vm5545_vm15 = vcmp.gt.f32.partialorder %v15862_v58, 0.0  ;;  %v6683_v61 = vpop.permute.xlu0 %6682 }
 0x2a8   : > { %v10436_v25 = vadd.f32 -1.0, %v13030_v4  ;;  %vm5548_vm6 = vcmp.gt.f32.partialorder %v15896_v59, 0.0  ;;  %v5677_v42 = vmin.f32 %v16039_v52, 0.0  ;;  %v16059_v34 = vpop.f32.mrf.mxu0  ;;  %v5680_v40 = vmin.f32 %v16043_v51, 0.0  ;;  %6687 = vst.msk [vmem:[#allocation3 + $0x35] sm:$0x7f] %vm6644_vm12, %v6683_v61 }
 0x2a9   : > { %v6166_v19 = vsel %vm5546_vm13, %v15859_v5, %v10437_v6  ;;  %13041 = vpow2.f32 %v5891_v16  ;;  %v5897_v26 = vmul.f32 1.442695, %v5678_v24  ;;  %v6563_v60 = vld [vmem:[#allocation2 + $0x291] ss:$2 sm:$0x7f]  ;;  %v5300_v28 = vadd.f32 %v15817_v11, %v3989_v53  ;;  %v16071_v5 = vpop.f32.mrf.mxu1  ;;  %v17776_v4 = vld [vmem:[#allocation65_spill] sm:$0xff] }
 0x2aa   : > { %v13032_v17 = vpop.eup %13031  ;;  %6291 = vst.msk [vmem:[#allocation2 + $0x2b8] sm:$0xff] %vm6203_vm2, %v6166_v19  ;;  %v6165_v35 = vsel %vm5545_vm15, %v15862_v58, %v10436_v25  ;;  %v5895_v41 = vmul.f32 1.442695, %v5677_v42  ;;  %v3992_v33 = vadd.f32 %v15826_v39, %v17774_v56  ;;  %6568 = vrot.lane.b32.xlu1 %v6563_v60, %s13187_s22  ;;  %v5901_v2 = vmul.f32 1.442695, %v5680_v40  ;;  %v17775_v58 = vld [vmem:[#allocation64_spill] sm:$0xff]  ;;  %v16078_v11 = vpop.f32.mrf.mxu0 }
 0x2ab   : > { %6899 = vst.msk [vmem:[#allocation3 + $0x35] sm:$0x7f] %vm6856_vm14, %v6895_v7  ;;  %v7090_v50 = vld [vmem:[#allocation3 + $0x29] sm:$0xff]  ;;  %v10439_v46 = vadd.f32 -1.0, %v13032_v17  ;;  %13043 = vpow2.f32 %v5897_v26  ;;  %v3991_v43 = vadd.f32 %v15845_v48, %v17775_v58  ;;  %v16081_v1 = vadd.f32 %v15984_v47, %v5300_v28  ;;  %v6483_v16 = vpop.permute.xlu0 %6482  ;;  %v16090_v48 = vpop.f32.mrf.mxu1 }
 0x2ac   : > { %v7059_v18 = vld [vmem:[#allocation3 + $0x28] sm:$0xff]  ;;  %6290 = vst.msk [vmem:[#allocation2 + $0x2b0] sm:$0xff] %vm6203_vm2, %v6165_v35  ;;  %12266 = vmatmul.mubr.msk.f32.gmra.mxu0 %vm7117_vm4, %v7090_v50  ;;  %v6391_v39 = vld [vmem:[#allocation2 + $0x290] ss:$2 sm:$0x7f]  ;;  %v13034_v53 = vpop.eup %13033  ;;  %13045 = vpow2.f32 %v5895_v41  ;;  %v5303_v20 = vadd.f32 %v15835_v0, %v3992_v33  ;;  %v3994_v6 = vadd.f32 %v15868_v62, %v17776_v4  ;;  %vm5547_vm8 = vcmp.gt.f32.partialorder %v15920_v37, 0.0  ;;  %v16114_v35 = vpop.f32.mrf.mxu0 }
 0x2ad   : > { %12355 = vmatmul.mubr.msk.f32.gmra.mxu1 %vm7117_vm4, %v7059_v18  ;;  %12268 = vmatprep.mubr.msk.f32.mxu0 %vm13190_vm0, %v17691_v13  ;;  %6393 = vst.msk [vmem:[#allocation3 + $0x9e] sm:$0x7f] %vm6327_vm9, %v6391_v39  ;;  %v6168_v24 = vsel %vm5548_vm6, %v15896_v59, %v10439_v46  ;;  %v10438_v7 = vadd.f32 -1.0, %v13034_v53  ;;  %13047 = vpow2.f32 %v5901_v2  ;;  %v5302_v0 = vadd.f32 %v15855_v10, %v3991_v43  ;;  %v6485_v59 = vpop.permute.xlu1 %6484  ;;  %v17777_v60 = vld [vmem:[#allocation66_spill] sm:$0xff]  ;;  %v17778_v56 = vld [vmem:[#allocation67_spill] sm:$0xff]  ;;  %v16121_v50 = vpop.f32.mrf.mxu1 }
 0x2ae   : > { %12357 = vmatprep.mubr.msk.f32.mxu1 %vm13190_vm0, %v17691_v13  ;;  %6488 = vst.msk [vmem:[#allocation3 + $0x3c] sm:$0xff] %vm6430_vm3, %v6483_v16  ;;  %v5679_v62 = vmin.f32 %v16081_v1, 0.0  ;;  %v16102_v25 = vadd.f32 %v15984_v47, %v5303_v20  ;;  %v5305_v42 = vadd.f32 %v15874_v3, %v3994_v6  ;;  %v6773_v61 = vld [vmem:[#allocation2 + $0x2a0] ss:$2 sm:$0xff]  ;;  %v6985_v19 = vld [vmem:[#allocation2 + $0x2a1] ss:$2 sm:$0xff]  ;;  %v3993_v17 = vadd.f32 %v15882_v63, %v17777_v60 }
 0x2af   : > { %6293 = vst.msk [vmem:[#allocation2 + $0x2c8] sm:$0xff] %vm6203_vm2, %v6168_v24  ;;  %v13036_v26 = vpop.eup %13035  ;;  %v6167_v40 = vsel %vm5547_vm8, %v15920_v37, %v10438_v7  ;;  %vm5550_vm10 = vcmp.gt.f32.partialorder %v15946_v21, 0.0  ;;  %v16108_v10 = vadd.f32 %v15984_v47, %v5302_v0  ;;  %6778 = vrot.lane.b32.xlu1 %v6773_v61, %s13188_s23  ;;  %v3996_v33 = vadd.f32 %v15902_v23, %v17778_v56  ;;  %v17779_v61 = vld [vmem:[#allocation68_spill] sm:$0xff] }
 0x2b0   : > { %6489 = vst.msk [vmem:[#allocation3 + $0x44] sm:$0x7f] %vm6432_vm1, %v6485_v59  ;;  %v13038_v3 = vpop.eup %13037  ;;  %v10441_v41 = vadd.f32 -1.0, %v13036_v26  ;;  %v5899_v28 = vmul.f32 1.442695, %v5679_v62  ;;  %v5682_v37 = vmin.f32 %v16102_v25, 0.0  ;;  %6990 = vrot.lane.b32.xlu0 %v6985_v19, %s13189_s24  ;;  %v16126_v46 = vadd.f32 %v15984_v47, %v5305_v42  ;;  %v16148_v62 = vpop.f32.mrf.mxu1 }
 0x2b1   : > { %6292 = vst.msk [vmem:[#allocation2 + $0x2c0] sm:$0xff] %vm6203_vm2, %v6167_v40  ;;  %vm5549_vm11 = vcmp.gt.f32.partialorder %v15949_v55, 0.0  ;;  %v10440_v63 = vadd.f32 -1.0, %v13038_v3  ;;  %v5681_v18 = vmin.f32 %v16108_v10, 0.0  ;;  %v5304_v39 = vadd.f32 %v15891_v15, %v3993_v17  ;;  %v17780_v59 = vld [vmem:[#allocation69_spill] sm:$0xff] }
 0x2b2   : > { %v7091_v2 = vld [vmem:[#allocation3 + $0x31] sm:$0xff]  ;;  %v6170_v43 = vsel %vm5550_vm10, %v15946_v21, %v10441_v41  ;;  %13049 = vpow2.f32 %v5899_v28  ;;  %v5905_v23 = vmul.f32 1.442695, %v5682_v37  ;;  %vm5552_vm13 = vcmp.gt.f32.partialorder %v15987_v45, 0.0  ;;  %v16139_v21 = vpop.f32.mrf.mxu0  ;;  %v6695_v0 = vpop.permute.xlu1 %6694 }
 0x2b3   : > { %v7060_v58 = vld [vmem:[#allocation3 + $0x30] sm:$0xff]  ;;  %12269 = vmatmul.mubr.msk.f32.gmra.mxu0 %vm7117_vm4, %v7091_v2  ;;  %v13040_v20 = vpop.eup %13039  ;;  %6295 = vst.msk [vmem:[#allocation2 + $0x2d8] sm:$0xff] %vm6203_vm2, %v6170_v43  ;;  %v6169_v4 = vsel %vm5549_vm11, %v15949_v55, %v10440_v63  ;;  %v5903_v6 = vmul.f32 1.442695, %v5681_v18  ;;  %v5684_v16 = vmin.f32 %v16126_v46, 0.0  ;;  %v16145_v24 = vadd.f32 %v15984_v47, %v5304_v39  ;;  %v17781_v2 = vld [vmem:[#allocation70_spill] sm:$0xff]  ;;  %v16179_v43 = vpop.f32.mrf.mxu1 }
 0x2b4   : > { %v6987_v53 = vld [vmem:[#allocation2 + $0x2b1] ss:$2 sm:$0x7f]  ;;  %12358 = vmatmul.mubr.msk.f32.gmra.mxu1 %vm7117_vm4, %v7060_v58  ;;  %12271 = vmatprep.mubr.msk.f32.mxu0 %vm13190_vm0, %v17691_v13  ;;  %6294 = vst.msk [vmem:[#allocation2 + $0x2d0] sm:$0xff] %vm6203_vm2, %v6169_v4  ;;  %v10443_v15 = vadd.f32 -1.0, %v13040_v20  ;;  %13051 = vpow2.f32 %v5905_v23  ;;  %v5307_v55 = vadd.f32 %v15915_v12, %v3996_v33  ;;  %v3995_v19 = vadd.f32 %v15922_v38, %v17779_v61  ;;  %v6907_v12 = vpop.permute.xlu0 %6906  ;;  %v10533_v38 = vld [vmem:[%s17628_s3 + $0x48] sm:$0xff]  ;;  %v16173_v37 = vpop.f32.mrf.mxu0 }
 0x2b5   : > { %6992 = vrot.lane.b32.xlu1 %v6987_v53, %s13189_s24  ;;  %v6775_v7 = vld [vmem:[#allocation2 + $0x2b0] ss:$2 sm:$0x7f]  ;;  %12360 = vmatprep.mubr.msk.f32.mxu1 %vm13190_vm0, %v17691_v13  ;;  %13053 = vpow2.f32 %v5903_v6  ;;  %v5909_v42 = vmul.f32 1.442695, %v5684_v16  ;;  %v3998_v26 = vadd.f32 %v15943_v36, %v17780_v59  ;;  %6700 = vst.msk [vmem:[#allocation3 + $0x3c] sm:$0xff] %vm6642_vm5, %v6695_v0  ;;  %v3997_v58 = vadd.f32 %v15961_v8, %v17781_v2 }
 0x2b6   : > { %6780 = vrot.lane.b32.xlu0 %v6775_v7, %s13188_s23  ;;  %v13042_v40 = vpop.eup %13041  ;;  %v6172_v60 = vsel %vm5552_vm13, %v15987_v45, %v10443_v15  ;;  %vm5551_vm15 = vcmp.gt.f32.partialorder %v16017_v14, 0.0  ;;  %v5683_v17 = vmin.f32 %v16145_v24, 0.0  ;;  %v16164_v3 = vadd.f32 %v15984_v47, %v5307_v55  ;;  %6912 = vst.msk [vmem:[#allocation3 + $0x3c] sm:$0xff] %vm6854_vm7, %v6907_v12  ;;  %12425 = vmatpush3.msra.mxu0 %v10533_v38  ;;  %v6909_v8 = vpop.permute.xlu1 %6908  ;;  %v10564_v59 = vld [vmem:[%s17628_s3 + $0x68] sm:$0xff] }
 0x2b7   : > { %6297 = vst.msk [vmem:[#allocation2 + $0x2e8] sm:$0xff] %vm6203_vm2, %v6172_v60  ;;  %v10442_v36 = vadd.f32 -1.0, %v13042_v40  ;;  %13055 = vpow2.f32 %v5909_v42  ;;  %v5306_v41 = vadd.f32 %v15927_v44, %v3995_v19  ;;  %v5309_v45 = vadd.f32 %v15957_v54, %v3998_v26  ;;  %12426 = vmatprep.subr.mxu0 %v17691_v13  ;;  %v16201_v42 = vpop.f32.mrf.mxu0  ;;  %v17782_v40 = vld [vmem:[#allocation71_spill] sm:$0xff]  ;;  %12514 = vmatpush3.msra.mxu1 %v10564_v59 }
 0x2b8   : > { %v6575_v28 = vld [vmem:[#allocation2 + $0x2c1] ss:$2 sm:$0xff]  ;;  %v6395_v56 = vld [vmem:[#allocation2 + $0x2c0] ss:$2 sm:$0xff]  ;;  %v13044_v33 = vpop.eup %13043  ;;  %vm5554_vm6 = vcmp.gt.f32.partialorder %v16036_v29, 0.0  ;;  %v5686_v18 = vmin.f32 %v16164_v3, 0.0  ;;  %v5308_v16 = vadd.f32 %v15970_v32, %v3997_v58  ;;  %v4000_v60 = vadd.f32 %v15978_v49, %v17782_v40  ;;  %12515 = vmatprep.subr.mxu1 %v17691_v13 }
 0x2b9   : > { %v5907_v63 = vmul.f32 1.442695, %v5683_v17  ;;  %6398 = vst.msk [vmem:[#allocation3 + $0xa5] sm:$0xff] %vm6203_vm2, %v6395_v56  ;;  %v13046_v44 = vpop.eup %13045  ;;  %v6171_v54 = vsel %vm5551_vm15, %v16017_v14, %v10442_v36  ;;  %v10445_v23 = vadd.f32 -1.0, %v13044_v33  ;;  %v16187_v39 = vadd.f32 %v15984_v47, %v5306_v41  ;;  %v6697_v15 = vpop.permute.xlu0 %6696  ;;  %v17783_v41 = vld [vmem:[#allocation72_spill] sm:$0xff]  ;;  %v17785_v56 = vld [vmem:[#allocation74_spill] sm:$0xff] }
 0x2ba   : > { %v16190_v53 = vadd.f32 %v15984_v47, %v5309_v45  ;;  %6580 = vrot.lane.b32.xlu0 %v6575_v28, %s13187_s22  ;;  %v13048_v20 = vpop.eup %13047  ;;  %6296 = vst.msk [vmem:[#allocation2 + $0x2e0] sm:$0xff] %vm6203_vm2, %v6171_v54  ;;  %v10444_v4 = vadd.f32 -1.0, %v13046_v44  ;;  %v5913_v6 = vmul.f32 1.442695, %v5686_v18  ;;  %vm5553_vm8 = vcmp.gt.f32.partialorder %v16039_v52, 0.0  ;;  %v17784_v28 = vld [vmem:[#allocation73_spill] sm:$0xff] }
 0x2bb   : > { %13057 = vpow2.f32 %v5907_v63  ;;  %v6174_v14 = vsel %vm5554_vm6, %v16036_v29, %v10445_v23  ;;  %v10447_v55 = vadd.f32 -1.0, %v13048_v20  ;;  %v5685_v7 = vmin.f32 %v16187_v39, 0.0  ;;  %v6577_v0 = vld [vmem:[#allocation2 + $0x2d1] ss:$2 sm:$0x7f]  ;;  %v16209_v29 = vpop.f32.mrf.mxu1 }
 0x2bc   : > { %6701 = vst.msk [vmem:[#allocation3 + $0x44] sm:$0x7f] %vm6644_vm12, %v6697_v15  ;;  %v6173_v61 = vsel %vm5553_vm8, %v16039_v52, %v10444_v4  ;;  %vm5556_vm10 = vcmp.gt.f32.partialorder %v16043_v51, 0.0  ;;  %13059 = vpow2.f32 %v5913_v6  ;;  %v5688_v32 = vmin.f32 %v16190_v53, 0.0  ;;  %6582 = vrot.lane.b32.xlu1 %v6577_v0, %s13187_s22  ;;  %v17786_v20 = vld [vmem:[#allocation75_spill] sm:$0xff] }
 0x2bd   : > { %6299 = vst.msk [vmem:[#allocation2 + $0x2f8] sm:$0xff] %vm6203_vm2, %v6174_v14  ;;  %v6397_v19 = vld [vmem:[#allocation2 + $0x2d0] ss:$2 sm:$0x7f]  ;;  %6298 = vst.msk [vmem:[#allocation2 + $0x2f0] sm:$0xff] %vm6203_vm2, %v6173_v61  ;;  %v6176_v52 = vsel %vm5556_vm10, %v16043_v51, %v10447_v55  ;;  %v16217_v12 = vadd.f32 %v15984_v47, %v5308_v16  ;;  %v3999_v45 = vadd.f32 %v16010_v31, %v17783_v41  ;;  %v6497_v63 = vpop.permute.xlu0 %6496  ;;  %vm5555_vm11 = vcmp.gt.f32.partialorder %v16081_v1, 0.0  ;;  %v16234_v31 = vpop.f32.mrf.mxu0 }
 0x2be   : > { %6913 = vst.msk [vmem:[#allocation3 + $0x44] sm:$0x7f] %vm6856_vm14, %v6909_v8  ;;  %v5911_v26 = vmul.f32 1.442695, %v5685_v7  ;;  %v7092_v17 = vld [vmem:[#allocation3 + $0x39] sm:$0xff]  ;;  %v4002_v51 = vadd.f32 %v16028_v9, %v17784_v28  ;;  %v4001_v33 = vadd.f32 %v16049_v30, %v17785_v56  ;;  %v5311_v2 = vadd.f32 %v15994_v22, %v4000_v60  ;;  %v16243_v44 = vpop.f32.mrf.mxu1 }
 0x2bf   : > { %v7061_v38 = vld [vmem:[#allocation3 + $0x38] sm:$0xff]  ;;  %6399 = vst.msk [vmem:[#allocation3 + $0xad] sm:$0x7f] %vm6327_vm9, %v6397_v19  ;;  %v5917_v36 = vmul.f32 1.442695, %v5688_v32  ;;  %12272 = vmatmul.mubr.msk.f32.gmra.mxu0 %vm7117_vm4, %v7092_v17  ;;  %v13050_v49 = vpop.eup %13049  ;;  %v5687_v18 = vmin.f32 %v16217_v12, 0.0  ;;  %v5310_v30 = vadd.f32 %v16012_v57, %v3999_v45  ;;  %v4004_v4 = vadd.f32 %v16059_v34, %v17786_v20 }
 0x2c0   : > { %6301 = vst.msk [vmem:[#allocation2 + $0x308] sm:$0xff] %vm6203_vm2, %v6176_v52  ;;  %12361 = vmatmul.mubr.msk.f32.gmra.mxu1 %vm7117_vm4, %v7061_v38  ;;  %13061 = vpow2.f32 %v5911_v26  ;;  %12274 = vmatprep.mubr.msk.f32.mxu0 %vm13190_vm0, %v17691_v13  ;;  %v10446_v9 = vadd.f32 -1.0, %v13050_v49  ;;  %v5313_v58 = vadd.f32 %v16047_v27, %v4002_v51  ;;  %v16247_v23 = vadd.f32 %v15984_v47, %v5311_v2  ;;  %v6499_v15 = vpop.permute.xlu1 %6498  ;;  %v16273_v26 = vpop.f32.mrf.mxu1  ;;  %v17787_v41 = vld [vmem:[#allocation76_spill] sm:$0xff]  ;;  %v17788_v49 = vld [vmem:[#allocation77_spill] sm:$0xff] }
 0x2c1   : > { %6502 = vst.msk [vmem:[#allocation3 + $0x4b] sm:$0xff] %vm6430_vm3, %v6497_v63  ;;  %12363 = vmatprep.mubr.msk.f32.mxu1 %vm13190_vm0, %v17691_v13  ;;  %13063 = vpow2.f32 %v5917_v36  ;;  %v13052_v22 = vpop.eup %13051  ;;  %v5915_v54 = vmul.f32 1.442695, %v5687_v18  ;;  %v5312_v8 = vadd.f32 %v16071_v5, %v4001_v33  ;;  %v6787_v6 = vld [vmem:[#allocation2 + $0x2e0] ss:$2 sm:$0xff]  ;;  %v16256_v55 = vadd.f32 %v15984_v47, %v5310_v30 }
 0x2c2   : > { %v6999_v16 = vld [vmem:[#allocation2 + $0x2e1] ss:$2 sm:$0xff]  ;;  %v13054_v57 = vpop.eup %13053  ;;  %v6175_v27 = vsel %vm5555_vm11, %v16081_v1, %v10446_v9  ;;  %v10449_v14 = vadd.f32 -1.0, %v13052_v22  ;;  %v16259_v7 = vadd.f32 %v15984_v47, %v5313_v58  ;;  %6792 = vrot.lane.b32.xlu1 %v6787_v6, %s13188_s23  ;;  %6503 = vst.msk [vmem:[#allocation3 + $0x53] sm:$0x7f] %vm6432_vm1, %v6499_v15  ;;  %vm5558_vm13 = vcmp.gt.f32.partialorder %v16102_v25, 0.0  ;;  %v16267_v1 = vpop.f32.mrf.mxu0 }
 0x2c3   : > { %7004 = vrot.lane.b32.xlu0 %v6999_v16, %s13189_s24  ;;  %6300 = vst.msk [vmem:[#allocation2 + $0x300] sm:$0xff] %vm6203_vm2, %v6175_v27  ;;  %v10448_v34 = vadd.f32 -1.0, %v13054_v57  ;;  %13065 = vpow2.f32 %v5915_v54  ;;  %v5690_v5 = vmin.f32 %v16247_v23, 0.0  ;;  %vm5557_vm15 = vcmp.gt.f32.partialorder %v16108_v10, 0.0  ;;  %v16304_v9 = vpop.f32.mrf.mxu1  ;;  %v17789_v22 = vld [vmem:[#allocation78_spill] sm:$0xff] }
 0x2c4   : > { %v13056_v32 = vpop.eup %13055  ;;  %v6178_v19 = vsel %vm5558_vm13, %v16102_v25, %v10449_v14  ;;  %vm5560_vm6 = vcmp.gt.f32.partialorder %v16126_v46, 0.0  ;;  %v5689_v59 = vmin.f32 %v16256_v55, 0.0  ;;  %v7001_v52 = vld [vmem:[#allocation2 + $0x2f1] ss:$2 sm:$0x7f]  ;;  %v5692_v25 = vmin.f32 %v16259_v7, 0.0  ;;  %v16298_v2 = vpop.f32.mrf.mxu0 }
 0x2c5   : > { %v7093_v0 = vld [vmem:[#allocation3 + $0x41] sm:$0xff]  ;;  %6303 = vst.msk [vmem:[#allocation2 + $0x318] sm:$0xff] %vm6203_vm2, %v6178_v19  ;;  %v6177_v40 = vsel %vm5557_vm15, %v16108_v10, %v10448_v34  ;;  %v10451_v60 = vadd.f32 -1.0, %v13056_v32  ;;  %v5921_v17 = vmul.f32 1.442695, %v5690_v5  ;;  %v16286_v36 = vadd.f32 %v15984_v47, %v5312_v8  ;;  %v6709_v51 = vpop.permute.xlu1 %6708 }
 0x2c6   : > { %v7062_v61 = vld [vmem:[#allocation3 + $0x40] sm:$0xff]  ;;  %12275 = vmatmul.mubr.msk.f32.gmra.mxu0 %vm7117_vm4, %v7093_v0  ;;  %6302 = vst.msk [vmem:[#allocation2 + $0x310] sm:$0xff] %vm6203_vm2, %v6177_v40  ;;  %v5919_v38 = vmul.f32 1.442695, %v5689_v59  ;;  %v4003_v45 = vadd.f32 %v16078_v11, %v17787_v41  ;;  %v5315_v10 = vadd.f32 %v16090_v48, %v4004_v4  ;;  %7006 = vrot.lane.b32.xlu1 %v7001_v52, %s13189_s24  ;;  %v5925_v63 = vmul.f32 1.442695, %v5692_v25  ;;  %v6921_v11 = vpop.permute.xlu0 %6920  ;;  %v16330_v0 = vpop.f32.mrf.mxu1 }
 0x2c7   : > { %12364 = vmatmul.mubr.msk.f32.gmra.mxu1 %vm7117_vm4, %v7062_v61  ;;  %12277 = vmatprep.mubr.msk.f32.mxu0 %vm13190_vm0, %v17691_v13  ;;  %v6789_v28 = vld [vmem:[#allocation2 + $0x2f0] ss:$2 sm:$0x7f]  ;;  %v6180_v33 = vsel %vm5560_vm6, %v16126_v46, %v10451_v60  ;;  %13067 = vpow2.f32 %v5921_v17  ;;  %v4006_v18 = vadd.f32 %v16114_v35, %v17788_v49  ;;  %6714 = vst.msk [vmem:[#allocation3 + $0x4b] sm:$0xff] %vm6642_vm5, %v6709_v51  ;;  %vm5559_vm8 = vcmp.gt.f32.partialorder %v16145_v24, 0.0 }
 0x2c8   : > { %12366 = vmatprep.mubr.msk.f32.mxu1 %vm13190_vm0, %v17691_v13  ;;  %v13058_v56 = vpop.eup %13057  ;;  %6794 = vrot.lane.b32.xlu0 %v6789_v28, %s13188_s23  ;;  %6305 = vst.msk [vmem:[#allocation2 + $0x328] sm:$0xff] %vm6203_vm2, %v6180_v33  ;;  %13069 = vpow2.f32 %v5919_v38  ;;  %v5691_v46 = vmin.f32 %v16286_v36, 0.0  ;;  %v16308_v30 = vadd.f32 %v15984_v47, %v5315_v10  ;;  %v5314_v58 = vadd.f32 %v16121_v50, %v4003_v45  ;;  %v17791_v41 = vld [vmem:[#allocation80_spill] sm:$0xff] }
 0x2c9   : > { %v10450_v48 = vadd.f32 -1.0, %v13058_v56  ;;  %6926 = vst.msk [vmem:[#allocation3 + $0x4b] sm:$0xff] %vm6854_vm7, %v6921_v11  ;;  %v13060_v35 = vpop.eup %13059  ;;  %13071 = vpow2.f32 %v5925_v63  ;;  %v4005_v54 = vadd.f32 %v16139_v21, %v17789_v22  ;;  %v5317_v6 = vadd.f32 %v16148_v62, %v4006_v18  ;;  %v6923_v15 = vpop.permute.xlu1 %6922  ;;  %v17792_v11 = vld [vmem:[#allocation81_spill] sm:$0xff] }
 0x2ca   : > { %v10453_v20 = vadd.f32 -1.0, %v13060_v35  ;;  %v5923_v4 = vmul.f32 1.442695, %v5691_v46  ;;  %v6589_v16 = vld [vmem:[#allocation2 + $0x301] ss:$2 sm:$0xff]  ;;  %vm5562_vm10 = vcmp.gt.f32.partialorder %v16164_v3, 0.0  ;;  %v16320_v50 = vadd.f32 %v15984_v47, %v5314_v58  ;;  %v16323_v21 = vpop.f32.mrf.mxu0  ;;  %v16356_v63 = vpop.f32.mrf.mxu1 }
 0x2cb   : > { %v6179_v8 = vsel %vm5559_vm8, %v16145_v24, %v10450_v48  ;;  %vm5561_vm11 = vcmp.gt.f32.partialorder %v16187_v39, 0.0  ;;  %v5694_v57 = vmin.f32 %v16308_v30, 0.0  ;;  %v6711_v24 = vpop.permute.xlu0 %6710  ;;  %v6401_v27 = vld [vmem:[#allocation2 + $0x300] ss:$2 sm:$0xff]  ;;  %v16327_v34 = vadd.f32 %v15984_v47, %v5317_v6 }
 0x2cc   : > { %6304 = vst.msk [vmem:[#allocation2 + $0x320] sm:$0xff] %vm6203_vm2, %v6179_v8  ;;  %6594 = vrot.lane.b32.xlu0 %v6589_v16, %s13187_s22  ;;  %v6182_v14 = vsel %vm5562_vm10, %v16164_v3, %v10453_v20  ;;  %13073 = vpow2.f32 %v5923_v4  ;;  %v5316_v5 = vadd.f32 %v16179_v43, %v4005_v54  ;;  %6404 = vst.msk [vmem:[#allocation3 + $0xb4] sm:$0xff] %vm6203_vm2, %v6401_v27  ;;  %v5693_v59 = vmin.f32 %v16320_v50, 0.0  ;;  %v17790_v3 = vld [vmem:[#allocation79_spill] sm:$0xff]  ;;  %v16350_v45 = vpop.f32.mrf.mxu0  ;;  %v17793_v58 = vld [vmem:[#allocation82_spill] sm:$0xff]  ;;  %v12238_v6 = vpop.f32.mrf.mxu1 }
 0x2cd   : > { %v13062_v62 = vpop.eup %13061  ;;  %6715 = vst.msk [vmem:[#allocation3 + $0x53] sm:$0x7f] %vm6644_vm12, %v6711_v24  ;;  %v5929_v19 = vmul.f32 1.442695, %v5694_v57  ;;  %v4008_v52 = vadd.f32 %v16173_v37, %v17790_v3  ;;  %vm5564_vm13 = vcmp.gt.f32.partialorder %v16190_v53, 0.0  ;;  %v5696_v40 = vmin.f32 %v16327_v34, 0.0 }
 0x2ce   : > { %v13064_v61 = vpop.eup %13063  ;;  %6307 = vst.msk [vmem:[#allocation2 + $0x338] sm:$0xff] %vm6203_vm2, %v6182_v14  ;;  %v10452_v32 = vadd.f32 -1.0, %v13062_v62  ;;  %v16342_v60 = vadd.f32 %v15984_v47, %v5316_v5  ;;  %v6591_v17 = vld [vmem:[#allocation2 + $0x311] ss:$2 sm:$0x7f]  ;;  %v4007_v37 = vadd.f32 %v16201_v42, %v17791_v41  ;;  %vm5563_vm15 = vcmp.gt.f32.partialorder %v16217_v12, 0.0 }
 0x2cf   : > { %6927 = vst.msk [vmem:[#allocation3 + $0x53] sm:$0x7f] %vm6856_vm14, %v6923_v15  ;;  %v10455_v43 = vadd.f32 -1.0, %v13064_v61  ;;  %13075 = vpow2.f32 %v5929_v19  ;;  %v5927_v38 = vmul.f32 1.442695, %v5693_v59  ;;  %6596 = vrot.lane.b32.xlu1 %v6591_v17, %s13187_s22  ;;  %v6511_v49 = vpop.permute.xlu0 %6510  ;;  %v5319_v18 = vadd.f32 %v16209_v29, %v4008_v52  ;;  %v17794_v14 = vld [vmem:[#allocation83_spill] sm:$0xff] }
 0x2d0   : > { %v6181_v25 = vsel %vm5561_vm11, %v16187_v39, %v10452_v32  ;;  %v7094_v10 = vld [vmem:[#allocation3 + $0x49] sm:$0xff]  ;;  %v13066_v51 = vpop.eup %13065  ;;  %v5933_v33 = vmul.f32 1.442695, %v5696_v40  ;;  %v5695_v39 = vmin.f32 %v16342_v60, 0.0  ;;  %6516 = vst.msk [vmem:[#allocation3 + $0x5a] sm:$0xff] %vm6430_vm3, %v6511_v49  ;;  %v5318_v35 = vadd.f32 %v16243_v44, %v4007_v37  ;;  %v16382_v44 = vpop.f32.mrf.mxu0  ;;  %v17795_v52 = vld [vmem:[#allocation84_spill] sm:$0xff] }
 0x2d1   : > { %v7063_v28 = vld [vmem:[#allocation3 + $0x48] sm:$0xff]  ;;  %6306 = vst.msk [vmem:[#allocation2 + $0x330] sm:$0xff] %vm6203_vm2, %v6181_v25  ;;  %v6184_v56 = vsel %vm5564_vm13, %v16190_v53, %v10455_v43  ;;  %12278 = vmatmul.mubr.msk.f32.gmra.mxu0 %vm7117_vm4, %v7094_v10  ;;  %v10454_v42 = vadd.f32 -1.0, %v13066_v51  ;;  %13077 = vpow2.f32 %v5927_v38  ;;  %v4010_v53 = vadd.f32 %v16234_v31, %v17792_v11  ;;  %v6403_v48 = vld [vmem:[#allocation2 + $0x310] ss:$2 sm:$0x7f]  ;;  %v5185_v37 = vpop.f32.mrf.mxu1 }
 0x2d2   : > { %12367 = vmatmul.mubr.msk.f32.gmra.mxu1 %vm7117_vm4, %v7063_v28  ;;  %6309 = vst.msk [vmem:[#allocation2 + $0x348] sm:$0xff] %vm6203_vm2, %v6184_v56  ;;  %12280 = vmatprep.mubr.msk.f32.mxu0 %vm13190_vm0, %v17691_v13  ;;  %13079 = vpow2.f32 %v5933_v33  ;;  %v5931_v46 = vmul.f32 1.442695, %v5695_v39  ;;  %v4009_v22 = vadd.f32 %v16267_v1, %v17793_v58  ;;  %vm5566_vm6 = vcmp.gt.f32.partialorder %v16247_v23, 0.0  ;;  %v6513_v16 = vpop.permute.xlu1 %6512  ;;  %v12051_v40 = vpop.f32.mrf.mxu0  ;;  %v10532_v25 = vld [vmem:[%s17628_s3 + $0x40] sm:$0xff] }
 0x2d3   : > { %12369 = vmatprep.mubr.msk.f32.mxu1 %vm13190_vm0, %v17691_v13  ;;  %v6801_v29 = vld [vmem:[#allocation2 + $0x320] ss:$2 sm:$0xff]  ;;  %v7013_v54 = vld [vmem:[#allocation2 + $0x321] ss:$2 sm:$0xff]  ;;  %6405 = vst.msk [vmem:[#allocation3 + $0xbc] sm:$0x7f] %vm6327_vm9, %v6403_v48  ;;  %v6183_v31 = vsel %vm5563_vm15, %v16217_v12, %v10454_v42  ;;  %v16378_v8 = vadd.f32 %v15984_v47, %v5319_v18  ;;  %v5321_v20 = vadd.f32 %v16273_v26, %v4010_v53 }
 0x2d4   : > { %6806 = vrot.lane.b32.xlu1 %v6801_v29, %s13188_s23  ;;  %v13068_v1 = vpop.eup %13067  ;;  %6308 = vst.msk [vmem:[#allocation2 + $0x340] sm:$0xff] %vm6203_vm2, %v6183_v31  ;;  %vm5565_vm8 = vcmp.gt.f32.partialorder %v16256_v55, 0.0  ;;  %13081 = vpow2.f32 %v5931_v46  ;;  %v16387_v4 = vadd.f32 %v15984_v47, %v5318_v35  ;;  %v5320_v12 = vadd.f32 %v16304_v9, %v4009_v22  ;;  %7018 = vrot.lane.b32.xlu0 %v7013_v54, %s13189_s24  ;;  %v10563_v33 = vld [vmem:[%s17628_s3 + $0x60] sm:$0xff]  ;;  %v17797_v48 = vld [vmem:[#allocation86_spill] sm:$0xff]  ;;  %v3884_v35 = vpop.f32.mrf.mxu0  ;;  %v17798_v54 = vld [vmem:[#allocation87_spill] sm:$0xff] }
 0x2d5   : > { %v13070_v57 = vpop.eup %13069  ;;  %v10457_v24 = vadd.f32 -1.0, %v13068_v1  ;;  %v5698_v27 = vmin.f32 %v16378_v8, 0.0  ;;  %v16395_v62 = vadd.f32 %v15984_v47, %v5321_v20  ;;  %v4012_v5 = vadd.f32 %v16298_v2, %v17794_v14  ;;  %6517 = vst.msk [vmem:[#allocation3 + $0x62] sm:$0x7f] %vm6432_vm1, %v6513_v16  ;;  %12427 = vmatpush3.msra.mxu0 %v10532_v25  ;;  %v17796_v42 = vld [vmem:[#allocation85_spill] sm:$0xff]  ;;  %12516 = vmatpush3.msra.mxu1 %v10563_v33  ;;  %v12241_v20 = vpop.f32.mrf.mxu1 }
 0x2d6   : > { %v7095_v26 = vld [vmem:[#allocation3 + $0x51] sm:$0xff]  ;;  %v13072_v9 = vpop.eup %13071  ;;  %v10456_v61 = vadd.f32 -1.0, %v13070_v57  ;;  %vm5568_vm10 = vcmp.gt.f32.partialorder %v16259_v7, 0.0  ;;  %v5697_v32 = vmin.f32 %v16387_v4, 0.0  ;;  %v16406_v19 = vadd.f32 %v15984_v47, %v5320_v12  ;;  %v6723_v10 = vpop.permute.xlu1 %6722 }
 0x2d7   : > { %v16391_v15 = vld [vmem:[#allocation3 + $0x50] sm:$0xff]  ;;  %12281 = vmatmul.mubr.msk.f32.gmra.mxu0 %vm7117_vm4, %v7095_v26  ;;  %v6186_v2 = vsel %vm5566_vm6, %v16247_v23, %v10457_v24  ;;  %v10459_v59 = vadd.f32 -1.0, %v13072_v9  ;;  %v5937_v3 = vmul.f32 1.442695, %v5698_v27  ;;  %v4011_v43 = vadd.f32 %v16323_v21, %v17795_v52  ;;  %v6935_v17 = vpop.permute.xlu0 %6934  ;;  %6728 = vst.msk [vmem:[#allocation3 + $0x5a] sm:$0xff] %vm6642_vm5, %v6723_v10  ;;  %v17799_v57 = vld [vmem:[#allocation88_spill] sm:$0xff] }
 0x2d8   : > { %12370 = vmatmul.mubr.msk.f32.gmra.mxu1 %vm7117_vm4, %v16391_v15  ;;  %12283 = vmatprep.mubr.msk.f32.mxu0 %vm13190_vm0, %v17691_v13  ;;  %6311 = vst.msk [vmem:[#allocation2 + $0x358] sm:$0xff] %vm6203_vm2, %v6186_v2  ;;  %v6185_v38 = vsel %vm5565_vm8, %v16256_v55, %v10456_v61  ;;  %vm5567_vm11 = vcmp.gt.f32.partialorder %v16286_v36, 0.0  ;;  %v5935_v23 = vmul.f32 1.442695, %v5697_v32  ;;  %v5700_v41 = vmin.f32 %v16395_v62, 0.0 }
 0x2d9   : > { %12372 = vmatprep.mubr.msk.f32.mxu1 %vm13190_vm0, %v17691_v13  ;;  %v13074_v21 = vpop.eup %13073  ;;  %6310 = vst.msk [vmem:[#allocation2 + $0x350] sm:$0xff] %vm6203_vm2, %v6185_v38  ;;  %v6188_v28 = vsel %vm5568_vm10, %v16259_v7, %v10459_v59  ;;  %13083 = vpow2.f32 %v5937_v3  ;;  %v5699_v51 = vmin.f32 %v16406_v19, 0.0  ;;  %v5323_v55 = vadd.f32 %v16330_v0, %v4012_v5  ;;  %v7015_v56 = vld [vmem:[#allocation2 + $0x331] ss:$2 sm:$0x7f]  ;;  %v5195_v3 = vpop.f32.mrf.mxu1 }
 0x2da   : > { %6313 = vst.msk [vmem:[#allocation2 + $0x368] sm:$0xff] %vm6203_vm2, %v6188_v28  ;;  %v10458_v39 = vadd.f32 -1.0, %v13074_v21  ;;  %13085 = vpow2.f32 %v5935_v23  ;;  %v5941_v49 = vmul.f32 1.442695, %v5700_v41  ;;  %v4014_v7 = vadd.f32 %v16350_v45, %v17796_v42  ;;  %7020 = vrot.lane.b32.xlu1 %v7015_v56, %s13189_s24 }
 0x2db   : > { %v6803_v18 = vld [vmem:[#allocation2 + $0x330] ss:$2 sm:$0x7f]  ;;  %6940 = vst.msk [vmem:[#allocation3 + $0x5a] sm:$0xff] %vm6854_vm7, %v6935_v17  ;;  %v5939_v0 = vmul.f32 1.442695, %v5699_v51  ;;  %v16442_v11 = vadd.f32 %v15984_v47, %v5323_v55  ;;  %v5322_v53 = vadd.f32 %v16356_v63, %v4011_v43  ;;  %v4013_v46 = vadd.f32 %v16382_v44, %v17797_v48 }
 0x2dc   : > { %6808 = vrot.lane.b32.xlu0 %v6803_v18, %s13188_s23  ;;  %v6407_v58 = vld [vmem:[#allocation2 + $0x340] ss:$2 sm:$0xff]  ;;  %v13076_v45 = vpop.eup %13075  ;;  %v6187_v22 = vsel %vm5567_vm11, %v16286_v36, %v10458_v39  ;;  %13087 = vpow2.f32 %v5941_v49  ;;  %v5325_v29 = vadd.f32 %v12238_v6, %v4014_v7  ;;  %v4016_v31 = vadd.f32 %v12051_v40, %v17798_v54  ;;  %v6603_v1 = vld [vmem:[#allocation2 + $0x341] ss:$2 sm:$0xff]  ;;  %v6937_v12 = vpop.permute.xlu1 %6936 }
 0x2dd   : > { %6410 = vst.msk [vmem:[#allocation3 + $0xc3] sm:$0xff] %vm6203_vm2, %v6407_v58  ;;  %6312 = vst.msk [vmem:[#allocation2 + $0x360] sm:$0xff] %vm6203_vm2, %v6187_v22  ;;  %vm5570_vm13 = vcmp.gt.f32.partialorder %v16308_v30, 0.0  ;;  %v10461_v63 = vadd.f32 -1.0, %v13076_v45  ;;  %13089 = vpow2.f32 %v5939_v0  ;;  %v5702_v44 = vmin.f32 %v16442_v11, 0.0  ;;  %v6725_v27 = vpop.permute.xlu0 %6724 }
 0x2de   : > { %v13078_v16 = vpop.eup %13077  ;;  %v16457_v36 = vadd.f32 %v15984_v47, %v5322_v53  ;;  %v5456_v6 = vadd.f32 %v15984_v47, %v5325_v29  ;;  %v5324_v26 = vadd.f32 %v5185_v37, %v4013_v46  ;;  %v4015_v24 = vadd.f32 %v3884_v35, %v17799_v57  ;;  %6729 = vst.msk [vmem:[#allocation3 + $0x62] sm:$0x7f] %vm6644_vm12, %v6725_v27  ;;  %v13174_v37 = vld [vmem:[%s17627_s2] ss:$0 sm:$0xff] }
 0x2df   : > { %v13080_v14 = vpop.eup %13079  ;;  %v6190_v5 = vsel %vm5570_vm13, %v16308_v30, %v10461_v63  ;;  %v10460_v9 = vadd.f32 -1.0, %v13078_v16  ;;  %v5945_v61 = vmul.f32 1.442695, %v5702_v44  ;;  %v5327_v32 = vadd.f32 %v12241_v20, %v4016_v31  ;;  %6941 = vst.msk [vmem:[#allocation3 + $0x62] sm:$0x7f] %vm6856_vm14, %v6937_v12 }
 0x2e0   : > { %6608 = vrot.lane.b32.xlu0 %v6603_v1, %s13187_s22  ;;  %6315 = vst.msk [vmem:[#allocation2 + $0x378] sm:$0xff] %vm6203_vm2, %v6190_v5  ;;  %vm5569_vm15 = vcmp.gt.f32.partialorder %v16320_v50, 0.0  ;;  %vm5572_vm6 = vcmp.gt.f32.partialorder %v16327_v34, 0.0  ;;  %v10463_v2 = vadd.f32 -1.0, %v13080_v14  ;;  %v5701_v59 = vmin.f32 %v16457_v36, 0.0 }
 0x2e1   : > { %v13082_v30 = vpop.eup %13081  ;;  %v6189_v52 = vsel %vm5569_vm15, %v16320_v50, %v10460_v9  ;;  %13091 = vpow2.f32 %v5945_v61  ;;  %v5704_v43 = vmin.f32 %v5456_v6, 0.0  ;;  %v5455_v40 = vadd.f32 %v15984_v47, %v5324_v26  ;;  %v6525_v21 = vpop.permute.xlu0 %6524  ;;  %v6409_v47 = vld [vmem:[#allocation2 + $0x350] ss:$2 sm:$0x7f] }
 0x2e2   : > { %v7096_v17 = vld [vmem:[#allocation3 + $0x59] sm:$0xff]  ;;  %6314 = vst.msk [vmem:[#allocation2 + $0x370] sm:$0xff] %vm6203_vm2, %v6189_v52  ;;  %v6192_v38 = vsel %vm5572_vm6, %v16327_v34, %v10463_v2  ;;  %v10462_v23 = vadd.f32 -1.0, %v13082_v30  ;;  %v5943_v41 = vmul.f32 1.442695, %v5701_v59  ;;  %v5458_v10 = vadd.f32 %v13174_v37, %v5327_v32 }
 0x2e3   : > { %v16471_v25 = vld [vmem:[#allocation3 + $0x58] sm:$0xff]  ;;  %12284 = vmatmul.mubr.msk.f32.gmra.mxu0 %vm7117_vm4, %v7096_v17  ;;  %6317 = vst.msk [vmem:[#allocation2 + $0x388] sm:$0xff] %vm6203_vm2, %v6192_v38  ;;  %vm5571_vm8 = vcmp.gt.f32.partialorder %v16342_v60, 0.0  ;;  %v5949_v50 = vmul.f32 1.442695, %v5704_v43  ;;  %v5703_v34 = vmin.f32 %v5455_v40, 0.0  ;;  %v5326_v28 = vadd.f32 %v5195_v3, %v4015_v24 }
 0x2e4   : > { %12373 = vmatmul.mubr.msk.f32.gmra.mxu1 %vm7117_vm4, %v16471_v25  ;;  %6530 = vst.msk [vmem:[#allocation3 + $0x69] sm:$0xff] %vm6430_vm3, %v6525_v21  ;;  %12286 = vmatprep.mubr.msk.f32.mxu0 %vm13190_vm0, %v17691_v13  ;;  %v6191_v51 = vsel %vm5571_vm8, %v16342_v60, %v10462_v23  ;;  %13093 = vpow2.f32 %v5943_v41  ;;  %v5706_v55 = vmin.f32 %v5458_v10, 0.0  ;;  %v6815_v56 = vld [vmem:[#allocation2 + $0x360] ss:$2 sm:$0xff]  ;;  %v7027_v33 = vld [vmem:[#allocation2 + $0x361] ss:$2 sm:$0xff]  ;;  %v6527_v42 = vpop.permute.xlu1 %6526 }
 0x2e5   : > { %12375 = vmatprep.mubr.msk.f32.mxu1 %vm13190_vm0, %v17691_v13  ;;  %6411 = vst.msk [vmem:[#allocation3 + $0xcb] sm:$0x7f] %vm6327_vm9, %v6409_v47  ;;  %13095 = vpow2.f32 %v5949_v50  ;;  %v5947_v39 = vmul.f32 1.442695, %v5703_v34  ;;  %v5457_v49 = vadd.f32 %v13174_v37, %v5326_v28  ;;  %6820 = vrot.lane.b32.xlu1 %v6815_v56, %s13188_s23  ;;  %vm5574_vm10 = vcmp.gt.f32.partialorder %v16378_v8, 0.0 }
 0x2e6   : > { %6316 = vst.msk [vmem:[#allocation2 + $0x380] sm:$0xff] %vm6203_vm2, %v6191_v51  ;;  %7032 = vrot.lane.b32.xlu0 %v7027_v33, %s13189_s24  ;;  %v13084_v7 = vpop.eup %13083  ;;  %v5953_v18 = vmul.f32 1.442695, %v5706_v55  ;;  %v7097_v48 = vld [vmem:[#allocation3 + $0x61] sm:$0xff]  ;;  %vm5573_vm11 = vcmp.gt.f32.partialorder %v16387_v4, 0.0  ;;  %vm5576_vm13 = vcmp.gt.f32.partialorder %v16395_v62, 0.0 }
 0x2e7   : > { %6531 = vst.msk [vmem:[#allocation3 + $0x71] sm:$0x7f] %vm6432_vm1, %v6527_v42  ;;  %v13086_v0 = vpop.eup %13085  ;;  %v10465_v60 = vadd.f32 -1.0, %v13084_v7  ;;  %13097 = vpow2.f32 %v5947_v39  ;;  %v5705_v53 = vmin.f32 %v5457_v49, 0.0  ;;  %v16494_v46 = vld [vmem:[#allocation3 + $0x60] sm:$0xff]  ;;  %12287 = vmatmul.mubr.msk.f32.gmra.mxu0 %vm7117_vm4, %v7097_v48  ;;  %v6949_v45 = vpop.permute.xlu0 %6948  ;;  %vm5575_vm15 = vcmp.gt.f32.partialorder %v16406_v19, 0.0 }
 0x2e8   : > { %v10464_v35 = vadd.f32 -1.0, %v13086_v0  ;;  %13099 = vpow2.f32 %v5953_v18  ;;  %v6605_v58 = vld [vmem:[#allocation2 + $0x351] ss:$2 sm:$0x7f]  ;;  %12376 = vmatmul.mubr.msk.f32.gmra.mxu1 %vm7117_vm4, %v16494_v46  ;;  %v6737_v20 = vpop.permute.xlu1 %6736  ;;  %12289 = vmatprep.mubr.msk.f32.mxu0 %vm13190_vm0, %v17691_v13  ;;  %vm5578_vm6 = vcmp.gt.f32.partialorder %v16442_v11, 0.0  ;;  %vm5577_vm8 = vcmp.gt.f32.partialorder %v16457_v36, 0.0 }
 0x2e9   : > { %v13088_v22 = vpop.eup %13087  ;;  %v6194_v29 = vsel %vm5574_vm10, %v16378_v8, %v10465_v60  ;;  %v5951_v54 = vmul.f32 1.442695, %v5705_v53  ;;  %6610 = vrot.lane.b32.xlu1 %v6605_v58, %s13187_s22  ;;  %v6817_v31 = vld [vmem:[#allocation2 + $0x370] ss:$2 sm:$0x7f]  ;;  %6742 = vst.msk [vmem:[#allocation3 + $0x69] sm:$0xff] %vm6642_vm5, %v6737_v20  ;;  %12378 = vmatprep.mubr.msk.f32.mxu1 %vm13190_vm0, %v17691_v13 }
 0x2ea   : > { %v13090_v1 = vpop.eup %13089  ;;  %6319 = vst.msk [vmem:[#allocation2 + $0x398] sm:$0xff] %vm6203_vm2, %v6194_v29  ;;  %v6193_v63 = vsel %vm5573_vm11, %v16387_v4, %v10464_v35  ;;  %v10467_v44 = vadd.f32 -1.0, %v13088_v22  ;;  %6822 = vrot.lane.b32.xlu0 %v6817_v31, %s13188_s23  ;;  %v7029_v12 = vld [vmem:[#allocation2 + $0x371] ss:$2 sm:$0x7f] }
 0x2eb   : > { %6318 = vst.msk [vmem:[#allocation2 + $0x390] sm:$0xff] %vm6203_vm2, %v6193_v63  ;;  %v10466_v8 = vadd.f32 -1.0, %v13090_v1  ;;  %13101 = vpow2.f32 %v5951_v54 }
 0x2ec   : > { %6954 = vst.msk [vmem:[#allocation3 + $0x69] sm:$0xff] %vm6854_vm7, %v6949_v45  ;;  %v6196_v16 = vsel %vm5576_vm13, %v16395_v62, %v10467_v44 }
 0x2ed   : > { %v6617_v4 = vld [vmem:[#allocation2 + $0x381] ss:$2 sm:$0xff]  ;;  %v6413_v6 = vld [vmem:[#allocation2 + $0x380] ss:$2 sm:$0xff]  ;;  %6321 = vst.msk [vmem:[#allocation2 + $0x3a8] sm:$0xff] %vm6203_vm2, %v6196_v16  ;;  %v6195_v26 = vsel %vm5575_vm15, %v16406_v19, %v10466_v8  ;;  %7034 = vrot.lane.b32.xlu1 %v7029_v12, %s13189_s24 }
 0x2ee   : > { %6416 = vst.msk [vmem:[#allocation3 + $0xd2] sm:$0xff] %vm6203_vm2, %v6413_v6  ;;  %v13092_v57 = vpop.eup %13091  ;;  %6320 = vst.msk [vmem:[#allocation2 + $0x3a0] sm:$0xff] %vm6203_vm2, %v6195_v26  ;;  %6622 = vrot.lane.b32.xlu0 %v6617_v4, %s13187_s22 }
 0x2ef   : > { %v10469_v24 = vadd.f32 -1.0, %v13092_v57  ;;  %v6739_v27 = vpop.permute.xlu1 %6738 }
 0x2f0   : > { %6743 = vst.msk [vmem:[#allocation3 + $0x71] sm:$0x7f] %vm6644_vm12, %v6739_v27 }
 0x2f1   : > { %v13094_v62 = vpop.eup %13093  ;;  %v6198_v14 = vsel %vm5578_vm6, %v16442_v11, %v10469_v24 }
 0x2f2   : > { %v13096_v5 = vpop.eup %13095  ;;  %6323 = vst.msk [vmem:[#allocation2 + $0x3b8] sm:$0xff] %vm6203_vm2, %v6198_v14  ;;  %v10468_v19 = vadd.f32 -1.0, %v13094_v62  ;;  %v6415_v59 = vld [vmem:[#allocation2 + $0x390] ss:$2 sm:$0x7f] }
 0x2f3   : > { %v7098_v9 = vld [vmem:[#allocation3 + $0x69] sm:$0xff]  ;;  %v6951_v32 = vpop.permute.xlu1 %6950  ;;  %v6539_v2 = vpop.permute.xlu0 %6538  ;;  %6417 = vst.msk [vmem:[#allocation3 + $0xda] sm:$0x7f] %vm6327_vm9, %v6415_v59  ;;  %v6619_v17 = vld [vmem:[#allocation2 + $0x391] ss:$2 sm:$0x7f] }
 0x2f4   : > { %v16526_v61 = vld [vmem:[#allocation3 + $0x68] sm:$0xff]  ;;  %12290 = vmatmul.mubr.msk.f32.gmra.mxu0 %vm7117_vm4, %v7098_v9  ;;  %v13098_v3 = vpop.eup %13097  ;;  %v6197_v11 = vsel %vm5577_vm8, %v16457_v36, %v10468_v19  ;;  %6955 = vst.msk [vmem:[#allocation3 + $0x71] sm:$0x7f] %vm6856_vm14, %v6951_v32 }
 0x2f5   : > { %12379 = vmatmul.mubr.msk.f32.gmra.mxu1 %vm7117_vm4, %v16526_v61  ;;  %6544 = vst.msk [vmem:[#allocation3 + $0x78] sm:$0xff] %vm6430_vm3, %v6539_v2  ;;  %12292 = vmatprep.mubr.msk.f32.mxu0 %vm13190_vm0, %v17691_v13  ;;  %v13100_v30 = vpop.eup %13099  ;;  %v6829_v52 = vld [vmem:[#allocation2 + $0x3a0] ss:$2 sm:$0xff]  ;;  %v7041_v43 = vld [vmem:[#allocation2 + $0x3a1] ss:$2 sm:$0xff] }
 0x2f6   : > { %12381 = vmatprep.mubr.msk.f32.mxu1 %vm13190_vm0, %v17691_v13  ;;  %6322 = vst.msk [vmem:[#allocation2 + $0x3b0] sm:$0xff] %vm6203_vm2, %v6197_v11  ;;  %6834 = vrot.lane.b32.xlu1 %v6829_v52, %s13188_s23  ;;  %vm8556_vm2 = vcmask 130048  }
 0x2f7   : > { %7046 = vrot.lane.b32.xlu0 %v7041_v43, %s13189_s24  ;;  %v6541_v36 = vpop.permute.xlu1 %6540 }
 0x2f8   : > { %v13102_v40 = vpop.eup %13101  ;;  %6545 = vst.msk [vmem:[#allocation3 + $0x80] sm:$0x7f] %vm6432_vm1, %v6541_v36 }
 0x2fa   : > { %6624 = vrot.lane.b32.xlu1 %v6619_v17, %s13187_s22  ;;  %v6751_v38 = vpop.permute.xlu0 %6750  ;;  %s13191_s22 = smov 48  }
 0x2fb   : > { %v16545_v23 = vld [vmem:[#allocation3 + $0x70] sm:$0xff]  ;;  %6756 = vst.msk [vmem:[#allocation3 + $0x78] sm:$0xff] %vm6642_vm5, %v6751_v38 }
 0x2fc   : > { %12382 = vmatmul.mubr.msk.f32.gmra.mxu1 %vm7117_vm4, %v16545_v23 }
 0x2fd   : > { %v6831_v41 = vld [vmem:[#allocation2 + $0x3b0] ss:$2 sm:$0x7f]  ;;  %v7043_v37 = vld [vmem:[#allocation2 + $0x3b1] ss:$2 sm:$0x7f]  ;;  %12384 = vmatprep.mubr.msk.f32.mxu1 %vm13190_vm0, %v17691_v13 }
 0x2fe   : > { %6836 = vrot.lane.b32.xlu0 %v6831_v41, %s13188_s23  ;;  %7048 = vrot.lane.b32.xlu1 %v7043_v37, %s13189_s24  ;;  %s13192_s24 = smov 32  }
 0x300   : > { %v6963_v10 = vpop.permute.xlu0 %6962 }
 0x301   : > { %6968 = vst.msk [vmem:[#allocation3 + $0x78] sm:$0xff] %vm6854_vm7, %v6963_v10  ;;  %v6965_v21 = vpop.permute.xlu1 %6964 }
 0x304   : > { %v6753_v47 = vpop.permute.xlu0 %6752 }
 0x305   : > { %6757 = vst.msk [vmem:[#allocation3 + $0x80] sm:$0x7f] %vm6644_vm12, %v6753_v47 }
 0x306   : > { %6969 = vst.msk [vmem:[#allocation3 + $0x80] sm:$0x7f] %vm6856_vm14, %v6965_v21 }
 0x308   : > { %v6555_v50 = vpop.permute.xlu1 %6554  ;;  %v7099_v28 = vld [vmem:[#allocation3 + $0x71] sm:$0xff] }
 0x309   : > { %v6553_v34 = vpop.permute.xlu0 %6552  ;;  %v16557_v51 = vld [vmem:[#allocation3 + $0x78] sm:$0xff]  ;;  %6559 = vst.msk [vmem:[#allocation3 + $0x8f] sm:$0x7f] %vm6432_vm1, %v6555_v50  ;;  %12293 = vmatmul.mubr.msk.f32.gmra.mxu0 %vm7117_vm4, %v7099_v28 }
 0x30a   : > { %6558 = vst.msk [vmem:[#allocation3 + $0x87] sm:$0xff] %vm6430_vm3, %v6553_v34  ;;  %12385 = vmatmul.mubr.msk.f32.gmra.mxu1 %vm7117_vm4, %v16557_v51  ;;  %12295 = vmatprep.mubr.msk.f32.mxu0 %vm13190_vm0, %v17691_v13 }
 0x30b   : > { %12387 = vmatprep.mubr.msk.f32.mxu1 %vm13190_vm0, %v17691_v13 }
 0x30d   : > { %v7100_v55 = vld [vmem:[#allocation3 + $0x79] sm:$0xff] }
 0x30e   : > { %12296 = vmatmul.mubr.msk.f32.gmra.mxu0 %vm7117_vm4, %v7100_v55 }
 0x30f   : > { %12298 = vmatprep.mubr.msk.f32.mxu0 %vm13190_vm0, %v17691_v13  ;;  %v6765_v56 = vpop.permute.xlu1 %6764 }
 0x310   : > { %6770 = vst.msk [vmem:[#allocation3 + $0x87] sm:$0xff] %vm6642_vm5, %v6765_v56  ;;  %v6977_v33 = vpop.permute.xlu0 %6976 }
 0x311   : > { %6982 = vst.msk [vmem:[#allocation3 + $0x87] sm:$0xff] %vm6854_vm7, %v6977_v33 }
 0x313   : > { %v6979_v39 = vpop.permute.xlu1 %6978 }
 0x314   : > { %v6767_v49 = vpop.permute.xlu0 %6766 }
 0x315   : > { %6771 = vst.msk [vmem:[#allocation3 + $0x8f] sm:$0x7f] %vm6644_vm12, %v6767_v49 }
 0x316   : > { %6983 = vst.msk [vmem:[#allocation3 + $0x8f] sm:$0x7f] %vm6856_vm14, %v6979_v39 }
 0x318   : > { %v6567_v42 = vpop.permute.xlu0 %6566  ;;  %v7101_v7 = vld [vmem:[#allocation3 + $0x81] sm:$0xff] }
 0x319   : > { %v16575_v18 = vld [vmem:[#allocation3 + $0x80] sm:$0xff]  ;;  %6572 = vst.msk [vmem:[#allocation3 + $0x96] sm:$0xff] %vm6430_vm3, %v6567_v42  ;;  %12299 = vmatmul.mubr.msk.f32.gmra.mxu0 %vm7117_vm4, %v7101_v7 }
 0x31a   : > { %12388 = vmatmul.mubr.msk.f32.gmra.mxu1 %vm7117_vm4, %v16575_v18  ;;  %12301 = vmatprep.mubr.msk.f32.mxu0 %vm13190_vm0, %v17691_v13 }
 0x31b   : > { %12390 = vmatprep.mubr.msk.f32.mxu1 %vm13190_vm0, %v17691_v13 }
 0x31c   : > { %v6569_v0 = vpop.permute.xlu1 %6568 }
 0x31d   : > { %6573 = vst.msk [vmem:[#allocation3 + $0x9e] sm:$0x7f] %vm6432_vm1, %v6569_v0  ;;  %v7102_v60 = vld [vmem:[#allocation3 + $0x89] sm:$0xff] }
 0x31e   : > { %v16586_v53 = vld [vmem:[#allocation3 + $0x88] sm:$0xff]  ;;  %12302 = vmatmul.mubr.msk.f32.gmra.mxu0 %vm7117_vm4, %v7102_v60 }
 0x31f   : > { %12391 = vmatmul.mubr.msk.f32.gmra.mxu1 %vm7117_vm4, %v16586_v53  ;;  %12304 = vmatprep.mubr.msk.f32.mxu0 %vm13190_vm0, %v17691_v13 }
 0x320   : > { %12393 = vmatprep.mubr.msk.f32.mxu1 %vm13190_vm0, %v17691_v13 }
 0x321   : > { %v6779_v48 = vpop.permute.xlu1 %6778 }
 0x322   : > { %6784 = vst.msk [vmem:[#allocation3 + $0x96] sm:$0xff] %vm6642_vm5, %v6779_v48  ;;  %v6991_v35 = vpop.permute.xlu0 %6990 }
 0x323   : > { %6996 = vst.msk [vmem:[#allocation3 + $0x96] sm:$0xff] %vm6854_vm7, %v6991_v35 }
 0x327   : > { %v6993_v58 = vpop.permute.xlu1 %6992 }
 0x328   : > { %v6781_v45 = vpop.permute.xlu0 %6780 }
 0x329   : > { %6785 = vst.msk [vmem:[#allocation3 + $0x9e] sm:$0x7f] %vm6644_vm12, %v6781_v45 }
 0x32a   : > { %6997 = vst.msk [vmem:[#allocation3 + $0x9e] sm:$0x7f] %vm6856_vm14, %v6993_v58  ;;  %v7103_v22 = vld [vmem:[#allocation3 + $0x91] sm:$0xff] }
 0x32b   : > { %v16599_v29 = vld [vmem:[#allocation3 + $0x90] sm:$0xff]  ;;  %12305 = vmatmul.mubr.msk.f32.gmra.mxu0 %vm7117_vm4, %v7103_v22 }
 0x32c   : > { %v6581_v54 = vpop.permute.xlu0 %6580  ;;  %12394 = vmatmul.mubr.msk.f32.gmra.mxu1 %vm7117_vm4, %v16599_v29  ;;  %12307 = vmatprep.mubr.msk.f32.mxu0 %vm13190_vm0, %v17691_v13 }
 0x32d   : > { %6586 = vst.msk [vmem:[#allocation3 + $0xa5] sm:$0xff] %vm6430_vm3, %v6581_v54  ;;  %12396 = vmatprep.mubr.msk.f32.mxu1 %vm13190_vm0, %v17691_v13 }
 0x32e   : > { %v6583_v31 = vpop.permute.xlu1 %6582 }
 0x32f   : > { %6587 = vst.msk [vmem:[#allocation3 + $0xad] sm:$0x7f] %vm6432_vm1, %v6583_v31 }
 0x331   : > { %v7104_v20 = vld [vmem:[#allocation3 + $0x99] sm:$0xff] }
 0x332   : > { %v16610_v1 = vld [vmem:[#allocation3 + $0x98] sm:$0xff]  ;;  %12308 = vmatmul.mubr.msk.f32.gmra.mxu0 %vm7117_vm4, %v7104_v20 }
 0x333   : > { %12397 = vmatmul.mubr.msk.f32.gmra.mxu1 %vm7117_vm4, %v16610_v1  ;;  %12310 = vmatprep.mubr.msk.f32.mxu0 %vm13190_vm0, %v17691_v13 }
 0x334   : > { %12399 = vmatprep.mubr.msk.f32.mxu1 %vm13190_vm0, %v17691_v13  ;;  %v6793_v63 = vpop.permute.xlu1 %6792 }
 0x335   : > { %v7005_v44 = vpop.permute.xlu0 %7004  ;;  %6798 = vst.msk [vmem:[#allocation3 + $0xa5] sm:$0xff] %vm6642_vm5, %v6793_v63 }
 0x336   : > { %7010 = vst.msk [vmem:[#allocation3 + $0xa5] sm:$0xff] %vm6854_vm7, %v7005_v44 }
 0x338   : > { %v7007_v8 = vpop.permute.xlu1 %7006 }
 0x33a   : > { %v6795_v12 = vpop.permute.xlu0 %6794 }
 0x33b   : > { %6799 = vst.msk [vmem:[#allocation3 + $0xad] sm:$0x7f] %vm6644_vm12, %v6795_v12 }
 0x33c   : > { %7011 = vst.msk [vmem:[#allocation3 + $0xad] sm:$0x7f] %vm6856_vm14, %v7007_v8 }
 0x33d   : > { %v7105_v4 = vld [vmem:[#allocation3 + $0xa1] sm:$0xff] }
 0x33e   : > { %v6595_v16 = vpop.permute.xlu0 %6594  ;;  %v16623_v6 = vld [vmem:[#allocation3 + $0xa0] sm:$0xff]  ;;  %12311 = vmatmul.mubr.msk.f32.gmra.mxu0 %vm7117_vm4, %v7105_v4 }
 0x33f   : > { %6600 = vst.msk [vmem:[#allocation3 + $0xb4] sm:$0xff] %vm6430_vm3, %v6595_v16  ;;  %12400 = vmatmul.mubr.msk.f32.gmra.mxu1 %vm7117_vm4, %v16623_v6  ;;  %12313 = vmatprep.mubr.msk.f32.mxu0 %vm13190_vm0, %v17691_v13 }
 0x340   : > { %12402 = vmatprep.mubr.msk.f32.mxu1 %vm13190_vm0, %v17691_v13 }
 0x341   : > { %v6597_v26 = vpop.permute.xlu1 %6596 }
 0x342   : > { %6601 = vst.msk [vmem:[#allocation3 + $0xbc] sm:$0x7f] %vm6432_vm1, %v6597_v26 }
 0x343   : > { %v7106_v57 = vld [vmem:[#allocation3 + $0xa9] sm:$0xff] }
 0x344   : > { %v16634_v24 = vld [vmem:[#allocation3 + $0xa8] sm:$0xff]  ;;  %12314 = vmatmul.mubr.msk.f32.gmra.mxu0 %vm7117_vm4, %v7106_v57 }
 0x345   : > { %12403 = vmatmul.mubr.msk.f32.gmra.mxu1 %vm7117_vm4, %v16634_v24  ;;  %12316 = vmatprep.mubr.msk.f32.mxu0 %vm13190_vm0, %v17691_v13 }
 0x346   : > { %12405 = vmatprep.mubr.msk.f32.mxu1 %vm13190_vm0, %v17691_v13  ;;  %v6807_v27 = vpop.permute.xlu1 %6806  ;;  %v7019_v62 = vpop.permute.xlu0 %7018 }
 0x347   : > { %6812 = vst.msk [vmem:[#allocation3 + $0xb4] sm:$0xff] %vm6642_vm5, %v6807_v27 }
 0x348   : > { %7024 = vst.msk [vmem:[#allocation3 + $0xb4] sm:$0xff] %vm6854_vm7, %v7019_v62 }
 0x34c   : > { %v7021_v14 = vpop.permute.xlu1 %7020 }
 0x34e   : > { %v6809_v5 = vpop.permute.xlu0 %6808  ;;  %v7546_v32 = vpop.f32.mrf.mxu1 }
 0x34f   : > { %6813 = vst.msk [vmem:[#allocation3 + $0xbc] sm:$0x7f] %vm6644_vm12, %v6809_v5  ;;  %v7107_v19 = vld [vmem:[#allocation3 + $0xb1] sm:$0xff] }
 0x350   : > { %v16646_v9 = vld [vmem:[#allocation3 + $0xb0] sm:$0xff]  ;;  %7025 = vst.msk [vmem:[#allocation3 + $0xbc] sm:$0x7f] %vm6856_vm14, %v7021_v14  ;;  %12317 = vmatmul.mubr.msk.f32.gmra.mxu0 %vm7117_vm4, %v7107_v19  ;;  %v12341_v59 = vpop.f32.mrf.mxu1 }
 0x351   : > { %12406 = vmatmul.mubr.msk.f32.gmra.mxu1 %vm7117_vm4, %v16646_v9  ;;  %12319 = vmatprep.mubr.msk.f32.mxu0 %vm13190_vm0, %v17691_v13  ;;  %v7680_v19 = vld [vmem:[#allocation3 + $0xf] sm:$0xff] }
 0x352   : > { %12408 = vmatprep.mubr.msk.f32.mxu1 %vm13190_vm0, %v17691_v13  ;;  %v6609_v2 = vpop.permute.xlu0 %6608 }
 0x353   : > { %6614 = vst.msk [vmem:[#allocation3 + $0xc3] sm:$0xff] %vm6430_vm3, %v6609_v2  ;;  %v7265_v3 = vpop.f32.mrf.mxu0 }
 0x354   : > { %v16657_v11 = vadd.f32 %v7546_v32, %v7265_v3  ;;  %v7551_v30 = vpop.f32.mrf.mxu1  ;;  %v8020_v32 = vld [vmem:[#allocation3 + $0x10] sm:$0xff] }
 0x355   : > { %v12252_v52 = vpop.f32.mrf.mxu0 }
 0x356   : > { %v12344_v43 = vpop.f32.mrf.mxu1  ;;  %v8021_v52 = vld [vmem:[#allocation3 + $0x18] sm:$0xff] }
 0x357   : > { %v7108_v36 = vld [vmem:[#allocation3 + $0xb9] sm:$0xff]  ;;  %v6821_v17 = vpop.permute.xlu1 %6820  ;;  %v7270_v41 = vpop.f32.mrf.mxu0 }
 0x358   : > { %v16659_v40 = vld [vmem:[#allocation3 + $0xb8] sm:$0xff]  ;;  %12320 = vmatmul.mubr.msk.f32.gmra.mxu0 %vm7117_vm4, %v7108_v36  ;;  %v7033_v38 = vpop.permute.xlu0 %7032  ;;  %6826 = vst.msk [vmem:[#allocation3 + $0xc3] sm:$0xff] %vm6642_vm5, %v6821_v17  ;;  %v7556_v37 = vpop.f32.mrf.mxu1  ;;  %v16670_v10 = vadd.f32 %v7551_v30, %v7270_v41  ;;  %v8022_v41 = vld [vmem:[#allocation3 + $0x20] sm:$0xff] }
 0x359   : > { %12409 = vmatmul.mubr.msk.f32.gmra.mxu1 %vm7117_vm4, %v16659_v40  ;;  %12322 = vmatprep.mubr.msk.f32.mxu0 %vm13190_vm0, %v17691_v13  ;;  %7038 = vst.msk [vmem:[#allocation3 + $0xc3] sm:$0xff] %vm6854_vm7, %v7033_v38  ;;  %v12255_v21 = vpop.f32.mrf.mxu0  ;;  %v7681_v30 = vld [vmem:[#allocation3 + $0x17] sm:$0xff]  ;;  %v7682_v38 = vld [vmem:[#allocation3 + $0x1f] sm:$0xff] }
 0x35a   : > { %12411 = vmatprep.mubr.msk.f32.mxu1 %vm13190_vm0, %v17691_v13  ;;  %v12347_v47 = vpop.f32.mrf.mxu1  ;;  %v8023_v21 = vld [vmem:[#allocation3 + $0x28] sm:$0xff] }
 0x35b   : > { %v6611_v50 = vpop.permute.xlu1 %6610  ;;  %v7275_v28 = vpop.f32.mrf.mxu0 }
 0x35c   : > { %6615 = vst.msk [vmem:[#allocation3 + $0xcb] sm:$0x7f] %vm6432_vm1, %v6611_v50  ;;  %v6823_v34 = vpop.permute.xlu0 %6822  ;;  %v16674_v55 = vadd.f32 %v7556_v37, %v7275_v28  ;;  %v7561_v56 = vpop.f32.mrf.mxu1  ;;  %v7683_v37 = vld [vmem:[#allocation3 + $0x27] sm:$0xff]  ;;  %v8024_v28 = vld [vmem:[#allocation3 + $0x30] sm:$0xff] }
 0x35d   : > { %6827 = vst.msk [vmem:[#allocation3 + $0xcb] sm:$0x7f] %vm6644_vm12, %v6823_v34  ;;  %v12258_v33 = vpop.f32.mrf.mxu0  ;;  %v7684_v34 = vld [vmem:[#allocation3 + $0x2f] sm:$0xff] }
 0x35e   : > { %v12350_v49 = vpop.f32.mrf.mxu1 }
 0x35f   : > { %v7035_v39 = vpop.permute.xlu1 %7034  ;;  %v7280_v60 = vpop.f32.mrf.mxu0  ;;  %v7685_v49 = vld [vmem:[#allocation3 + $0x37] sm:$0xff] }
 0x360   : > { %7039 = vst.msk [vmem:[#allocation3 + $0xcb] sm:$0x7f] %vm6856_vm14, %v7035_v39  ;;  %v6623_v42 = vpop.permute.xlu0 %6622  ;;  %v7109_v7 = vld [vmem:[#allocation3 + $0xc1] sm:$0xff]  ;;  %v16683_v48 = vadd.f32 %v7561_v56, %v7280_v60 }
 0x361   : > { %v16677_v0 = vld [vmem:[#allocation3 + $0xc0] sm:$0xff]  ;;  %6628 = vst.msk [vmem:[#allocation3 + $0xd2] sm:$0xff] %vm6430_vm3, %v6623_v42  ;;  %12323 = vmatmul.mubr.msk.f32.gmra.mxu0 %vm7117_vm4, %v7109_v7  ;;  %v12261_v58 = vpop.f32.mrf.mxu0  ;;  %v13175_v42 = vld [vmem:[#allocation3 + $0x38] sm:$0xff] }
 0x362   : > { %12412 = vmatmul.mubr.msk.f32.gmra.mxu1 %vm7117_vm4, %v16677_v0  ;;  %12325 = vmatprep.mubr.msk.f32.mxu0 %vm13190_vm0, %v17691_v13 }
 0x363   : > { %v7566_v35 = vpop.f32.mrf.mxu1  ;;  %12414 = vmatprep.mubr.msk.f32.mxu1 %vm13190_vm0, %v17691_v13  ;;  %v7285_v22 = vpop.f32.mrf.mxu0 }
 0x364   : > { %v16689_v54 = vadd.f32 %v7566_v35, %v7285_v22  ;;  %v7686_v22 = vld [vmem:[#allocation3 + $0x3f] sm:$0xff] }
 0x365   : > { %v12353_v45 = vpop.f32.mrf.mxu1  ;;  %v12264_v31 = vpop.f32.mrf.mxu0 }
 0x366   : > { %v13176_v31 = vld [vmem:[#allocation3 + $0x40] sm:$0xff] }
 0x367   : > { %v7110_v20 = vld [vmem:[#allocation3 + $0xc9] sm:$0xff]  ;;  %v7111_v12 = vld [vmem:[#allocation3 + $0xd1] sm:$0x1] }
 0x368   : > { %v16691_v63 = vld [vmem:[#allocation3 + $0xc8] sm:$0xff]  ;;  %v6835_v44 = vpop.permute.xlu1 %6834  ;;  %12326 = vmatmul.mubr.msk.f32.gmra.mxu0 %vm7117_vm4, %v7110_v20  ;;  %v7080_v16 = vld [vmem:[#allocation3 + $0xd0] sm:$0x1] }
 0x369   : > { %v7047_v8 = vpop.permute.xlu0 %7046  ;;  %12415 = vmatmul.mubr.msk.f32.gmra.mxu1 %vm7117_vm4, %v16691_v63  ;;  %6840 = vst.msk [vmem:[#allocation3 + $0xd2] sm:$0xff] %vm6642_vm5, %v6835_v44  ;;  %12328 = vmatprep.mubr.msk.f32.mxu0 %vm13190_vm0, %v17691_v13  ;;  %v7687_v20 = vld [vmem:[#allocation3 + $0x47] sm:$0xff] }
 0x36a   : > { %12417 = vmatprep.mubr.msk.f32.mxu1 %vm13190_vm0, %v17691_v13  ;;  %7052 = vst.msk [vmem:[#allocation3 + $0xd2] sm:$0xff] %vm6854_vm7, %v7047_v8  ;;  %v13177_v44 = vld [vmem:[#allocation3 + $0x48] sm:$0xff]  ;;  %vm8586_vm7 = vcmask 129024  }
 0x36b   : > { %v7688_v8 = vld [vmem:[#allocation3 + $0x4f] sm:$0xff] }
 0x36c   : > { %v7290_v4 = vpop.f32.mrf.mxu0  ;;  %v6625_v57 = vpop.permute.xlu1 %6624  ;;  %12329 = vmatmul.mubr.msk.f32.gmra.mxu0 %vm7117_vm4, %v7111_v12 }
 0x36d   : > { %v7571_v26 = vpop.f32.mrf.mxu1  ;;  %12418 = vmatmul.mubr.msk.f32.gmra.mxu1 %vm7117_vm4, %v7080_v16  ;;  %6629 = vst.msk [vmem:[#allocation3 + $0xda] sm:$0x7f] %vm6432_vm1, %v6625_v57  ;;  %12428 = vmatprep.mubr.msk.f32.mxu0 %vm13190_vm0, %v17691_v13 }
 0x36e   : > { %v16704_v27 = vadd.f32 %v7571_v26, %v7290_v4  ;;  %12517 = vmatprep.mubr.msk.f32.mxu1 %vm13190_vm0, %v17691_v13  ;;  %v12267_v62 = vpop.f32.mrf.mxu0 }
 0x36f   : > { %v12356_v14 = vpop.f32.mrf.mxu1  ;;  %v7689_v62 = vld [vmem:[#allocation3 + $0x57] sm:$0xff] }
 0x370   : > { %v6837_v5 = vpop.permute.xlu0 %6836  ;;  %v7049_v2 = vpop.permute.xlu1 %7048  ;;  %12429 = vmatmul.mubr.msk.f32.vlgmr.msra.gmra.mxu0 %vm7117_vm4, %v7680_v19  ;;  %v7690_v19 = vld [vmem:[#allocation3 + $0x5f] sm:$0xff] }
 0x371   : > { %6841 = vst.msk [vmem:[#allocation3 + $0xda] sm:$0x7f] %vm6644_vm12, %v6837_v5  ;;  %12518 = vmatmul.mubr.msk.f32.vlgmr.msra.gmra.mxu1 %vm7117_vm4, %v8020_v32  ;;  %12431 = vmatprep.mubr.msk.f32.mxu0 %vm13190_vm0, %v17691_v13 }
 0x372   : > { %7053 = vst.msk [vmem:[#allocation3 + $0xda] sm:$0x7f] %vm6856_vm14, %v7049_v2  ;;  %12520 = vmatprep.mubr.msk.f32.mxu1 %vm13190_vm0, %v17691_v13 }
 0x373   : > { %v7295_v59 = vpop.f32.mrf.mxu0 }
 0x374   : > { %v7576_v3 = vpop.f32.mrf.mxu1  ;;  %12432 = vmatmul.mubr.msk.f32.gmra.mxu0 %vm7117_vm4, %v7681_v30 }
 0x375   : > { %v16719_v43 = vadd.f32 %v7576_v3, %v7295_v59  ;;  %12521 = vmatmul.mubr.msk.f32.gmra.mxu1 %vm7117_vm4, %v8021_v52  ;;  %v12270_v36 = vpop.f32.mrf.mxu0  ;;  %12434 = vmatprep.mubr.msk.f32.mxu0 %vm13190_vm0, %v17691_v13  ;;  %v7692_v59 = vld [vmem:[#allocation3 + $0x6f] sm:$0xff]  ;;  %v7693_v3 = vld [vmem:[#allocation3 + $0x77] sm:$0xff] }
 0x376   : > { %v12359_v17 = vpop.f32.mrf.mxu1  ;;  %12523 = vmatprep.mubr.msk.f32.mxu1 %vm13190_vm0, %v17691_v13 }
 0x378   : > { %12435 = vmatmul.mubr.msk.f32.gmra.mxu0 %vm7117_vm4, %v7682_v38 }
 0x379   : > { %12524 = vmatmul.mubr.msk.f32.gmra.mxu1 %vm7117_vm4, %v8022_v41  ;;  %12437 = vmatprep.mubr.msk.f32.mxu0 %vm13190_vm0, %v17691_v13 }
 0x37a   : > { %12526 = vmatprep.mubr.msk.f32.mxu1 %vm13190_vm0, %v17691_v13 }
 0x37c   : > { %12438 = vmatmul.mubr.msk.f32.gmra.mxu0 %vm7117_vm4, %v7683_v37 }
 0x37d   : > { %12527 = vmatmul.mubr.msk.f32.gmra.mxu1 %vm7117_vm4, %v8023_v21  ;;  %12440 = vmatprep.mubr.msk.f32.mxu0 %vm13190_vm0, %v17691_v13  ;;  %v7695_v21 = vld [vmem:[#allocation3 + $0x87] sm:$0xff] }
 0x37e   : > { %12529 = vmatprep.mubr.msk.f32.mxu1 %vm13190_vm0, %v17691_v13 }
 0x37f   : > { %v7300_v47 = vpop.f32.mrf.mxu0 }
 0x380   : > { %v7581_v50 = vpop.f32.mrf.mxu1  ;;  %12441 = vmatmul.mubr.msk.f32.gmra.mxu0 %vm7117_vm4, %v7684_v34 }
 0x381   : > { %v16739_v56 = vadd.f32 %v7581_v50, %v7300_v47  ;;  %12530 = vmatmul.mubr.msk.f32.gmra.mxu1 %vm7117_vm4, %v8024_v28  ;;  %v12273_v33 = vpop.f32.mrf.mxu0  ;;  %12443 = vmatprep.mubr.msk.f32.mxu0 %vm13190_vm0, %v17691_v13  ;;  %v7697_v47 = vld [vmem:[#allocation3 + $0x97] sm:$0xff] }
 0x382   : > { %v12362_v39 = vpop.f32.mrf.mxu1  ;;  %12532 = vmatprep.mubr.msk.f32.mxu1 %vm13190_vm0, %v17691_v13  ;;  %v7698_v33 = vld [vmem:[#allocation3 + $0x9f] sm:$0xff] }
 0x384   : > { %12444 = vmatmul.mubr.msk.f32.gmra.mxu0 %vm7117_vm4, %v7685_v49  ;;  %v7700_v49 = vld [vmem:[#allocation3 + $0xaf] sm:$0xff] }
 0x385   : > { %12533 = vmatmul.mubr.msk.f32.gmra.mxu1 %vm7117_vm4, %v13175_v42  ;;  %12446 = vmatprep.mubr.msk.f32.mxu0 %vm13190_vm0, %v17691_v13  ;;  %v7702_v42 = vld [vmem:[#allocation3 + $0xbf] sm:$0xff] }
 0x386   : > { %v7305_v7 = vpop.f32.mrf.mxu0  ;;  %12535 = vmatprep.mubr.msk.f32.mxu1 %vm13190_vm0, %v17691_v13 }
 0x387   : > { %v7586_v60 = vpop.f32.mrf.mxu1 }
 0x388   : > { %v16753_v35 = vadd.f32 %v7586_v60, %v7305_v7  ;;  %v12276_v58 = vpop.f32.mrf.mxu0  ;;  %12447 = vmatmul.mubr.msk.f32.gmra.mxu0 %vm7117_vm4, %v7686_v22  ;;  %v7703_v60 = vld [vmem:[#allocation3 + $0xc7] sm:$0xff]  ;;  %v7704_v22 = vld [vmem:[#allocation3 + $0xcf] sm:$0xff] }
 0x389   : > { %v12365_v45 = vpop.f32.mrf.mxu1  ;;  %12536 = vmatmul.mubr.msk.f32.gmra.mxu1 %vm7117_vm4, %v13176_v31  ;;  %12449 = vmatprep.mubr.msk.f32.mxu0 %vm13190_vm0, %v17691_v13  ;;  %v8044_v31 = vld [vmem:[#allocation3 + $0xd0] sm:$0xff] }
 0x38a   : > { %12538 = vmatprep.mubr.msk.f32.mxu1 %vm13190_vm0, %v17691_v13 }
 0x38c   : > { %12450 = vmatmul.mubr.msk.f32.gmra.mxu0 %vm7117_vm4, %v7687_v20 }
 0x38d   : > { %12539 = vmatmul.mubr.msk.f32.gmra.mxu1 %vm7117_vm4, %v13177_v44  ;;  %12452 = vmatprep.mubr.msk.f32.mxu0 %vm13190_vm0, %v17691_v13 }
 0x38e   : > { %12541 = vmatprep.mubr.msk.f32.mxu1 %vm13190_vm0, %v17691_v13 }
 0x390   : > { %12453 = vmatmul.mubr.msk.f32.gmra.mxu0 %vm7117_vm4, %v7688_v8  ;;  %v8045_v8 = vld [vmem:[#allocation3 + $0xd8] sm:$0xff] }
 0x391   : > { %12542 = vmatmul.mubr.msk.f32.gmra.mxu1 %vm7117_vm4, %v16391_v15  ;;  %v7310_v12 = vpop.f32.mrf.mxu0  ;;  %12455 = vmatprep.mubr.msk.f32.mxu0 %vm13190_vm0, %v17691_v13 }
 0x392   : > { %v7591_v16 = vpop.f32.mrf.mxu1  ;;  %12544 = vmatprep.mubr.msk.f32.mxu1 %vm13190_vm0, %v17691_v13 }
 0x393   : > { %v16774_v4 = vadd.f32 %v7591_v16, %v7310_v12  ;;  %v12279_v26 = vpop.f32.mrf.mxu0  ;;  %v7706_v12 = vld [vmem:[#allocation3 + $0xdf] sm:$0x1]  ;;  %v8046_v16 = vld [vmem:[#allocation3 + $0xe0] sm:$0x1] }
 0x394   : > { %v12368_v57 = vpop.f32.mrf.mxu1  ;;  %12456 = vmatmul.mubr.msk.f32.gmra.mxu0 %vm7117_vm4, %v7689_v62 }
 0x395   : > { %12545 = vmatmul.mubr.msk.f32.gmra.mxu1 %vm7117_vm4, %v16471_v25  ;;  %12458 = vmatprep.mubr.msk.f32.mxu0 %vm13190_vm0, %v17691_v13  ;;  %v7691_v25 = vld [vmem:[#allocation3 + $0x67] sm:$0xff] }
 0x396   : > { %12547 = vmatprep.mubr.msk.f32.mxu1 %vm13190_vm0, %v17691_v13 }
 0x397   : > { %v7315_v15 = vpop.f32.mrf.mxu0 }
 0x398   : > { %v7596_v14 = vpop.f32.mrf.mxu1  ;;  %12459 = vmatmul.mubr.msk.f32.gmra.mxu0 %vm7117_vm4, %v7690_v19 }
 0x399   : > { %v16783_v5 = vadd.f32 %v7596_v14, %v7315_v15  ;;  %v12282_v32 = vpop.f32.mrf.mxu0  ;;  %12548 = vmatmul.mubr.msk.f32.gmra.mxu1 %vm7117_vm4, %v16494_v46  ;;  %12461 = vmatprep.mubr.msk.f32.mxu0 %vm13190_vm0, %v17691_v13 }
 0x39a   : > { %v12371_v2 = vpop.f32.mrf.mxu1  ;;  %12550 = vmatprep.mubr.msk.f32.mxu1 %vm13190_vm0, %v17691_v13 }
 0x39c   : > { %12462 = vmatmul.mubr.msk.f32.gmra.mxu0 %vm7117_vm4, %v7691_v25 }
 0x39d   : > { %12551 = vmatmul.mubr.msk.f32.gmra.mxu1 %vm7117_vm4, %v16526_v61  ;;  %12464 = vmatprep.mubr.msk.f32.mxu0 %vm13190_vm0, %v17691_v13 }
 0x39e   : > { %12553 = vmatprep.mubr.msk.f32.mxu1 %vm13190_vm0, %v17691_v13 }
 0x3a0   : > { %12465 = vmatmul.mubr.msk.f32.gmra.mxu0 %vm7117_vm4, %v7692_v59 }
 0x3a1   : > { %12554 = vmatmul.mubr.msk.f32.gmra.mxu1 %vm7117_vm4, %v16545_v23  ;;  %12467 = vmatprep.mubr.msk.f32.mxu0 %vm13190_vm0, %v17691_v13  ;;  %v7694_v23 = vld [vmem:[#allocation3 + $0x7f] sm:$0xff] }
 0x3a2   : > { %12556 = vmatprep.mubr.msk.f32.mxu1 %vm13190_vm0, %v17691_v13 }
 0x3a3   : > { %v7320_v46 = vpop.f32.mrf.mxu0 }
 0x3a4   : > { %v7601_v61 = vpop.f32.mrf.mxu1  ;;  %12468 = vmatmul.mubr.msk.f32.gmra.mxu0 %vm7117_vm4, %v7693_v3 }
 0x3a5   : > { %v16806_v30 = vadd.f32 %v7601_v61, %v7320_v46  ;;  %12557 = vmatmul.mubr.msk.f32.gmra.mxu1 %vm7117_vm4, %v16557_v51  ;;  %v12285_v52 = vpop.f32.mrf.mxu0  ;;  %12470 = vmatprep.mubr.msk.f32.mxu0 %vm13190_vm0, %v17691_v13 }
 0x3a6   : > { %v12374_v36 = vpop.f32.mrf.mxu1  ;;  %12559 = vmatprep.mubr.msk.f32.mxu1 %vm13190_vm0, %v17691_v13 }
 0x3a7   : > { %v7325_v17 = vpop.f32.mrf.mxu0 }
 0x3a8   : > { %12471 = vmatmul.mubr.msk.f32.gmra.mxu0 %vm7117_vm4, %v7694_v23  ;;  %v7606_v38 = vpop.f32.mrf.mxu1 }
 0x3a9   : > { %12560 = vmatmul.mubr.msk.f32.gmra.mxu1 %vm7117_vm4, %v16575_v18  ;;  %12473 = vmatprep.mubr.msk.f32.mxu0 %vm13190_vm0, %v17691_v13  ;;  %v16822_v51 = vadd.f32 %v7606_v38, %v7325_v17  ;;  %v12288_v41 = vpop.f32.mrf.mxu0  ;;  %v7696_v18 = vld [vmem:[#allocation3 + $0x8f] sm:$0xff] }
 0x3aa   : > { %12562 = vmatprep.mubr.msk.f32.mxu1 %vm13190_vm0, %v17691_v13  ;;  %v12377_v37 = vpop.f32.mrf.mxu1 }
 0x3ac   : > { %12474 = vmatmul.mubr.msk.f32.gmra.mxu0 %vm7117_vm4, %v7695_v21 }
 0x3ad   : > { %12563 = vmatmul.mubr.msk.f32.gmra.mxu1 %vm7117_vm4, %v16586_v53  ;;  %12476 = vmatprep.mubr.msk.f32.mxu0 %vm13190_vm0, %v17691_v13 }
 0x3ae   : > { %12565 = vmatprep.mubr.msk.f32.mxu1 %vm13190_vm0, %v17691_v13 }
 0x3b0   : > { %12477 = vmatmul.mubr.msk.f32.gmra.mxu0 %vm7117_vm4, %v7696_v18 }
 0x3b1   : > { %12566 = vmatmul.mubr.msk.f32.gmra.mxu1 %vm7117_vm4, %v16599_v29  ;;  %12479 = vmatprep.mubr.msk.f32.mxu0 %vm13190_vm0, %v17691_v13 }
 0x3b2   : > { %12568 = vmatprep.mubr.msk.f32.mxu1 %vm13190_vm0, %v17691_v13 }
 0x3b4   : > { %v7330_v53 = vpop.f32.mrf.mxu0  ;;  %12480 = vmatmul.mubr.msk.f32.gmra.mxu0 %vm7117_vm4, %v7697_v47 }
 0x3b5   : > { %v7611_v50 = vpop.f32.mrf.mxu1  ;;  %12569 = vmatmul.mubr.msk.f32.gmra.mxu1 %vm7117_vm4, %v16610_v1  ;;  %12482 = vmatprep.mubr.msk.f32.mxu0 %vm13190_vm0, %v17691_v13  ;;  %v7699_v1 = vld [vmem:[#allocation3 + $0xa7] sm:$0xff] }
 0x3b6   : > { %v16841_v34 = vadd.f32 %v7611_v50, %v7330_v53  ;;  %12571 = vmatprep.mubr.msk.f32.mxu1 %vm13190_vm0, %v17691_v13  ;;  %v12291_v29 = vpop.f32.mrf.mxu0 }
 0x3b7   : > { %v12380_v28 = vpop.f32.mrf.mxu1 }
 0x3b8   : > { %12483 = vmatmul.mubr.msk.f32.gmra.mxu0 %vm7117_vm4, %v7698_v33 }
 0x3b9   : > { %12572 = vmatmul.mubr.msk.f32.gmra.mxu1 %vm7117_vm4, %v16623_v6  ;;  %12485 = vmatprep.mubr.msk.f32.mxu0 %vm13190_vm0, %v17691_v13 }
 0x3ba   : > { %12574 = vmatprep.mubr.msk.f32.mxu1 %vm13190_vm0, %v17691_v13 }
 0x3bc   : > { %12486 = vmatmul.mubr.msk.f32.gmra.mxu0 %vm7117_vm4, %v7699_v1  ;;  %v7616_v39 = vpop.f32.mrf.mxu1 }
 0x3bd   : > { %12575 = vmatmul.mubr.msk.f32.gmra.mxu1 %vm7117_vm4, %v16634_v24  ;;  %12488 = vmatprep.mubr.msk.f32.mxu0 %vm13190_vm0, %v17691_v13  ;;  %v7701_v24 = vld [vmem:[#allocation3 + $0xb7] sm:$0xff] }
 0x3be   : > { %12577 = vmatprep.mubr.msk.f32.mxu1 %vm13190_vm0, %v17691_v13  ;;  %v12383_v6 = vpop.f32.mrf.mxu1 }
 0x3c0   : > { %12489 = vmatmul.mubr.msk.f32.gmra.mxu0 %vm7117_vm4, %v7700_v49 }
 0x3c1   : > { %12578 = vmatmul.mubr.msk.f32.gmra.mxu1 %vm7117_vm4, %v16646_v9  ;;  %12491 = vmatprep.mubr.msk.f32.mxu0 %vm13190_vm0, %v17691_v13 }
 0x3c2   : > { %12580 = vmatprep.mubr.msk.f32.mxu1 %vm13190_vm0, %v17691_v13 }
 0x3c4   : > { %12492 = vmatmul.mubr.msk.f32.gmra.mxu0 %vm7117_vm4, %v7701_v24 }
 0x3c5   : > { %12581 = vmatmul.mubr.msk.f32.gmra.mxu1 %vm7117_vm4, %v16659_v40  ;;  %12494 = vmatprep.mubr.msk.f32.mxu0 %vm13190_vm0, %v17691_v13 }
 0x3c6   : > { %12583 = vmatprep.mubr.msk.f32.mxu1 %vm13190_vm0, %v17691_v13 }
 0x3c8   : > { %12495 = vmatmul.mubr.msk.f32.gmra.mxu0 %vm7117_vm4, %v7702_v42 }
 0x3c9   : > { %12584 = vmatmul.mubr.msk.f32.gmra.mxu1 %vm7117_vm4, %v16677_v0  ;;  %12497 = vmatprep.mubr.msk.f32.mxu0 %vm13190_vm0, %v17691_v13  ;;  %v7335_v9 = vpop.f32.mrf.mxu0 }
 0x3ca   : > { %12586 = vmatprep.mubr.msk.f32.mxu1 %vm13190_vm0, %v17691_v13  ;;  %v7621_v40 = vpop.f32.mrf.mxu1  ;;  %v16882_v7 = vadd.f32 %v7616_v39, %v7335_v9 }
 0x3cb   : > { %v12294_v58 = vpop.f32.mrf.mxu0 }
 0x3cc   : > { %v12386_v45 = vpop.f32.mrf.mxu1  ;;  %12498 = vmatmul.mubr.msk.f32.gmra.mxu0 %vm7117_vm4, %v7703_v60 }
 0x3cd   : > { %12587 = vmatmul.mubr.msk.f32.gmra.mxu1 %vm7117_vm4, %v16691_v63  ;;  %12500 = vmatprep.mubr.msk.f32.mxu0 %vm13190_vm0, %v17691_v13  ;;  %v7705_v63 = vld [vmem:[#allocation3 + $0xd7] sm:$0xff] }
 0x3ce   : > { %12589 = vmatprep.mubr.msk.f32.mxu1 %vm13190_vm0, %v17691_v13  ;;  %v7340_v0 = vpop.f32.mrf.mxu0 }
 0x3cf   : > { %v16891_v20 = vadd.f32 %v7621_v40, %v7340_v0 }
 0x3d0   : > { %12501 = vmatmul.mubr.msk.f32.gmra.mxu0 %vm7117_vm4, %v7704_v22  ;;  %v12297_v44 = vpop.f32.mrf.mxu0 }
 0x3d1   : > { %12590 = vmatmul.mubr.msk.f32.gmra.mxu1 %vm7117_vm4, %v8044_v31  ;;  %12503 = vmatprep.mubr.msk.f32.mxu0 %vm13190_vm0, %v17691_v13 }
 0x3d2   : > { %12592 = vmatprep.mubr.msk.f32.mxu1 %vm13190_vm0, %v17691_v13 }
 0x3d4   : > { %12504 = vmatmul.mubr.msk.f32.gmra.mxu0 %vm7117_vm4, %v7705_v63 }
 0x3d5   : > { %12593 = vmatmul.mubr.msk.f32.gmra.mxu1 %vm7117_vm4, %v8045_v8  ;;  %12506 = vmatprep.mubr.msk.f32.mxu0 %vm13190_vm0, %v17691_v13 }
 0x3d6   : > { %12595 = vmatprep.mubr.msk.f32.mxu1 %vm13190_vm0, %v17691_v13 }
 0x3d8   : > { %12507 = vmatmul.mubr.msk.f32.gmra.mxu0 %vm7117_vm4, %v7706_v12 }
 0x3d9   : > { %12596 = vmatmul.mubr.msk.f32.gmra.mxu1 %vm7117_vm4, %v8046_v16  ;;  %v7345_v26 = vpop.f32.mrf.mxu0 }
 0x3da   : > { %v7626_v57 = vpop.f32.mrf.mxu1 }
 0x3db   : > { %v16907_v62 = vadd.f32 %v7626_v57, %v7345_v26  ;;  %v12300_v15 = vpop.f32.mrf.mxu0 }
 0x3dc   : > { %v12389_v14 = vpop.f32.mrf.mxu1 }
 0x3de   : > { %v7350_v19 = vpop.f32.mrf.mxu0 }
 0x3df   : > { %v7631_v32 = vpop.f32.mrf.mxu1 }
 0x3e0   : > { %v16909_v2 = vadd.f32 %v7631_v32, %v7350_v19  ;;  %v12303_v25 = vpop.f32.mrf.mxu0 }
 0x3e1   : > { %v12392_v59 = vpop.f32.mrf.mxu1 }
 0x3eb   : > { %v7355_v46 = vpop.f32.mrf.mxu0 }
 0x3ec   : > { %v7636_v61 = vpop.f32.mrf.mxu1 }
 0x3ed   : > { %v16911_v3 = vadd.f32 %v7636_v61, %v7355_v46  ;;  %v12306_v52 = vpop.f32.mrf.mxu0 }
 0x3ee   : > { %v12395_v36 = vpop.f32.mrf.mxu1 }
 0x3ef   : > { %v16933_v36 = vld [vmem:[%s17629_s4] ss:$0 sm:$0xff] }
 0x3f2   : > { %v7360_v23 = vpop.f32.mrf.mxu0 }
 0x3f3   : > { %v7641_v17 = vpop.f32.mrf.mxu1 }
 0x3f4   : > { %v16913_v38 = vadd.f32 %v7641_v17, %v7360_v23  ;;  %v12309_v41 = vpop.f32.mrf.mxu0 }
 0x3f5   : > { %v12398_v37 = vpop.f32.mrf.mxu1 }
 0x3fe   : > { %v7365_v21 = vpop.f32.mrf.mxu0 }
 0x3ff   : > { %v7646_v18 = vpop.f32.mrf.mxu1 }
 0x400   : > { %v16915_v47 = vadd.f32 %v7646_v18, %v7365_v21  ;;  %v12312_v53 = vpop.f32.mrf.mxu0  ;;  %v10629_v18 = vld [vmem:[%s17630_s5 + $0x78] sm:$0xff] }
 0x401   : > { %v12401_v50 = vpop.f32.mrf.mxu1  ;;  %v8769_v53 = vld [vmem:[%s17630_s5 + $0x38] sm:$0xff]  ;;  %12598 = vmatprep.subr.mxu0 %v10629_v18 }
 0x402   : > { %12623 = vmatprep.subr.mxu1 %v8769_v53  ;;  %12599 = vmatpush3.msra.mxu0 %v10629_v18 }
 0x403   : > { %12624 = vmatpush3.msra.mxu1 %v8769_v53 }
 0x404   : > { %v7370_v29 = vpop.f32.mrf.mxu0 }
 0x405   : > { %v7651_v28 = vpop.f32.mrf.mxu1 }
 0x406   : > { %v16917_v33 = vadd.f32 %v7651_v28, %v7370_v29  ;;  %v12315_v1 = vpop.f32.mrf.mxu0 }
 0x407   : > { %v12404_v39 = vpop.f32.mrf.mxu1 }
 0x410   : > { %v7375_v6 = vpop.f32.mrf.mxu0 }
 0x411   : > { %v7656_v49 = vpop.f32.mrf.mxu1 }
 0x412   : > { %v16919_v24 = vadd.f32 %v7656_v49, %v7375_v6  ;;  %v12318_v42 = vpop.f32.mrf.mxu0 }
 0x413   : > { %v12407_v9 = vpop.f32.mrf.mxu1 }
 0x418   : > { %v7380_v40 = vpop.f32.mrf.mxu0 }
 0x419   : > { %v7661_v60 = vpop.f32.mrf.mxu1 }
 0x41a   : > { %v16921_v58 = vadd.f32 %v7661_v60, %v7380_v40  ;;  %v12321_v45 = vpop.f32.mrf.mxu0 }
 0x41b   : > { %v12410_v0 = vpop.f32.mrf.mxu1 }
 0x421   : > { %v7385_v22 = vpop.f32.mrf.mxu0 }
 0x422   : > { %v7666_v31 = vpop.f32.mrf.mxu1 }
 0x423   : > { %v16923_v44 = vadd.f32 %v7666_v31, %v7385_v22  ;;  %v12324_v63 = vpop.f32.mrf.mxu0 }
 0x424   : > { %v12413_v8 = vpop.f32.mrf.mxu1  ;;  %v10628_v63 = vld [vmem:[%s17630_s5 + $0x70] sm:$0xff] }
 0x425   : > { %v8768_v8 = vld [vmem:[%s17630_s5 + $0x30] sm:$0xff]  ;;  %12600 = vmatprep.subr.mxu0 %v10628_v63 }
 0x426   : > { %12625 = vmatprep.subr.mxu1 %v8768_v8  ;;  %12601 = vmatpush3.msra.mxu0 %v10628_v63  ;;  %v8767_v63 = vld [vmem:[%s17630_s5 + $0x28] sm:$0xff] }
 0x427   : > { %12626 = vmatpush3.msra.mxu1 %v8768_v8 }
 0x428   : > { %v7390_v12 = vpop.f32.mrf.mxu0  ;;  %12627 = vmatprep.subr.mxu1 %v8767_v63 }
 0x429   : > { %v7671_v16 = vpop.f32.mrf.mxu1  ;;  %12628 = vmatpush3.msra.mxu1 %v8767_v63 }
 0x42a   : > { %v16925_v26 = vadd.f32 %v7671_v16, %v7390_v12  ;;  %v12327_v57 = vpop.f32.mrf.mxu0 }
 0x42b   : > { %v12416_v15 = vpop.f32.mrf.mxu1 }
 0x42c   : > { %v7395_v14 = vpop.f32.mrf.mxu0 }
 0x42d   : > { %v7676_v19 = vpop.f32.mrf.mxu1 }
 0x42e   : > { %v16927_v32 = vadd.f32 %v7676_v19, %v7395_v14  ;;  %v12330_v25 = vpop.f32.mrf.mxu0 }
 0x42f   : > { %v12419_v59 = vpop.f32.mrf.mxu1 }
 0x430   : > { %v7859_v46 = vpop.f32.mrf.mxu0 }
 0x431   : > { %v8199_v61 = vpop.f32.mrf.mxu1  ;;  %v7993_v52 = vadd.f32 %v7859_v46, %v16657_v11 }
 0x432   : > { %v12430_v23 = vpop.f32.mrf.mxu0 }
 0x433   : > { %v12519_v17 = vpop.f32.mrf.mxu1  ;;  %v8333_v41 = vadd.f32 %v8199_v61, %v7993_v52 }
 0x434   : > { %v7864_v37 = vpop.f32.mrf.mxu0 }
 0x435   : > { %v8204_v21 = vpop.f32.mrf.mxu1  ;;  %v16942_v11 = vadd.f32 %v16933_v36, %v8333_v41  ;;  %v7994_v50 = vadd.f32 %v7864_v37, %v16670_v10 }
 0x436   : > { %v12433_v29 = vpop.f32.mrf.mxu0 }
 0x437   : > { %v12522_v28 = vpop.f32.mrf.mxu1  ;;  %v8421_v1 = vmin.f32 %v16942_v11, 0.0  ;;  %v8334_v39 = vadd.f32 %v8204_v21, %v7994_v50  ;;  %vm8394_vm9 = vcmp.gt.f32.partialorder %v16942_v11, 0.0 }
 0x438   : > { %v7869_v6 = vpop.f32.mrf.mxu0 }
 0x439   : > { %v8209_v49 = vpop.f32.mrf.mxu1  ;;  %v8448_v42 = vmul.f32 1.442695, %v8421_v1  ;;  %v16947_v9 = vadd.f32 %v16933_v36, %v8334_v39  ;;  %v7995_v40 = vadd.f32 %v7869_v6, %v16674_v55 }
 0x43a   : > { %v12436_v60 = vpop.f32.mrf.mxu0 }
 0x43b   : > { %v12525_v45 = vpop.f32.mrf.mxu1  ;;  %13103 = vpow2.f32 %v8448_v42  ;;  %v8422_v10 = vmin.f32 %v16947_v9, 0.0  ;;  %v8335_v0 = vadd.f32 %v8209_v49, %v7995_v40  ;;  %vm8395_vm3 = vcmp.gt.f32.partialorder %v16947_v9, 0.0 }
 0x43c   : > { %v7874_v22 = vpop.f32.mrf.mxu0 }
 0x43d   : > { %v8214_v31 = vpop.f32.mrf.mxu1  ;;  %v8450_v12 = vmul.f32 1.442695, %v8422_v10  ;;  %v16958_v16 = vadd.f32 %v16933_v36, %v8335_v0  ;;  %v7996_v55 = vadd.f32 %v7874_v22, %v16683_v48 }
 0x43e   : > { %v12439_v57 = vpop.f32.mrf.mxu0 }
 0x43f   : > { %v12528_v15 = vpop.f32.mrf.mxu1  ;;  %13105 = vpow2.f32 %v8450_v12  ;;  %v8423_v14 = vmin.f32 %v16958_v16, 0.0  ;;  %v8336_v19 = vadd.f32 %v8214_v31, %v7996_v55  ;;  %v10627_v31 = vld [vmem:[%s17630_s5 + $0x68] sm:$0xff]  ;;  %vm8396_vm1 = vcmp.gt.f32.partialorder %v16958_v16, 0.0 }
 0x440   : > { %v7879_v25 = vpop.f32.mrf.mxu0  ;;  %12602 = vmatprep.subr.mxu0 %v10627_v31 }
 0x441   : > { %v8219_v59 = vpop.f32.mrf.mxu1  ;;  %v8452_v46 = vmul.f32 1.442695, %v8423_v14  ;;  %v16963_v61 = vadd.f32 %v16933_v36, %v8336_v19  ;;  %v7997_v52 = vadd.f32 %v7879_v25, %v16689_v54  ;;  %12603 = vmatpush3.msra.mxu0 %v10627_v31 }
 0x442   : > { %v12442_v23 = vpop.f32.mrf.mxu0 }
 0x443   : > { %v12531_v48 = vpop.f32.mrf.mxu1  ;;  %13107 = vpow2.f32 %v8452_v46  ;;  %v8424_v17 = vmin.f32 %v16963_v61, 0.0  ;;  %v8337_v41 = vadd.f32 %v8219_v59, %v7997_v52  ;;  %vm8397_vm5 = vcmp.gt.f32.partialorder %v16963_v61, 0.0 }
 0x444   : > { %v7884_v37 = vpop.f32.mrf.mxu0 }
 0x445   : > { %v8224_v21 = vpop.f32.mrf.mxu1  ;;  %v8454_v18 = vmul.f32 1.442695, %v8424_v17  ;;  %v16968_v53 = vadd.f32 %v16933_v36, %v8337_v41  ;;  %v7998_v50 = vadd.f32 %v7884_v37, %v16704_v27 }
 0x446   : > { %v12445_v29 = vpop.f32.mrf.mxu0 }
 0x447   : > { %v12534_v28 = vpop.f32.mrf.mxu1  ;;  %13109 = vpow2.f32 %v8454_v18  ;;  %v8425_v1 = vmin.f32 %v16968_v53, 0.0  ;;  %v8338_v54 = vadd.f32 %v8224_v21, %v7998_v50  ;;  %vm8398_vm12 = vcmp.gt.f32.partialorder %v16968_v53, 0.0 }
 0x448   : > { %v13104_v39 = vpop.eup %13103  ;;  %v7889_v6 = vpop.f32.mrf.mxu0 }
 0x449   : > { %v8229_v49 = vpop.f32.mrf.mxu1  ;;  %v10595_v42 = vadd.f32 -1.0, %v13104_v39  ;;  %v8456_v40 = vmul.f32 1.442695, %v8425_v1  ;;  %v16973_v60 = vadd.f32 %v16933_v36, %v8338_v54  ;;  %v7999_v45 = vadd.f32 %v7889_v6, %v16719_v43 }
 0x44a   : > { %v12448_v27 = vpop.f32.mrf.mxu0 }
 0x44b   : > { %v12537_v10 = vpop.f32.mrf.mxu1  ;;  %v8529_v0 = vsel %vm8394_vm9, %v16942_v11, %v10595_v42  ;;  %13111 = vpow2.f32 %v8456_v40  ;;  %v8426_v22 = vmin.f32 %v16973_v60, 0.0  ;;  %v8339_v43 = vadd.f32 %v8229_v49, %v7999_v45 }
 0x44c   : > { %v13106_v8 = vpop.eup %13105  ;;  %8557 = vst.msk [vmem:[#allocation4] sm:$0xff] %vm8556_vm2, %v8529_v0  ;;  %v7894_v12 = vpop.f32.mrf.mxu0  ;;  %vm8399_vm14 = vcmp.gt.f32.partialorder %v16973_v60, 0.0 }
 0x44d   : > { %v8234_v55 = vpop.f32.mrf.mxu1  ;;  %v10596_v11 = vadd.f32 -1.0, %v13106_v8  ;;  %v8458_v57 = vmul.f32 1.442695, %v8426_v22  ;;  %v8000_v15 = vadd.f32 %v7894_v12, %v16739_v56  ;;  %v16989_v14 = vadd.f32 %v16933_v36, %v8339_v43 }
 0x44e   : > { %v12451_v19 = vpop.f32.mrf.mxu0 }
 0x44f   : > { %v12540_v25 = vpop.f32.mrf.mxu1  ;;  %v8530_v59 = vsel %vm8395_vm3, %v16947_v9, %v10596_v11  ;;  %13113 = vpow2.f32 %v8458_v57  ;;  %v8340_v46 = vadd.f32 %v8234_v55, %v8000_v15  ;;  %v8427_v23 = vmin.f32 %v16989_v14, 0.0 }
 0x450   : > { %v13108_v52 = vpop.eup %13107  ;;  %8558 = vst.msk [vmem:[#allocation4 + $0x8] sm:$0xff] %vm8556_vm2, %v8530_v59  ;;  %v7899_v48 = vpop.f32.mrf.mxu0  ;;  %v8766_v25 = vld [vmem:[%s17630_s5 + $0x20] sm:$0xff]  ;;  %vm8400_vm10 = vcmp.gt.f32.partialorder %v16989_v14, 0.0 }
 0x451   : > { %v8239_v56 = vpop.f32.mrf.mxu1  ;;  %v10597_v17 = vadd.f32 -1.0, %v13108_v52  ;;  %v16995_v41 = vadd.f32 %v16933_v36, %v8340_v46  ;;  %v8001_v37 = vadd.f32 %v7899_v48, %v16753_v35  ;;  %v8460_v21 = vmul.f32 1.442695, %v8427_v23  ;;  %12629 = vmatprep.subr.mxu1 %v8766_v25 }
 0x452   : > { %v12454_v18 = vpop.f32.mrf.mxu0  ;;  %12630 = vmatpush3.msra.mxu1 %v8766_v25 }
 0x453   : > { %v12543_v9 = vpop.f32.mrf.mxu1  ;;  %v8531_v50 = vsel %vm8396_vm1, %v16958_v16, %v10597_v17  ;;  %v8428_v29 = vmin.f32 %v16995_v41, 0.0  ;;  %v8341_v28 = vadd.f32 %v8239_v56, %v8001_v37  ;;  %13115 = vpow2.f32 %v8460_v21  ;;  %v10626_v16 = vld [vmem:[%s17630_s5 + $0x60] sm:$0xff] }
 0x454   : > { %v13110_v1 = vpop.eup %13109  ;;  %8559 = vst.msk [vmem:[#allocation4 + $0x10] sm:$0xff] %vm8556_vm2, %v8531_v50  ;;  %v7904_v54 = vpop.f32.mrf.mxu0  ;;  %12604 = vmatprep.subr.mxu0 %v10626_v16  ;;  %vm8401_vm11 = vcmp.gt.f32.partialorder %v16995_v41, 0.0 }
 0x455   : > { %v8244_v39 = vpop.f32.mrf.mxu1  ;;  %v10598_v6 = vadd.f32 -1.0, %v13110_v1  ;;  %v8462_v49 = vmul.f32 1.442695, %v8428_v29  ;;  %v17003_v35 = vadd.f32 %v16933_v36, %v8341_v28  ;;  %v8002_v42 = vadd.f32 %v7904_v54, %v16774_v4  ;;  %12605 = vmatpush3.msra.mxu0 %v10626_v16 }
 0x456   : > { %v12457_v40 = vpop.f32.mrf.mxu0 }
 0x457   : > { %v12546_v45 = vpop.f32.mrf.mxu1  ;;  %v8532_v27 = vsel %vm8397_vm5, %v16963_v61, %v10598_v6  ;;  %13117 = vpow2.f32 %v8462_v49  ;;  %v8429_v10 = vmin.f32 %v17003_v35, 0.0  ;;  %v8607_v0 = vld [vmem:[#allocation4 + $0x1] ss:$2 sm:$0x7f]  ;;  %v8342_v4 = vadd.f32 %v8244_v39, %v8002_v42 }
 0x458   : > { %v13112_v22 = vpop.eup %13111  ;;  %8560 = vst.msk [vmem:[#allocation4 + $0x18] sm:$0xff] %vm8556_vm2, %v8532_v27  ;;  %v7909_v31 = vpop.f32.mrf.mxu0  ;;  %8609 = vrot.lane.b32.xlu0 %v8607_v0, %s13188_s23  ;;  %v8585_v8 = vld [vmem:[#allocation4] ss:$2 sm:$0x7f]  ;;  %vm8402_vm13 = vcmp.gt.f32.partialorder %v17003_v35, 0.0 }
 0x459   : > { %v8249_v63 = vpop.f32.mrf.mxu1  ;;  %v10599_v43 = vadd.f32 -1.0, %v13112_v22  ;;  %v8464_v12 = vmul.f32 1.442695, %v8429_v10  ;;  %v8003_v55 = vadd.f32 %v7909_v31, %v16783_v5  ;;  %8587 = vst.msk [vmem:[#allocation5] sm:$0x7f] %vm8586_vm7, %v8585_v8  ;;  %v17018_v61 = vadd.f32 %v16933_v36, %v8342_v4  ;;  %v8765_v8 = vld [vmem:[%s17630_s5 + $0x18] sm:$0xff] }
 0x45a   : > { %v12460_v11 = vpop.f32.mrf.mxu0  ;;  %12631 = vmatprep.subr.mxu1 %v8765_v8 }
 0x45b   : > { %v12549_v57 = vpop.f32.mrf.mxu1  ;;  %v8533_v15 = vsel %vm8398_vm12, %v16968_v53, %v10599_v43  ;;  %13119 = vpow2.f32 %v8464_v12  ;;  %v8343_v19 = vadd.f32 %v8249_v63, %v8003_v55  ;;  %v8430_v5 = vmin.f32 %v17018_v61, 0.0  ;;  %v10625_v63 = vld [vmem:[%s17630_s5 + $0x58] sm:$0xff]  ;;  %12632 = vmatpush3.msra.mxu1 %v8765_v8 }
 0x45c   : > { %v13114_v59 = vpop.eup %13113  ;;  %8561 = vst.msk [vmem:[#allocation4 + $0x20] sm:$0xff] %vm8556_vm2, %v8533_v15  ;;  %v7914_v46 = vpop.f32.mrf.mxu0  ;;  %12606 = vmatprep.subr.mxu0 %v10625_v63  ;;  %vm8403_vm15 = vcmp.gt.f32.partialorder %v17018_v61, 0.0 }
 0x45d   : > { %v8254_v52 = vpop.f32.mrf.mxu1  ;;  %v10600_v23 = vadd.f32 -1.0, %v13114_v59  ;;  %v17027_v48 = vadd.f32 %v16933_v36, %v8343_v19  ;;  %v8004_v53 = vadd.f32 %v7914_v46, %v16806_v30  ;;  %v8466_v56 = vmul.f32 1.442695, %v8430_v5  ;;  %12607 = vmatpush3.msra.mxu0 %v10625_v63 }
 0x45e   : > { %v12463_v17 = vpop.f32.mrf.mxu0 }
 0x45f   : > { %v12552_v37 = vpop.f32.mrf.mxu1  ;;  %v8534_v21 = vsel %vm8399_vm14, %v16973_v60, %v10600_v23  ;;  %v8431_v18 = vmin.f32 %v17027_v48, 0.0  ;;  %v8344_v9 = vadd.f32 %v8254_v52, %v8004_v53  ;;  %v8707_v50 = vld [vmem:[#allocation4 + $0x10] ss:$2 sm:$0x7f]  ;;  %13121 = vpow2.f32 %v8466_v56 }
 0x460   : > { %8562 = vst.msk [vmem:[#allocation4 + $0x28] sm:$0xff] %vm8556_vm2, %v8534_v21  ;;  %v7919_v29 = vpop.f32.mrf.mxu0  ;;  %8709 = vrot.lane.b32.xlu0 %v8707_v50, %s13191_s22  ;;  %v8657_v30 = vld [vmem:[#allocation4 + $0xf] ss:$2 sm:$0x7f]  ;;  %v13116_v1 = vpop.eup %13115  ;;  %vm8404_vm6 = vcmp.gt.f32.partialorder %v17027_v48, 0.0 }
 0x461   : > { %v8259_v28 = vpop.f32.mrf.mxu1  ;;  %v8468_v54 = vmul.f32 1.442695, %v8431_v18  ;;  %v17036_v39 = vadd.f32 %v16933_v36, %v8344_v9  ;;  %v8005_v60 = vadd.f32 %v7919_v29, %v16822_v51  ;;  %8659 = vrot.lane.b32.xlu1 %v8657_v30, %s13192_s24  ;;  %v10601_v6 = vadd.f32 -1.0, %v13116_v1 }
 0x462   : > { %v12466_v49 = vpop.f32.mrf.mxu0 }
 0x463   : > { %v12555_v42 = vpop.f32.mrf.mxu1  ;;  %13123 = vpow2.f32 %v8468_v54  ;;  %v8432_v16 = vmin.f32 %v17036_v39, 0.0  ;;  %v8345_v40 = vadd.f32 %v8259_v28, %v8005_v60  ;;  %v8535_v27 = vsel %vm8400_vm10, %v16989_v14, %v10601_v6 }
 0x464   : > { %v13118_v45 = vpop.eup %13117  ;;  %v7924_v10 = vpop.f32.mrf.mxu0  ;;  %8563 = vst.msk [vmem:[#allocation4 + $0x30] sm:$0xff] %vm8556_vm2, %v8535_v27  ;;  %vm8405_vm8 = vcmp.gt.f32.partialorder %v17036_v39, 0.0 }
 0x465   : > { %v8264_v0 = vpop.f32.mrf.mxu1  ;;  %v10602_v51 = vadd.f32 -1.0, %v13118_v45  ;;  %v8470_v22 = vmul.f32 1.442695, %v8432_v16  ;;  %v17045_v4 = vadd.f32 %v16933_v36, %v8345_v40  ;;  %v8006_v31 = vadd.f32 %v7924_v10, %v16841_v34 }
 0x466   : > { %v12469_v14 = vpop.f32.mrf.mxu0 }
 0x467   : > { %v12558_v43 = vpop.f32.mrf.mxu1  ;;  %v8536_v12 = vsel %vm8401_vm11, %v16995_v41, %v10602_v51  ;;  %13125 = vpow2.f32 %v8470_v22  ;;  %v8433_v55 = vmin.f32 %v17045_v4, 0.0  ;;  %v8615_v34 = vld [vmem:[#allocation4 + $0x1f] ss:$2 sm:$0x7f]  ;;  %v8346_v57 = vadd.f32 %v8264_v0, %v8006_v31 }
 0x468   : > { %v13120_v11 = vpop.eup %13119  ;;  %8564 = vst.msk [vmem:[#allocation4 + $0x38] sm:$0xff] %vm8556_vm2, %v8536_v12  ;;  %v7929_v15 = vpop.f32.mrf.mxu0  ;;  %8617 = vrot.lane.b32.xlu1 %v8615_v34, %s13188_s23  ;;  %v8589_v25 = vld [vmem:[#allocation4 + $0x1e] ss:$2 sm:$0x7f]  ;;  %vm8406_vm9 = vcmp.gt.f32.partialorder %v17045_v4, 0.0 }
 0x469   : > { %v8269_v19 = vpop.f32.mrf.mxu1  ;;  %v10603_v59 = vadd.f32 -1.0, %v13120_v11  ;;  %v8472_v5 = vmul.f32 1.442695, %v8433_v55  ;;  %v8007_v46 = vadd.f32 %v7929_v15, %v16882_v7  ;;  %8590 = vst.msk [vmem:[#allocation5 + $0x7] sm:$0x7f] %vm8586_vm7, %v8589_v25  ;;  %v17063_v41 = vadd.f32 %v16933_v36, %v8346_v57  ;;  %v10624_v22 = vld [vmem:[%s17630_s5 + $0x50] sm:$0xff] }
 0x46a   : > { %v12472_v52 = vpop.f32.mrf.mxu0  ;;  %v8764_v31 = vld [vmem:[%s17630_s5 + $0x10] sm:$0xff]  ;;  %12608 = vmatprep.subr.mxu0 %v10624_v22  ;;  %v10622_v25 = vld [vmem:[%s17630_s5 + $0x40] sm:$0xff] }
 0x46b   : > { %v12561_v23 = vpop.f32.mrf.mxu1  ;;  %v8537_v53 = vsel %vm8402_vm13, %v17003_v35, %v10603_v59  ;;  %13127 = vpow2.f32 %v8472_v5  ;;  %v8347_v56 = vadd.f32 %v8269_v19, %v8007_v46  ;;  %v8434_v17 = vmin.f32 %v17063_v41, 0.0  ;;  %12633 = vmatprep.subr.mxu1 %v8764_v31  ;;  %12609 = vmatpush3.msra.mxu0 %v10624_v22  ;;  %v10623_v19 = vld [vmem:[%s17630_s5 + $0x48] sm:$0xff] }
 0x46c   : > { %8565 = vst.msk [vmem:[#allocation4 + $0x40] sm:$0xff] %vm8556_vm2, %v8537_v53  ;;  %v7934_v37 = vpop.f32.mrf.mxu0  ;;  %v13122_v7 = vpop.eup %13121  ;;  %12634 = vmatpush3.msra.mxu1 %v8764_v31  ;;  %12610 = vmatprep.subr.mxu0 %v10623_v19  ;;  %v8762_v23 = vld [vmem:[%s17630_s5] sm:$0xff]  ;;  %vm8407_vm3 = vcmp.gt.f32.partialorder %v17063_v41, 0.0 }
 0x46d   : > { %v8274_v21 = vpop.f32.mrf.mxu1  ;;  %v17069_v18 = vadd.f32 %v16933_v36, %v8347_v56  ;;  %v8008_v9 = vadd.f32 %v7934_v37, %v16891_v20  ;;  %v10604_v50 = vadd.f32 -1.0, %v13122_v7  ;;  %v8474_v29 = vmul.f32 1.442695, %v8434_v17  ;;  %12611 = vmatpush3.msra.mxu0 %v10623_v19 }
 0x46e   : > { %v12475_v30 = vpop.f32.mrf.mxu0  ;;  %12612 = vmatprep.subr.mxu0 %v10622_v25 }
 0x46f   : > { %v12564_v28 = vpop.f32.mrf.mxu1  ;;  %v8435_v35 = vmin.f32 %v17069_v18, 0.0  ;;  %v8348_v1 = vadd.f32 %v8274_v21, %v8008_v9  ;;  %v8715_v54 = vld [vmem:[#allocation4 + $0x2e] ss:$2 sm:$0x7f]  ;;  %v8538_v6 = vsel %vm8403_vm15, %v17018_v61, %v10604_v50  ;;  %13129 = vpow2.f32 %v8474_v29  ;;  %12613 = vmatpush3.msra.mxu0 %v10622_v25 }
 0x470   : > { %v13124_v60 = vpop.eup %13123  ;;  %v7939_v49 = vpop.f32.mrf.mxu0  ;;  %8717 = vrot.lane.b32.xlu1 %v8715_v54, %s13191_s22  ;;  %v8665_v42 = vld [vmem:[#allocation4 + $0x2d] ss:$2 sm:$0x7f]  ;;  %8566 = vst.msk [vmem:[#allocation4 + $0x48] sm:$0xff] %vm8556_vm2, %v8538_v6  ;;  %vm8408_vm1 = vcmp.gt.f32.partialorder %v17069_v18, 0.0 }
 0x471   : > { %v8279_v16 = vpop.f32.mrf.mxu1  ;;  %v10605_v20 = vadd.f32 -1.0, %v13124_v60  ;;  %v8476_v40 = vmul.f32 1.442695, %v8435_v35  ;;  %v17078_v45 = vadd.f32 %v16933_v36, %v8348_v1  ;;  %v8009_v27 = vadd.f32 %v7939_v49, %v16907_v62  ;;  %8667 = vrot.lane.b32.xlu0 %v8665_v42, %s13192_s24 }
 0x472   : > { %v12478_v61 = vpop.f32.mrf.mxu0 }
 0x473   : > { %v12567_v10 = vpop.f32.mrf.mxu1  ;;  %v8539_v0 = vsel %vm8404_vm6, %v17027_v48, %v10605_v20  ;;  %13131 = vpow2.f32 %v8476_v40  ;;  %v8436_v51 = vmin.f32 %v17078_v45, 0.0  ;;  %v8349_v63 = vadd.f32 %v8279_v16, %v8009_v27 }
 0x474   : > { %v13126_v62 = vpop.eup %13125  ;;  %8567 = vst.msk [vmem:[#allocation4 + $0x50] sm:$0xff] %vm8556_vm2, %v8539_v0  ;;  %v7944_v8 = vpop.f32.mrf.mxu0  ;;  %vm8409_vm5 = vcmp.gt.f32.partialorder %v17078_v45, 0.0 }
 0x475   : > { %v8284_v14 = vpop.f32.mrf.mxu1  ;;  %v10606_v48 = vadd.f32 -1.0, %v13126_v62  ;;  %v8478_v43 = vmul.f32 1.442695, %v8436_v51  ;;  %v8010_v12 = vadd.f32 %v7944_v8, %v16909_v2  ;;  %v17095_v55 = vadd.f32 %v16933_v36, %v8349_v63  ;;  %v8763_v2 = vld [vmem:[%s17630_s5 + $0x8] sm:$0xff] }
 0x476   : > { %v12481_v34 = vpop.f32.mrf.mxu0  ;;  %12635 = vmatprep.subr.mxu1 %v8763_v2 }
 0x477   : > { %v12570_v11 = vpop.f32.mrf.mxu1  ;;  %v8540_v57 = vsel %vm8405_vm8, %v17036_v39, %v10606_v48  ;;  %13133 = vpow2.f32 %v8478_v43  ;;  %v8350_v15 = vadd.f32 %v8284_v14, %v8010_v12  ;;  %v8437_v5 = vmin.f32 %v17095_v55, 0.0  ;;  %v8622_v46 = vld [vmem:[#allocation4 + $0x3d] ss:$2 sm:$0x7f]  ;;  %12636 = vmatpush3.msra.mxu1 %v8763_v2 }
 0x478   : > { %v13128_v59 = vpop.eup %13127  ;;  %8568 = vst.msk [vmem:[#allocation4 + $0x58] sm:$0xff] %vm8556_vm2, %v8540_v57  ;;  %v7949_v39 = vpop.f32.mrf.mxu0  ;;  %8624 = vrot.lane.b32.xlu0 %v8622_v46, %s13188_s23  ;;  %v8592_v37 = vld [vmem:[#allocation4 + $0x3c] ss:$2 sm:$0x7f]  ;;  %12637 = vmatprep.subr.mxu1 %v8762_v23  ;;  %vm8410_vm12 = vcmp.gt.f32.partialorder %v17095_v55, 0.0 }
 0x479   : > { %v8289_v52 = vpop.f32.mrf.mxu1  ;;  %v10607_v53 = vadd.f32 -1.0, %v13128_v59  ;;  %v17113_v56 = vadd.f32 %v16933_v36, %v8350_v15  ;;  %v8011_v17 = vadd.f32 %v7949_v39, %v16911_v3  ;;  %v8480_v21 = vmul.f32 1.442695, %v8437_v5  ;;  %8593 = vst.msk [vmem:[#allocation5 + $0xe] sm:$0x7f] %vm8586_vm7, %v8592_v37  ;;  %12638 = vmatpush3.msra.mxu1 %v8762_v23 }
 0x47a   : > { %v12484_v7 = vpop.f32.mrf.mxu0 }
 0x47b   : > { %v12573_v9 = vpop.f32.mrf.mxu1  ;;  %v8541_v50 = vsel %vm8406_vm9, %v17045_v4, %v10607_v53  ;;  %v8438_v29 = vmin.f32 %v17113_v56, 0.0  ;;  %v8351_v30 = vadd.f32 %v8289_v52, %v8011_v17  ;;  %v8672_v28 = vld [vmem:[#allocation4 + $0x4b] ss:$2 sm:$0x7f]  ;;  %13135 = vpow2.f32 %v8480_v21 }
 0x47c   : > { %8569 = vst.msk [vmem:[#allocation4 + $0x60] sm:$0xff] %vm8556_vm2, %v8541_v50  ;;  %v7954_v3 = vpop.f32.mrf.mxu0  ;;  %8674 = vrot.lane.b32.xlu1 %v8672_v28, %s13192_s24  ;;  %v13130_v1 = vpop.eup %13129  ;;  %vm8411_vm14 = vcmp.gt.f32.partialorder %v17113_v56, 0.0 }
 0x47d   : > { %v8294_v35 = vpop.f32.mrf.mxu1  ;;  %v8482_v54 = vmul.f32 1.442695, %v8438_v29  ;;  %v17124_v60 = vadd.f32 %v16933_v36, %v8351_v30  ;;  %v8012_v4 = vadd.f32 %v7954_v3, %v16913_v38  ;;  %v10608_v6 = vadd.f32 -1.0, %v13130_v1 }
 0x47e   : > { %v12487_v49 = vpop.f32.mrf.mxu0 }
 0x47f   : > { %v12576_v42 = vpop.f32.mrf.mxu1  ;;  %13137 = vpow2.f32 %v8482_v54  ;;  %v8439_v16 = vmin.f32 %v17124_v60, 0.0  ;;  %v8352_v20 = vadd.f32 %v8294_v35, %v8012_v4  ;;  %v8722_v40 = vld [vmem:[#allocation4 + $0x4c] ss:$2 sm:$0x7f]  ;;  %v8542_v61 = vsel %vm8407_vm3, %v17063_v41, %v10608_v6 }
 0x480   : > { %v13132_v27 = vpop.eup %13131  ;;  %v7959_v10 = vpop.f32.mrf.mxu0  ;;  %8724 = vrot.lane.b32.xlu0 %v8722_v40, %s13191_s22  ;;  %8570 = vst.msk [vmem:[#allocation4 + $0x68] sm:$0xff] %vm8556_vm2, %v8542_v61  ;;  %vm8412_vm10 = vcmp.gt.f32.partialorder %v17124_v60, 0.0 }
 0x481   : > { %v8299_v0 = vpop.f32.mrf.mxu1  ;;  %v10609_v38 = vadd.f32 -1.0, %v13132_v27  ;;  %v8484_v51 = vmul.f32 1.442695, %v8439_v16  ;;  %v17133_v22 = vadd.f32 %v16933_v36, %v8352_v20  ;;  %v8013_v31 = vadd.f32 %v7959_v10, %v16915_v47 }
 0x482   : > { %v12490_v62 = vpop.f32.mrf.mxu0 }
 0x483   : > { %v12579_v63 = vpop.f32.mrf.mxu1  ;;  %v8543_v8 = vsel %vm8408_vm1, %v17069_v18, %v10609_v38  ;;  %13139 = vpow2.f32 %v8484_v51  ;;  %v8440_v41 = vmin.f32 %v17133_v22, 0.0  ;;  %v8629_v14 = vld [vmem:[#allocation4 + $0x5b] ss:$2 sm:$0x7f]  ;;  %v8353_v43 = vadd.f32 %v8299_v0, %v8013_v31 }
 0x484   : > { %v13134_v48 = vpop.eup %13133  ;;  %8571 = vst.msk [vmem:[#allocation4 + $0x70] sm:$0xff] %vm8556_vm2, %v8543_v8  ;;  %v7964_v12 = vpop.f32.mrf.mxu0  ;;  %8631 = vrot.lane.b32.xlu1 %v8629_v14, %s13188_s23  ;;  %v8595_v11 = vld [vmem:[#allocation4 + $0x5a] ss:$2 sm:$0x7f]  ;;  %vm8413_vm11 = vcmp.gt.f32.partialorder %v17133_v22, 0.0  ;;  %vm8583_vm1 = vcmask 122880  }
 0x485   : > { %v8304_v34 = vpop.f32.mrf.mxu1  ;;  %v10610_v47 = vadd.f32 -1.0, %v13134_v48  ;;  %v8486_v57 = vmul.f32 1.442695, %v8440_v41  ;;  %v8014_v15 = vadd.f32 %v7964_v12, %v16917_v33  ;;  %8596 = vst.msk [vmem:[#allocation5 + $0x15] sm:$0x7f] %vm8586_vm7, %v8595_v11  ;;  %v17145_v18 = vadd.f32 %v16933_v36, %v8353_v43 }
 0x486   : > { %v12493_v19 = vpop.f32.mrf.mxu0 }
 0x487   : > { %v12582_v2 = vpop.f32.mrf.mxu1  ;;  %v8544_v25 = vsel %vm8409_vm5, %v17078_v45, %v10610_v47  ;;  %13141 = vpow2.f32 %v8486_v57  ;;  %v8354_v59 = vadd.f32 %v8304_v34, %v8014_v15  ;;  %v8441_v5 = vmin.f32 %v17145_v18, 0.0 }
 0x488   : > { %8572 = vst.msk [vmem:[#allocation4 + $0x78] sm:$0xff] %vm8556_vm2, %v8544_v25  ;;  %v7969_v39 = vpop.f32.mrf.mxu0  ;;  %v13136_v33 = vpop.eup %13135  ;;  %vm8414_vm13 = vcmp.gt.f32.partialorder %v17145_v18, 0.0 }
 0x489   : > { %v8309_v46 = vpop.f32.mrf.mxu1  ;;  %v17151_v52 = vadd.f32 %v16933_v36, %v8354_v59  ;;  %v8015_v23 = vadd.f32 %v7969_v39, %v16919_v24  ;;  %v10611_v53 = vadd.f32 -1.0, %v13136_v33  ;;  %v8488_v17 = vmul.f32 1.442695, %v8441_v5 }
 0x48a   : > { %v12496_v37 = vpop.f32.mrf.mxu0 }
 0x48b   : > { %v12585_v21 = vpop.f32.mrf.mxu1  ;;  %v8442_v45 = vmin.f32 %v17151_v52, 0.0  ;;  %v8355_v7 = vadd.f32 %v8309_v46, %v8015_v23  ;;  %v8679_v9 = vld [vmem:[#allocation4 + $0x69] ss:$2 sm:$0x7f]  ;;  %v8545_v29 = vsel %vm8410_vm12, %v17095_v55, %v10611_v53  ;;  %13143 = vpow2.f32 %v8488_v17 }
 0x48c   : > { %v13138_v50 = vpop.eup %13137  ;;  %v7974_v30 = vpop.f32.mrf.mxu0  ;;  %8681 = vrot.lane.b32.xlu1 %v8679_v9, %s13192_s24  ;;  %8573 = vst.msk [vmem:[#allocation4 + $0x80] sm:$0xff] %vm8556_vm2, %v8545_v29  ;;  %v8729_v49 = vld [vmem:[#allocation4 + $0x6a] ss:$2 sm:$0x7f]  ;;  %vm8415_vm15 = vcmp.gt.f32.partialorder %v17151_v52, 0.0  ;;  %vm8612_vm12 = vcmask 260224  }
 0x48d   : > { %v8314_v28 = vpop.f32.mrf.mxu1  ;;  %v10612_v24 = vadd.f32 -1.0, %v13138_v50  ;;  %v8490_v3 = vmul.f32 1.442695, %v8442_v45  ;;  %v17160_v35 = vadd.f32 %v16933_v36, %v8355_v7  ;;  %v8016_v1 = vadd.f32 %v7974_v30, %v16921_v58  ;;  %v17192_v53 = vld [vmem:[%s17630_s5 + $0xb8] sm:$0xff] }
 0x48e   : > { %v12499_v54 = vpop.f32.mrf.mxu0  ;;  %12648 = vmatprep.subr.mxu0 %v17192_v53 }
 0x48f   : > { %v12588_v4 = vpop.f32.mrf.mxu1  ;;  %v8546_v55 = vsel %vm8411_vm14, %v17113_v56, %v10612_v24  ;;  %13145 = vpow2.f32 %v8490_v3  ;;  %v8443_v6 = vmin.f32 %v17160_v35, 0.0  ;;  %v8356_v16 = vadd.f32 %v8314_v28, %v8016_v1 }
 0x490   : > { %v13140_v42 = vpop.eup %13139  ;;  %8574 = vst.msk [vmem:[#allocation4 + $0x88] sm:$0xff] %vm8556_vm2, %v8546_v55  ;;  %v7979_v20 = vpop.f32.mrf.mxu0  ;;  %8731 = vrot.lane.b32.xlu1 %v8729_v49, %s13191_s22  ;;  %vm8416_vm6 = vcmp.gt.f32.partialorder %v17160_v35, 0.0  ;;  %vm8712_vm14 = vcmask 522624  }
 0x491   : > { %v8319_v40 = vpop.f32.mrf.mxu1  ;;  %v10613_v27 = vadd.f32 -1.0, %v13140_v42  ;;  %v8492_v58 = vmul.f32 1.442695, %v8443_v6  ;;  %v8017_v61 = vadd.f32 %v7979_v20, %v16923_v44  ;;  %v17171_v56 = vadd.f32 %v16933_v36, %v8356_v16 }
 0x492   : > { %v12502_v10 = vpop.f32.mrf.mxu0 }
 0x493   : > { %v12591_v0 = vpop.f32.mrf.mxu1  ;;  %v8547_v38 = vsel %vm8412_vm10, %v17124_v60, %v10613_v27  ;;  %13147 = vpow2.f32 %v8492_v58  ;;  %v8357_v51 = vadd.f32 %v8319_v40, %v8017_v61  ;;  %v8444_v62 = vmin.f32 %v17171_v56, 0.0  ;;  %v8636_v8 = vld [vmem:[#allocation4 + $0x79] ss:$2 sm:$0x7f] }
 0x494   : > { %v13142_v31 = vpop.eup %13141  ;;  %8575 = vst.msk [vmem:[#allocation4 + $0x90] sm:$0xff] %vm8556_vm2, %v8547_v38  ;;  %v7984_v63 = vpop.f32.mrf.mxu0  ;;  %8638 = vrot.lane.b32.xlu0 %v8636_v8, %s13188_s23  ;;  %v8598_v43 = vld [vmem:[#allocation4 + $0x78] ss:$2 sm:$0x7f]  ;;  %vm8417_vm8 = vcmp.gt.f32.partialorder %v17171_v56, 0.0 }
 0x495   : > { %v8324_v41 = vpop.f32.mrf.mxu1  ;;  %v10614_v44 = vadd.f32 -1.0, %v13142_v31  ;;  %v17177_v14 = vadd.f32 %v16933_v36, %v8357_v51  ;;  %v8018_v48 = vadd.f32 %v7984_v63, %v16925_v26  ;;  %v8494_v60 = vmul.f32 1.442695, %v8444_v62  ;;  %8599 = vst.msk [vmem:[#allocation5 + $0x1c] sm:$0x7f] %vm8586_vm7, %v8598_v43 }
 0x496   : > { %v12505_v12 = vpop.f32.mrf.mxu0 }
 0x497   : > { %v12594_v34 = vpop.f32.mrf.mxu1  ;;  %v8548_v11 = vsel %vm8413_vm11, %v17133_v22, %v10614_v44  ;;  %v8445_v47 = vmin.f32 %v17177_v14, 0.0  ;;  %v8358_v57 = vadd.f32 %v8324_v41, %v8018_v48  ;;  %13149 = vpow2.f32 %v8494_v60  ;;  %v10648_v12 = vld [vmem:[%s17630_s5 + $0xb0] sm:$0xff] }
 0x498   : > { %8576 = vst.msk [vmem:[#allocation4 + $0x98] sm:$0xff] %vm8556_vm2, %v8548_v11  ;;  %v7989_v15 = vpop.f32.mrf.mxu0  ;;  %v13144_v19 = vpop.eup %13143  ;;  %vm8418_vm9 = vcmp.gt.f32.partialorder %v17177_v14, 0.0 }
 0x499   : > { %v8329_v26 = vpop.f32.mrf.mxu1  ;;  %v8496_v2 = vmul.f32 1.442695, %v8445_v47  ;;  %v8392_v25 = vadd.f32 %v16933_v36, %v8358_v57  ;;  %v8019_v59 = vadd.f32 %v7989_v15, %v16927_v32  ;;  %v10615_v5 = vadd.f32 -1.0, %v13144_v19  ;;  %v17200_v32 = vld [vmem:[%s17630_s5 + $0xf8] sm:$0xff]  ;;  %v10662_v47 = vld [vmem:[%s17630_s5 + $0xf0] sm:$0xff]  ;;  %v10647_v57 = vld [vmem:[%s17630_s5 + $0xa8] sm:$0xff] }
 0x49a   : > { %v12508_v39 = vpop.f32.mrf.mxu0  ;;  %12673 = vmatprep.subr.mxu1 %v17200_v32  ;;  %v10661_v15 = vld [vmem:[%s17630_s5 + $0xe8] sm:$0xff]  ;;  %v10646_v19 = vld [vmem:[%s17630_s5 + $0xa0] sm:$0xff] }
 0x49b   : > { %v12597_v46 = vpop.f32.mrf.mxu1  ;;  %13151 = vpow2.f32 %v8496_v2  ;;  %v8446_v22 = vmin.f32 %v8392_v25, 0.0  ;;  %v8359_v33 = vadd.f32 %v8329_v26, %v8019_v59  ;;  %v8686_v23 = vld [vmem:[#allocation4 + $0x87] ss:$2 sm:$0x7f]  ;;  %v8549_v37 = vsel %vm8414_vm13, %v17145_v18, %v10615_v5  ;;  %v10660_v2 = vld [vmem:[%s17630_s5 + $0xe0] sm:$0xff] }
 0x49c   : > { %v13146_v17 = vpop.eup %13145  ;;  %8688 = vrot.lane.b32.xlu0 %v8686_v23, %s13192_s24  ;;  %8577 = vst.msk [vmem:[#allocation4 + $0xa0] sm:$0xff] %vm8556_vm2, %v8549_v37  ;;  %v8736_v50 = vld [vmem:[#allocation4 + $0x88] ss:$2 sm:$0x7f]  ;;  %vm8419_vm3 = vcmp.gt.f32.partialorder %v8392_v25, 0.0  ;;  %v10642_v23 = vld [vmem:[%s17630_s5 + $0x80] sm:$0xff] }
 0x49d   : > { %v10616_v21 = vadd.f32 -1.0, %v13146_v17  ;;  %v8498_v45 = vmul.f32 1.442695, %v8446_v22  ;;  %v8393_v7 = vadd.f32 %v16933_v36, %v8359_v33  ;;  %v10659_v59 = vld [vmem:[%s17630_s5 + $0xd8] sm:$0xff]  ;;  %v10644_v39 = vld [vmem:[%s17630_s5 + $0x90] sm:$0xff]  ;;  %v10643_v22 = vld [vmem:[%s17630_s5 + $0x88] sm:$0xff] }
 0x49e   : > { %v10658_v46 = vld [vmem:[%s17630_s5 + $0xd0] sm:$0xff]  ;;  %v10657_v33 = vld [vmem:[%s17630_s5 + $0xc8] sm:$0xff] }
 0x49f   : > { %v8550_v18 = vsel %vm8415_vm15, %v17151_v52, %v10616_v21  ;;  %13153 = vpow2.f32 %v8498_v45  ;;  %v8447_v9 = vmin.f32 %v8393_v7, 0.0  ;;  %vm8420_vm5 = vcmp.gt.f32.partialorder %v8393_v7, 0.0 }
 0x4a0   : > { %v13148_v29 = vpop.eup %13147  ;;  %8578 = vst.msk [vmem:[#allocation4 + $0xa8] sm:$0xff] %vm8556_vm2, %v8550_v18  ;;  %8738 = vrot.lane.b32.xlu0 %v8736_v50, %s13191_s22 }
 0x4a1   : > { %v10617_v30 = vadd.f32 -1.0, %v13148_v29  ;;  %v8500_v28 = vmul.f32 1.442695, %v8447_v9 }
 0x4a3   : > { %v8551_v36 = vsel %vm8416_vm6, %v17160_v35, %v10617_v30  ;;  %13155 = vpow2.f32 %v8500_v28  ;;  %v8643_v24 = vld [vmem:[#allocation4 + $0x97] ss:$2 sm:$0x7f]  ;;  %v8601_v3 = vld [vmem:[#allocation4 + $0x96] ss:$2 sm:$0x7f] }
 0x4a4   : > { %8579 = vst.msk [vmem:[#allocation4 + $0xb0] sm:$0xff] %vm8556_vm2, %v8551_v36  ;;  %v13150_v52 = vpop.eup %13149  ;;  %8645 = vrot.lane.b32.xlu1 %v8643_v24, %s13188_s23  ;;  %vm9334_vm6 = vcmask 253952  }
 0x4a5   : > { %8602 = vst.msk [vmem:[#allocation5 + $0x23] sm:$0x7f] %vm8586_vm7, %v8601_v3  ;;  %v10618_v1 = vadd.f32 -1.0, %v13150_v52 }
 0x4a7   : > { %v8552_v4 = vsel %vm8417_vm8, %v17171_v56, %v10618_v1  ;;  %vm9337_vm8 = vcmask 256000  }
 0x4a8   : > { %v13152_v54 = vpop.eup %13151  ;;  %8580 = vst.msk [vmem:[#allocation4 + $0xb8] sm:$0xff] %vm8556_vm2, %v8552_v4 }
 0x4a9   : > { %v10619_v55 = vadd.f32 -1.0, %v13152_v54 }
 0x4ab   : > { %v8553_v35 = vsel %vm8418_vm9, %v17177_v14, %v10619_v55  ;;  %v8743_v6 = vld [vmem:[#allocation4 + $0xa6] ss:$2 sm:$0x7f]  ;;  %v8693_v49 = vld [vmem:[#allocation4 + $0xa5] ss:$2 sm:$0x7f] }
 0x4ac   : > { %v13154_v42 = vpop.eup %13153  ;;  %8581 = vst.msk [vmem:[#allocation4 + $0xc0] sm:$0xff] %vm8556_vm2, %v8553_v35  ;;  %8745 = vrot.lane.b32.xlu1 %v8743_v6, %s13191_s22  ;;  %8695 = vrot.lane.b32.xlu0 %v8693_v49, %s13192_s24 }
 0x4ad   : > { %v10620_v16 = vadd.f32 -1.0, %v13154_v42 }
 0x4af   : > { %v8554_v20 = vsel %vm8419_vm3, %v8392_v25, %v10620_v16  ;;  %v10645_v25 = vld [vmem:[%s17630_s5 + $0x98] sm:$0xff] }
 0x4b0   : > { %v13156_v40 = vpop.eup %13155  ;;  %8582 = vst.msk [vmem:[#allocation4 + $0xc8] sm:$0xff] %vm8556_vm2, %v8554_v20  ;;  %vm8662_vm2 = vcmask 391424   ;;  %v10692_v20 = vld [vmem:[%s17632_s7 + $0xf8] sm:$0xff] }
 0x4b1   : > { %v10621_v27 = vadd.f32 -1.0, %v13156_v40  ;;  %v9427_v40 = vld [vmem:[%s17632_s7 + $0x78] sm:$0xff] }
 0x4b3   : > { %v8555_v58 = vsel %vm8420_vm5, %v8393_v7, %v10621_v27  ;;  %v8650_v61 = vld [vmem:[#allocation4 + $0xb5] ss:$2 sm:$0x7f]  ;;  %v8604_v56 = vld [vmem:[#allocation4 + $0xb4] ss:$2 sm:$0x7f] }
 0x4b4   : > { %8584 = vst.msk [vmem:[#allocation4 + $0xd0] sm:$0x1] %vm8583_vm1, %v8555_v58  ;;  %8652 = vrot.lane.b32.xlu0 %v8650_v61, %s13188_s23  ;;  %v10691_v27 = vld [vmem:[%s17632_s7 + $0xf0] sm:$0xff]  ;;  %v10690_v61 = vld [vmem:[%s17632_s7 + $0xe8] sm:$0xff]  ;;  %vm9373_vm1 = vcmask 780800   ;;  %vm9395_vm5 = vcmask 1043200  }
 0x4b5   : > { %8605 = vst.msk [vmem:[#allocation5 + $0x2a] sm:$0x7f] %vm8586_vm7, %v8604_v56  ;;  %vm8785_vm7 = vcmask 523264   ;;  %v9426_v58 = vld [vmem:[%s17632_s7 + $0x70] sm:$0xff]  ;;  %v9425_v56 = vld [vmem:[%s17632_s7 + $0x68] sm:$0xff] }
 0x4b7   : > { %v8700_v10 = vld [vmem:[#allocation4 + $0xc3] ss:$2 sm:$0x7f] }
 0x4b8   : > { %8702 = vrot.lane.b32.xlu1 %v8700_v10, %s13192_s24  ;;  %v10689_v10 = vld [vmem:[%s17632_s7 + $0xe0] sm:$0xff] }
 0x4bb   : > { %v8750_v0 = vld [vmem:[#allocation4 + $0xc4] ss:$2 sm:$0x7f] }
 0x4bc   : > { %8752 = vrot.lane.b32.xlu0 %v8750_v0, %s13191_s22  ;;  %v9424_v0 = vld [vmem:[%s17632_s7 + $0x60] sm:$0xff] }
 0x4ca   : > { %v8610_v38 = vpop.permute.xlu0 %8609 }
 0x4cb   : > { %8613 = vst.msk [vmem:[#allocation5] sm:$0x7f] %vm8612_vm12, %v8610_v38  ;;  %v10688_v38 = vld [vmem:[%s17632_s7 + $0xd8] sm:$0xff] }
 0x4d2   : > { %v8710_v51 = vpop.permute.xlu0 %8709 }
 0x4d3   : > { %v8660_v31 = vpop.permute.xlu1 %8659 }
 0x4d4   : > { %8663 = vst.msk [vmem:[#allocation5] sm:$0x7f] %vm8662_vm2, %v8660_v31  ;;  %v10687_v31 = vld [vmem:[%s17632_s7 + $0xd0] sm:$0xff] }
 0x4d5   : > { %8713 = vst.msk [vmem:[#allocation5] sm:$0x7f] %vm8712_vm14, %v8710_v51  ;;  %v9423_v51 = vld [vmem:[%s17632_s7 + $0x58] sm:$0xff] }
 0x4da   : > { %v8618_v62 = vpop.permute.xlu1 %8617 }
 0x4db   : > { %8620 = vst.msk [vmem:[#allocation5 + $0x7] sm:$0x7f] %vm8612_vm12, %v8618_v62  ;;  %v9422_v62 = vld [vmem:[%s17632_s7 + $0x50] sm:$0xff] }
 0x4e2   : > { %v8718_v63 = vpop.permute.xlu1 %8717 }
 0x4e3   : > { %v8668_v8 = vpop.permute.xlu0 %8667 }
 0x4e4   : > { %8670 = vst.msk [vmem:[#allocation5 + $0x7] sm:$0x7f] %vm8662_vm2, %v8668_v8 }
 0x4e5   : > { %8720 = vst.msk [vmem:[#allocation5 + $0x7] sm:$0x7f] %vm8712_vm14, %v8718_v63 }
 0x4ea   : > { %v8625_v41 = vpop.permute.xlu0 %8624 }
 0x4eb   : > { %8627 = vst.msk [vmem:[#allocation5 + $0xe] sm:$0x7f] %vm8612_vm12, %v8625_v41 }
 0x4ec   : > { %v8770_v44 = vld [vmem:[#allocation5 + $0x1] sm:$0xff] }
 0x4ed   : > { %v8756_v14 = vld [vmem:[#allocation5] sm:$0xff]  ;;  %12614 = vmatprep.mubr.msk.f32.mxu0 %vm8785_vm7, %v8770_v44 }
 0x4ee   : > { %12639 = vmatprep.mubr.msk.f32.mxu1 %vm8785_vm7, %v8756_v14  ;;  %v8675_v48 = vpop.permute.xlu1 %8674 }
 0x4ef   : > { %8677 = vst.msk [vmem:[#allocation5 + $0xe] sm:$0x7f] %vm8662_vm2, %v8675_v48 }
 0x4f2   : > { %v8725_v43 = vpop.permute.xlu0 %8724 }
 0x4f3   : > { %8727 = vst.msk [vmem:[#allocation5 + $0xe] sm:$0x7f] %vm8712_vm14, %v8725_v43 }
 0x4f6   : > { %v8632_v60 = vpop.permute.xlu1 %8631 }
 0x4f7   : > { %8634 = vst.msk [vmem:[#allocation5 + $0x15] sm:$0x7f] %vm8612_vm12, %v8632_v60 }
 0x4fa   : > { %v8771_v34 = vld [vmem:[#allocation5 + $0x9] sm:$0xff] }
 0x4fb   : > { %v17242_v11 = vld [vmem:[#allocation5 + $0x8] sm:$0xff]  ;;  %12615 = vmatmul.mubr.msk.f32.vlgmr.msra.gmra.mxu0 %vm8785_vm7, %v8771_v34 }
 0x4fc   : > { %12640 = vmatmul.mubr.msk.f32.vlgmr.msra.gmra.mxu1 %vm8785_vm7, %v17242_v11  ;;  %12649 = vmatpush3.msra.mxu0 %v17192_v53  ;;  %v10656_v53 = vld [vmem:[%s17630_s5 + $0xc0] sm:$0xff] }
 0x4fd   : > { %12674 = vmatpush3.msra.mxu1 %v17200_v32  ;;  %12650 = vmatprep.subr.mxu0 %v10648_v12  ;;  %v9012_v52 = vld [vmem:[#allocation5 + $0x7] sm:$0xff] }
 0x4fe   : > { %12675 = vmatprep.subr.mxu1 %v10662_v47  ;;  %v8682_v26 = vpop.permute.xlu1 %8681  ;;  %12651 = vmatpush3.msra.mxu0 %v10648_v12 }
 0x4ff   : > { %12676 = vmatpush3.msra.mxu1 %v10662_v47  ;;  %8684 = vst.msk [vmem:[#allocation5 + $0x15] sm:$0x7f] %vm8662_vm2, %v8682_v26  ;;  %12652 = vmatprep.subr.mxu0 %v10647_v57 }
 0x500   : > { %12677 = vmatprep.subr.mxu1 %v10661_v15  ;;  %12653 = vmatpush3.msra.mxu0 %v10647_v57 }
 0x501   : > { %12678 = vmatpush3.msra.mxu1 %v10661_v15  ;;  %12654 = vmatprep.subr.mxu0 %v10646_v19 }
 0x502   : > { %12679 = vmatprep.subr.mxu1 %v10660_v2  ;;  %v8732_v5 = vpop.permute.xlu1 %8731  ;;  %12655 = vmatpush3.msra.mxu0 %v10646_v19 }
 0x503   : > { %12680 = vmatpush3.msra.mxu1 %v10660_v2  ;;  %8734 = vst.msk [vmem:[#allocation5 + $0x15] sm:$0x7f] %vm8712_vm14, %v8732_v5  ;;  %12656 = vmatprep.subr.mxu0 %v10645_v25 }
 0x504   : > { %12681 = vmatprep.subr.mxu1 %v10659_v59  ;;  %12657 = vmatpush3.msra.mxu0 %v10645_v25  ;;  %v10670_v25 = vld [vmem:[%s17631_s6] ss:$0 sm:$0xff] }
 0x505   : > { %12682 = vmatpush3.msra.mxu1 %v10659_v59  ;;  %12658 = vmatprep.subr.mxu0 %v10644_v39 }
 0x506   : > { %12683 = vmatprep.subr.mxu1 %v10658_v46  ;;  %12659 = vmatpush3.msra.mxu0 %v10644_v39  ;;  %v8639_v17 = vpop.permute.xlu0 %8638 }
 0x507   : > { %12684 = vmatpush3.msra.mxu1 %v10658_v46  ;;  %12660 = vmatprep.subr.mxu0 %v10643_v22  ;;  %8641 = vst.msk [vmem:[#allocation5 + $0x1c] sm:$0x7f] %vm8612_vm12, %v8639_v17 }
 0x508   : > { %12685 = vmatprep.subr.mxu1 %v10657_v33  ;;  %12661 = vmatpush3.msra.mxu0 %v10643_v22 }
 0x509   : > { %12686 = vmatpush3.msra.mxu1 %v10657_v33  ;;  %12662 = vmatprep.subr.mxu0 %v10642_v23 }
 0x50a   : > { %12687 = vmatprep.subr.mxu1 %v10656_v53  ;;  %v8772_v37 = vld [vmem:[#allocation5 + $0x11] sm:$0xff]  ;;  %12663 = vmatpush3.msra.mxu0 %v10642_v23 }
 0x50b   : > { %v8758_v32 = vld [vmem:[#allocation5 + $0x10] sm:$0xff]  ;;  %12688 = vmatpush3.msra.mxu1 %v10656_v53  ;;  %12617 = vmatprep.mubr.msk.f32.mxu0 %vm8785_vm7, %v8772_v37 }
 0x50c   : > { %12642 = vmatprep.mubr.msk.f32.mxu1 %vm8785_vm7, %v8758_v32  ;;  %12698 = vmatprep.subr.mxu0 %v17691_v13  ;;  %v9013_v54 = vld [vmem:[#allocation5 + $0xf] sm:$0xff] }
 0x50d   : > { %12733 = vmatprep.subr.mxu1 %v17691_v13 }
 0x50e   : > { %v8689_v21 = vpop.permute.xlu0 %8688 }
 0x50f   : > { %8691 = vst.msk [vmem:[#allocation5 + $0x1c] sm:$0x7f] %vm8662_vm2, %v8689_v21 }
 0x512   : > { %v8739_v45 = vpop.permute.xlu0 %8738 }
 0x513   : > { %8741 = vst.msk [vmem:[#allocation5 + $0x1c] sm:$0x7f] %vm8712_vm14, %v8739_v45 }
 0x516   : > { %v8646_v7 = vpop.permute.xlu1 %8645 }
 0x517   : > { %8648 = vst.msk [vmem:[#allocation5 + $0x23] sm:$0x7f] %vm8612_vm12, %v8646_v7 }
 0x51a   : > { %v8773_v18 = vld [vmem:[#allocation5 + $0x19] sm:$0xff] }
 0x51b   : > { %v8759_v9 = vld [vmem:[#allocation5 + $0x18] sm:$0xff]  ;;  %12618 = vmatmul.mubr.msk.f32.gmra.mxu0 %vm8785_vm7, %v8773_v18 }
 0x51c   : > { %12643 = vmatmul.mubr.msk.f32.gmra.mxu1 %vm8785_vm7, %v8759_v9  ;;  %v9014_v4 = vld [vmem:[#allocation5 + $0x17] sm:$0xff] }
 0x51e   : > { %v8746_v50 = vpop.permute.xlu1 %8745  ;;  %v8696_v29 = vpop.permute.xlu0 %8695 }
 0x51f   : > { %8698 = vst.msk [vmem:[#allocation5 + $0x23] sm:$0x7f] %vm8662_vm2, %v8696_v29 }
 0x520   : > { %8748 = vst.msk [vmem:[#allocation5 + $0x23] sm:$0x7f] %vm8712_vm14, %v8746_v50 }
 0x526   : > { %v8653_v30 = vpop.permute.xlu0 %8652 }
 0x527   : > { %8655 = vst.msk [vmem:[#allocation5 + $0x2a] sm:$0x7f] %vm8612_vm12, %v8653_v30  ;;  %v8774_v28 = vld [vmem:[#allocation5 + $0x21] sm:$0xff]  ;;  %v8775_v24 = vld [vmem:[#allocation5 + $0x29] sm:$0x1]  ;;  %vm9780_vm12 = vcmask 520195  }
 0x528   : > { %v8760_v36 = vld [vmem:[#allocation5 + $0x20] sm:$0xff]  ;;  %12620 = vmatprep.mubr.msk.f32.mxu0 %vm8785_vm7, %v8774_v28  ;;  %v8761_v3 = vld [vmem:[#allocation5 + $0x28] sm:$0x1] }
 0x529   : > { %12645 = vmatprep.mubr.msk.f32.mxu1 %vm8785_vm7, %v8760_v36  ;;  %12621 = vmatmul.mubr.msk.f32.gmra.mxu0 %vm8785_vm7, %v8775_v24  ;;  %v9015_v35 = vld [vmem:[#allocation5 + $0x1f] sm:$0xff] }
 0x52a   : > { %12646 = vmatmul.mubr.msk.f32.gmra.mxu1 %vm8785_vm7, %v8761_v3  ;;  %12664 = vmatprep.mubr.msk.f32.mxu0 %vm8785_vm7, %v9012_v52  ;;  %v8703_v1 = vpop.permute.xlu1 %8702 }
 0x52b   : > { %12689 = vmatprep.mubr.msk.f32.mxu1 %vm8785_vm7, %v17242_v11  ;;  %8705 = vst.msk [vmem:[#allocation5 + $0x2a] sm:$0x7f] %vm8662_vm2, %v8703_v1 }
 0x52d   : > { %12665 = vmatmul.mubr.msk.f32.vlgmr.msra.gmra.mxu0 %vm8785_vm7, %v9013_v54 }
 0x52e   : > { %12690 = vmatmul.mubr.msk.f32.vlgmr.msra.gmra.mxu1 %vm8785_vm7, %v8758_v32  ;;  %12667 = vmatprep.mubr.msk.f32.mxu0 %vm8785_vm7, %v9014_v4  ;;  %v8753_v55 = vpop.permute.xlu0 %8752 }
 0x52f   : > { %12692 = vmatprep.mubr.msk.f32.mxu1 %vm8785_vm7, %v8759_v9  ;;  %8755 = vst.msk [vmem:[#allocation5 + $0x2a] sm:$0x7f] %vm8712_vm14, %v8753_v55  ;;  %12699 = vmatpush3.msra.mxu0 %v10692_v20 }
 0x530   : > { %12734 = vmatpush3.msra.mxu1 %v9427_v40  ;;  %12700 = vmatprep.subr.mxu0 %v17691_v13 }
 0x531   : > { %12668 = vmatmul.mubr.msk.f32.gmra.mxu0 %vm8785_vm7, %v9015_v35  ;;  %12735 = vmatprep.subr.mxu1 %v17691_v13 }
 0x532   : > { %12693 = vmatmul.mubr.msk.f32.gmra.mxu1 %vm8785_vm7, %v8760_v36  ;;  %12701 = vmatpush3.msra.mxu0 %v10691_v27 }
 0x533   : > { %12736 = vmatpush3.msra.mxu1 %v9426_v58  ;;  %12702 = vmatprep.subr.mxu0 %v17691_v13 }
 0x534   : > { %12737 = vmatprep.subr.mxu1 %v17691_v13  ;;  %12703 = vmatpush3.msra.mxu0 %v10690_v61 }
 0x535   : > { %12738 = vmatpush3.msra.mxu1 %v9425_v56  ;;  %12704 = vmatprep.subr.mxu0 %v17691_v13 }
 0x536   : > { %v9016_v6 = vld [vmem:[#allocation5 + $0x27] sm:$0xff]  ;;  %v9017_v42 = vld [vmem:[#allocation5 + $0x2f] sm:$0x1]  ;;  %v9151_v16 = vld [vmem:[#allocation5 + $0x30] sm:$0x1]  ;;  %12739 = vmatprep.subr.mxu1 %v17691_v13  ;;  %12705 = vmatpush3.msra.mxu0 %v10689_v10 }
 0x537   : > { %v9150_v49 = vld [vmem:[#allocation5 + $0x28] sm:$0xff]  ;;  %12670 = vmatprep.mubr.msk.f32.mxu0 %vm8785_vm7, %v9016_v6  ;;  %12740 = vmatpush3.msra.mxu1 %v9424_v0 }
 0x538   : > { %12695 = vmatprep.mubr.msk.f32.mxu1 %vm8785_vm7, %v9150_v49  ;;  %12671 = vmatmul.mubr.msk.f32.gmra.mxu0 %vm8785_vm7, %v9017_v42 }
 0x539   : > { %12696 = vmatmul.mubr.msk.f32.gmra.mxu1 %vm8785_vm7, %v9151_v16  ;;  %12730 = vmatprep.mubr.msk.f32.mxu0 %vm13190_vm0, %v17691_v13 }
 0x53a   : > { %12765 = vmatprep.mubr.msk.f32.mxu1 %vm13190_vm0, %v17691_v13  ;;  %12706 = vmatprep.subr.mxu0 %v17691_v13 }
 0x53b   : > { %12741 = vmatprep.subr.mxu1 %v17691_v13  ;;  %12707 = vmatpush3.msra.mxu0 %v10688_v38 }
 0x53c   : > { %12742 = vmatpush3.msra.mxu1 %v9423_v51  ;;  %12708 = vmatprep.subr.mxu0 %v17691_v13 }
 0x53d   : > { %12743 = vmatprep.subr.mxu1 %v17691_v13  ;;  %12709 = vmatpush3.msra.mxu0 %v10687_v31 }
 0x53e   : > { %12744 = vmatpush3.msra.mxu1 %v9422_v62  ;;  %12710 = vmatprep.subr.mxu0 %v17691_v13 }
 0x53f   : > { %12745 = vmatprep.subr.mxu1 %v17691_v13 }
 0x5bb   : > { %v12616_v63 = vpop.f32.mrf.mxu0 }
 0x5bc   : > { %v12641_v8 = vpop.f32.mrf.mxu1 }
 0x5bd   : > { %v8870_v41 = vpop.f32.mrf.mxu0  ;;  %v8989_v57 = vadd.f32 %v12641_v8, %v12616_v63  ;;  %v10686_v63 = vld [vmem:[%s17632_s7 + $0xc8] sm:$0xff] }
 0x5be   : > { %v8983_v44 = vpop.f32.mrf.mxu1  ;;  %v9421_v8 = vld [vmem:[%s17632_s7 + $0x48] sm:$0xff]  ;;  %12711 = vmatpush3.msra.mxu0 %v10686_v63 }
 0x5bf   : > { %v8984_v19 = vadd.f32 %v8983_v44, %v8870_v41  ;;  %v10685_v41 = vld [vmem:[%s17632_s7 + $0xc0] sm:$0xff]  ;;  %12746 = vmatpush3.msra.mxu1 %v9421_v8  ;;  %12712 = vmatprep.subr.mxu0 %v17691_v13  ;;  %v10706_v63 = vld [vmem:[%s17632_s7 + $0x168] sm:$0xff] }
 0x5c0   : > { %12747 = vmatprep.subr.mxu1 %v17691_v13  ;;  %12713 = vmatpush3.msra.mxu0 %v10685_v41  ;;  %v10722_v8 = vld [vmem:[%s17632_s7 + $0x1e8] sm:$0xff]  ;;  %v10705_v41 = vld [vmem:[%s17632_s7 + $0x160] sm:$0xff] }
 0x5c1   : > { %12714 = vmatprep.subr.mxu0 %v17691_v13 }
 0x5db   : > { %v12619_v14 = vpop.f32.mrf.mxu0 }
 0x5dc   : > { %v12644_v48 = vpop.f32.mrf.mxu1 }
 0x5dd   : > { %v8880_v43 = vpop.f32.mrf.mxu0  ;;  %v8999_v39 = vadd.f32 %v12644_v48, %v12619_v14  ;;  %v9420_v14 = vld [vmem:[%s17632_s7 + $0x40] sm:$0xff] }
 0x5de   : > { %v8993_v60 = vpop.f32.mrf.mxu1  ;;  %12748 = vmatpush3.msra.mxu1 %v9420_v14  ;;  %v10704_v14 = vld [vmem:[%s17632_s7 + $0x158] sm:$0xff] }
 0x5df   : > { %v8994_v32 = vadd.f32 %v8993_v60, %v8880_v43  ;;  %12749 = vmatprep.subr.mxu1 %v17691_v13 }
 0x5e9   : > { %v12622_v12 = vpop.f32.mrf.mxu0 }
 0x5ea   : > { %v12647_v34 = vpop.f32.mrf.mxu1 }
 0x5eb   : > { %v8890_v11 = vpop.f32.mrf.mxu0  ;;  %v9009_v36 = vadd.f32 %v12647_v34, %v12622_v12 }
 0x5ec   : > { %v9003_v47 = vpop.f32.mrf.mxu1 }
 0x5ed   : > { %v12666_v15 = vpop.f32.mrf.mxu0  ;;  %v9004_v4 = vadd.f32 %v9003_v47, %v8890_v11  ;;  %v10684_v11 = vld [vmem:[%s17632_s7 + $0xb8] sm:$0xff] }
 0x5ee   : > { %v12691_v26 = vpop.f32.mrf.mxu1  ;;  %v9141_v2 = vadd.f32 %v12666_v15, %v8989_v57  ;;  %v9419_v47 = vld [vmem:[%s17632_s7 + $0x38] sm:$0xff]  ;;  %v10683_v57 = vld [vmem:[%s17632_s7 + $0xb0] sm:$0xff]  ;;  %12715 = vmatpush3.msra.mxu0 %v10684_v11  ;;  %v10701_v11 = vld [vmem:[%s17632_s7 + $0x140] sm:$0xff] }
 0x5ef   : > { %v9111_v59 = vpop.f32.mrf.mxu0  ;;  %12750 = vmatpush3.msra.mxu1 %v9419_v47  ;;  %12716 = vmatprep.subr.mxu0 %v17691_v13  ;;  %v10717_v47 = vld [vmem:[%s17632_s7 + $0x1c0] sm:$0xff] }
 0x5f0   : > { %v9245_v5 = vpop.f32.mrf.mxu1  ;;  %v9275_v46 = vadd.f32 %v12691_v26, %v9141_v2  ;;  %v9140_v22 = vadd.f32 %v9111_v59, %v8984_v19  ;;  %v9418_v19 = vld [vmem:[%s17632_s7 + $0x30] sm:$0xff]  ;;  %12751 = vmatprep.subr.mxu1 %v17691_v13  ;;  %12717 = vmatpush3.msra.mxu0 %v10683_v57  ;;  %v10682_v59 = vld [vmem:[%s17632_s7 + $0xa8] sm:$0xff]  ;;  %v10700_v57 = vld [vmem:[%s17632_s7 + $0x138] sm:$0xff] }
 0x5f1   : > { %v12669_v33 = vpop.f32.mrf.mxu0  ;;  %12752 = vmatpush3.msra.mxu1 %v9418_v19  ;;  %12718 = vmatprep.subr.mxu0 %v17691_v13  ;;  %v10715_v19 = vld [vmem:[%s17632_s7 + $0x1b0] sm:$0xff] }
 0x5f2   : > { %v9288_v23 = vadd.f32 %v10670_v25, %v9275_v46  ;;  %v9274_v53 = vadd.f32 %v9245_v5, %v9140_v22  ;;  %v9143_v17 = vadd.f32 %v12669_v33, %v8999_v39  ;;  %v12694_v37 = vpop.f32.mrf.mxu1  ;;  %12753 = vmatprep.subr.mxu1 %v17691_v13  ;;  %v9417_v5 = vld [vmem:[%s17632_s7 + $0x28] sm:$0xff]  ;;  %v10681_v39 = vld [vmem:[%s17632_s7 + $0xa0] sm:$0xff]  ;;  %12719 = vmatpush3.msra.mxu0 %v10682_v59 }
 0x5f3   : > { %v9121_v21 = vpop.f32.mrf.mxu0  ;;  %12754 = vmatpush3.msra.mxu1 %v9417_v5  ;;  %v9416_v22 = vld [vmem:[%s17632_s7 + $0x20] sm:$0xff]  ;;  %12720 = vmatprep.subr.mxu0 %v17691_v13 }
 0x5f4   : > { %v9300_v45 = vmin.f32 %v9288_v23, 0.0  ;;  %v9287_v7 = vadd.f32 %v10670_v25, %v9274_v53  ;;  %v9277_v18 = vadd.f32 %v12694_v37, %v9143_v17  ;;  %v9142_v9 = vadd.f32 %v9121_v21, %v8994_v32  ;;  %v9255_v28 = vpop.f32.mrf.mxu1  ;;  %12755 = vmatprep.subr.mxu1 %v17691_v13  ;;  %12721 = vmatpush3.msra.mxu0 %v10681_v39  ;;  %v10680_v21 = vld [vmem:[%s17632_s7 + $0x98] sm:$0xff]  ;;  %v10697_v59 = vld [vmem:[%s17632_s7 + $0x120] sm:$0xff] }
 0x5f5   : > { %vm9294_vm10 = vcmp.gt.f32.partialorder %v9288_v23, 0.0  ;;  %12756 = vmatpush3.msra.mxu1 %v9416_v22  ;;  %12722 = vmatprep.subr.mxu0 %v17691_v13  ;;  %v10713_v5 = vld [vmem:[%s17632_s7 + $0x1a0] sm:$0xff]  ;;  %v10696_v39 = vld [vmem:[%s17632_s7 + $0x118] sm:$0xff]  ;;  %v10695_v22 = vld [vmem:[%s17632_s7 + $0x110] sm:$0xff] }
 0x5f6   : > { %v9307_v50 = vmul.f32 1.442695, %v9300_v45  ;;  %v9299_v29 = vmin.f32 %v9287_v7, 0.0  ;;  %v9290_v30 = vadd.f32 %v10670_v25, %v9277_v18  ;;  %v9276_v24 = vadd.f32 %v9255_v28, %v9142_v9  ;;  %v9415_v45 = vld [vmem:[%s17632_s7 + $0x18] sm:$0xff]  ;;  %12757 = vmatprep.subr.mxu1 %v17691_v13  ;;  %12723 = vmatpush3.msra.mxu0 %v10680_v21  ;;  %v9414_v18 = vld [vmem:[%s17632_s7 + $0x10] sm:$0xff]  ;;  %v10678_v28 = vld [vmem:[%s17632_s7 + $0x88] sm:$0xff] }
 0x5f7   : > { %vm9293_vm11 = vcmp.gt.f32.partialorder %v9287_v7, 0.0  ;;  %12758 = vmatpush3.msra.mxu1 %v9415_v45  ;;  %12724 = vmatprep.subr.mxu0 %v17691_v13 }
 0x5f8   : > { %13157 = vpow2.f32 %v9307_v50  ;;  %v9305_v3 = vmul.f32 1.442695, %v9299_v29  ;;  %v9302_v52 = vmin.f32 %v9290_v30, 0.0  ;;  %v12672_v1 = vpop.f32.mrf.mxu0  ;;  %v9289_v55 = vadd.f32 %v10670_v25, %v9276_v24  ;;  %12759 = vmatprep.subr.mxu1 %v17691_v13 }
 0x5f9   : > { %v12697_v54 = vpop.f32.mrf.mxu1  ;;  %v9145_v35 = vadd.f32 %v12672_v1, %v9009_v36  ;;  %vm9296_vm13 = vcmp.gt.f32.partialorder %v9290_v30, 0.0  ;;  %12760 = vmatpush3.msra.mxu1 %v9414_v18  ;;  %v9413_v36 = vld [vmem:[%s17632_s7 + $0x8] sm:$0xff] }
 0x5fa   : > { %13159 = vpow2.f32 %v9305_v3  ;;  %v9311_v6 = vmul.f32 1.442695, %v9302_v52  ;;  %v9131_v49 = vpop.f32.mrf.mxu0  ;;  %v9301_v42 = vmin.f32 %v9289_v55, 0.0  ;;  %vm9295_vm15 = vcmp.gt.f32.partialorder %v9289_v55, 0.0  ;;  %12761 = vmatprep.subr.mxu1 %v17691_v13  ;;  %v10677_v3 = vld [vmem:[%s17632_s7 + $0x80] sm:$0xff] }
 0x5fb   : > { %v9279_v16 = vadd.f32 %v12697_v54, %v9145_v35  ;;  %v9144_v20 = vadd.f32 %v9131_v49, %v9004_v4  ;;  %v9265_v40 = vpop.f32.mrf.mxu1  ;;  %12762 = vmatpush3.msra.mxu1 %v9413_v36  ;;  %v9412_v52 = vld [vmem:[%s17632_s7] sm:$0xff] }
 0x5fc   : > { %13161 = vpow2.f32 %v9311_v6  ;;  %v9309_v27 = vmul.f32 1.442695, %v9301_v42  ;;  %12763 = vmatprep.subr.mxu1 %v17691_v13  ;;  %v10725_v36 = vld [vmem:[%s17633_s8] ss:$0 sm:$0xff] }
 0x5fd   : > { %v17377_v58 = vadd.f32 %v10670_v25, %v9279_v16  ;;  %v9278_v61 = vadd.f32 %v9265_v40, %v9144_v20  ;;  %12764 = vmatpush3.msra.mxu1 %v9412_v52 }
 0x5fe   : > { %13163 = vpow2.f32 %v9309_v27  ;;  %12803 = vmatprep.subr.mxu1 %v17691_v13 }
 0x5ff   : > { %v9304_v56 = vmin.f32 %v17377_v58, 0.0  ;;  %v17380_v10 = vadd.f32 %v10670_v25, %v9278_v61  ;;  %vm9298_vm9 = vcmp.gt.f32.partialorder %v17377_v58, 0.0 }
 0x601   : > { %v9315_v0 = vmul.f32 1.442695, %v9304_v56  ;;  %v9303_v38 = vmin.f32 %v17380_v10, 0.0  ;;  %vm9297_vm3 = vcmp.gt.f32.partialorder %v17380_v10, 0.0 }
 0x603   : > { %13165 = vpow2.f32 %v9315_v0  ;;  %v9313_v51 = vmul.f32 1.442695, %v9303_v38  ;;  %v10724_v0 = vld [vmem:[%s17632_s7 + $0x1f8] sm:$0xff] }
 0x605   : > { %v13158_v31 = vpop.eup %13157  ;;  %13167 = vpow2.f32 %v9313_v51 }
 0x606   : > { %v10672_v62 = vadd.f32 -1.0, %v13158_v31  ;;  %v10707_v31 = vld [vmem:[%s17632_s7 + $0x170] sm:$0xff] }
 0x607   : > { %v13160_v44 = vpop.eup %13159 }
 0x608   : > { %v9324_v48 = vsel %vm9294_vm10, %v9288_v23, %v10672_v62  ;;  %v10671_v43 = vadd.f32 -1.0, %v13160_v44  ;;  %v10723_v62 = vld [vmem:[%s17632_s7 + $0x1f0] sm:$0xff]  ;;  %v10721_v44 = vld [vmem:[%s17632_s7 + $0x1e0] sm:$0xff] }
 0x609   : > { %v13162_v60 = vpop.eup %13161  ;;  %9330 = vst.msk [vmem:[#allocation6 + $0x8] sm:$0xff] %vm7117_vm4, %v9324_v48  ;;  %v10720_v48 = vld [vmem:[%s17632_s7 + $0x1d8] sm:$0xff] }
 0x60a   : > { %v9323_v12 = vsel %vm9293_vm11, %v9287_v7, %v10671_v43  ;;  %v10674_v34 = vadd.f32 -1.0, %v13162_v60  ;;  %v10679_v7 = vld [vmem:[%s17632_s7 + $0x90] sm:$0xff] }
 0x60b   : > { %9329 = vst.msk [vmem:[#allocation6] sm:$0xff] %vm7117_vm4, %v9323_v12  ;;  %v13164_v15 = vpop.eup %13163  ;;  %12725 = vmatpush3.msra.mxu0 %v10679_v7  ;;  %v10703_v43 = vld [vmem:[%s17632_s7 + $0x150] sm:$0xff]  ;;  %v10702_v12 = vld [vmem:[%s17632_s7 + $0x148] sm:$0xff] }
 0x60c   : > { %v9326_v26 = vsel %vm9296_vm13, %v9290_v30, %v10674_v34  ;;  %v10673_v2 = vadd.f32 -1.0, %v13164_v15  ;;  %12726 = vmatprep.subr.mxu0 %v17691_v13  ;;  %v10719_v60 = vld [vmem:[%s17632_s7 + $0x1d0] sm:$0xff]  ;;  %v10718_v34 = vld [vmem:[%s17632_s7 + $0x1c8] sm:$0xff]  ;;  %v10716_v15 = vld [vmem:[%s17632_s7 + $0x1b8] sm:$0xff] }
 0x60d   : > { %9332 = vst.msk [vmem:[#allocation6 + $0x18] sm:$0xff] %vm7117_vm4, %v9326_v26  ;;  %12727 = vmatpush3.msra.mxu0 %v10678_v28  ;;  %v10699_v26 = vld [vmem:[%s17632_s7 + $0x130] sm:$0xff] }
 0x60e   : > { %v9325_v25 = vsel %vm9295_vm15, %v9289_v55, %v10673_v2  ;;  %12728 = vmatprep.subr.mxu0 %v17691_v13  ;;  %v10698_v2 = vld [vmem:[%s17632_s7 + $0x128] sm:$0xff] }
 0x60f   : > { %9331 = vst.msk [vmem:[#allocation6 + $0x10] sm:$0xff] %vm7117_vm4, %v9325_v25  ;;  %12729 = vmatpush3.msra.mxu0 %v10677_v3  ;;  %v10714_v25 = vld [vmem:[%s17632_s7 + $0x1a8] sm:$0xff] }
 0x610   : > { %v13166_v46 = vpop.eup %13165  ;;  %v9390_v24 = vld [vmem:[#allocation6 + $0x8] ss:$2 sm:$0x7]  ;;  %12768 = vmatprep.subr.mxu0 %v17691_v13 }
 0x611   : > { %v10676_v33 = vadd.f32 -1.0, %v13166_v46  ;;  %v10712_v46 = vld [vmem:[%s17632_s7 + $0x198] sm:$0xff] }
 0x612   : > { %v13168_v23 = vpop.eup %13167  ;;  %v9346_v53 = vld [vmem:[#allocation6 + $0x1] ss:$2 sm:$0x7]  ;;  %v9336_v32 = vld [vmem:[#allocation6] ss:$2 sm:$0x7] }
 0x613   : > { %v9328_v17 = vsel %vm9298_vm9, %v17377_v58, %v10676_v33  ;;  %v10675_v37 = vadd.f32 -1.0, %v13168_v23  ;;  %9348 = vrot.lane.b32.xlu1 %v9346_v53, %s13192_s24  ;;  %9338 = vst.msk [vmem:[#allocation7] sm:$0x7] %vm9337_vm8, %v9336_v32  ;;  %v9368_v50 = vld [vmem:[#allocation6 + $0x7] ss:$2 sm:$0x7] }
 0x614   : > { %9335 = vst.msk [vmem:[#allocation6 + $0x28] sm:$0x1] %vm9334_vm6, %v9328_v17  ;;  %v10711_v33 = vld [vmem:[%s17632_s7 + $0x190] sm:$0xff]  ;;  %v10694_v23 = vld [vmem:[%s17632_s7 + $0x108] sm:$0xff]  ;;  %v10693_v17 = vld [vmem:[%s17632_s7 + $0x100] sm:$0xff] }
 0x615   : > { %v9327_v9 = vsel %vm9297_vm3, %v17380_v10, %v10675_v37  ;;  %v10708_v10 = vld [vmem:[%s17632_s7 + $0x178] sm:$0xff]  ;;  %v10710_v53 = vld [vmem:[%s17632_s7 + $0x188] sm:$0xff]  ;;  %v10709_v37 = vld [vmem:[%s17632_s7 + $0x180] sm:$0xff] }
 0x616   : > { %9333 = vst.msk [vmem:[#allocation6 + $0x20] sm:$0xff] %vm7117_vm4, %v9327_v9  ;;  %v9354_v29 = vld [vmem:[#allocation6 + $0xf] ss:$2 sm:$0x7]  ;;  %vm9351_vm4 = vcmask 518400  }
 0x617   : > { %9370 = vrot.lane.b32.xlu1 %v9368_v50, %s13193_s25  ;;  %9356 = vrot.lane.b32.xlu0 %v9354_v29, %s13192_s24  ;;  %v9340_v30 = vld [vmem:[#allocation6 + $0xe] ss:$2 sm:$0x7]  ;;  %v9376_v1 = vld [vmem:[#allocation6 + $0x15] ss:$2 sm:$0x7] }
 0x618   : > { %9341 = vst.msk [vmem:[#allocation7 + $0x3] sm:$0x7] %vm9337_vm8, %v9340_v30  ;;  %v9398_v55 = vld [vmem:[#allocation6 + $0x16] ss:$2 sm:$0x7] }
 0x61b   : > { %9392 = vrot.lane.b32.xlu1 %v9390_v24, %s13194_s13  ;;  %9378 = vrot.lane.b32.xlu0 %v9376_v1, %s13193_s25 }
 0x61d   : > { %v9361_v54 = vld [vmem:[#allocation6 + $0x1d] ss:$2 sm:$0x7]  ;;  %v9343_v4 = vld [vmem:[#allocation6 + $0x1c] ss:$2 sm:$0x7] }
 0x61e   : > { %9344 = vst.msk [vmem:[#allocation7 + $0x6] sm:$0x7] %vm9337_vm8, %v9343_v4  ;;  %v9405_v35 = vld [vmem:[#allocation6 + $0x24] ss:$2 sm:$0x7] }
 0x61f   : > { %9363 = vrot.lane.b32.xlu1 %v9361_v54, %s13192_s24  ;;  %9400 = vrot.lane.b32.xlu0 %v9398_v55, %s13194_s13  ;;  %v9383_v6 = vld [vmem:[#allocation6 + $0x23] ss:$2 sm:$0x7] }
 0x623   : > { %9407 = vrot.lane.b32.xlu1 %v9405_v35, %s13194_s13  ;;  %9385 = vrot.lane.b32.xlu0 %v9383_v6, %s13193_s25  ;;  %s9842_s25 = sshll.u32 %s17801_s10, 2 }
 0x624   : > { %s330_s28 = scalar_lea.vmem %s17634_s9, %s9842_s25 }
 0x685   : > { %v9349_v49 = vpop.permute.xlu1 %9348 }
 0x686   : > { %9352 = vst.msk [vmem:[#allocation7] sm:$0x7] %vm9351_vm4, %v9349_v49 }
 0x689   : > { %v9371_v42 = vpop.permute.xlu1 %9370  ;;  %v9357_v16 = vpop.permute.xlu0 %9356 }
 0x68a   : > { %9374 = vst.msk [vmem:[#allocation7] sm:$0x7] %vm9373_vm1, %v9371_v42 }
 0x68b   : > { %9359 = vst.msk [vmem:[#allocation7 + $0x3] sm:$0x7] %vm9351_vm4, %v9357_v16 }
 0x68d   : > { %v9393_v20 = vpop.permute.xlu1 %9392  ;;  %v9379_v40 = vpop.permute.xlu0 %9378 }
 0x68e   : > { %9396 = vst.msk [vmem:[#allocation7] sm:$0x7] %vm9395_vm5, %v9393_v20 }
 0x68f   : > { %9381 = vst.msk [vmem:[#allocation7 + $0x3] sm:$0x7] %vm9373_vm1, %v9379_v40 }
 0x691   : > { %v9364_v27 = vpop.permute.xlu1 %9363  ;;  %v9401_v58 = vpop.permute.xlu0 %9400 }
 0x692   : > { %9366 = vst.msk [vmem:[#allocation7 + $0x6] sm:$0x7] %vm9351_vm4, %v9364_v27 }
 0x693   : > { %9403 = vst.msk [vmem:[#allocation7 + $0x3] sm:$0x7] %vm9395_vm5, %v9401_v58 }
 0x695   : > { %v9408_v61 = vpop.permute.xlu1 %9407  ;;  %v9386_v56 = vpop.permute.xlu0 %9385 }
 0x696   : > { %9388 = vst.msk [vmem:[#allocation7 + $0x6] sm:$0x7] %vm9373_vm1, %v9386_v56 }
 0x697   : > { %9410 = vst.msk [vmem:[#allocation7 + $0x6] sm:$0x7] %vm9395_vm5, %v9408_v61 }
 0x69a   : > { %v9428_v38 = vld [vmem:[#allocation7 + $0x1] sm:$0x1f] }
 0x69b   : > { %v9411_v51 = vld [vmem:[#allocation7] sm:$0x1f]  ;;  %12731 = vmatmul.mubr.f32.vlgmr.msra.gmra.mxu0 %v9428_v38 }
 0x69c   : > { %12766 = vmatmul.mubr.f32.vlgmr.msra.gmra.mxu1 %v9411_v51  ;;  %12769 = vmatpush3.msra.mxu0 %v10708_v10 }
 0x69d   : > { %12804 = vmatpush3.msra.mxu1 %v10724_v0  ;;  %12770 = vmatprep.subr.mxu0 %v17691_v13 }
 0x69e   : > { %12805 = vmatprep.subr.mxu1 %v17691_v13  ;;  %12771 = vmatpush3.msra.mxu0 %v10707_v31  ;;  %v9586_v32 = vld [vmem:[#allocation7 + $0x3] sm:$0x1f] }
 0x69f   : > { %12806 = vmatpush3.msra.mxu1 %v10723_v62  ;;  %12772 = vmatprep.subr.mxu0 %v17691_v13  ;;  %v9675_v21 = vld [vmem:[#allocation7 + $0x4] sm:$0x1f] }
 0x6a0   : > { %12807 = vmatprep.subr.mxu1 %v17691_v13  ;;  %12773 = vmatpush3.msra.mxu0 %v10706_v63 }
 0x6a1   : > { %12808 = vmatpush3.msra.mxu1 %v10722_v8  ;;  %12774 = vmatprep.subr.mxu0 %v17691_v13 }
 0x6a2   : > { %12809 = vmatprep.subr.mxu1 %v17691_v13  ;;  %12775 = vmatpush3.msra.mxu0 %v10705_v41 }
 0x6a3   : > { %12810 = vmatpush3.msra.mxu1 %v10721_v44  ;;  %12776 = vmatprep.subr.mxu0 %v17691_v13 }
 0x6a4   : > { %12811 = vmatprep.subr.mxu1 %v17691_v13  ;;  %12777 = vmatpush3.msra.mxu0 %v10704_v14 }
 0x6a5   : > { %12812 = vmatpush3.msra.mxu1 %v10720_v48  ;;  %12778 = vmatprep.subr.mxu0 %v17691_v13 }
 0x6a6   : > { %12813 = vmatprep.subr.mxu1 %v17691_v13  ;;  %12779 = vmatpush3.msra.mxu0 %v10703_v43 }
 0x6a7   : > { %12814 = vmatpush3.msra.mxu1 %v10719_v60  ;;  %12780 = vmatprep.subr.mxu0 %v17691_v13 }
 0x6a8   : > { %12815 = vmatprep.subr.mxu1 %v17691_v13  ;;  %12781 = vmatpush3.msra.mxu0 %v10702_v12 }
 0x6a9   : > { %12816 = vmatpush3.msra.mxu1 %v10718_v34  ;;  %12782 = vmatprep.subr.mxu0 %v17691_v13 }
 0x6aa   : > { %12817 = vmatprep.subr.mxu1 %v17691_v13  ;;  %12783 = vmatpush3.msra.mxu0 %v10701_v11 }
 0x6ab   : > { %12818 = vmatpush3.msra.mxu1 %v10717_v47  ;;  %12784 = vmatprep.subr.mxu0 %v17691_v13 }
 0x6ac   : > { %12819 = vmatprep.subr.mxu1 %v17691_v13  ;;  %12785 = vmatpush3.msra.mxu0 %v10700_v57 }
 0x6ad   : > { %12820 = vmatpush3.msra.mxu1 %v10716_v15  ;;  %12786 = vmatprep.subr.mxu0 %v17691_v13 }
 0x6ae   : > { %12821 = vmatprep.subr.mxu1 %v17691_v13  ;;  %12787 = vmatpush3.msra.mxu0 %v10699_v26 }
 0x6af   : > { %12822 = vmatpush3.msra.mxu1 %v10715_v19  ;;  %12788 = vmatprep.subr.mxu0 %v17691_v13 }
 0x6b0   : > { %12823 = vmatprep.subr.mxu1 %v17691_v13  ;;  %12789 = vmatpush3.msra.mxu0 %v10698_v2 }
 0x6b1   : > { %12824 = vmatpush3.msra.mxu1 %v10714_v25  ;;  %12790 = vmatprep.subr.mxu0 %v17691_v13 }
 0x6b2   : > { %12825 = vmatprep.subr.mxu1 %v17691_v13  ;;  %12791 = vmatpush3.msra.mxu0 %v10697_v59 }
 0x6b3   : > { %12826 = vmatpush3.msra.mxu1 %v10713_v5  ;;  %12792 = vmatprep.subr.mxu0 %v17691_v13 }
 0x6b4   : > { %12827 = vmatprep.subr.mxu1 %v17691_v13  ;;  %12793 = vmatpush3.msra.mxu0 %v10696_v39 }
 0x6b5   : > { %12828 = vmatpush3.msra.mxu1 %v10712_v46  ;;  %12794 = vmatprep.subr.mxu0 %v17691_v13 }
 0x6b6   : > { %12829 = vmatprep.subr.mxu1 %v17691_v13  ;;  %12795 = vmatpush3.msra.mxu0 %v10695_v22 }
 0x6b7   : > { %12830 = vmatpush3.msra.mxu1 %v10711_v33  ;;  %12796 = vmatprep.subr.mxu0 %v17691_v13 }
 0x6b8   : > { %12831 = vmatprep.subr.mxu1 %v17691_v13  ;;  %12797 = vmatpush3.msra.mxu0 %v10694_v23 }
 0x6b9   : > { %12832 = vmatpush3.msra.mxu1 %v10710_v53  ;;  %12798 = vmatprep.subr.mxu0 %v17691_v13 }
 0x6ba   : > { %12833 = vmatprep.subr.mxu1 %v17691_v13  ;;  %12799 = vmatpush3.msra.mxu0 %v10693_v17 }
 0x6bb   : > { %12800 = vmatprep.mubr.msk.f32.mxu0 %vm13190_vm0, %v17691_v13  ;;  %12834 = vmatpush3.msra.mxu1 %v10709_v37 }
 0x6bc   : > { %12835 = vmatprep.mubr.msk.f32.mxu1 %vm13190_vm0, %v17691_v13  ;;  %12801 = vmatmul.mubr.f32.vlgmr.msra.gmra.mxu0 %v9586_v32  ;;  %vm9778_vm0 = vcmask 517120  }
 0x6bd   : > { %12836 = vmatmul.mubr.f32.vlgmr.msra.gmra.mxu1 %v9675_v21 }
 0x75b   : > { %v9512_v45 = vpop.f32.mrf.mxu0 }
 0x75c   : > { %v9582_v7 = vpop.f32.mrf.mxu1 }
 0x75d   : > { %v12732_v18 = vpop.f32.mrf.mxu0  ;;  %v9583_v50 = vadd.f32 %v9582_v7, %v9512_v45 }
 0x75e   : > { %v12767_v9 = vpop.f32.mrf.mxu1 }
 0x77c   : > { %v9670_v29 = vpop.f32.mrf.mxu0 }
 0x77d   : > { %v9759_v30 = vpop.f32.mrf.mxu1  ;;  %v9674_v28 = vadd.f32 %v9670_v29, %v9583_v50 }
 0x77e   : > { %v12802_v24 = vpop.f32.mrf.mxu0 }
 0x77f   : > { %v12837_v3 = vpop.f32.mrf.mxu1  ;;  %v9763_v13 = vadd.f32 %v9759_v30, %v9674_v28 }
 0x781   : > { %v9771_v52 = vadd.f32 %v10725_v36, %v9763_v13 }
 0x783   : > { %v9773_v1 = vmin.f32 %v9771_v52, 0.0  ;;  %vm9772_vm2 = vcmp.gt.f32.partialorder %v9771_v52, 0.0 }
 0x785   : > { %v9774_v54 = vmul.f32 1.442695, %v9773_v1 }
 0x787   : > { %13169 = vpow2.f32 %v9774_v54 }
 0x794   : > { %v13170_v4 = vpop.eup %13169 }
 0x795   : > { %v10726_v55 = vadd.f32 -1.0, %v13170_v4 }
 0x797   : > { %v9777_v35 = vsel %vm9772_vm2, %v9771_v52, %v10726_v55 }
 0x798   : > { %9779 = vst.msk [vmem:[%s330_s28] sm:$0x3] %vm9778_vm0, %v9777_v35 }
 0x799   : > { %9781 = vst.msk [vmem:[%s330_s28 - $0x1] sm:$0x18] %vm9780_vm12, %v9777_v35 }
 0x79a PF: > { %s19_s30 = sadd.s32 1, %s13184_s30  }
 0x79b   : > { %p16_p4 = scmp.ge.s32.totalorder %s19_s30, 4  }
 0x79d   :  { %18 = sbr.rel (!%p16_p4) target bundleno = 1 (0x1), region = 255 }

</bundles_post_ra>
